<compile_context>
chip_gen: v7x
topology: tpu7x:2x2x1
jax: 0.10.0
libtpu: 0.0.40
codegen_flags: <defaults>
</compile_context>

<pallas_src>
import functools
import math

import jax
import jax.numpy as jnp
from jax.experimental import pallas as pl
from jax.experimental.pallas import tpu as pltpu


# ------------------------------------------------------------------ helpers
def _layer_norm(x, gamma, beta, eps=1e-5):
    mu = jnp.mean(x, axis=-1, keepdims=True)
    var = jnp.mean((x - mu) ** 2, axis=-1, keepdims=True)
    return (x - mu) * jax.lax.rsqrt(var + eps) * gamma + beta


def sinusoid_positional_embedding(seq_len, d_model):
    pos = jnp.arange(seq_len, dtype=jnp.float32)[:, None]
    i = jnp.arange(d_model // 2, dtype=jnp.float32)[None, :]
    angle = pos / jnp.power(10000.0, (2.0 * i) / float(d_model))
    pe = jnp.zeros((seq_len, d_model), jnp.float32)
    pe = pe.at[:, 0::2].set(jnp.sin(angle))
    pe = pe.at[:, 1::2].set(jnp.cos(angle))
    return pe[None]  # (1, S, D)


# ------------------------------------------------------------------ kernel
def encoder_stack_kernel(x_ref, pos_ref, mask_ref, ln0g_ref, ln0b_ref,
                         wqkv_ref, bqkv_ref, wo_ref, bo_ref, ln1g_ref, ln1b_ref,
                         w1_ref, b1_ref, w2_ref, b2_ref, ln2g_ref, ln2b_ref,
                         o_ref, act_ref, *, n_heads, has_mask):
    l = pl.program_id(1)
    n_layers = pl.num_programs(1)

    Bb, S, D = x_ref.shape
    H = n_heads
    dh = D // H

    # Fused prologue: act = LayerNorm(features) + pos_embedding (only at layer 0 of each
    # batch block; the activation then stays VMEM-resident across all layers).
    @pl.when(l == 0)
    def _():
        x0 = _layer_norm(x_ref[...], ln0g_ref[...], ln0b_ref[...]) + pos_ref[...]
        act_ref[...] = x0.reshape(Bb * S, D)

    x = act_ref[...]                       # (Bb*S, D) f32 activation
    xb = x.astype(jnp.bfloat16)

    # ---- fused QKV projection: one MXU matmul with N = 3D, single bias add.
    #      1/sqrt(dh) is already folded into the Q columns of wqkv/bqkv. ----
    qkv = jnp.dot(xb, wqkv_ref[0], preferred_element_type=jnp.float32) + bqkv_ref[0]

    if has_mask:
        mask = mask_ref[...]               # (Bb, 1, S) additive key mask (0 / -1e9)

    wo = wo_ref[0]                         # (D, D) bf16, loaded once per layer

    # ---- attention: lane-aligned per-head slices straight out of qkv (no stack/concat),
    #      head merge folded into the output projection accumulation. ----
    att = None
    for h in range(H):
        qh = qkv[:, h * dh:(h + 1) * dh].reshape(Bb, S, dh).astype(jnp.bfloat16)
        kh = qkv[:, D + h * dh:D + (h + 1) * dh].reshape(Bb, S, dh).astype(jnp.bfloat16)
        vh = qkv[:, 2 * D + h * dh:2 * D + (h + 1) * dh].reshape(Bb, S, dh).astype(jnp.bfloat16)

        s = jnp.einsum('bqd,bkd->bqk', qh, kh,
                       preferred_element_type=jnp.float32)          # (Bb, S, S) f32
        if has_mask:
            s = s + mask                                            # mask padded keys
        s = s - jnp.max(s, axis=-1, keepdims=True)
        p = jnp.exp(s)
        p = p * pl.reciprocal(jnp.sum(p, axis=-1, keepdims=True), approx=True)
        oh = jnp.einsum('bqk,bkd->bqd', p.astype(jnp.bfloat16), vh,
                        preferred_element_type=jnp.float32)          # (Bb, S, dh)

        contrib = jnp.dot(oh.reshape(Bb * S, dh).astype(jnp.bfloat16),
                          wo[h * dh:(h + 1) * dh, :],
                          preferred_element_type=jnp.float32)        # (Bb*S, D)
        att = contrib if att is None else att + contrib
    att = att + bo_ref[0]

    # residual + post-LN (MultiHeadAtt)
    y = _layer_norm(x + att, ln1g_ref[0], ln1b_ref[0])

    # PositionWiseFeedForward: Linear -> ReLU -> Linear, residual + post-LN
    h1 = jnp.maximum(
        jnp.dot(y.astype(jnp.bfloat16), w1_ref[0],
                preferred_element_type=jnp.float32) + b1_ref[0], 0.0)
    ff = jnp.dot(h1.astype(jnp.bfloat16), w2_ref[0],
                 preferred_element_type=jnp.float32) + b2_ref[0]
    new_x = _layer_norm(y + ff, ln2g_ref[0], ln2b_ref[0])

    act_ref[...] = new_x                   # carry activation to next layer in VMEM

    @pl.when(l == n_layers - 1)
    def _():
        o_ref[...] = new_x.reshape(Bb, S, D).astype(o_ref.dtype)   # one HBM writeback / block


# ------------------------------------------------------------------ wrapper
def uni_modal_encoder(features, padding_mask, params, *, batch_block=2):
    B, S, D = features.shape
    H = int(params["n_heads"])
    L = params["wqkv"].shape[0]
    Dff = params["w1"].shape[-1]

    # Batch blocking: largest divisor of B that is <= batch_block.  Amortizes the per-layer
    # weight DMA over Bb rows; the remaining B//Bb axis stays "parallel" (megacore).
    Bb = max(d for d in range(1, min(B, batch_block) + 1) if B % d == 0)
    NB = B // Bb

    pos = sinusoid_positional_embedding(S, D)
    has_mask = padding_mask is not None
    if has_mask:
        mask = jnp.where(padding_mask.reshape(B, 1, S), -1e9, 0.0).astype(jnp.float32)
    else:
        mask = jnp.zeros((B, 1, S), jnp.float32)   # never read (has_mask=False is static)

    kern = functools.partial(encoder_stack_kernel, n_heads=H, has_mask=has_mask)

    def batch_spec(shape):
        n = len(shape) - 1
        return pl.BlockSpec((Bb,) + tuple(shape[1:]),
                            lambda bb, l, _n=n: (bb,) + (0,) * _n)

    def const_spec(shape):
        n = len(shape)
        return pl.BlockSpec(tuple(shape), lambda bb, l, _n=n: (0,) * _n)

    def layer_spec(shape):
        n = len(shape) - 1
        return pl.BlockSpec((1,) + tuple(shape[1:]),
                            lambda bb, l, _n=n: (l,) + (0,) * _n)

    in_specs = [
        batch_spec((B, S, D)),                       # features
        const_spec((1, S, D)),                       # positional embedding
        batch_spec((B, 1, S)),                       # additive padding mask
        const_spec((1, D)), const_spec((1, D)),      # ln0 gamma / beta
        layer_spec(params["wqkv"].shape), layer_spec(params["bqkv"].shape),
        layer_spec(params["wo"].shape), layer_spec(params["bo"].shape),
        layer_spec(params["ln1g"].shape), layer_spec(params["ln1b"].shape),
        layer_spec(params["w1"].shape), layer_spec(params["b1"].shape),
        layer_spec(params["w2"].shape), layer_spec(params["b2"].shape),
        layer_spec(params["ln2g"].shape), layer_spec(params["ln2b"].shape),
    ]

    # ---- generation-aware VMEM budget (single-counted estimate, capped at 80% of physical) ----
    try:
        vmem_cap = int(pltpu.get_tpu_info().vmem_capacity_bytes)
    except Exception:
        vmem_cap = 64 * 2 ** 20                                   # conservative (v7x) fallback
    w_bytes = 2 * 2 * (D * 3 * D + D * D + 2 * D * Dff)           # bf16 layer weights, double-buffered
    p_bytes = 2 * 4 * (3 * D + D + Dff + D + 4 * D)               # f32 biases / LN params, double-buffered
    io_bytes = 2 * 4 * (2 * Bb * S * D + S * D + Bb * S)          # feat + out + pos + mask blocks, double-buffered
    live_bytes = 4 * (Bb * S * (D + 3 * D + Dff + 2 * D) + Bb * S * S + S * D)  # scratch + f32 intermediates
    need = w_bytes + p_bytes + io_bytes + live_bytes
    vmem_limit = int(min(0.8 * vmem_cap, max(32 * 2 ** 20, 2 * need)))

    return pl.pallas_call(
        kern,
        out_shape=jax.ShapeDtypeStruct((B, S, D), features.dtype),
        grid=(NB, L),
        in_specs=in_specs,
        out_specs=pl.BlockSpec((Bb, S, D), lambda bb, l: (bb, 0, 0)),
        scratch_shapes=[pltpu.VMEM((Bb * S, D), jnp.float32)],
        compiler_params=pltpu.CompilerParams(
            dimension_semantics=("parallel", "arbitrary"),
            vmem_limit_bytes=vmem_limit,
        ),
    )(features, pos, mask, params["ln0g"], params["ln0b"],
      params["wqkv"], params["bqkv"], params["wo"], params["bo"],
      params["ln1g"], params["ln1b"], params["w1"], params["b1"],
      params["w2"], params["b2"], params["ln2g"], params["ln2b"])


# ------------------------------------------------------------------ params
def init_params(key, d_model, d_ff, n_heads, n_layers):
    def dense(k, shape):
        return (0.02 * jax.random.normal(k, shape, jnp.float32)).astype(jnp.bfloat16)

    keys = jax.random.split(key, 4 * n_layers)
    wqkv, wo, w1, w2 = [], [], [], []
    for l in range(n_layers):
        kq, ko, k1, k2 = keys[4 * l:4 * l + 4]
        wqkv.append(dense(kq, (d_model, 3 * d_model)))   # fused Wq|Wk|Wv (unscaled)
        wo.append(dense(ko, (d_model, d_model)))
        w1.append(dense(k1, (d_model, d_ff)))
        w2.append(dense(k2, (d_ff, d_model)))

    L = n_layers
    return {
        "n_heads": n_heads,
        "ln0g": jnp.ones((1, d_model), jnp.float32),
        "ln0b": jnp.zeros((1, d_model), jnp.float32),
        "wqkv": jnp.stack(wqkv), "bqkv": jnp.zeros((L, 1, 3 * d_model), jnp.float32),
        "wo": jnp.stack(wo), "bo": jnp.zeros((L, 1, d_model), jnp.float32),
        "ln1g": jnp.ones((L, 1, d_model), jnp.float32),
        "ln1b": jnp.zeros((L, 1, d_model), jnp.float32),
        "w1": jnp.stack(w1), "b1": jnp.zeros((L, 1, d_ff), jnp.float32),
        "w2": jnp.stack(w2), "b2": jnp.zeros((L, 1, d_model), jnp.float32),
        "ln2g": jnp.ones((L, 1, d_model), jnp.float32),
        "ln2b": jnp.zeros((L, 1, d_model), jnp.float32),
    }


def prepare_encoder_params(params):
    """One-time parameter transform: fold 1/sqrt(dh) into the Q columns of wqkv / bqkv."""
    H = int(params["n_heads"])
    D = params["wqkv"].shape[1]
    dh = D // H
    scale = 1.0 / math.sqrt(dh)
    col_scale = jnp.concatenate([jnp.full((D,), scale, jnp.float32),
                                 jnp.ones((2 * D,), jnp.float32)])
    out = dict(params)
    out["wqkv"] = (params["wqkv"].astype(jnp.float32) * col_scale).astype(jnp.bfloat16)
    out["bqkv"] = params["bqkv"] * col_scale
    return out


# ------------------------------------------------------------------ pure-JAX reference
def uni_modal_encoder_ref(features, padding_mask, params):
    B, S, D = features.shape
    H = int(params["n_heads"])
    L = params["wqkv"].shape[0]
    dh = D // H
    pos = sinusoid_positional_embedding(S, D)
    if padding_mask is None:
        mask = jnp.zeros((B, 1, 1, S), jnp.float32)
    else:
        mask = jnp.where(padding_mask.reshape(B, 1, 1, S), -1e9, 0.0).astype(jnp.float32)

    x = _layer_norm(features, params["ln0g"], params["ln0b"]) + pos
    for l in range(L):
        xb = x.astype(jnp.bfloat16)
        qkv = jnp.einsum('bsd,de->bse', xb, params["wqkv"][l],
                         preferred_element_type=jnp.float32) + params["bqkv"][l]
        q = qkv[..., :D] / math.sqrt(dh)
        k, v = qkv[..., D:2 * D], qkv[..., 2 * D:]
        qh = q.reshape(B, S, H, dh).transpose(0, 2, 1, 3).astype(jnp.bfloat16)
        kh = k.reshape(B, S, H, dh).transpose(0, 2, 1, 3).astype(jnp.bfloat16)
        vh = v.reshape(B, S, H, dh).transpose(0, 2, 1, 3).astype(jnp.bfloat16)
        s = jnp.einsum('bhqd,bhkd->bhqk', qh, kh,
                       preferred_element_type=jnp.float32) + mask
        p = jax.nn.softmax(s, axis=-1)
        oh = jnp.einsum('bhqk,bhkd->bhqd', p.astype(jnp.bfloat16), vh,
                        preferred_element_type=jnp.float32)
        att = oh.transpose(0, 2, 1, 3).reshape(B, S, D)
        att = jnp.einsum('bsd,de->bse', att.astype(jnp.bfloat16), params["wo"][l],
                         preferred_element_type=jnp.float32) + params["bo"][l]
        y = _layer_norm(x + att, params["ln1g"][l], params["ln1b"][l])
        h1 = jnp.maximum(
            jnp.einsum('bsd,df->bsf', y.astype(jnp.bfloat16), params["w1"][l],
                       preferred_element_type=jnp.float32) + params["b1"][l], 0.0)
        ff = jnp.einsum('bsf,fd->bsd', h1.astype(jnp.bfloat16), params["w2"][l],
                        preferred_element_type=jnp.float32) + params["b2"][l]
        x = _layer_norm(y + ff, params["ln2g"][l], params["ln2b"][l])
    return x


# ------------------------------------------------------------------ main
if __name__ == "__main__":
    # Lane-friendly small config: d_model and head_dim are multiples of 128.
    # B=4 with Bb=2 gives a parallel grid axis of extent 2 (feeds both v7x TensorCores)
    # while still amortizing each layer-weight DMA over 2 batch rows.
    B, S, D, H, Dff, L = 4, 128, 256, 2, 512, 2
    key = jax.random.PRNGKey(0)
    k_feat, k_par = jax.random.split(key)
    features = jax.random.normal(k_feat, (B, S, D), jnp.float32)
    params = init_params(k_par, D, Dff, H, L)
    kparams = prepare_encoder_params(params)       # one-time Q-scale fold (not per-call)

    # no padding mask (static no-mask specialization)
    out = uni_modal_encoder(features, None, kparams)
    jax.block_until_ready(out)
    assert out.shape == (B, S, D)
    assert bool(jnp.isfinite(out).all())
    ref = uni_modal_encoder_ref(features, None, params)
    err = float(jnp.max(jnp.abs(out - ref)))
    assert err < 5e-2, f"mismatch vs reference (no mask): {err}"

    # padded keys: last 32 positions of every row are padding
    padding_mask = jnp.broadcast_to(jnp.arange(S)[None, :] >= (S - 32), (B, S))
    out_m = uni_modal_encoder(features, padding_mask, kparams)
    jax.block_until_ready(out_m)
    assert out_m.shape == (B, S, D)
    assert bool(jnp.isfinite(out_m).all())
    ref_m = uni_modal_encoder_ref(features, padding_mask, params)
    err_m = float(jnp.max(jnp.abs(out_m - ref_m)))
    assert err_m < 5e-2, f"mismatch vs reference (masked): {err_m}"

    print("KERNEL_OK")
</pallas_src>

<mosaic_0001>
module attributes {stable_mosaic.version = 11 : i64} {
  func.func @encoder_stack_kernel(%arg0: i32, %arg1: i32, %arg2: memref<2x128x256xf32, #tpu.memory_space<vmem>>, %arg3: memref<1x128x256xf32, #tpu.memory_space<vmem>>, %arg4: memref<2x1x128xf32, #tpu.memory_space<vmem>>, %arg5: memref<1x256xf32, #tpu.memory_space<vmem>>, %arg6: memref<1x256xf32, #tpu.memory_space<vmem>>, %arg7: memref<1x256x768xbf16, #tpu.memory_space<vmem>>, %arg8: memref<1x1x768xf32, #tpu.memory_space<vmem>>, %arg9: memref<1x256x256xbf16, #tpu.memory_space<vmem>>, %arg10: memref<1x1x256xf32, #tpu.memory_space<vmem>>, %arg11: memref<1x1x256xf32, #tpu.memory_space<vmem>>, %arg12: memref<1x1x256xf32, #tpu.memory_space<vmem>>, %arg13: memref<1x256x512xbf16, #tpu.memory_space<vmem>>, %arg14: memref<1x1x512xf32, #tpu.memory_space<vmem>>, %arg15: memref<1x512x256xbf16, #tpu.memory_space<vmem>>, %arg16: memref<1x1x256xf32, #tpu.memory_space<vmem>>, %arg17: memref<1x1x256xf32, #tpu.memory_space<vmem>>, %arg18: memref<1x1x256xf32, #tpu.memory_space<vmem>>, %arg19: memref<2x128x256xf32, #tpu.memory_space<vmem>>, %arg20: memref<256x256xf32, #tpu.memory_space<vmem>>) attributes {dimension_semantics = [#tpu.dimension_semantics<parallel>, #tpu.dimension_semantics<arbitrary>], iteration_bounds = array<i64: 2, 2>, scalar_prefetch = 0 : i64, scratch_operands = 1 : i64, tpu.core_type = #tpu.core_type<tc>, window_params = [{transform_indices = @transform_0, window_bounds = array<i64: 2, 128, 256>}, {pipeline_mode = #tpu.pipeline_mode<synchronous>, transform_indices = @transform_1, window_bounds = array<i64: 1, 128, 256>}, {transform_indices = @transform_2, window_bounds = array<i64: 2, 1, 128>}, {pipeline_mode = #tpu.pipeline_mode<synchronous>, transform_indices = @transform_3, window_bounds = array<i64: 1, 256>}, {pipeline_mode = #tpu.pipeline_mode<synchronous>, transform_indices = @transform_4, window_bounds = array<i64: 1, 256>}, {transform_indices = @transform_5, window_bounds = array<i64: 1, 256, 768>}, {transform_indices = @transform_6, window_bounds = array<i64: 1, 1, 768>}, {transform_indices = @transform_7, window_bounds = array<i64: 1, 256, 256>}, {transform_indices = @transform_8, window_bounds = array<i64: 1, 1, 256>}, {transform_indices = @transform_9, window_bounds = array<i64: 1, 1, 256>}, {transform_indices = @transform_10, window_bounds = array<i64: 1, 1, 256>}, {transform_indices = @transform_11, window_bounds = array<i64: 1, 256, 512>}, {transform_indices = @transform_12, window_bounds = array<i64: 1, 1, 512>}, {transform_indices = @transform_13, window_bounds = array<i64: 1, 512, 256>}, {transform_indices = @transform_14, window_bounds = array<i64: 1, 1, 256>}, {transform_indices = @transform_15, window_bounds = array<i64: 1, 1, 256>}, {transform_indices = @transform_16, window_bounds = array<i64: 1, 1, 256>}, {transform_indices = @transform_17, window_bounds = array<i64: 2, 128, 256>}]} {
    %c0_i32 = arith.constant 0 : i32
    %0 = arith.cmpi eq, %arg1, %c0_i32 : i32
    %1 = arith.extui %0 : i1 to i32
    %c0_i32_0 = arith.constant 0 : i32
    %2 = arith.cmpi ne, %1, %c0_i32_0 : i32
    scf.if %2 {
      %c0_64 = arith.constant 0 : index
      %c0_65 = arith.constant 0 : index
      %c0_66 = arith.constant 0 : index
      %147 = vector.load %arg2[%c0_64, %c0_65, %c0_66] : memref<2x128x256xf32, #tpu.memory_space<vmem>>, vector<2x128x256xf32>
      %c0_67 = arith.constant 0 : index
      %c0_68 = arith.constant 0 : index
      %148 = vector.load %arg5[%c0_67, %c0_68] : memref<1x256xf32, #tpu.memory_space<vmem>>, vector<1x256xf32>
      %c0_69 = arith.constant 0 : index
      %c0_70 = arith.constant 0 : index
      %149 = vector.load %arg6[%c0_69, %c0_70] : memref<1x256xf32, #tpu.memory_space<vmem>>, vector<1x256xf32>
      %cst_71 = arith.constant dense<0.000000e+00> : vector<2x128xf32>
      %150 = vector.multi_reduction <add>, %147, %cst_71 [2] : vector<2x128x256xf32> to vector<2x128xf32>
      %151 = vector.shape_cast %150 : vector<2x128xf32> to vector<2x128x1xf32>
      %cst_72 = arith.constant 2.560000e+02 : f32
      %152 = vector.broadcast %cst_72 : f32 to vector<2x128x1xf32>
      %153 = arith.divf %151, %152 : vector<2x128x1xf32>
      %154 = vector.broadcast %153 : vector<2x128x1xf32> to vector<2x128x256xf32>
      %155 = arith.subf %147, %154 : vector<2x128x256xf32>
      %156 = arith.mulf %155, %155 : vector<2x128x256xf32>
      %cst_73 = arith.constant dense<0.000000e+00> : vector<2x128xf32>
      %157 = vector.multi_reduction <add>, %156, %cst_73 [2] : vector<2x128x256xf32> to vector<2x128xf32>
      %158 = vector.shape_cast %157 : vector<2x128xf32> to vector<2x128x1xf32>
      %cst_74 = arith.constant 2.560000e+02 : f32
      %159 = vector.broadcast %cst_74 : f32 to vector<2x128x1xf32>
      %160 = arith.divf %158, %159 : vector<2x128x1xf32>
      %161 = vector.broadcast %153 : vector<2x128x1xf32> to vector<2x128x256xf32>
      %162 = arith.subf %147, %161 : vector<2x128x256xf32>
      %cst_75 = arith.constant 9.99999974E-6 : f32
      %163 = vector.broadcast %cst_75 : f32 to vector<2x128x1xf32>
      %164 = arith.addf %160, %163 : vector<2x128x1xf32>
      %165 = math.rsqrt %164 : vector<2x128x1xf32>
      %166 = vector.broadcast %165 : vector<2x128x1xf32> to vector<2x128x256xf32>
      %167 = arith.mulf %162, %166 : vector<2x128x256xf32>
      %168 = vector.shape_cast %148 : vector<1x256xf32> to vector<1x1x256xf32>
      %169 = vector.broadcast %168 : vector<1x1x256xf32> to vector<2x128x256xf32>
      %170 = arith.mulf %167, %169 : vector<2x128x256xf32>
      %171 = vector.shape_cast %149 : vector<1x256xf32> to vector<1x1x256xf32>
      %172 = vector.broadcast %171 : vector<1x1x256xf32> to vector<2x128x256xf32>
      %173 = arith.addf %170, %172 : vector<2x128x256xf32>
      %c0_76 = arith.constant 0 : index
      %c0_77 = arith.constant 0 : index
      %c0_78 = arith.constant 0 : index
      %174 = vector.load %arg3[%c0_76, %c0_77, %c0_78] : memref<1x128x256xf32, #tpu.memory_space<vmem>>, vector<1x128x256xf32>
      %175 = vector.broadcast %174 : vector<1x128x256xf32> to vector<2x128x256xf32>
      %176 = arith.addf %173, %175 : vector<2x128x256xf32>
      %177 = vector.shape_cast %176 : vector<2x128x256xf32> to vector<256x256xf32>
      %c0_79 = arith.constant 0 : index
      %c0_80 = arith.constant 0 : index
      %178 = vector.load %arg20[%c0_79, %c0_80] : memref<256x256xf32, #tpu.memory_space<vmem>>, vector<256x256xf32>
      tpu.vector_store %arg20[%c0_79, %c0_80], %177 {strides = array<i32>} : memref<256x256xf32, #tpu.memory_space<vmem>>, vector<256x256xf32>,
    } else {
    }
    %c0 = arith.constant 0 : index
    %c0_1 = arith.constant 0 : index
    %3 = vector.load %arg20[%c0, %c0_1] : memref<256x256xf32, #tpu.memory_space<vmem>>, vector<256x256xf32>
    %4 = arith.truncf %3 : vector<256x256xf32> to vector<256x256xbf16>
    %c0_2 = arith.constant 0 : index
    %c0_3 = arith.constant 0 : index
    %c0_4 = arith.constant 0 : index
    %5 = vector.load %arg7[%c0_2, %c0_3, %c0_4] : memref<1x256x768xbf16, #tpu.memory_space<vmem>>, vector<1x256x768xbf16>
    %6 = vector.shape_cast %5 : vector<1x256x768xbf16> to vector<256x768xbf16>
    %cst = arith.constant dense<0.000000e+00> : vector<256x768xf32>
    %7 = tpu.matmul %4, %6, %cst {dimension_numbers = #tpu.dot_dimension_numbers<[1], [0], [0], [1], [0, 0, 1, 1], [], []>} : vector<256x256xbf16>, vector<256x768xbf16>, vector<256x768xf32> -> vector<256x768xf32>
    %c0_5 = arith.constant 0 : index
    %c0_6 = arith.constant 0 : index
    %c0_7 = arith.constant 0 : index
    %8 = vector.load %arg8[%c0_5, %c0_6, %c0_7] : memref<1x1x768xf32, #tpu.memory_space<vmem>>, vector<1x1x768xf32>
    %9 = vector.shape_cast %8 : vector<1x1x768xf32> to vector<1x768xf32>
    %10 = vector.broadcast %9 : vector<1x768xf32> to vector<256x768xf32>
    %11 = arith.addf %7, %10 : vector<256x768xf32>
    %c0_8 = arith.constant 0 : index
    %c0_9 = arith.constant 0 : index
    %c0_10 = arith.constant 0 : index
    %12 = vector.load %arg9[%c0_8, %c0_9, %c0_10] : memref<1x256x256xbf16, #tpu.memory_space<vmem>>, vector<1x256x256xbf16>
    %13 = vector.shape_cast %12 : vector<1x256x256xbf16> to vector<256x256xbf16>
    %14 = vector.extract_strided_slice %11 {offsets = [0, 0], sizes = [256, 128], strides = [1, 1]} : vector<256x768xf32> to vector<256x128xf32>
    %15 = vector.shape_cast %14 : vector<256x128xf32> to vector<2x128x128xf32>
    %16 = arith.truncf %15 : vector<2x128x128xf32> to vector<2x128x128xbf16>
    %17 = vector.extract_strided_slice %11 {offsets = [0, 256], sizes = [256, 128], strides = [1, 1]} : vector<256x768xf32> to vector<256x128xf32>
    %18 = vector.shape_cast %17 : vector<256x128xf32> to vector<2x128x128xf32>
    %19 = arith.truncf %18 : vector<2x128x128xf32> to vector<2x128x128xbf16>
    %20 = vector.extract_strided_slice %11 {offsets = [0, 512], sizes = [256, 128], strides = [1, 1]} : vector<256x768xf32> to vector<256x128xf32>
    %21 = vector.shape_cast %20 : vector<256x128xf32> to vector<2x128x128xf32>
    %22 = arith.truncf %21 : vector<2x128x128xf32> to vector<2x128x128xbf16>
    "tpu.trace_start"() <{level = 10 : i32, message = "bqd,bkd->bqk"}> : () -> ()
    %cst_11 = arith.constant dense<0.000000e+00> : vector<2x128x128xf32>
    %23 = tpu.matmul %16, %19, %cst_11 {dimension_numbers = #tpu.dot_dimension_numbers<[2], [2], [1], [1], [0, 0, 0, 1, 1, 1], [0], [0]>} : vector<2x128x128xbf16>, vector<2x128x128xbf16>, vector<2x128x128xf32> -> vector<2x128x128xf32>
    "tpu.trace_stop"() : () -> ()
    %cst_12 = arith.constant dense<0xFF800000> : vector<2x128xf32>
    %24 = vector.multi_reduction <maximumf>, %23, %cst_12 [2] : vector<2x128x128xf32> to vector<2x128xf32>
    %25 = vector.shape_cast %24 : vector<2x128xf32> to vector<2x128x1xf32>
    %26 = vector.broadcast %25 : vector<2x128x1xf32> to vector<2x128x128xf32>
    %27 = arith.subf %23, %26 : vector<2x128x128xf32>
    %28 = math.exp %27 : vector<2x128x128xf32>
    %cst_13 = arith.constant dense<0.000000e+00> : vector<2x128xf32>
    %29 = vector.multi_reduction <add>, %28, %cst_13 [2] : vector<2x128x128xf32> to vector<2x128xf32>
    %30 = vector.shape_cast %29 : vector<2x128xf32> to vector<2x128x1xf32>
    %31 = tpu.reciprocal %30 {approx = true} : vector<2x128x1xf32> -> vector<2x128x1xf32>
    %32 = vector.broadcast %31 : vector<2x128x1xf32> to vector<2x128x128xf32>
    %33 = arith.mulf %28, %32 : vector<2x128x128xf32>
    %34 = arith.truncf %33 : vector<2x128x128xf32> to vector<2x128x128xbf16>
    "tpu.trace_start"() <{level = 10 : i32, message = "bqk,bkd->bqd"}> : () -> ()
    %cst_14 = arith.constant dense<0.000000e+00> : vector<2x128x128xf32>
    %35 = tpu.matmul %34, %22, %cst_14 {dimension_numbers = #tpu.dot_dimension_numbers<[2], [1], [1], [2], [0, 0, 0, 1, 1, 2], [0], [0]>} : vector<2x128x128xbf16>, vector<2x128x128xbf16>, vector<2x128x128xf32> -> vector<2x128x128xf32>
    "tpu.trace_stop"() : () -> ()
    %36 = vector.shape_cast %35 : vector<2x128x128xf32> to vector<256x128xf32>
    %37 = arith.truncf %36 : vector<256x128xf32> to vector<256x128xbf16>
    %38 = vector.extract_strided_slice %13 {offsets = [0, 0], sizes = [128, 256], strides = [1, 1]} : vector<256x256xbf16> to vector<128x256xbf16>
    %cst_15 = arith.constant dense<0.000000e+00> : vector<256x256xf32>
    %39 = tpu.matmul %37, %38, %cst_15 {dimension_numbers = #tpu.dot_dimension_numbers<[1], [0], [0], [1], [0, 0, 1, 1], [], []>} : vector<256x128xbf16>, vector<128x256xbf16>, vector<256x256xf32> -> vector<256x256xf32>
    %40 = vector.extract_strided_slice %11 {offsets = [0, 128], sizes = [256, 128], strides = [1, 1]} : vector<256x768xf32> to vector<256x128xf32>
    %41 = vector.shape_cast %40 : vector<256x128xf32> to vector<2x128x128xf32>
    %42 = arith.truncf %41 : vector<2x128x128xf32> to vector<2x128x128xbf16>
    %43 = vector.extract_strided_slice %11 {offsets = [0, 384], sizes = [256, 128], strides = [1, 1]} : vector<256x768xf32> to vector<256x128xf32>
    %44 = vector.shape_cast %43 : vector<256x128xf32> to vector<2x128x128xf32>
    %45 = arith.truncf %44 : vector<2x128x128xf32> to vector<2x128x128xbf16>
    %46 = vector.extract_strided_slice %11 {offsets = [0, 640], sizes = [256, 128], strides = [1, 1]} : vector<256x768xf32> to vector<256x128xf32>
    %47 = vector.shape_cast %46 : vector<256x128xf32> to vector<2x128x128xf32>
    %48 = arith.truncf %47 : vector<2x128x128xf32> to vector<2x128x128xbf16>
    "tpu.trace_start"() <{level = 10 : i32, message = "bqd,bkd->bqk"}> : () -> ()
    %cst_16 = arith.constant dense<0.000000e+00> : vector<2x128x128xf32>
    %49 = tpu.matmul %42, %45, %cst_16 {dimension_numbers = #tpu.dot_dimension_numbers<[2], [2], [1], [1], [0, 0, 0, 1, 1, 1], [0], [0]>} : vector<2x128x128xbf16>, vector<2x128x128xbf16>, vector<2x128x128xf32> -> vector<2x128x128xf32>
    "tpu.trace_stop"() : () -> ()
    %cst_17 = arith.constant dense<0xFF800000> : vector<2x128xf32>
    %50 = vector.multi_reduction <maximumf>, %49, %cst_17 [2] : vector<2x128x128xf32> to vector<2x128xf32>
    %51 = vector.shape_cast %50 : vector<2x128xf32> to vector<2x128x1xf32>
    %52 = vector.broadcast %51 : vector<2x128x1xf32> to vector<2x128x128xf32>
    %53 = arith.subf %49, %52 : vector<2x128x128xf32>
    %54 = math.exp %53 : vector<2x128x128xf32>
    %cst_18 = arith.constant dense<0.000000e+00> : vector<2x128xf32>
    %55 = vector.multi_reduction <add>, %54, %cst_18 [2] : vector<2x128x128xf32> to vector<2x128xf32>
    %56 = vector.shape_cast %55 : vector<2x128xf32> to vector<2x128x1xf32>
    %57 = tpu.reciprocal %56 {approx = true} : vector<2x128x1xf32> -> vector<2x128x1xf32>
    %58 = vector.broadcast %57 : vector<2x128x1xf32> to vector<2x128x128xf32>
    %59 = arith.mulf %54, %58 : vector<2x128x128xf32>
    %60 = arith.truncf %59 : vector<2x128x128xf32> to vector<2x128x128xbf16>
    "tpu.trace_start"() <{level = 10 : i32, message = "bqk,bkd->bqd"}> : () -> ()
    %cst_19 = arith.constant dense<0.000000e+00> : vector<2x128x128xf32>
    %61 = tpu.matmul %60, %48, %cst_19 {dimension_numbers = #tpu.dot_dimension_numbers<[2], [1], [1], [2], [0, 0, 0, 1, 1, 2], [0], [0]>} : vector<2x128x128xbf16>, vector<2x128x128xbf16>, vector<2x128x128xf32> -> vector<2x128x128xf32>
    "tpu.trace_stop"() : () -> ()
    %62 = vector.shape_cast %61 : vector<2x128x128xf32> to vector<256x128xf32>
    %63 = arith.truncf %62 : vector<256x128xf32> to vector<256x128xbf16>
    %64 = vector.extract_strided_slice %13 {offsets = [128, 0], sizes = [128, 256], strides = [1, 1]} : vector<256x256xbf16> to vector<128x256xbf16>
    %cst_20 = arith.constant dense<0.000000e+00> : vector<256x256xf32>
    %65 = tpu.matmul %63, %64, %cst_20 {dimension_numbers = #tpu.dot_dimension_numbers<[1], [0], [0], [1], [0, 0, 1, 1], [], []>} : vector<256x128xbf16>, vector<128x256xbf16>, vector<256x256xf32> -> vector<256x256xf32>
    %66 = arith.addf %39, %65 : vector<256x256xf32>
    %c0_21 = arith.constant 0 : index
    %c0_22 = arith.constant 0 : index
    %c0_23 = arith.constant 0 : index
    %67 = vector.load %arg10[%c0_21, %c0_22, %c0_23] : memref<1x1x256xf32, #tpu.memory_space<vmem>>, vector<1x1x256xf32>
    %68 = vector.shape_cast %67 : vector<1x1x256xf32> to vector<1x256xf32>
    %69 = vector.broadcast %68 : vector<1x256xf32> to vector<256x256xf32>
    %70 = arith.addf %66, %69 : vector<256x256xf32>
    %71 = arith.addf %3, %70 : vector<256x256xf32>
    %c0_24 = arith.constant 0 : index
    %c0_25 = arith.constant 0 : index
    %c0_26 = arith.constant 0 : index
    %72 = vector.load %arg11[%c0_24, %c0_25, %c0_26] : memref<1x1x256xf32, #tpu.memory_space<vmem>>, vector<1x1x256xf32>
    %73 = vector.shape_cast %72 : vector<1x1x256xf32> to vector<1x256xf32>
    %c0_27 = arith.constant 0 : index
    %c0_28 = arith.constant 0 : index
    %c0_29 = arith.constant 0 : index
    %74 = vector.load %arg12[%c0_27, %c0_28, %c0_29] : memref<1x1x256xf32, #tpu.memory_space<vmem>>, vector<1x1x256xf32>
    %75 = vector.shape_cast %74 : vector<1x1x256xf32> to vector<1x256xf32>
    %cst_30 = arith.constant dense<0.000000e+00> : vector<256xf32>
    %76 = vector.multi_reduction <add>, %71, %cst_30 [1] : vector<256x256xf32> to vector<256xf32>
    %77 = vector.shape_cast %76 : vector<256xf32> to vector<256x1xf32>
    %cst_31 = arith.constant 2.560000e+02 : f32
    %78 = vector.broadcast %cst_31 : f32 to vector<256x1xf32>
    %79 = arith.divf %77, %78 : vector<256x1xf32>
    %80 = vector.broadcast %79 : vector<256x1xf32> to vector<256x256xf32>
    %81 = arith.subf %71, %80 : vector<256x256xf32>
    %82 = arith.mulf %81, %81 : vector<256x256xf32>
    %cst_32 = arith.constant dense<0.000000e+00> : vector<256xf32>
    %83 = vector.multi_reduction <add>, %82, %cst_32 [1] : vector<256x256xf32> to vector<256xf32>
    %84 = vector.shape_cast %83 : vector<256xf32> to vector<256x1xf32>
    %cst_33 = arith.constant 2.560000e+02 : f32
    %85 = vector.broadcast %cst_33 : f32 to vector<256x1xf32>
    %86 = arith.divf %84, %85 : vector<256x1xf32>
    %87 = vector.broadcast %79 : vector<256x1xf32> to vector<256x256xf32>
    %88 = arith.subf %71, %87 : vector<256x256xf32>
    %cst_34 = arith.constant 9.99999974E-6 : f32
    %89 = vector.broadcast %cst_34 : f32 to vector<256x1xf32>
    %90 = arith.addf %86, %89 : vector<256x1xf32>
    %91 = math.rsqrt %90 : vector<256x1xf32>
    %92 = vector.broadcast %91 : vector<256x1xf32> to vector<256x256xf32>
    %93 = arith.mulf %88, %92 : vector<256x256xf32>
    %94 = vector.broadcast %73 : vector<1x256xf32> to vector<256x256xf32>
    %95 = arith.mulf %93, %94 : vector<256x256xf32>
    %96 = vector.broadcast %75 : vector<1x256xf32> to vector<256x256xf32>
    %97 = arith.addf %95, %96 : vector<256x256xf32>
    %98 = arith.truncf %97 : vector<256x256xf32> to vector<256x256xbf16>
    %c0_35 = arith.constant 0 : index
    %c0_36 = arith.constant 0 : index
    %c0_37 = arith.constant 0 : index
    %99 = vector.load %arg13[%c0_35, %c0_36, %c0_37] : memref<1x256x512xbf16, #tpu.memory_space<vmem>>, vector<1x256x512xbf16>
    %100 = vector.shape_cast %99 : vector<1x256x512xbf16> to vector<256x512xbf16>
    %cst_38 = arith.constant dense<0.000000e+00> : vector<256x512xf32>
    %101 = tpu.matmul %98, %100, %cst_38 {dimension_numbers = #tpu.dot_dimension_numbers<[1], [0], [0], [1], [0, 0, 1, 1], [], []>} : vector<256x256xbf16>, vector<256x512xbf16>, vector<256x512xf32> -> vector<256x512xf32>
    %c0_39 = arith.constant 0 : index
    %c0_40 = arith.constant 0 : index
    %c0_41 = arith.constant 0 : index
    %102 = vector.load %arg14[%c0_39, %c0_40, %c0_41] : memref<1x1x512xf32, #tpu.memory_space<vmem>>, vector<1x1x512xf32>
    %103 = vector.shape_cast %102 : vector<1x1x512xf32> to vector<1x512xf32>
    %104 = vector.broadcast %103 : vector<1x512xf32> to vector<256x512xf32>
    %105 = arith.addf %101, %104 : vector<256x512xf32>
    %cst_42 = arith.constant 0.000000e+00 : f32
    %106 = vector.broadcast %cst_42 : f32 to vector<256x512xf32>
    %107 = arith.maximumf %105, %106 : vector<256x512xf32>
    %108 = arith.truncf %107 : vector<256x512xf32> to vector<256x512xbf16>
    %c0_43 = arith.constant 0 : index
    %c0_44 = arith.constant 0 : index
    %c0_45 = arith.constant 0 : index
    %109 = vector.load %arg15[%c0_43, %c0_44, %c0_45] : memref<1x512x256xbf16, #tpu.memory_space<vmem>>, vector<1x512x256xbf16>
    %110 = vector.shape_cast %109 : vector<1x512x256xbf16> to vector<512x256xbf16>
    %cst_46 = arith.constant dense<0.000000e+00> : vector<256x256xf32>
    %111 = tpu.matmul %108, %110, %cst_46 {dimension_numbers = #tpu.dot_dimension_numbers<[1], [0], [0], [1], [0, 0, 1, 1], [], []>} : vector<256x512xbf16>, vector<512x256xbf16>, vector<256x256xf32> -> vector<256x256xf32>
    %c0_47 = arith.constant 0 : index
    %c0_48 = arith.constant 0 : index
    %c0_49 = arith.constant 0 : index
    %112 = vector.load %arg16[%c0_47, %c0_48, %c0_49] : memref<1x1x256xf32, #tpu.memory_space<vmem>>, vector<1x1x256xf32>
    %113 = vector.shape_cast %112 : vector<1x1x256xf32> to vector<1x256xf32>
    %114 = vector.broadcast %113 : vector<1x256xf32> to vector<256x256xf32>
    %115 = arith.addf %111, %114 : vector<256x256xf32>
    %116 = arith.addf %97, %115 : vector<256x256xf32>
    %c0_50 = arith.constant 0 : index
    %c0_51 = arith.constant 0 : index
    %c0_52 = arith.constant 0 : index
    %117 = vector.load %arg17[%c0_50, %c0_51, %c0_52] : memref<1x1x256xf32, #tpu.memory_space<vmem>>, vector<1x1x256xf32>
    %118 = vector.shape_cast %117 : vector<1x1x256xf32> to vector<1x256xf32>
    %c0_53 = arith.constant 0 : index
    %c0_54 = arith.constant 0 : index
    %c0_55 = arith.constant 0 : index
    %119 = vector.load %arg18[%c0_53, %c0_54, %c0_55] : memref<1x1x256xf32, #tpu.memory_space<vmem>>, vector<1x1x256xf32>
    %120 = vector.shape_cast %119 : vector<1x1x256xf32> to vector<1x256xf32>
    %cst_56 = arith.constant dense<0.000000e+00> : vector<256xf32>
    %121 = vector.multi_reduction <add>, %116, %cst_56 [1] : vector<256x256xf32> to vector<256xf32>
    %122 = vector.shape_cast %121 : vector<256xf32> to vector<256x1xf32>
    %cst_57 = arith.constant 2.560000e+02 : f32
    %123 = vector.broadcast %cst_57 : f32 to vector<256x1xf32>
    %124 = arith.divf %122, %123 : vector<256x1xf32>
    %125 = vector.broadcast %124 : vector<256x1xf32> to vector<256x256xf32>
    %126 = arith.subf %116, %125 : vector<256x256xf32>
    %127 = arith.mulf %126, %126 : vector<256x256xf32>
    %cst_58 = arith.constant dense<0.000000e+00> : vector<256xf32>
    %128 = vector.multi_reduction <add>, %127, %cst_58 [1] : vector<256x256xf32> to vector<256xf32>
    %129 = vector.shape_cast %128 : vector<256xf32> to vector<256x1xf32>
    %cst_59 = arith.constant 2.560000e+02 : f32
    %130 = vector.broadcast %cst_59 : f32 to vector<256x1xf32>
    %131 = arith.divf %129, %130 : vector<256x1xf32>
    %132 = vector.broadcast %124 : vector<256x1xf32> to vector<256x256xf32>
    %133 = arith.subf %116, %132 : vector<256x256xf32>
    %cst_60 = arith.constant 9.99999974E-6 : f32
    %134 = vector.broadcast %cst_60 : f32 to vector<256x1xf32>
    %135 = arith.addf %131, %134 : vector<256x1xf32>
    %136 = math.rsqrt %135 : vector<256x1xf32>
    %137 = vector.broadcast %136 : vector<256x1xf32> to vector<256x256xf32>
    %138 = arith.mulf %133, %137 : vector<256x256xf32>
    %139 = vector.broadcast %118 : vector<1x256xf32> to vector<256x256xf32>
    %140 = arith.mulf %138, %139 : vector<256x256xf32>
    %141 = vector.broadcast %120 : vector<1x256xf32> to vector<256x256xf32>
    %142 = arith.addf %140, %141 : vector<256x256xf32>
    %c0_61 = arith.constant 0 : index
    %c0_62 = arith.constant 0 : index
    %143 = vector.load %arg20[%c0_61, %c0_62] : memref<256x256xf32, #tpu.memory_space<vmem>>, vector<256x256xf32>
    tpu.vector_store %arg20[%c0_61, %c0_62], %142 {strides = array<i32>} : memref<256x256xf32, #tpu.memory_space<vmem>>, vector<256x256xf32>,
    %c1_i32 = arith.constant 1 : i32
    %144 = arith.cmpi eq, %arg1, %c1_i32 : i32
    %145 = arith.extui %144 : i1 to i32
    %c0_i32_63 = arith.constant 0 : i32
    %146 = arith.cmpi ne, %145, %c0_i32_63 : i32
    scf.if %146 {
      %147 = vector.shape_cast %142 : vector<256x256xf32> to vector<2x128x256xf32>
      %c0_64 = arith.constant 0 : index
      %c0_65 = arith.constant 0 : index
      %c0_66 = arith.constant 0 : index
      %148 = vector.load %arg19[%c0_64, %c0_65, %c0_66] : memref<2x128x256xf32, #tpu.memory_space<vmem>>, vector<2x128x256xf32>
      tpu.vector_store %arg19[%c0_64, %c0_65, %c0_66], %147 {strides = array<i32>} : memref<2x128x256xf32, #tpu.memory_space<vmem>>, vector<2x128x256xf32>,
    } else {
    }
    return
  }
  func.func @transform_0(%arg0: i32, %arg1: i32) -> (i32, i32, i32) {
    %c0_i32 = arith.constant 0 : i32
    %c0_i32_0 = arith.constant 0 : i32
    %c0_i32_1 = arith.constant 0 : i32
    return %arg0, %c0_i32, %c0_i32_0 : i32, i32, i32
  }
  func.func @transform_1(%arg0: i32, %arg1: i32) -> (i32, i32, i32) {
    %c0_i32 = arith.constant 0 : i32
    %c0_i32_0 = arith.constant 0 : i32
    %c0_i32_1 = arith.constant 0 : i32
    %c0_i32_2 = arith.constant 0 : i32
    return %c0_i32, %c0_i32_0, %c0_i32_1 : i32, i32, i32
  }
  func.func @transform_2(%arg0: i32, %arg1: i32) -> (i32, i32, i32) {
    %c0_i32 = arith.constant 0 : i32
    %c0_i32_0 = arith.constant 0 : i32
    %c0_i32_1 = arith.constant 0 : i32
    return %arg0, %c0_i32, %c0_i32_0 : i32, i32, i32
  }
  func.func @transform_3(%arg0: i32, %arg1: i32) -> (i32, i32) {
    %c0_i32 = arith.constant 0 : i32
    %c0_i32_0 = arith.constant 0 : i32
    %c0_i32_1 = arith.constant 0 : i32
    return %c0_i32, %c0_i32_0 : i32, i32
  }
  func.func @transform_4(%arg0: i32, %arg1: i32) -> (i32, i32) {
    %c0_i32 = arith.constant 0 : i32
    %c0_i32_0 = arith.constant 0 : i32
    %c0_i32_1 = arith.constant 0 : i32
    return %c0_i32, %c0_i32_0 : i32, i32
  }
  func.func @transform_5(%arg0: i32, %arg1: i32) -> (i32, i32, i32) {
    %c0_i32 = arith.constant 0 : i32
    %c0_i32_0 = arith.constant 0 : i32
    %c0_i32_1 = arith.constant 0 : i32
    return %arg1, %c0_i32, %c0_i32_0 : i32, i32, i32
  }
  func.func @transform_6(%arg0: i32, %arg1: i32) -> (i32, i32, i32) {
    %c0_i32 = arith.constant 0 : i32
    %c0_i32_0 = arith.constant 0 : i32
    %c0_i32_1 = arith.constant 0 : i32
    return %arg1, %c0_i32, %c0_i32_0 : i32, i32, i32
  }
  func.func @transform_7(%arg0: i32, %arg1: i32) -> (i32, i32, i32) {
    %c0_i32 = arith.constant 0 : i32
    %c0_i32_0 = arith.constant 0 : i32
    %c0_i32_1 = arith.constant 0 : i32
    return %arg1, %c0_i32, %c0_i32_0 : i32, i32, i32
  }
  func.func @transform_8(%arg0: i32, %arg1: i32) -> (i32, i32, i32) {
    %c0_i32 = arith.constant 0 : i32
    %c0_i32_0 = arith.constant 0 : i32
    %c0_i32_1 = arith.constant 0 : i32
    return %arg1, %c0_i32, %c0_i32_0 : i32, i32, i32
  }
  func.func @transform_9(%arg0: i32, %arg1: i32) -> (i32, i32, i32) {
    %c0_i32 = arith.constant 0 : i32
    %c0_i32_0 = arith.constant 0 : i32
    %c0_i32_1 = arith.constant 0 : i32
    return %arg1, %c0_i32, %c0_i32_0 : i32, i32, i32
  }
  func.func @transform_10(%arg0: i32, %arg1: i32) -> (i32, i32, i32) {
    %c0_i32 = arith.constant 0 : i32
    %c0_i32_0 = arith.constant 0 : i32
    %c0_i32_1 = arith.constant 0 : i32
    return %arg1, %c0_i32, %c0_i32_0 : i32, i32, i32
  }
  func.func @transform_11(%arg0: i32, %arg1: i32) -> (i32, i32, i32) {
    %c0_i32 = arith.constant 0 : i32
    %c0_i32_0 = arith.constant 0 : i32
    %c0_i32_1 = arith.constant 0 : i32
    return %arg1, %c0_i32, %c0_i32_0 : i32, i32, i32
  }
  func.func @transform_12(%arg0: i32, %arg1: i32) -> (i32, i32, i32) {
    %c0_i32 = arith.constant 0 : i32
    %c0_i32_0 = arith.constant 0 : i32
    %c0_i32_1 = arith.constant 0 : i32
    return %arg1, %c0_i32, %c0_i32_0 : i32, i32, i32
  }
  func.func @transform_13(%arg0: i32, %arg1: i32) -> (i32, i32, i32) {
    %c0_i32 = arith.constant 0 : i32
    %c0_i32_0 = arith.constant 0 : i32
    %c0_i32_1 = arith.constant 0 : i32
    return %arg1, %c0_i32, %c0_i32_0 : i32, i32, i32
  }
  func.func @transform_14(%arg0: i32, %arg1: i32) -> (i32, i32, i32) {
    %c0_i32 = arith.constant 0 : i32
    %c0_i32_0 = arith.constant 0 : i32
    %c0_i32_1 = arith.constant 0 : i32
    return %arg1, %c0_i32, %c0_i32_0 : i32, i32, i32
  }
  func.func @transform_15(%arg0: i32, %arg1: i32) -> (i32, i32, i32) {
    %c0_i32 = arith.constant 0 : i32
    %c0_i32_0 = arith.constant 0 : i32
    %c0_i32_1 = arith.constant 0 : i32
    return %arg1, %c0_i32, %c0_i32_0 : i32, i32, i32
  }
  func.func @transform_16(%arg0: i32, %arg1: i32) -> (i32, i32, i32) {
    %c0_i32 = arith.constant 0 : i32
    %c0_i32_0 = arith.constant 0 : i32
    %c0_i32_1 = arith.constant 0 : i32
    return %arg1, %c0_i32, %c0_i32_0 : i32, i32, i32
  }
  func.func @transform_17(%arg0: i32, %arg1: i32) -> (i32, i32, i32) {
    %c0_i32 = arith.constant 0 : i32
    %c0_i32_0 = arith.constant 0 : i32
    %c0_i32_1 = arith.constant 0 : i32
    return %arg0, %c0_i32, %c0_i32_0 : i32, i32, i32
  }
}

</mosaic_0001>

<bundles_post_ra>
// kernel: tpu_custom_call.1
= control target key start
LH: loop header
LB: loop body
LE: loop exit
PB: predicated region body
PF: predicated region fallthrough
CT: control target
= control target key end

     0   :  { %s17467_s0 = inlined_call_operand.hbm [shape: f32[4,128,256], index: 0, kind: input, shape index: {}]   ;;  %s17468_s1 = inlined_call_operand.hbm [shape: f32[1,128,256], index: 1, kind: input, shape index: {}]   ;;  %s17469_s2 = inlined_call_operand.hbm [shape: f32[4,1,128], index: 2, kind: input, shape index: {}]   ;;  %s17470_s3 = inlined_call_operand.hbm [shape: f32[1,256], index: 3, kind: input, shape index: {}]   ;;  %s17471_s4 = inlined_call_operand.hbm [shape: f32[1,256], index: 4, kind: input, shape index: {}]   ;;  %s17472_s5 = inlined_call_operand.hbm [shape: bf16[2,256,768], index: 5, kind: input, shape index: {}]   ;;  %s17473_s6 = inlined_call_operand.vmem [shape: f32[2,1,768], index: 6, kind: input, shape index: {}]   ;;  %s17474_s7 = inlined_call_operand.hbm [shape: bf16[2,256,256], index: 7, kind: input, shape index: {}]   ;;  %s17475_s8 = inlined_call_operand.vmem [shape: f32[2,1,256], index: 8, kind: input, shape index: {}]   ;;  %s17476_s9 = inlined_call_operand.vmem [shape: f32[2,1,256], index: 9, kind: input, shape index: {}]   ;;  %s17477_s10 = inlined_call_operand.vmem [shape: f32[2,1,256], index: 10, kind: input, shape index: {}]   ;;  %s17478_s11 = inlined_call_operand.hbm [shape: bf16[2,256,512], index: 11, kind: input, shape index: {}]   ;;  %s17479_s12 = inlined_call_operand.vmem [shape: f32[2,1,512], index: 12, kind: input, shape index: {}]   ;;  %s17480_s13 = inlined_call_operand.hbm [shape: bf16[2,512,256], index: 13, kind: input, shape index: {}]   ;;  %s17481_s14 = inlined_call_operand.vmem [shape: f32[2,1,256], index: 14, kind: input, shape index: {}]   ;;  %s17482_s15 = inlined_call_operand.vmem [shape: f32[2,1,256], index: 15, kind: input, shape index: {}]   ;;  %s17483_s16 = inlined_call_operand.vmem [shape: f32[2,1,256], index: 16, kind: input, shape index: {}]   ;;  %s17484_s17 = inlined_call_operand.hbm [shape: f32[4,128,256], index: 17, kind: output, shape index: {}]  }
   0x1   :  { %17782 = sst [smem:[#allocation125_spill]] %s17467_s0 }
   0x2   :  { %17783 = sst [smem:[#allocation126_spill]] %s17468_s1 }
   0x3   :  { %17784 = sst [smem:[#allocation127_spill]] %s17469_s2 }
   0x4   :  { %17785 = sst [smem:[#allocation128_spill]] %s17470_s3 }
   0x5   :  { %17786 = sst [smem:[#allocation129_spill]] %s17471_s4 }
   0x6   :  { %17787 = sst [smem:[#allocation130_spill]] %s17472_s5 }
   0x7   :  { %17788 = sst [smem:[#allocation131_spill]] %s17473_s6 }
   0x8   :  { %17789 = sst [smem:[#allocation132_spill]] %s17474_s7 }
   0x9   :  { %17790 = sst [smem:[#allocation133_spill]] %s17475_s8 }
   0xa   :  { %17791 = sst [smem:[#allocation134_spill]] %s17476_s9 }
   0xb   :  { %17792 = sst [smem:[#allocation135_spill]] %s17477_s10 }
   0xc   :  { %17793 = sst [smem:[#allocation136_spill]] %s17478_s11 }
   0xd   :  { %17794 = sst [smem:[#allocation137_spill]] %s17479_s12 }
   0xe   :  { %17795 = sst [smem:[#allocation138_spill]] %s17480_s13 }
   0xf   :  { %17796 = sst [smem:[#allocation139_spill]] %s17481_s14 }
  0x10   :  { %17797 = sst [smem:[#allocation140_spill]] %s17482_s15 }
  0x11   :  { %17798 = sst [smem:[#allocation141_spill]] %s17483_s16 }
  0x12   :  { %17799 = sst [smem:[#allocation142_spill]] %s17484_s17 }
  0x13   :  { %22 = vsyncpa [#allocation4], 0 }
  0x14   :  { %24 = vsyncpa [#allocation4 + $0x1], 0 }
  0x15   :  { %25 = vsyncpa [#allocation7], 0 }
  0x16   :  { %26 = vsyncpa [#allocation11], 0 }
  0x17   :  { %27 = vsyncpa [#allocation5], 0 }
  0x18   :  { %29 = vsyncpa [#allocation5 + $0x1], 0  ;;  %s11472_s24 = smov 0   ;;  %s11474_s25 = smov 0  }
  0x19   :  { %s11476_s26 = smov 0   ;;  %s11478_s27 = smov 0  }
  0x1a   :  { %s11480_s28 = smov 0   ;;  %s11482_s29 = smov 0  }
  0x1b   :  { %s11484_s0 = smov 0   ;;  %s11486_s30 = smov 0  }
  0x1c   :  { %s11488_s18 = smov 0   ;;  %s11490_s19 = smov 0  }
  0x1d   :  { %s11492_s1 = smov 0  }
  0x1e LB: > { %17800 = sst [smem:[#allocation24_spill]] %s11324_s25  ;;  %s44_s20 = sadd.s32 1, %s11352_s18  ;;  %s11360_s1 = sphi %s11492_s1, %s35_s1   ;;  %s11356_s19 = sphi %s11490_s19, %s18470_s19   ;;  %s11352_s18 = sphi %s11488_s18, %s18469_s18   ;;  %s11348_s30 = sphi %s11486_s30, %s18468_s30   ;;  %s11344_s0 = sphi %s11484_s0, %s18467_s0   ;;  %s11340_s29 = sphi %s11482_s29, %s18473_s29   ;;  %s11336_s28 = sphi %s11480_s28, %s18472_s28   ;;  %s11332_s27 = sphi %s11478_s27, %s18471_s27   ;;  %s11328_s26 = sphi %s11476_s26, %s18464_s26   ;;  %s11324_s25 = sphi %s11474_s25, %s18463_s25   ;;  %s11320_s24 = sphi %s11472_s24, %s18462_s24  }
  0x1f   : > { %17801 = sst [smem:[#allocation25_spill]] %s11328_s26  ;;  %s47_s21 = sadd.s32 1, %s11356_s19 }
  0x20   : > { %17802 = sst [smem:[#allocation26_spill]] %s11332_s27  ;;  %p45_p0 = scmp.ge.s32.totalorder %s44_s20, 2 }
  0x21   : > { %17803 = sst [smem:[#allocation27_spill]] %s11340_s29  ;;  %s54_s22 = sadd.s32 1, %s11340_s29 }
  0x22   : > { %17804 = sst [smem:[#allocation28_spill]] %s11344_s0  ;;  %p17491_p1 = scmp.ne.s32.totalorder %s11340_s29, %s11336_s28 }
  0x23   : > { %17805 = sst [smem:[#allocation29_spill]] %s11348_s30  ;;  %p62_p2 = scmp.eq.s32.totalorder %s11360_s1, 0 }
  0x24   : > { %17806 = sst [smem:[#allocation30_spill]] %s11352_s18  ;;  %s18475_s20 = smov (%p45_p0, %s44_s20), 0 }
  0x25   : > { %17807 = sst [smem:[#allocation31_spill]] %s11356_s19  ;;  %s18477_s21 = smov (!%p45_p0, %s47_s21), %s11356_s19 }
  0x26   : > { %17808 = sst [smem:[#allocation32_spill]] %s11360_s1  ;;  %p11541_p3 = por %p62_p2, %p17491_p1 }
  0x27   : > { %17809 = sst [smem:[#allocation33_spill]] %s18475_s20  ;;  %p49_p4 = scmp.ge.s32.totalorder %s18477_s21, 2 }
  0x28   : > { %p17492_p5 = scmp.lt.s32.totalorder %s11360_s1, 4  ;;  %s553_s17 = sand.u32 1, %s11360_s1  }
  0x29   : > { %s18479_s21 = smov (%p49_p4, %s18477_s21), 0  ;;  %s555_s30 = sand.u32 1, %s11340_s29  }
  0x2a   : > { %17811 = sst [smem:[#allocation34_spill]] %s18479_s21  ;;  %s51_s16 = ssub.s32 %s11356_s19, %s18479_s21 }
  0x2b   : > { %p52_p6 = scmp.eq.s32.totalorder %s51_s16, 0  ;;  %s9005_s15 = sshll.u32 %s555_s30, 9 }
  0x2c   : > { %s9303_s12 = sshll.u32 %s11356_s19, 13  ;;  %s17813_s9 = sld [smem:[#allocation125_spill]] }
  0x2d   : > { %s11554_s14 = scalar_select %p52_p6, %s11340_s29, %s54_s22  }
  0x2e   : > { %s557_s0 = scalar_lea.vmem [#allocation3], %s9005_s15  ;;  %p11567_p7 = pnand %p17492_p5, %p11541_p3 }
  0x2f   : > { %17812 = sst [smem:[#allocation35_spill]] %s11554_s14  ;;  %s565_s13 = sshll.u32 %s557_s0, 4  ;;  %s11561_s13 = int_to_ptr.vmem [resolvable:$true] %s565_s13 }
  0x30   : > { %s11571_s22 = sshll.u32 %s555_s30, 1  ;;  %s9304_s6 = sshll.u32 %s11356_s19, 5 }
  0x31   : > { %s11574_s10 = scalar_lea.sflag [#allocation4], %s553_s17  ;;  %p10956_p9 = pneg %p11567_p7 }
  0x32   : > { %s11559_s8 = scalar_lea.hbm %s17813_s9, %s9303_s12  ;;  %s10959_s23 = scalar_lea.hbm %s17813_s9, 16384 }
  0x33   : > { %s10954_s12 = scalar_lea.hbm %s11559_s8, 8192  ;;  %p10960_p12 = scmp.lt.u32.totalorder %s11559_s8, %s17813_s9 }
  0x34   : > { %p10955_p8 = scmp.ne.s32.totalorder %s11559_s8, %s10954_s12  ;;  %p10961_p13 = scmp.lt.u32.totalorder %s10959_s23, %s10954_s12 }
  0x35   : > { %p10963_p3 = scmp.lt.u32.totalorder %s10954_s12, %s11559_s8 }
  0x36   : > { %p10957_p10 = pnand %p10956_p9, %p10955_p8  ;;  %p10962_p0 = por %p10961_p13, %p10960_p12 }
  0x38   : > { %p10958_p11 = pneg %p10957_p10  ;;  %p10964_p4 = por %p10963_p3, %p10962_p0 }
  0x3a   : > { %p10965_p6 = pnand %p10964_p4, %p10958_p11 }
  0x3c   : > { %10968 = shalt.err (!%p10965_p6)
}
  0x3d   : > { %s10969_s17 = scalar_lea.vmem %s11561_s13, 8192  ;;  %s11362_s30 = smov [#allocation3]  }
  0x3e   : > { %p10970_p8 = scmp.ne.s32.totalorder %s11561_s13, %s10969_s17  ;;  %s10974_s15 = sshll.u32 %s11362_s30, 4  ;;  %s10975_s15 = int_to_ptr.vmem [resolvable:$false] %s10974_s15 }
  0x3f   : > { %s10976_s14 = scalar_lea.vmem %s10975_s15, 16384  ;;  %p10977_p5 = scmp.lt.s32.totalorder %s11561_s13, %s10975_s15 }
  0x40   : > { %p10972_p10 = pnand %p10970_p8, %p10956_p9  ;;  %p10978_p12 = scmp.lt.s32.totalorder %s10976_s14, %s10969_s17 }
  0x42   : > { %p10973_p1 = pneg %p10972_p10  ;;  %p10979_p13 = por %p10978_p12, %p10977_p5 }
  0x44   : > { %p10980_p0 = pnand %p10979_p13, %p10973_p1 }
  0x46   : > { %10983 = shalt.err (!%p10980_p0)
}
  0x47   : > { %s17493_s21 = smov 256   ;;  %s17495_s12 = smov 16  }
  0x48   : > { %9929 = dma.hbm_to_vmem [thread:$0]  (!%p11567_p7), %s11559_s8, 8192, %s11561_s13, %s11574_s10, %s17493_s21, %s17493_s21, %s17495_s12  }
  0x49   : > { %s579_s0 = scalar_lea.vmem [#allocation8], %s11571_s22  ;;  %s17815_s2 = sld [smem:[#allocation127_spill]] }
  0x4a   : > { %s586_s23 = sshll.u32 %s579_s0, 4  ;;  %s11613_s23 = int_to_ptr.vmem [resolvable:$true] %s586_s23 }
  0x4f   : > { %s11611_s15 = scalar_lea.hbm %s17815_s2, %s9304_s6  ;;  %s10989_s22 = scalar_lea.hbm %s17815_s2, 64 }
  0x50   : > { %s10984_s14 = scalar_lea.hbm %s11611_s15, 32  ;;  %p10990_p3 = scmp.lt.u32.totalorder %s11611_s15, %s17815_s2 }
  0x51   : > { %p10985_p1 = scmp.ne.s32.totalorder %s11611_s15, %s10984_s14  ;;  %p10991_p4 = scmp.lt.u32.totalorder %s10989_s22, %s10984_s14 }
  0x52   : > { %p10993_p8 = scmp.lt.u32.totalorder %s10984_s14, %s11611_s15 }
  0x53   : > { %p10987_p5 = pnand %p10985_p1, %p10956_p9  ;;  %p10992_p6 = por %p10991_p4, %p10990_p3 }
  0x55   : > { %p10988_p11 = pneg %p10987_p5  ;;  %p10994_p10 = por %p10993_p8, %p10992_p6 }
  0x57   : > { %p10995_p12 = pnand %p10994_p10, %p10988_p11 }
  0x59   : > { %10998 = shalt.err (!%p10995_p12)
}
  0x5a   : > { %s10999_s6 = scalar_lea.vmem %s11613_s23, 32  ;;  %s11365_s30 = smov [#allocation8]  }
  0x5b   : > { %p11000_p13 = scmp.ne.s32.totalorder %s11613_s23, %s10999_s6  ;;  %s11004_s8 = sshll.u32 %s11365_s30, 4  ;;  %s11005_s8 = int_to_ptr.vmem [resolvable:$false] %s11004_s8 }
  0x5c   : > { %s11006_s13 = scalar_lea.vmem %s11005_s8, 64  ;;  %p11007_p5 = scmp.lt.s32.totalorder %s11613_s23, %s11005_s8 }
  0x5d   : > { %p11002_p0 = pnand %p11000_p13, %p10956_p9  ;;  %p11008_p3 = scmp.lt.s32.totalorder %s11006_s13, %s10999_s6 }
  0x5f   : > { %p11003_p1 = pneg %p11002_p0  ;;  %p11009_p4 = por %p11008_p3, %p11007_p5 }
  0x61   : > { %p11010_p6 = pnand %p11009_p4, %p11003_p1 }
  0x63   : > { %11013 = shalt.err (!%p11010_p6)
}
  0x64   : > { %s11366_s14 = smov 1   ;;  %s166_s22 = ssub.s32 %s11352_s18, %s18475_s20 }
  0x65   : > { %9932 = dma.hbm_to_vmem [thread:$0]  (!%p11567_p7), %s11611_s15, 32, %s11613_s23, %s11574_s10, %s17495_s12, %s17495_s12, %s11366_s14  }
  0x66   : > { %s169_s0 = sadd.s32 1, %s11328_s26  ;;  %p167_p9 = scmp.eq.s32.totalorder %s166_s22, 0 }
  0x67   : > { %p176_p11 = scmp.ne.s32.totalorder %s11328_s26, %s11324_s25  ;;  %s11647_s16 = sand.u32 1, %s11328_s26  }
  0x68   : > { %s9887_s17 = smul.u32 12288, %s11352_s18  ;;  %s17817_s5 = sld [smem:[#allocation130_spill]] }
  0x69   : > { %s11651_s6 = scalar_select %p167_p9, %s11328_s26, %s169_s0  }
  0x6a   : > { %p178_p8 = por %p176_p11, %p62_p2  ;;  %s9886_s30 = smul.u32 768, %s11647_s16 }
  0x6b   : > { %17816 = sst [smem:[#allocation36_spill]] %s11651_s6  ;;  %p17818_p10 = scmp.lt.s32.totalorder %s11360_s1, 4 }
  0x6c   : > { %s600_s15 = scalar_lea.vmem [#allocation12], %s9886_s30 }
  0x6d   : > { %p11663_p7 = pnand %p17818_p10, %p178_p8  ;;  %s607_s14 = sshll.u32 %s600_s15, 4  ;;  %s11667_s14 = int_to_ptr.vmem [resolvable:$true] %s607_s14 }
  0x6e   : > { %s11659_s21 = scalar_lea.hbm %s17817_s5, %s9887_s17  ;;  %s11019_s13 = scalar_lea.hbm %s17817_s5, 24576 }
  0x6f   : > { %s17819_s23 = scalar_select %p11663_p7, 1, 0 }
  0x70   : > { %s11014_s22 = scalar_lea.hbm %s11659_s21, 12288  ;;  %p11673_p12 = pneg %p11663_p7 }
  0x71   : > { %p11015_p2 = scmp.ne.s32.totalorder %s11659_s21, %s11014_s22  ;;  %p11020_p1 = scmp.lt.u32.totalorder %s11659_s21, %s17817_s5 }
  0x72   : > { %s17820_s0 = scalar_select %p11673_p12, 1, 0 }
  0x73   : > { %p11017_p13 = pnand %p11673_p12, %p11015_p2  ;;  %p11021_p5 = scmp.lt.u32.totalorder %s11019_s13, %s11014_s22 }
  0x74   : > { %p11023_p4 = scmp.lt.u32.totalorder %s11014_s22, %s11659_s21 }
  0x75   : > { %p11018_p0 = pneg %p11017_p13  ;;  %p11022_p3 = por %p11021_p5, %p11020_p1 }
  0x77   : > { %p11024_p6 = por %p11023_p4, %p11022_p3 }
  0x79   : > { %p11025_p9 = pnand %p11024_p6, %p11018_p0 }
  0x7b   : > { %11028 = shalt.err (!%p11025_p9)
}
  0x7c   : > { %s11029_s15 = scalar_lea.vmem %s11667_s14, 12288  ;;  %s11367_s17 = smov [#allocation12]  }
  0x7d   : > { %p11030_p11 = scmp.ne.s32.totalorder %s11667_s14, %s11029_s15  ;;  %s11034_s8 = sshll.u32 %s11367_s17, 4  ;;  %s11035_s8 = int_to_ptr.vmem [resolvable:$false] %s11034_s8 }
  0x7e   : > { %s11036_s12 = scalar_lea.vmem %s11035_s8, 24576  ;;  %p11037_p2 = scmp.lt.s32.totalorder %s11667_s14, %s11035_s8 }
  0x7f   : > { %p11032_p8 = pnand %p11030_p11, %p11673_p12  ;;  %p11038_p13 = scmp.lt.s32.totalorder %s11036_s12, %s11029_s15 }
  0x81   : > { %p11033_p10 = pneg %p11032_p8  ;;  %p11039_p1 = por %p11038_p13, %p11037_p2 }
  0x83   : > { %p11040_p5 = pnand %p11039_p1, %p11033_p10 }
  0x85   : > { %11043 = shalt.err (!%p11040_p5)
}
  0x86   : > { %s11368_s22 = smov 384   ;;  %s11369_s13 = smov 24  }
  0x87   : > { %9935 = dma.hbm_to_vmem [thread:$0]  (!%p11663_p7), %s11659_s21, 12288, %s11667_s14, %s11574_s10, %s11368_s22, %s11368_s22, %s11369_s13  }
  0x88   : > { %s9013_s30 = sshll.u32 %s11647_s16, 8  ;;  %s9305_s17 = sshll.u32 %s11352_s18, 12 }
  0x89   : > { %s17821_s7 = sld [smem:[#allocation132_spill]]  ;;  %s628_s8 = scalar_lea.vmem [#allocation13], %s9013_s30 }
  0x8a   : > { %s635_s12 = sshll.u32 %s628_s8, 4  ;;  %s11704_s12 = int_to_ptr.vmem [resolvable:$true] %s635_s12 }
  0x8f   : > { %s11702_s15 = scalar_lea.hbm %s17821_s7, %s9305_s17  ;;  %s11049_s22 = scalar_lea.hbm %s17821_s7, 8192 }
  0x90   : > { %s11044_s9 = scalar_lea.hbm %s11702_s15, 4096  ;;  %p11050_p6 = scmp.lt.u32.totalorder %s11702_s15, %s17821_s7 }
  0x91   : > { %p11045_p0 = scmp.ne.s32.totalorder %s11702_s15, %s11044_s9  ;;  %p11051_p9 = scmp.lt.u32.totalorder %s11049_s22, %s11044_s9 }
  0x92   : > { %p11053_p8 = scmp.lt.u32.totalorder %s11044_s9, %s11702_s15 }
  0x93   : > { %p11047_p3 = pnand %p11045_p0, %p11673_p12  ;;  %p11052_p11 = por %p11051_p9, %p11050_p6 }
  0x95   : > { %p11048_p4 = pneg %p11047_p3  ;;  %p11054_p10 = por %p11053_p8, %p11052_p11 }
  0x97   : > { %p11055_p2 = pnand %p11054_p10, %p11048_p4 }
  0x99   : > { %11058 = shalt.err (!%p11055_p2)
}
  0x9a   : > { %s11059_s13 = scalar_lea.vmem %s11704_s12, 4096  ;;  %s11370_s30 = smov [#allocation13]  }
  0x9b   : > { %p11060_p13 = scmp.ne.s32.totalorder %s11704_s12, %s11059_s13  ;;  %s11064_s17 = sshll.u32 %s11370_s30, 4  ;;  %s11065_s17 = int_to_ptr.vmem [resolvable:$false] %s11064_s17 }
  0x9c   : > { %s11066_s8 = scalar_lea.vmem %s11065_s17, 8192  ;;  %p11067_p0 = scmp.lt.s32.totalorder %s11704_s12, %s11065_s17 }
  0x9d   : > { %p11062_p1 = pnand %p11060_p13, %p11673_p12  ;;  %p11068_p3 = scmp.lt.s32.totalorder %s11066_s8, %s11059_s13 }
  0x9f   : > { %p11063_p5 = pneg %p11062_p1  ;;  %p11069_p6 = por %p11068_p3, %p11067_p0 }
  0xa1   : > { %p11070_p9 = pnand %p11069_p6, %p11063_p5 }
  0xa3   : > { %11073 = shalt.err (!%p11070_p9)
}
  0xa4   : > { %s17499_s9 = smov 128   ;;  %s17500_s21 = smov 8  }
  0xa5   : > { %9938 = dma.hbm_to_vmem [thread:$0]  (!%p11663_p7), %s11702_s15, 4096, %s11704_s12, %s11574_s10, %s17499_s9, %s17499_s9, %s17500_s21  }
  0xa6   : > { %s11732_s14 = sadd.s32 4294967295, %s11360_s1   ;;  %s8999_s22 = sadd.s32 4294967294, %s11360_s1  }
  0xa7   : > { %p67_p4 = scmp.ne.s32.totalorder %s11336_s28, %s11332_s27  ;;  %p17505_p11 = scmp.eq.s32.totalorder %s11732_s14, 0 }
  0xa8   : > { %p182_p8 = scmp.ne.s32.totalorder %s11324_s25, %s11320_s24  ;;  %p492_p10 = scmp.eq.s32.totalorder %s11732_s14, 3 }
  0xa9   : > { %p11743_p2 = por %p17505_p11, %p67_p4  ;;  %p498_p13 = scmp.eq.s32.totalorder %s8999_s22, 3 }
  0xaa   : > { %p11749_p1 = por %p182_p8, %p17505_p11  ;;  %p17824_p5 = scmp.ne.s32.totalorder %s11340_s29, %s11336_s28 }
  0xab   : > { %s17822_s2 = scalar_select %p11743_p2, 1, 0 }
  0xac   : > { %s17823_s15 = scalar_select %p11749_p1, 1, 0 }
  0xad   : > { %p11756_p0 = por %p492_p10, %p17824_p5  ;;  %p11760_p3 = por %p498_p13, %p67_p4 }
  0xae   : > { %p9000_p6 = scmp.ge.s32.totalorder %s11360_s1, 1  ;;  %p505_p9 = scmp.lt.s32.totalorder %s11360_s1, 5 }
  0xaf   : > { %s17825_s12 = scalar_select %p11756_p0, 1, 0 }
  0xb0   : > { %s17827_s24 = scalar_select %p11760_p3, 1, 0 }
  0xb1   : > { %17826 = sst [smem:[#allocation37_spill]] %s17825_s12  ;;  %s17510_s5 = sshll.u32 %s11647_s16, 9 }
  0xb2   : > { %17828 = sst [smem:[#allocation38_spill]] %s17827_s24  ;;  %p11767_p2 = pnand %p9000_p6, %p505_p9 }
  0xb3   : > { %s11373_s30 = smov [#allocation6]   ;;  %s17503_s8 = sshll.u32 %s11352_s18, 13 }
  0xb4   : > { %s17829_s13 = scalar_select %p11767_p2, 1, 0 }
  0xb5   : > { %s517_s17 = sshll.u32 %s11373_s30, 4  ;;  %p9916_p8 = pneg %p11767_p2  ;;  %s11771_s17 = int_to_ptr.vmem [resolvable:$true] %s517_s17 }
  0xb6   : > { %s17830_s11 = sld [smem:[#allocation136_spill]]  ;;  %s670_s7 = scalar_lea.vmem [#allocation14], %s17510_s5 }
  0xb7   : > { %s677_s20 = sshll.u32 %s670_s7, 4  ;;  %p11787_p4 = pnand %p9916_p8, %p17505_p11  ;;  %s11791_s20 = int_to_ptr.vmem [resolvable:$true] %s677_s20 }
  0xb9   : > { %s17831_s30 = scalar_select %p11787_p4, 1, 0 }
  0xbc   : > { %s11781_s21 = scalar_lea.hbm %s17830_s11, %s17503_s8  ;;  %s11079_s8 = scalar_lea.hbm %s17830_s11, 16384 }
  0xbd   : > { %s11074_s19 = scalar_lea.hbm %s11781_s21, 8192  ;;  %p11080_p6 = scmp.lt.u32.totalorder %s11781_s21, %s17830_s11 }
  0xbe   : > { %p11075_p10 = scmp.ne.s32.totalorder %s11781_s21, %s11074_s19  ;;  %p11081_p9 = scmp.lt.u32.totalorder %s11079_s8, %s11074_s19 }
  0xbf   : > { %p11083_p11 = scmp.lt.u32.totalorder %s11074_s19, %s11781_s21 }
  0xc0   : > { %p11077_p13 = pnand %p11075_p10, %p11673_p12  ;;  %p11082_p8 = por %p11081_p9, %p11080_p6 }
  0xc2   : > { %p11078_p5 = pneg %p11077_p13  ;;  %p11084_p3 = por %p11083_p11, %p11082_p8 }
  0xc4   : > { %p11085_p0 = pnand %p11084_p3, %p11078_p5 }
  0xc6   : > { %11088 = shalt.err (!%p11085_p0)
}
  0xc7   : > { %s11089_s7 = scalar_lea.vmem %s11791_s20, 8192  ;;  %s11374_s9 = smov [#allocation14]  }
  0xc8   : > { %p11090_p10 = scmp.ne.s32.totalorder %s11791_s20, %s11089_s7  ;;  %s11094_s22 = sshll.u32 %s11374_s9, 4  ;;  %s11095_s22 = int_to_ptr.vmem [resolvable:$false] %s11094_s22 }
  0xc9   : > { %s11096_s29 = scalar_lea.vmem %s11095_s22, 16384  ;;  %p11097_p2 = scmp.lt.s32.totalorder %s11791_s20, %s11095_s22 }
  0xca   : > { %p11092_p13 = pnand %p11090_p10, %p11673_p12  ;;  %p11098_p4 = scmp.lt.s32.totalorder %s11096_s29, %s11089_s7 }
  0xcc   : > { %p11093_p1 = pneg %p11092_p13  ;;  %p11099_p6 = por %p11098_p4, %p11097_p2 }
  0xce   : > { %p11100_p9 = pnand %p11099_p6, %p11093_p1 }
  0xd0   : > { %11103 = shalt.err (!%p11100_p9)
}
  0xd1   : > { %s17832_s19 = smov 16   ;;  %s17833_s6 = smov 256  }
  0xd2   : > { %9941 = dma.hbm_to_vmem [thread:$0]  (!%p11663_p7), %s11781_s21, 8192, %s11791_s20, %s11574_s10, %s17833_s6, %s17833_s6, %s17832_s19  }
  0xd3   : > { %s17834_s9 = sld [smem:[#allocation126_spill]]  ;;  %p17835_p2 = scmp.ne.s32.totalorder %s17831_s30, 0 }
  0xd5   : > { %p11826_p1 = pneg %p17835_p2 }
  0xd9   : > { %s11104_s11 = scalar_lea.hbm %s17834_s9, 4096 }
  0xda   : > { %p11105_p11 = scmp.ne.s32.totalorder %s17834_s9, %s11104_s11  ;;  %p11111_p4 = scmp.lt.u32.totalorder %s11104_s11, %s17834_s9 }
  0xdc   : > { %p11107_p0 = pnand %p11826_p1, %p11105_p11 }
  0xde   : > { %p11108_p3 = pneg %p11107_p0 }
  0xe0   : > { %p11113_p5 = pnand %p11111_p4, %p11108_p3 }
  0xe2   : > { %11116 = shalt.err (!%p11113_p5)
}
  0xe3   : > { %s11117_s26 = scalar_lea.vmem %s11771_s17, 4096  ;;  %p11125_p6 = scmp.lt.s32.totalorder %s11771_s17, %s11771_s17 }
  0xe4   : > { %p11118_p8 = scmp.ne.s32.totalorder %s11771_s17, %s11117_s26  ;;  %p11126_p9 = scmp.lt.s32.totalorder %s11117_s26, %s11117_s26 }
  0xe6   : > { %p11120_p10 = pnand %p11118_p8, %p11826_p1  ;;  %p11127_p11 = por %p11126_p9, %p11125_p6 }
  0xe8   : > { %p11121_p13 = pneg %p11120_p10 }
  0xea   : > { %p11128_p0 = pnand %p11127_p11, %p11121_p13 }
  0xec   : > { %11131 = shalt.err (!%p11128_p0)
}
  0xed   : > { %9919 = dma.hbm_to_vmem [thread:$0]  (!%p17835_p2), %s17834_s9, 4096, %s11771_s17, [#allocation7], %s17833_s6, %s17833_s6, %s17832_s19  }
  0xee   : > { %s11375_s21 = smov [#allocation9]   ;;  %s11376_s5 = smov [#allocation10]  }
  0xef   : > { %s531_s24 = sshll.u32 %s11375_s21, 4  ;;  %s542_s8 = sshll.u32 %s11376_s5, 4  ;;  %s532_s24 = int_to_ptr.vmem [resolvable:$true] %s531_s24  ;;  %s543_s8 = int_to_ptr.vmem [resolvable:$true] %s542_s8 }
  0xf0   : > { %s17837_s3 = sld [smem:[#allocation128_spill]] }
  0xf6   : > { %s11132_s26 = scalar_lea.hbm %s17837_s3, 32 }
  0xf7   : > { %p11133_p3 = scmp.ne.s32.totalorder %s17837_s3, %s11132_s26  ;;  %p11139_p8 = scmp.lt.u32.totalorder %s11132_s26, %s17837_s3 }
  0xf9   : > { %p11135_p4 = pnand %p11133_p3, %p11826_p1 }
  0xfb   : > { %p11136_p5 = pneg %p11135_p4 }
  0xfd   : > { %p11141_p10 = pnand %p11139_p8, %p11136_p5 }
  0xff   : > { %11144 = shalt.err (!%p11141_p10)
}
 0x100   : > { %s11145_s17 = scalar_lea.vmem %s532_s24, 32  ;;  %p11153_p11 = scmp.lt.s32.totalorder %s532_s24, %s532_s24 }
 0x101   : > { %p11146_p13 = scmp.ne.s32.totalorder %s532_s24, %s11145_s17  ;;  %p11154_p0 = scmp.lt.s32.totalorder %s11145_s17, %s11145_s17 }
 0x103   : > { %p11148_p6 = pnand %p11146_p13, %p11826_p1  ;;  %p11155_p7 = por %p11154_p0, %p11153_p11 }
 0x105   : > { %p11149_p9 = pneg %p11148_p6 }
 0x107   : > { %p11156_p12 = pnand %p11155_p7, %p11149_p9 }
 0x109   : > { %11159 = shalt.err (!%p11156_p12)
}
 0x10a   : > { %9922 = dma.hbm_to_vmem [thread:$0]  (!%p17835_p2), %s17837_s3, 32, %s532_s24, [#allocation7]  }
 0x10b   : > { %s17838_s4 = sld [smem:[#allocation129_spill]] }
 0x111   : > { %s11160_s6 = scalar_lea.hbm %s17838_s4, 32 }
 0x112   : > { %p11161_p3 = scmp.ne.s32.totalorder %s17838_s4, %s11160_s6  ;;  %p11167_p12 = scmp.lt.u32.totalorder %s11160_s6, %s17838_s4 }
 0x114   : > { %p11163_p4 = pnand %p11161_p3, %p11826_p1 }
 0x116   : > { %p11164_p7 = pneg %p11163_p4 }
 0x118   : > { %p11169_p5 = pnand %p11167_p12, %p11164_p7 }
 0x11a   : > { %11172 = shalt.err (!%p11169_p5)
}
 0x11b   : > { %s11173_s29 = scalar_lea.vmem %s543_s8, 32  ;;  %p11181_p6 = scmp.lt.s32.totalorder %s543_s8, %s543_s8 }
 0x11c   : > { %p11174_p8 = scmp.ne.s32.totalorder %s543_s8, %s11173_s29  ;;  %p11182_p9 = scmp.lt.s32.totalorder %s11173_s29, %s11173_s29 }
 0x11e   : > { %p11176_p10 = pnand %p11174_p8, %p11826_p1  ;;  %p11183_p11 = por %p11182_p9, %p11181_p6 }
 0x120   : > { %p11177_p13 = pneg %p11176_p10 }
 0x122   : > { %p11184_p0 = pnand %p11183_p11, %p11177_p13 }
 0x124   : > { %11187 = shalt.err (!%p11184_p0)
}
 0x125   : > { %9925 = dma.hbm_to_vmem [thread:$0]  (!%p17835_p2), %s17838_s4, 32, %s543_s8, [#allocation11]  }
 0x126   : > { %s17839_s11 = sshll.u32 %s11352_s18, 13  ;;  %s17840_s7 = sld [smem:[#allocation138_spill]] }
 0x127   : > { %s17841_s12 = sshll.u32 %s11647_s16, 9  ;;  %p17842_p3 = scmp.ne.s32.totalorder %s17820_s0, 0 }
 0x128   : > { %s698_s19 = scalar_lea.vmem [#allocation15], %s17841_s12 }
 0x129   : > { %s705_s30 = sshll.u32 %s698_s19, 4  ;;  %s11895_s30 = int_to_ptr.vmem [resolvable:$true] %s705_s30 }
 0x12c   : > { %s11891_s1 = scalar_lea.hbm %s17840_s7, %s17839_s11  ;;  %s11193_s21 = scalar_lea.hbm %s17840_s7, 16384 }
 0x12d   : > { %s11188_s6 = scalar_lea.hbm %s11891_s1, 8192  ;;  %p11194_p7 = scmp.lt.u32.totalorder %s11891_s1, %s17840_s7 }
 0x12e   : > { %p11189_p1 = scmp.ne.s32.totalorder %s11891_s1, %s11188_s6  ;;  %p11195_p12 = scmp.lt.u32.totalorder %s11193_s21, %s11188_s6 }
 0x12f   : > { %p11197_p8 = scmp.lt.u32.totalorder %s11188_s6, %s11891_s1 }
 0x130   : > { %p11191_p4 = pnand %p11189_p1, %p17842_p3  ;;  %p11196_p5 = por %p11195_p12, %p11194_p7 }
 0x132   : > { %p11192_p2 = pneg %p11191_p4  ;;  %p11198_p10 = por %p11197_p8, %p11196_p5 }
 0x134   : > { %p11199_p13 = pnand %p11198_p10, %p11192_p2 }
 0x136   : > { %11202 = shalt.err (!%p11199_p13)
}
 0x137   : > { %s11203_s16 = scalar_lea.vmem %s11895_s30, 8192  ;;  %s11377_s29 = smov [#allocation15]  }
 0x138   : > { %p11204_p6 = scmp.ne.s32.totalorder %s11895_s30, %s11203_s16  ;;  %s11208_s24 = sshll.u32 %s11377_s29, 4  ;;  %s11209_s24 = int_to_ptr.vmem [resolvable:$false] %s11208_s24 }
 0x139   : > { %s11210_s26 = scalar_lea.vmem %s11209_s24, 16384  ;;  %p11211_p0 = scmp.lt.s32.totalorder %s11895_s30, %s11209_s24 }
 0x13a   : > { %p11206_p9 = pnand %p11204_p6, %p17842_p3  ;;  %p11212_p1 = scmp.lt.s32.totalorder %s11210_s26, %s11203_s16 }
 0x13c   : > { %p11207_p11 = pneg %p11206_p9  ;;  %p11213_p4 = por %p11212_p1, %p11211_p0 }
 0x13e   : > { %p11214_p7 = pnand %p11213_p4, %p11207_p11 }
 0x140   : > { %11217 = shalt.err (!%p11214_p7)
}
 0x141   : > { %p17843_p2 = scmp.ne.s32.totalorder %s17819_s23, 0  ;;  %s17844_s11 = smov 8  }
 0x142   : > { %s17845_s17 = smov 128   ;;  %p17846_p3 = scmp.ne.s32.totalorder %s17829_s13, 0 }
 0x143   : > { %9944 = dma.hbm_to_vmem [thread:$0]  (!%p17843_p2), %s11891_s1, 8192, %s11895_s30, %s11574_s10, %s17845_s17, %s17845_s17, %s17844_s11  }
 0x144   : > { %738 = sbr.rel (%p17846_p3) target bundleno = 4128 (0x1020), region = 88 }
 0x14b   : > { %s740_s0 = sand.u32 1, %s11732_s14   ;;  %s17521_s27 = sand.u32 1, %s11336_s28  }
 0x14c   : > { %s11928_s12 = sshll.u32 %s17521_s27, 9  ;;  %s741_s23 = scalar_lea.sflag [#allocation4], %s740_s0 }
 0x14d   : > { %s11931_s19 = scalar_lea.vmem [#allocation3], %s11928_s12  ;;  %p17847_p12 = scmp.ne.s32.totalorder %s17822_s2, 0 }
 0x14f   : > { %11291 = dma.done.wait (%p17847_p12), %s741_s23, 8192  }
 0x150   : > { %11293 = vsyncadd (%p17847_p12), %s741_s23, 4294959104  ;;  %p17848_p5 = scmp.eq.s32.totalorder %s11732_s14, 0 }
 0x152   : > { %11295 = dma.done.wait (%p17848_p5), [#allocation7], 4096   ;;  %p17849_p8 = pmov %p17848_p5 }
 0x154   : > { %11297 = vsyncadd (%p17849_p8), [#allocation7], 4294963200 }
 0x155   : > { %11299 = dma.done.wait (%p17847_p12), %s741_s23, 32  }
 0x156   : > { %11301 = vsyncadd (%p17847_p12), %s741_s23, 4294967264  ;;  %p17850_p10 = pmov %p17848_p5 }
 0x157   : > { %p17851_p13 = pmov %p17848_p5 }
 0x158   : > { %11303 = dma.done.wait (%p17850_p10), [#allocation7], 32  }
 0x159   : > { %11305 = vsyncadd (%p17851_p13), [#allocation7], 4294967264  ;;  %p17852_p6 = pmov %p17848_p5 }
 0x15a   : > { %p17853_p9 = pmov %p17848_p5 }
 0x15b   : > { %11307 = dma.done.wait (%p17852_p6), [#allocation11], 32  }
 0x15c   : > { %11309 = vsyncadd (%p17853_p9), [#allocation11], 4294967264  ;;  %s772_s10 = sand.u32 1, %s11324_s25   ;;  %p17854_p11 = scmp.ne.s32.totalorder %s17823_s15, 0 }
 0x15d   : > { %s9888_s13 = smul.u32 768, %s772_s10 }
 0x15f   : > { %s11954_s1 = scalar_lea.vmem [#allocation12], %s9888_s13 }
 0x160   : > { %11311 = dma.done.wait (%p17854_p11), %s741_s23, 32768  }
 0x161   : > { %11313 = vsyncadd (%p17854_p11), %s741_s23, 4294934528  ;;  %s17855_s2 = sld [smem:[#allocation28_spill]]  ;;  %s9027_s30 = sshll.u32 %s772_s10, 8 }
 0x162   : > { %s9028_s6 = sshll.u32 %s772_s10, 9  ;;  %s17858_s0 = sld [smem:[#allocation131_spill]] }
 0x163   : > { %s17859_s27 = sld [smem:[#allocation135_spill]]  ;;  %s17860_s7 = sld [smem:[#allocation139_spill]] }
 0x164   : > { %s17861_s15 = sld [smem:[#allocation137_spill]]  ;;  %s17862_s24 = sld [smem:[#allocation140_spill]] }
 0x165   : > { %s11998_s10 = scalar_lea.vmem [#allocation13], %s9027_s30  ;;  %s12005_s4 = scalar_lea.vmem [#allocation16], %s11928_s12 }
 0x167   : > { %p911_p0 = scmp.lt.s32.totalorder %s17855_s2, 1  ;;  %p9038_p1 = scmp.ne.s32.totalorder %s17855_s2, 0 }
 0x169   : > { %s912_s8 = scalar_select %p911_p0, %s17855_s2, 1 }
 0x16b   : > { %s9889_s14 = smul.u32 6, %s912_s8  ;;  %s11962_s20 = sshll.u32 %s912_s8, 1 }
 0x16c   : > { %s926_s3 = scalar_lea.vmem %s17859_s27, %s11962_s20  ;;  %s9034_s21 = sshll.u32 %s912_s8, 2 }
 0x16d   : > { %s11975_s23 = scalar_lea.vmem %s17858_s0, %s9889_s14  ;;  %s934_s9 = scalar_lea.vmem %s17860_s7, %s11962_s20 }
 0x16e   : > { %s11988_s25 = scalar_lea.vmem %s17861_s15, %s9034_s21  ;;  %s938_s11 = scalar_lea.vmem %s17862_s24, %s11962_s20 }
 0x16f   : > { %s17863_s0 = sld [smem:[#allocation141_spill]]  ;;  %s12000_s27 = scalar_lea.vmem [#allocation14], %s9028_s6 }
 0x170   : > { %s12002_s8 = scalar_lea.vmem [#allocation15], %s9028_s6  ;;  %948 = sbr.rel (%p9038_p1) target bundleno = 782 (0x30e), region = 128 }
 0x175   : > { %s942_s26 = scalar_lea.vmem %s17863_s0, %s11962_s20 }
 0x177   : > { %v12009_v0 = vld [vmem:[%s11931_s19] sm:$0xff]  ;;  %v12012_v1 = vld [vmem:[%s11931_s19 + $0x8] sm:$0xff]  ;;  %v12023_v5 = vld [vmem:[%s11931_s19 + $0x10] sm:$0xff] }
 0x178   : > { %v12015_v2 = vld [vmem:[%s11931_s19 + $0x20] sm:$0xff]  ;;  %v1015_v3 = vadd.f32 %v12012_v1, %v12009_v0  ;;  %v12020_v4 = vld [vmem:[%s11931_s19 + $0x28] sm:$0xff]  ;;  %v12026_v6 = vld [vmem:[%s11931_s19 + $0x18] sm:$0xff] }
 0x179   : > { %v1021_v7 = vadd.f32 %v12020_v4, %v12015_v2  ;;  %v12031_v8 = vld [vmem:[%s11931_s19 + $0x30] sm:$0xff]  ;;  %v12034_v9 = vld [vmem:[%s11931_s19 + $0x38] sm:$0xff]  ;;  %v1018_v10 = vadd.f32 %v12026_v6, %v12023_v5  ;;  %v12041_v12 = vld [vmem:[%s11931_s19 + $0x40] sm:$0xff] }
 0x17a   : > { %1016 = vadd.xlane.f32.xlu0 %v1015_v3  ;;  %v1024_v11 = vadd.f32 %v12034_v9, %v12031_v8  ;;  %v12044_v13 = vld [vmem:[%s11931_s19 + $0x48] sm:$0xff]  ;;  %v12047_v14 = vld [vmem:[%s11931_s19 + $0x50] sm:$0xff]  ;;  %v12050_v15 = vld [vmem:[%s11931_s19 + $0x58] sm:$0xff] }
 0x17b   : > { %1022 = vadd.xlane.f32.xlu1 %v1021_v7  ;;  %v1027_v16 = vadd.f32 %v12044_v13, %v12041_v12  ;;  %v1030_v17 = vadd.f32 %v12050_v15, %v12047_v14  ;;  %v12057_v18 = vld [vmem:[%s11931_s19 + $0x60] sm:$0xff]  ;;  %v12060_v19 = vld [vmem:[%s11931_s19 + $0x68] sm:$0xff]  ;;  %v12063_v20 = vld [vmem:[%s11931_s19 + $0x70] sm:$0xff] }
 0x17c   : > { %v12066_v21 = vld [vmem:[%s11931_s19 + $0x78] sm:$0xff]  ;;  %v1033_v22 = vadd.f32 %v12060_v19, %v12057_v18  ;;  %v12073_v24 = vld [vmem:[%s11931_s19 + $0x80] sm:$0xff]  ;;  %v12076_v25 = vld [vmem:[%s11931_s19 + $0x88] sm:$0xff] }
 0x17d   : > { %v1036_v23 = vadd.f32 %v12066_v21, %v12063_v20  ;;  %v12079_v26 = vld [vmem:[%s11931_s19 + $0x90] sm:$0xff]  ;;  %v12082_v27 = vld [vmem:[%s11931_s19 + $0x98] sm:$0xff]  ;;  %v1039_v28 = vadd.f32 %v12076_v25, %v12073_v24  ;;  %v12089_v30 = vld [vmem:[%s11931_s19 + $0xa0] sm:$0xff] }
 0x17e   : > { %1019 = vadd.xlane.f32.xlu0 %v1018_v10  ;;  %v1042_v29 = vadd.f32 %v12082_v27, %v12079_v26  ;;  %v12092_v31 = vld [vmem:[%s11931_s19 + $0xa8] sm:$0xff]  ;;  %v12095_v32 = vld [vmem:[%s11931_s19 + $0xb0] sm:$0xff]  ;;  %v12098_v33 = vld [vmem:[%s11931_s19 + $0xb8] sm:$0xff] }
 0x17f   : > { %1025 = vadd.xlane.f32.xlu1 %v1024_v11  ;;  %v1045_v34 = vadd.f32 %v12092_v31, %v12089_v30  ;;  %v1048_v35 = vadd.f32 %v12098_v33, %v12095_v32  ;;  %v12105_v36 = vld [vmem:[%s11931_s19 + $0xc0] sm:$0xff]  ;;  %v12108_v37 = vld [vmem:[%s11931_s19 + $0xc8] sm:$0xff]  ;;  %v12111_v38 = vld [vmem:[%s11931_s19 + $0xd0] sm:$0xff] }
 0x180   : > { %v12114_v39 = vld [vmem:[%s11931_s19 + $0xd8] sm:$0xff]  ;;  %v1051_v40 = vadd.f32 %v12108_v37, %v12105_v36  ;;  %v12121_v42 = vld [vmem:[%s11931_s19 + $0xe0] sm:$0xff]  ;;  %v12124_v43 = vld [vmem:[%s11931_s19 + $0xe8] sm:$0xff] }
 0x181   : > { %v1054_v41 = vadd.f32 %v12114_v39, %v12111_v38  ;;  %v12127_v44 = vld [vmem:[%s11931_s19 + $0xf0] sm:$0xff]  ;;  %v12130_v45 = vld [vmem:[%s11931_s19 + $0xf8] sm:$0xff]  ;;  %v1057_v46 = vadd.f32 %v12124_v43, %v12121_v42  ;;  %v12137_v48 = vld [vmem:[%s11931_s19 + $0x100] sm:$0xff] }
 0x182   : > { %1028 = vadd.xlane.f32.xlu0 %v1027_v16  ;;  %v1060_v47 = vadd.f32 %v12130_v45, %v12127_v44  ;;  %v12140_v49 = vld [vmem:[%s11931_s19 + $0x108] sm:$0xff]  ;;  %v12143_v50 = vld [vmem:[%s11931_s19 + $0x110] sm:$0xff]  ;;  %v12146_v51 = vld [vmem:[%s11931_s19 + $0x118] sm:$0xff] }
 0x183   : > { %1031 = vadd.xlane.f32.xlu1 %v1030_v17  ;;  %v1063_v52 = vadd.f32 %v12140_v49, %v12137_v48  ;;  %v1066_v53 = vadd.f32 %v12146_v51, %v12143_v50  ;;  %v12153_v54 = vld [vmem:[%s11931_s19 + $0x120] sm:$0xff]  ;;  %v12156_v55 = vld [vmem:[%s11931_s19 + $0x128] sm:$0xff]  ;;  %v12159_v56 = vld [vmem:[%s11931_s19 + $0x130] sm:$0xff] }
 0x184   : > { %v12162_v57 = vld [vmem:[%s11931_s19 + $0x138] sm:$0xff]  ;;  %v1069_v58 = vadd.f32 %v12156_v55, %v12153_v54  ;;  %v12169_v60 = vld [vmem:[%s11931_s19 + $0x140] sm:$0xff]  ;;  %v12172_v61 = vld [vmem:[%s11931_s19 + $0x148] sm:$0xff] }
 0x185   : > { %v1072_v59 = vadd.f32 %v12162_v57, %v12159_v56  ;;  %v12175_v62 = vld [vmem:[%s11931_s19 + $0x150] sm:$0xff]  ;;  %v12178_v63 = vld [vmem:[%s11931_s19 + $0x158] sm:$0xff]  ;;  %v1075_v3 = vadd.f32 %v12172_v61, %v12169_v60  ;;  %v12185_v10 = vld [vmem:[%s11931_s19 + $0x160] sm:$0xff] }
 0x186   : > { %1034 = vadd.xlane.f32.xlu0 %v1033_v22  ;;  %v1078_v7 = vadd.f32 %v12178_v63, %v12175_v62  ;;  %v12188_v11 = vld [vmem:[%s11931_s19 + $0x168] sm:$0xff]  ;;  %v12191_v16 = vld [vmem:[%s11931_s19 + $0x170] sm:$0xff]  ;;  %v12194_v17 = vld [vmem:[%s11931_s19 + $0x178] sm:$0xff] }
 0x187   : > { %1037 = vadd.xlane.f32.xlu1 %v1036_v23  ;;  %v1081_v22 = vadd.f32 %v12188_v11, %v12185_v10  ;;  %v1084_v23 = vadd.f32 %v12194_v17, %v12191_v16 }
 0x18a   : > { %1040 = vadd.xlane.f32.xlu0 %v1039_v28  ;;  %v12201_v28 = vld [vmem:[%s11931_s19 + $0x180] sm:$0xff] }
 0x18b   : > { %1043 = vadd.xlane.f32.xlu1 %v1042_v29  ;;  %v12204_v29 = vld [vmem:[%s11931_s19 + $0x188] sm:$0xff] }
 0x18e   : > { %1046 = vadd.xlane.f32.xlu0 %v1045_v34  ;;  %v12207_v34 = vld [vmem:[%s11931_s19 + $0x190] sm:$0xff] }
 0x18f   : > { %1049 = vadd.xlane.f32.xlu1 %v1048_v35  ;;  %17864 = vst [vmem:[#allocation39_spill] sm:$0xff] %v12207_v34  ;;  %v12210_v35 = vld [vmem:[%s11931_s19 + $0x198] sm:$0xff] }
 0x190   : > { %17865 = vst [vmem:[#allocation40_spill] sm:$0xff] %v12210_v35 }
 0x192   : > { %1052 = vadd.xlane.f32.xlu0 %v1051_v40  ;;  %v1087_v40 = vadd.f32 %v12204_v29, %v12201_v28 }
 0x193   : > { %1055 = vadd.xlane.f32.xlu1 %v1054_v41  ;;  %v1090_v41 = vadd.f32 %v12210_v35, %v12207_v34 }
 0x196   : > { %1058 = vadd.xlane.f32.xlu0 %v1057_v46  ;;  %v12217_v46 = vld [vmem:[%s11931_s19 + $0x1a0] sm:$0xff] }
 0x197   : > { %1061 = vadd.xlane.f32.xlu1 %v1060_v47  ;;  %17866 = vst [vmem:[#allocation41_spill] sm:$0xff] %v12217_v46  ;;  %v12220_v47 = vld [vmem:[%s11931_s19 + $0x1a8] sm:$0xff] }
 0x198   : > { %17867 = vst [vmem:[#allocation42_spill] sm:$0xff] %v12220_v47 }
 0x19a   : > { %1064 = vadd.xlane.f32.xlu0 %v1063_v52  ;;  %v12223_v52 = vld [vmem:[%s11931_s19 + $0x1b0] sm:$0xff] }
 0x19b   : > { %1067 = vadd.xlane.f32.xlu1 %v1066_v53  ;;  %17868 = vst [vmem:[#allocation43_spill] sm:$0xff] %v12223_v52  ;;  %v12226_v53 = vld [vmem:[%s11931_s19 + $0x1b8] sm:$0xff] }
 0x19c   : > { %17869 = vst [vmem:[#allocation44_spill] sm:$0xff] %v12226_v53 }
 0x19e   : > { %1070 = vadd.xlane.f32.xlu0 %v1069_v58  ;;  %v1093_v58 = vadd.f32 %v12220_v47, %v12217_v46  ;;  %v12252_v47 = vld [vmem:[%s11931_s19 + $0x1e8] sm:$0xff] }
 0x19f   : > { %1073 = vadd.xlane.f32.xlu1 %v1072_v59  ;;  %v1096_v59 = vadd.f32 %v12226_v53, %v12223_v52  ;;  %17874 = vst [vmem:[#allocation49_spill] sm:$0xff] %v12252_v47  ;;  %v12255_v53 = vld [vmem:[%s11931_s19 + $0x1f0] sm:$0xff]  ;;  %v12258_v52 = vld [vmem:[%s11931_s19 + $0x1f8] sm:$0xff] }
 0x1a0   : > { %17875 = vst [vmem:[#allocation50_spill] sm:$0xff] %v12258_v52 }
 0x1a2   : > { %1076 = vadd.xlane.f32.xlu0 %v1075_v3  ;;  %v12233_v3 = vld [vmem:[%s11931_s19 + $0x1c0] sm:$0xff] }
 0x1a3   : > { %1079 = vadd.xlane.f32.xlu1 %v1078_v7  ;;  %17870 = vst [vmem:[#allocation45_spill] sm:$0xff] %v12233_v3  ;;  %v12236_v7 = vld [vmem:[%s11931_s19 + $0x1c8] sm:$0xff] }
 0x1a4   : > { %17871 = vst [vmem:[#allocation46_spill] sm:$0xff] %v12236_v7  ;;  %v1099_v35 = vadd.f32 %v12236_v7, %v12233_v3 }
 0x1a6   : > { %1082 = vadd.xlane.f32.xlu0 %v1081_v22  ;;  %v12239_v22 = vld [vmem:[%s11931_s19 + $0x1d0] sm:$0xff] }
 0x1a7   : > { %1085 = vadd.xlane.f32.xlu1 %v1084_v23  ;;  %17872 = vst [vmem:[#allocation47_spill] sm:$0xff] %v12239_v22  ;;  %v12242_v23 = vld [vmem:[%s11931_s19 + $0x1d8] sm:$0xff] }
 0x1a8   : > { %17873 = vst [vmem:[#allocation48_spill] sm:$0xff] %v12242_v23 }
 0x1aa   : > { %1088 = vadd.xlane.f32.xlu0 %v1087_v40  ;;  %v1102_v40 = vadd.f32 %v12242_v23, %v12239_v22 }
 0x1ab   : > { %1091 = vadd.xlane.f32.xlu1 %v1090_v41  ;;  %v12249_v41 = vld [vmem:[%s11931_s19 + $0x1e0] sm:$0xff] }
 0x1ac   : > { %v1105_v46 = vadd.f32 %v12252_v47, %v12249_v41 }
 0x1ae   : > { %1094 = vadd.xlane.f32.xlu0 %v1093_v58  ;;  %v1108_v58 = vadd.f32 %v12258_v52, %v12255_v53 }
 0x1af   : > { %1097 = vadd.xlane.f32.xlu1 %v1096_v59 }
 0x1b2   : > { %1100 = vadd.xlane.f32.xlu0 %v1099_v35 }
 0x1b3   : > { %1103 = vadd.xlane.f32.xlu1 %v1102_v40 }
 0x1b6   : > { %1106 = vadd.xlane.f32.xlu0 %v1105_v46 }
 0x1b7   : > { %1109 = vadd.xlane.f32.xlu1 %v1108_v58 }
 0x207   : > { %v1017_v59 = vpop.xlane.xlu0 %1016 }
 0x208   : > { %v1112_v23 = vmul.f32 0.00390625, %v1017_v59  ;;  %v1023_v22 = vpop.xlane.xlu1 %1022 }
 0x209   : > { %v1114_v7 = vmul.f32 0.00390625, %v1023_v22 }
 0x20a   : > { %v12265_v3 = vsub.f32 %v12009_v0, %v1112_v23  ;;  %v12268_v34 = vsub.f32 %v12012_v1, %v1112_v23 }
 0x20b   : > { %v12271_v35 = vsub.f32 %v12015_v2, %v1114_v7  ;;  %v12274_v40 = vsub.f32 %v12020_v4, %v1114_v7  ;;  %v1020_v47 = vpop.xlane.xlu0 %1019 }
 0x20c   : > { %17876 = vst [vmem:[#allocation51_spill] sm:$0xff] %v12265_v3  ;;  %17877 = vst [vmem:[#allocation52_spill] sm:$0xff] %v12268_v34  ;;  %v1113_v52 = vmul.f32 0.00390625, %v1020_v47  ;;  %v1026_v46 = vpop.xlane.xlu1 %1025  ;;  %v1208_v58 = vmul.f32 %v12265_v3, %v12265_v3  ;;  %v1209_v22 = vmul.f32 %v12268_v34, %v12268_v34 }
 0x20d   : > { %17878 = vst [vmem:[#allocation53_spill] sm:$0xff] %v12271_v35  ;;  %17879 = vst [vmem:[#allocation54_spill] sm:$0xff] %v12274_v40  ;;  %v1115_v0 = vmul.f32 0.00390625, %v1026_v46  ;;  %v1212_v1 = vmul.f32 %v12271_v35, %v12271_v35  ;;  %v1213_v2 = vmul.f32 %v12274_v40, %v12274_v40 }
 0x20e   : > { %v12285_v23 = vsub.f32 %v12023_v5, %v1113_v52  ;;  %v12288_v4 = vsub.f32 %v12026_v6, %v1113_v52  ;;  %v1272_v47 = vadd.f32 %v1209_v22, %v1208_v58 }
 0x20f   : > { %v12291_v7 = vsub.f32 %v12031_v8, %v1115_v0  ;;  %v12294_v59 = vsub.f32 %v12034_v9, %v1115_v0  ;;  %v1029_v46 = vpop.xlane.xlu0 %1028  ;;  %v1278_v3 = vadd.f32 %v1213_v2, %v1212_v1 }
 0x210   : > { %v1116_v34 = vmul.f32 0.00390625, %v1029_v46  ;;  %1273 = vadd.xlane.f32.xlu0 %v1272_v47  ;;  %v1032_v35 = vpop.xlane.xlu1 %1031  ;;  %v1210_v40 = vmul.f32 %v12285_v23, %v12285_v23  ;;  %v1211_v5 = vmul.f32 %v12288_v4, %v12288_v4 }
 0x211   : > { %v1117_v6 = vmul.f32 0.00390625, %v1032_v35  ;;  %v1214_v52 = vmul.f32 %v12291_v7, %v12291_v7  ;;  %v1215_v8 = vmul.f32 %v12294_v59, %v12294_v59 }
 0x212   : > { %v12305_v9 = vsub.f32 %v12041_v12, %v1116_v34  ;;  %v12308_v58 = vsub.f32 %v12044_v13, %v1116_v34  ;;  %v1275_v22 = vadd.f32 %v1211_v5, %v1210_v40 }
 0x213   : > { %v12311_v0 = vsub.f32 %v12047_v14, %v1117_v6  ;;  %v12314_v1 = vsub.f32 %v12050_v15, %v1117_v6  ;;  %v1035_v35 = vpop.xlane.xlu0 %1034  ;;  %v1281_v46 = vadd.f32 %v1215_v8, %v1214_v52 }
 0x214   : > { %v1118_v2 = vmul.f32 0.00390625, %v1035_v35  ;;  %1279 = vadd.xlane.f32.xlu0 %v1278_v3  ;;  %1276 = vadd.xlane.f32.xlu1 %v1275_v22  ;;  %v1038_v47 = vpop.xlane.xlu1 %1037  ;;  %v1216_v12 = vmul.f32 %v12305_v9, %v12305_v9  ;;  %v1217_v13 = vmul.f32 %v12308_v58, %v12308_v58 }
 0x215   : > { %v1119_v34 = vmul.f32 0.00390625, %v1038_v47  ;;  %v1218_v14 = vmul.f32 %v12311_v0, %v12311_v0  ;;  %v1219_v15 = vmul.f32 %v12314_v1, %v12314_v1 }
 0x216   : > { %v12325_v40 = vsub.f32 %v12057_v18, %v1118_v2  ;;  %v12328_v3 = vsub.f32 %v12060_v19, %v1118_v2  ;;  %v1284_v5 = vadd.f32 %v1217_v13, %v1216_v12 }
 0x217   : > { %v12331_v6 = vsub.f32 %v12063_v20, %v1119_v34  ;;  %v12334_v52 = vsub.f32 %v12066_v21, %v1119_v34  ;;  %v1041_v8 = vpop.xlane.xlu0 %1040  ;;  %v1287_v47 = vadd.f32 %v1219_v15, %v1218_v14 }
 0x218   : > { %v1120_v22 = vmul.f32 0.00390625, %v1041_v8  ;;  %1282 = vadd.xlane.f32.xlu1 %v1281_v46  ;;  %1285 = vadd.xlane.f32.xlu0 %v1284_v5  ;;  %v1044_v35 = vpop.xlane.xlu1 %1043  ;;  %v1220_v18 = vmul.f32 %v12325_v40, %v12325_v40  ;;  %v1221_v19 = vmul.f32 %v12328_v3, %v12328_v3 }
 0x219   : > { %v1121_v2 = vmul.f32 0.00390625, %v1044_v35  ;;  %v1222_v20 = vmul.f32 %v12331_v6, %v12331_v6  ;;  %v1223_v21 = vmul.f32 %v12334_v52, %v12334_v52 }
 0x21a   : > { %v12345_v12 = vsub.f32 %v12073_v24, %v1120_v22  ;;  %v12348_v46 = vsub.f32 %v12076_v25, %v1120_v22  ;;  %v1290_v13 = vadd.f32 %v1221_v19, %v1220_v18 }
 0x21b   : > { %v12351_v34 = vsub.f32 %v12079_v26, %v1121_v2  ;;  %v12354_v14 = vsub.f32 %v12082_v27, %v1121_v2  ;;  %v1047_v15 = vpop.xlane.xlu0 %1046  ;;  %v1293_v35 = vadd.f32 %v1223_v21, %v1222_v20 }
 0x21c   : > { %v1122_v5 = vmul.f32 0.00390625, %v1047_v15  ;;  %1288 = vadd.xlane.f32.xlu1 %v1287_v47  ;;  %1291 = vadd.xlane.f32.xlu0 %v1290_v13  ;;  %v1050_v8 = vpop.xlane.xlu1 %1049  ;;  %v1224_v24 = vmul.f32 %v12345_v12, %v12345_v12  ;;  %v1225_v25 = vmul.f32 %v12348_v46, %v12348_v46 }
 0x21d   : > { %v1123_v22 = vmul.f32 0.00390625, %v1050_v8  ;;  %v1226_v26 = vmul.f32 %v12351_v34, %v12351_v34  ;;  %v1227_v27 = vmul.f32 %v12354_v14, %v12354_v14 }
 0x21e   : > { %v12365_v18 = vsub.f32 %v12089_v30, %v1122_v5  ;;  %v12368_v47 = vsub.f32 %v12092_v31, %v1122_v5  ;;  %v1296_v19 = vadd.f32 %v1225_v25, %v1224_v24 }
 0x21f   : > { %v12371_v2 = vsub.f32 %v12095_v32, %v1123_v22  ;;  %v12374_v20 = vsub.f32 %v12098_v33, %v1123_v22  ;;  %v1053_v21 = vpop.xlane.xlu0 %1052  ;;  %v1299_v8 = vadd.f32 %v1227_v27, %v1226_v26 }
 0x220   : > { %v1124_v13 = vmul.f32 0.00390625, %v1053_v21  ;;  %1294 = vadd.xlane.f32.xlu1 %v1293_v35  ;;  %1297 = vadd.xlane.f32.xlu0 %v1296_v19  ;;  %v1056_v15 = vpop.xlane.xlu1 %1055  ;;  %v1228_v30 = vmul.f32 %v12365_v18, %v12365_v18  ;;  %v1229_v31 = vmul.f32 %v12368_v47, %v12368_v47 }
 0x221   : > { %v1125_v5 = vmul.f32 0.00390625, %v1056_v15  ;;  %v1230_v32 = vmul.f32 %v12371_v2, %v12371_v2  ;;  %v1231_v33 = vmul.f32 %v12374_v20, %v12374_v20 }
 0x222   : > { %v12385_v24 = vsub.f32 %v12105_v36, %v1124_v13  ;;  %v12388_v35 = vsub.f32 %v12108_v37, %v1124_v13  ;;  %v1302_v25 = vadd.f32 %v1229_v31, %v1228_v30 }
 0x223   : > { %v12391_v22 = vsub.f32 %v12111_v38, %v1125_v5  ;;  %v12394_v26 = vsub.f32 %v12114_v39, %v1125_v5  ;;  %v1059_v27 = vpop.xlane.xlu0 %1058  ;;  %v1305_v15 = vadd.f32 %v1231_v33, %v1230_v32 }
 0x224   : > { %v1126_v19 = vmul.f32 0.00390625, %v1059_v27  ;;  %1300 = vadd.xlane.f32.xlu1 %v1299_v8  ;;  %1303 = vadd.xlane.f32.xlu0 %v1302_v25  ;;  %v1062_v21 = vpop.xlane.xlu1 %1061  ;;  %v1232_v36 = vmul.f32 %v12385_v24, %v12385_v24  ;;  %v1233_v37 = vmul.f32 %v12388_v35, %v12388_v35 }
 0x225   : > { %v1127_v13 = vmul.f32 0.00390625, %v1062_v21  ;;  %v1234_v38 = vmul.f32 %v12391_v22, %v12391_v22  ;;  %v1235_v39 = vmul.f32 %v12394_v26, %v12394_v26 }
 0x226   : > { %v12405_v30 = vsub.f32 %v12121_v42, %v1126_v19  ;;  %v12408_v8 = vsub.f32 %v12124_v43, %v1126_v19  ;;  %v1308_v31 = vadd.f32 %v1233_v37, %v1232_v36 }
 0x227   : > { %v12411_v5 = vsub.f32 %v12127_v44, %v1127_v13  ;;  %v12414_v32 = vsub.f32 %v12130_v45, %v1127_v13  ;;  %v1065_v33 = vpop.xlane.xlu0 %1064  ;;  %v1311_v21 = vadd.f32 %v1235_v39, %v1234_v38 }
 0x228   : > { %v1128_v25 = vmul.f32 0.00390625, %v1065_v33  ;;  %1306 = vadd.xlane.f32.xlu1 %v1305_v15  ;;  %1309 = vadd.xlane.f32.xlu0 %v1308_v31  ;;  %v1068_v27 = vpop.xlane.xlu1 %1067  ;;  %v1236_v42 = vmul.f32 %v12405_v30, %v12405_v30  ;;  %v1237_v43 = vmul.f32 %v12408_v8, %v12408_v8 }
 0x229   : > { %v1129_v19 = vmul.f32 0.00390625, %v1068_v27  ;;  %v1238_v44 = vmul.f32 %v12411_v5, %v12411_v5  ;;  %v1239_v45 = vmul.f32 %v12414_v32, %v12414_v32 }
 0x22a   : > { %v12425_v36 = vsub.f32 %v12137_v48, %v1128_v25  ;;  %v12428_v15 = vsub.f32 %v12140_v49, %v1128_v25  ;;  %v1314_v37 = vadd.f32 %v1237_v43, %v1236_v42 }
 0x22b   : > { %v12431_v13 = vsub.f32 %v12143_v50, %v1129_v19  ;;  %v12434_v38 = vsub.f32 %v12146_v51, %v1129_v19  ;;  %v1071_v39 = vpop.xlane.xlu0 %1070  ;;  %v1317_v27 = vadd.f32 %v1239_v45, %v1238_v44 }
 0x22c   : > { %v1130_v31 = vmul.f32 0.00390625, %v1071_v39  ;;  %1312 = vadd.xlane.f32.xlu1 %v1311_v21  ;;  %1315 = vadd.xlane.f32.xlu0 %v1314_v37  ;;  %v1074_v33 = vpop.xlane.xlu1 %1073  ;;  %v1240_v48 = vmul.f32 %v12425_v36, %v12425_v36  ;;  %v1241_v49 = vmul.f32 %v12428_v15, %v12428_v15 }
 0x22d   : > { %v1131_v25 = vmul.f32 0.00390625, %v1074_v33  ;;  %v1242_v50 = vmul.f32 %v12431_v13, %v12431_v13  ;;  %v1243_v51 = vmul.f32 %v12434_v38, %v12434_v38 }
 0x22e   : > { %v12445_v42 = vsub.f32 %v12153_v54, %v1130_v31  ;;  %v12448_v21 = vsub.f32 %v12156_v55, %v1130_v31  ;;  %v1320_v43 = vadd.f32 %v1241_v49, %v1240_v48 }
 0x22f   : > { %v12451_v19 = vsub.f32 %v12159_v56, %v1131_v25  ;;  %v12454_v44 = vsub.f32 %v12162_v57, %v1131_v25  ;;  %v1077_v45 = vpop.xlane.xlu0 %1076  ;;  %v1323_v33 = vadd.f32 %v1243_v51, %v1242_v50 }
 0x230   : > { %v1132_v37 = vmul.f32 0.00390625, %v1077_v45  ;;  %1318 = vadd.xlane.f32.xlu1 %v1317_v27  ;;  %1321 = vadd.xlane.f32.xlu0 %v1320_v43  ;;  %v1080_v39 = vpop.xlane.xlu1 %1079  ;;  %v1244_v54 = vmul.f32 %v12445_v42, %v12445_v42  ;;  %v1245_v55 = vmul.f32 %v12448_v21, %v12448_v21 }
 0x231   : > { %v1133_v31 = vmul.f32 0.00390625, %v1080_v39  ;;  %v1246_v56 = vmul.f32 %v12451_v19, %v12451_v19  ;;  %v1247_v57 = vmul.f32 %v12454_v44, %v12454_v44 }
 0x232   : > { %v12465_v48 = vsub.f32 %v12169_v60, %v1132_v37  ;;  %v12468_v27 = vsub.f32 %v12172_v61, %v1132_v37  ;;  %v1326_v49 = vadd.f32 %v1245_v55, %v1244_v54 }
 0x233   : > { %v12471_v25 = vsub.f32 %v12175_v62, %v1133_v31  ;;  %v12474_v50 = vsub.f32 %v12178_v63, %v1133_v31  ;;  %v1083_v51 = vpop.xlane.xlu0 %1082  ;;  %v1329_v39 = vadd.f32 %v1247_v57, %v1246_v56 }
 0x234   : > { %17880 = vst [vmem:[#allocation55_spill] sm:$0xff] %v12465_v48  ;;  %17881 = vst [vmem:[#allocation56_spill] sm:$0xff] %v12468_v27  ;;  %v1134_v43 = vmul.f32 0.00390625, %v1083_v51  ;;  %1324 = vadd.xlane.f32.xlu1 %v1323_v33  ;;  %1327 = vadd.xlane.f32.xlu0 %v1326_v49  ;;  %v1086_v45 = vpop.xlane.xlu1 %1085  ;;  %v1248_v60 = vmul.f32 %v12465_v48, %v12465_v48  ;;  %v1249_v61 = vmul.f32 %v12468_v27, %v12468_v27 }
 0x235   : > { %17882 = vst [vmem:[#allocation57_spill] sm:$0xff] %v12471_v25  ;;  %17883 = vst [vmem:[#allocation58_spill] sm:$0xff] %v12474_v50  ;;  %v1135_v37 = vmul.f32 0.00390625, %v1086_v45  ;;  %v1250_v62 = vmul.f32 %v12471_v25, %v12471_v25  ;;  %v1251_v63 = vmul.f32 %v12474_v50, %v12474_v50  ;;  %v12612_v25 = vld [vmem:[#allocation6 + $0x10] sm:$0xff] }
 0x236   : > { %v12485_v54 = vsub.f32 %v12185_v10, %v1134_v43  ;;  %v12488_v33 = vsub.f32 %v12188_v11, %v1134_v43  ;;  %v1332_v55 = vadd.f32 %v1249_v61, %v1248_v60 }
 0x237   : > { %v12491_v31 = vsub.f32 %v12191_v16, %v1135_v37  ;;  %v12494_v56 = vsub.f32 %v12194_v17, %v1135_v37  ;;  %v1089_v57 = vpop.xlane.xlu0 %1088  ;;  %v1335_v45 = vadd.f32 %v1251_v63, %v1250_v62  ;;  %v17890_v37 = vld [vmem:[#allocation39_spill] sm:$0xff]  ;;  %v17892_v63 = vld [vmem:[#allocation40_spill] sm:$0xff] }
 0x238   : > { %17884 = vst [vmem:[#allocation59_spill] sm:$0xff] %v12485_v54  ;;  %17885 = vst [vmem:[#allocation60_spill] sm:$0xff] %v12488_v33  ;;  %v1136_v49 = vmul.f32 0.00390625, %v1089_v57  ;;  %1330 = vadd.xlane.f32.xlu1 %v1329_v39  ;;  %1333 = vadd.xlane.f32.xlu0 %v1332_v55  ;;  %v1092_v51 = vpop.xlane.xlu1 %1091  ;;  %v1252_v10 = vmul.f32 %v12485_v54, %v12485_v54  ;;  %v1253_v11 = vmul.f32 %v12488_v33, %v12488_v33 }
 0x239   : > { %17886 = vst [vmem:[#allocation61_spill] sm:$0xff] %v12491_v31  ;;  %17887 = vst [vmem:[#allocation62_spill] sm:$0xff] %v12494_v56  ;;  %v1137_v43 = vmul.f32 0.00390625, %v1092_v51  ;;  %v1254_v16 = vmul.f32 %v12491_v31, %v12491_v31  ;;  %v1255_v17 = vmul.f32 %v12494_v56, %v12494_v56 }
 0x23a   : > { %v12505_v60 = vsub.f32 %v12201_v28, %v1136_v49  ;;  %v12508_v39 = vsub.f32 %v12204_v29, %v1136_v49  ;;  %v1338_v61 = vadd.f32 %v1253_v11, %v1252_v10 }
 0x23b   : > { %v12511_v62 = vsub.f32 %v17890_v37, %v1137_v43  ;;  %v12514_v55 = vsub.f32 %v17892_v63, %v1137_v43  ;;  %v1095_v57 = vpop.xlane.xlu0 %1094  ;;  %v1341_v33 = vadd.f32 %v1255_v17, %v1254_v16  ;;  %v17894_v43 = vld [vmem:[#allocation41_spill] sm:$0xff]  ;;  %v17898_v17 = vld [vmem:[#allocation43_spill] sm:$0xff] }
 0x23c   : > { %17888 = vst [vmem:[#allocation63_spill] sm:$0xff] %v12505_v60  ;;  %17889 = vst [vmem:[#allocation64_spill] sm:$0xff] %v12508_v39  ;;  %v1138_v51 = vmul.f32 0.00390625, %v1095_v57  ;;  %1336 = vadd.xlane.f32.xlu1 %v1335_v45  ;;  %1339 = vadd.xlane.f32.xlu0 %v1338_v61  ;;  %v1098_v31 = vpop.xlane.xlu1 %1097  ;;  %v1256_v28 = vmul.f32 %v12505_v60, %v12505_v60  ;;  %v1257_v29 = vmul.f32 %v12508_v39, %v12508_v39  ;;  %v17896_v45 = vld [vmem:[#allocation42_spill] sm:$0xff]  ;;  %v17900_v57 = vld [vmem:[#allocation44_spill] sm:$0xff] }
 0x23d   : > { %17891 = vst [vmem:[#allocation39_spill] sm:$0xff] %v12511_v62  ;;  %17893 = vst [vmem:[#allocation40_spill] sm:$0xff] %v12514_v55  ;;  %v1139_v49 = vmul.f32 0.00390625, %v1098_v31  ;;  %v1258_v10 = vmul.f32 %v12511_v62, %v12511_v62  ;;  %v1259_v11 = vmul.f32 %v12514_v55, %v12514_v55 }
 0x23e   : > { %v12525_v37 = vsub.f32 %v17894_v43, %v1138_v51  ;;  %v12528_v61 = vsub.f32 %v17896_v45, %v1138_v51  ;;  %v1344_v16 = vadd.f32 %v1257_v29, %v1256_v28 }
 0x23f   : > { %v12531_v63 = vsub.f32 %v17898_v17, %v1139_v49  ;;  %v12534_v60 = vsub.f32 %v17900_v57, %v1139_v49  ;;  %v1101_v31 = vpop.xlane.xlu0 %1100  ;;  %v1347_v56 = vadd.f32 %v1259_v11, %v1258_v10  ;;  %v17902_v49 = vld [vmem:[#allocation45_spill] sm:$0xff]  ;;  %v17906_v11 = vld [vmem:[#allocation47_spill] sm:$0xff] }
 0x240   : > { %17895 = vst [vmem:[#allocation41_spill] sm:$0xff] %v12525_v37  ;;  %17897 = vst [vmem:[#allocation42_spill] sm:$0xff] %v12528_v61  ;;  %v1140_v39 = vmul.f32 0.00390625, %v1101_v31  ;;  %1342 = vadd.xlane.f32.xlu1 %v1341_v33  ;;  %1345 = vadd.xlane.f32.xlu0 %v1344_v16  ;;  %v1104_v62 = vpop.xlane.xlu1 %1103  ;;  %v1260_v43 = vmul.f32 %v12525_v37, %v12525_v37  ;;  %v1261_v51 = vmul.f32 %v12528_v61, %v12528_v61  ;;  %v17904_v33 = vld [vmem:[#allocation46_spill] sm:$0xff]  ;;  %v17908_v31 = vld [vmem:[#allocation48_spill] sm:$0xff] }
 0x241   : > { %17899 = vst [vmem:[#allocation43_spill] sm:$0xff] %v12531_v63  ;;  %17901 = vst [vmem:[#allocation44_spill] sm:$0xff] %v12534_v60  ;;  %v1141_v45 = vmul.f32 0.00390625, %v1104_v62  ;;  %v1262_v28 = vmul.f32 %v12531_v63, %v12531_v63  ;;  %v1263_v29 = vmul.f32 %v12534_v60, %v12534_v60  ;;  %v17919_v60 = vld [vmem:[#allocation54_spill] sm:$0xff] }
 0x242   : > { %v12545_v17 = vsub.f32 %v17902_v49, %v1140_v39  ;;  %v12548_v16 = vsub.f32 %v17904_v33, %v1140_v39  ;;  %v1350_v10 = vadd.f32 %v1261_v51, %v1260_v43 }
 0x243   : > { %v12551_v57 = vsub.f32 %v17906_v11, %v1141_v45  ;;  %v12554_v37 = vsub.f32 %v17908_v31, %v1141_v45  ;;  %v1107_v62 = vpop.xlane.xlu0 %1106  ;;  %v1353_v55 = vadd.f32 %v1263_v29, %v1262_v28  ;;  %v17914_v11 = vld [vmem:[#allocation50_spill] sm:$0xff] }
 0x244   : > { %17903 = vst [vmem:[#allocation45_spill] sm:$0xff] %v12545_v17  ;;  %17905 = vst [vmem:[#allocation46_spill] sm:$0xff] %v12548_v16  ;;  %v1142_v61 = vmul.f32 0.00390625, %v1107_v62  ;;  %1348 = vadd.xlane.f32.xlu1 %v1347_v56  ;;  %1351 = vadd.xlane.f32.xlu0 %v1350_v10  ;;  %v1110_v63 = vpop.xlane.xlu1 %1109  ;;  %v1264_v49 = vmul.f32 %v12545_v17, %v12545_v17  ;;  %v1265_v39 = vmul.f32 %v12548_v16, %v12548_v16  ;;  %v17911_v56 = vld [vmem:[#allocation49_spill] sm:$0xff] }
 0x245   : > { %17907 = vst [vmem:[#allocation47_spill] sm:$0xff] %v12551_v57  ;;  %17909 = vst [vmem:[#allocation48_spill] sm:$0xff] %v12554_v37  ;;  %v1143_v33 = vmul.f32 0.00390625, %v1110_v63  ;;  %v1266_v43 = vmul.f32 %v12551_v57, %v12551_v57  ;;  %v1267_v51 = vmul.f32 %v12554_v37, %v12554_v37 }
 0x246   : > { %v12565_v45 = vsub.f32 %v12249_v41, %v1142_v61  ;;  %v12568_v10 = vsub.f32 %v17911_v56, %v1142_v61  ;;  %v1356_v28 = vadd.f32 %v1265_v39, %v1264_v49 }
 0x247   : > { %v12571_v29 = vsub.f32 %v12255_v53, %v1143_v33  ;;  %v12574_v31 = vsub.f32 %v17914_v11, %v1143_v33  ;;  %v1359_v63 = vadd.f32 %v1267_v51, %v1266_v43  ;;  %v1529_v43 = vlaneseq }
 0x248   : > { %17910 = vst [vmem:[#allocation65_spill] sm:$0xff] %v12565_v45  ;;  %17912 = vst [vmem:[#allocation49_spill] sm:$0xff] %v12568_v10  ;;  %1354 = vadd.xlane.f32.xlu1 %v1353_v55  ;;  %1357 = vadd.xlane.f32.xlu0 %v1356_v28  ;;  %v1268_v62 = vmul.f32 %v12565_v45, %v12565_v45  ;;  %v1269_v41 = vmul.f32 %v12568_v10, %v12568_v10 }
 0x249   : > { %17913 = vst [vmem:[#allocation66_spill] sm:$0xff] %v12571_v29  ;;  %17915 = vst [vmem:[#allocation50_spill] sm:$0xff] %v12574_v31  ;;  %v1270_v61 = vmul.f32 %v12571_v29, %v12571_v29  ;;  %v1271_v49 = vmul.f32 %v12574_v31, %v12574_v31  ;;  %v1530_v45 = vshrl.u32 %v1529_v43, 7  ;;  %v1014_v31 = vld [vmem:[#allocation10] sm:$0x3] }
 0x24a   : > { %v1362_v53 = vadd.f32 %v1269_v41, %v1268_v62 }
 0x24b   : > { %v1365_v39 = vadd.f32 %v1271_v49, %v1270_v61  ;;  %v1531_v41 = vsub.s32 0, %v1530_v45  ;;  %v1535_v61 = vsub.s32 1, %v1530_v45  ;;  %v1013_v49 = vld [vmem:[#allocation9] sm:$0x3] }
 0x24c   : > { %1360 = vadd.xlane.f32.xlu1 %v1359_v63  ;;  %1363 = vadd.xlane.f32.xlu0 %v1362_v53 }
 0x24d   : > { %v12584_v43 = vrot.slane %v1013_v49, %v1531_v41  ;;  %v12590_v45 = vrot.slane %v1014_v31, %v1535_v61 }
 0x250   : > { %1366 = vadd.xlane.f32.xlu1 %v1365_v39 }
 0x29d   : > { %v1274_v55 = vpop.xlane.xlu0 %1273 }
 0x29e   : > { %v1368_v33 = vmul.f32 0.00390625, %v1274_v55 }
 0x2a0   : > { %v1400_v51 = vadd.f32 1e-05, %v1368_v33 }
 0x2a1   : > { %v1277_v56 = vpop.xlane.xlu1 %1276  ;;  %v1280_v28 = vpop.xlane.xlu0 %1279 }
 0x2a2   : > { %10058 = vrsqrt.f32 %v1400_v51  ;;  %v1369_v11 = vmul.f32 0.00390625, %v1277_v56  ;;  %v1370_v10 = vmul.f32 0.00390625, %v1280_v28  ;;  %v12588_v28 = vrot.slane %v1014_v31, %v1531_v41  ;;  %v12598_v41 = vld [vmem:[#allocation6 + $0x8] sm:$0xff] }
 0x2a4   : > { %v1401_v37 = vadd.f32 1e-05, %v1369_v11  ;;  %v1402_v29 = vadd.f32 1e-05, %v1370_v10  ;;  %v12586_v10 = vrot.slane %v1013_v49, %v1535_v61 }
 0x2a5   : > { %v1283_v57 = vpop.xlane.xlu1 %1282  ;;  %v1286_v16 = vpop.xlane.xlu0 %1285 }
 0x2a6   : > { %10060 = vrsqrt.f32 %v1401_v37  ;;  %v1371_v62 = vmul.f32 0.00390625, %v1283_v57  ;;  %v1372_v63 = vmul.f32 0.00390625, %v1286_v16 }
 0x2a7   : > { %10062 = vrsqrt.f32 %v1402_v29  ;;  %v17916_v29 = vld [vmem:[#allocation51_spill] sm:$0xff] }
 0x2a8   : > { %v1403_v53 = vadd.f32 1e-05, %v1371_v62  ;;  %v1404_v39 = vadd.f32 1e-05, %v1372_v63  ;;  %v17917_v62 = vld [vmem:[#allocation52_spill] sm:$0xff] }
 0x2a9   : > { %v1289_v55 = vpop.xlane.xlu1 %1288  ;;  %v1292_v33 = vpop.xlane.xlu0 %1291 }
 0x2aa   : > { %10064 = vrsqrt.f32 %v1403_v53  ;;  %v1373_v51 = vmul.f32 0.00390625, %v1289_v55  ;;  %v1374_v56 = vmul.f32 0.00390625, %v1292_v33 }
 0x2ab   : > { %10066 = vrsqrt.f32 %v1404_v39 }
 0x2ac   : > { %v10059_v37 = vpop.eup %10058  ;;  %v1405_v57 = vadd.f32 1e-05, %v1373_v51  ;;  %v1406_v16 = vadd.f32 1e-05, %v1374_v56  ;;  %v12596_v56 = vld [vmem:[#allocation6] sm:$0xff] }
 0x2ad   : > { %v1464_v11 = vmul.f32 %v10059_v37, %v17916_v29  ;;  %v1465_v63 = vmul.f32 %v10059_v37, %v17917_v62  ;;  %v1295_v17 = vpop.xlane.xlu1 %1294  ;;  %v1298_v53 = vpop.xlane.xlu0 %1297 }
 0x2ae   : > { %10068 = vrsqrt.f32 %v1405_v57  ;;  %v1375_v55 = vmul.f32 0.00390625, %v1295_v17  ;;  %v1376_v33 = vmul.f32 0.00390625, %v1298_v53 }
 0x2af   : > { %v1539_v49 = vmul.f32 %v12584_v43, %v1464_v11  ;;  %v1540_v39 = vmul.f32 %v12586_v10, %v1465_v63  ;;  %10070 = vrsqrt.f32 %v1406_v16  ;;  %v17918_v16 = vld [vmem:[#allocation53_spill] sm:$0xff] }
 0x2b0   : > { %v10061_v51 = vpop.eup %10060  ;;  %v1407_v31 = vadd.f32 1e-05, %v1375_v55  ;;  %v1408_v61 = vadd.f32 1e-05, %v1376_v33 }
 0x2b1   : > { %v10063_v29 = vpop.eup %10062  ;;  %v1614_v37 = vadd.f32 %v12588_v28, %v1539_v49  ;;  %v1615_v62 = vadd.f32 %v12590_v45, %v1540_v39  ;;  %v1466_v17 = vmul.f32 %v10061_v51, %v12285_v23  ;;  %v1467_v57 = vmul.f32 %v10061_v51, %v12288_v4  ;;  %v1301_v11 = vpop.xlane.xlu1 %1300  ;;  %v12614_v4 = vld [vmem:[#allocation6 + $0x18] sm:$0xff] }
 0x2b2   : > { %v12604_v53 = vpop.xlane.xlu0 %1303  ;;  %v1468_v63 = vmul.f32 %v10063_v29, %v17918_v16  ;;  %v1469_v54 = vmul.f32 %v10063_v29, %v17919_v60  ;;  %10072 = vrsqrt.f32 %v1407_v31  ;;  %v1377_v50 = vmul.f32 0.00390625, %v1301_v11 }
 0x2b3   : > { %v1710_v55 = vadd.f32 %v12596_v56, %v1614_v37  ;;  %v1711_v33 = vadd.f32 %v12598_v41, %v1615_v62  ;;  %v1541_v49 = vmul.f32 %v12584_v43, %v1466_v17  ;;  %v1542_v39 = vmul.f32 %v12586_v10, %v1467_v57  ;;  %v12622_v62 = vld [vmem:[#allocation6 + $0x20] sm:$0xff]  ;;  %v12624_v17 = vld [vmem:[#allocation6 + $0x28] sm:$0xff] }
 0x2b4   : > { %v10065_v23 = vpop.eup %10064  ;;  %v1543_v51 = vmul.f32 %v12584_v43, %v1468_v63  ;;  %v1544_v16 = vmul.f32 %v12586_v10, %v1469_v54  ;;  %10074 = vrsqrt.f32 %v1408_v61  ;;  %v12618_v60 = vadd.f32 1e-05, %v1377_v50  ;;  %17920 = vst [vmem:[#allocation51_spill] sm:$0xff] %v12622_v62  ;;  %17921 = vst [vmem:[#allocation52_spill] sm:$0xff] %v12624_v17 }
 0x2b5   : > { %v10067_v31 = vpop.eup %10066  ;;  %1774 = vst [vmem:[#allocation2] sm:$0xff] %v1710_v55  ;;  %1775 = vst [vmem:[#allocation2 + $0x8] sm:$0xff] %v1711_v33  ;;  %v1616_v29 = vadd.f32 %v12588_v28, %v1541_v49  ;;  %v1617_v37 = vadd.f32 %v12590_v45, %v1542_v39  ;;  %v1470_v57 = vmul.f32 %v10065_v23, %v12291_v7  ;;  %v12628_v63 = vpop.xlane.xlu1 %1306 }
 0x2b6   : > { %v1471_v11 = vmul.f32 %v10065_v23, %v12294_v59  ;;  %v12630_v54 = vpop.xlane.xlu0 %1309  ;;  %v1618_v50 = vadd.f32 %v12588_v28, %v1543_v51  ;;  %v1619_v61 = vadd.f32 %v12590_v45, %v1544_v16  ;;  %v1472_v55 = vmul.f32 %v10067_v31, %v12305_v9  ;;  %v12642_v51 = vld [vmem:[#allocation6 + $0x30] sm:$0xff]  ;;  %v12644_v16 = vld [vmem:[#allocation6 + $0x38] sm:$0xff] }
 0x2b7   : > { %v1473_v33 = vmul.f32 %v10067_v31, %v12308_v58  ;;  %v1712_v49 = vadd.f32 %v12612_v25, %v1616_v29  ;;  %v1713_v39 = vadd.f32 %v12614_v4, %v1617_v37  ;;  %v1545_v7 = vmul.f32 %v12584_v43, %v1470_v57  ;;  %v12650_v57 = vld [vmem:[#allocation6 + $0x40] sm:$0xff] }
 0x2b8   : > { %v1546_v59 = vmul.f32 %v12586_v10, %v1471_v11  ;;  %v10069_v23 = vpop.eup %10068  ;;  %v1714_v27 = vadd.f32 %v12622_v62, %v1618_v50  ;;  %v1715_v48 = vadd.f32 %v12624_v17, %v1619_v61  ;;  %v1547_v9 = vmul.f32 %v12584_v43, %v1472_v55  ;;  %17922 = vst [vmem:[#allocation53_spill] sm:$0xff] %v12650_v57  ;;  %v12652_v11 = vld [vmem:[#allocation6 + $0x48] sm:$0xff] }
 0x2b9   : > { %v1548_v58 = vmul.f32 %v12586_v10, %v1473_v33  ;;  %v10071_v31 = vpop.eup %10070  ;;  %1776 = vst [vmem:[#allocation2 + $0x10] sm:$0xff] %v1712_v49  ;;  %1777 = vst [vmem:[#allocation2 + $0x18] sm:$0xff] %v1713_v39  ;;  %v1620_v29 = vadd.f32 %v12588_v28, %v1545_v7  ;;  %v1474_v50 = vmul.f32 %v10069_v23, %v12311_v0  ;;  %v1313_v17 = vpop.xlane.xlu1 %1312  ;;  %10076 = vrsqrt.f32 %v12618_v60 }
 0x2ba   : > { %v1621_v37 = vadd.f32 %v12590_v45, %v1546_v59  ;;  %17923 = vst [vmem:[#allocation54_spill] sm:$0xff] %v12652_v11  ;;  %v1475_v61 = vmul.f32 %v10069_v23, %v12314_v1  ;;  %v12656_v62 = vpop.xlane.xlu0 %1315  ;;  %1778 = vst [vmem:[#allocation2 + $0x20] sm:$0xff] %v1714_v27  ;;  %v1622_v55 = vadd.f32 %v12588_v28, %v1547_v9  ;;  %v12668_v9 = vld [vmem:[#allocation6 + $0x50] sm:$0xff] }
 0x2bb   : > { %1779 = vst [vmem:[#allocation2 + $0x28] sm:$0xff] %v1715_v48  ;;  %v1623_v33 = vadd.f32 %v12590_v45, %v1548_v58  ;;  %v1476_v49 = vmul.f32 %v10071_v31, %v12325_v40  ;;  %v1477_v39 = vmul.f32 %v10071_v31, %v12328_v3  ;;  %v1716_v7 = vadd.f32 %v12642_v51, %v1620_v29  ;;  %v12670_v58 = vld [vmem:[#allocation6 + $0x58] sm:$0xff] }
 0x2bc   : > { %v1717_v59 = vadd.f32 %v12644_v16, %v1621_v37  ;;  %v1549_v0 = vmul.f32 %v12584_v43, %v1474_v50  ;;  %v1550_v1 = vmul.f32 %v12586_v10, %v1475_v61  ;;  %v10073_v23 = vpop.eup %10072  ;;  %v1718_v27 = vadd.f32 %v12650_v57, %v1622_v55  ;;  %v12676_v37 = vld [vmem:[#allocation6 + $0x60] sm:$0xff]  ;;  %v12678_v50 = vld [vmem:[#allocation6 + $0x68] sm:$0xff] }
 0x2bd   : > { %v1719_v48 = vadd.f32 %v12652_v11, %v1623_v33  ;;  %v1551_v40 = vmul.f32 %v12584_v43, %v1476_v49  ;;  %v1552_v3 = vmul.f32 %v12586_v10, %v1477_v39  ;;  %1780 = vst [vmem:[#allocation2 + $0x30] sm:$0xff] %v1716_v7  ;;  %v1478_v61 = vmul.f32 %v10073_v23, %v12331_v6  ;;  %v1319_v33 = vpop.xlane.xlu1 %1318 }
 0x2be   : > { %1781 = vst [vmem:[#allocation2 + $0x38] sm:$0xff] %v1717_v59  ;;  %v1624_v31 = vadd.f32 %v12588_v28, %v1549_v0  ;;  %v1625_v29 = vadd.f32 %v12590_v45, %v1550_v1  ;;  %v1479_v55 = vmul.f32 %v10073_v23, %v12334_v52  ;;  %v1322_v11 = vpop.xlane.xlu0 %1321  ;;  %v10075_v57 = vpop.eup %10074  ;;  %1782 = vst [vmem:[#allocation2 + $0x40] sm:$0xff] %v1718_v27  ;;  %v1378_v7 = vmul.f32 0.00390625, %v12604_v53  ;;  %v12692_v27 = vld [vmem:[#allocation6 + $0x70] sm:$0xff] }
 0x2bf   : > { %1783 = vst [vmem:[#allocation2 + $0x48] sm:$0xff] %v1719_v48  ;;  %v1626_v49 = vadd.f32 %v12588_v28, %v1551_v40  ;;  %v1627_v39 = vadd.f32 %v12590_v45, %v1552_v3  ;;  %v1553_v6 = vmul.f32 %v12584_v43, %v1478_v61  ;;  %v12694_v48 = vld [vmem:[#allocation6 + $0x78] sm:$0xff]  ;;  %v1480_v60 = vmul.f32 %v10075_v57, %v12345_v12 }
 0x2c0   : > { %v1720_v59 = vadd.f32 %v12668_v9, %v1624_v31  ;;  %v1721_v0 = vadd.f32 %v12670_v58, %v1625_v29  ;;  %v1554_v52 = vmul.f32 %v12586_v10, %v1479_v55  ;;  %v1481_v53 = vmul.f32 %v10075_v57, %v12348_v46 }
 0x2c1   : > { %v1722_v1 = vadd.f32 %v12676_v37, %v1626_v49  ;;  %v1723_v23 = vadd.f32 %v12678_v50, %v1627_v39  ;;  %v1628_v40 = vadd.f32 %v12588_v28, %v1553_v6  ;;  %v1410_v31 = vadd.f32 1e-05, %v1378_v7  ;;  %v1325_v61 = vpop.xlane.xlu1 %1324  ;;  %v12708_v7 = vld [vmem:[#allocation6 + $0x88] sm:$0xff] }
 0x2c2   : > { %1784 = vst [vmem:[#allocation2 + $0x50] sm:$0xff] %v1720_v59  ;;  %1785 = vst [vmem:[#allocation2 + $0x58] sm:$0xff] %v1721_v0  ;;  %v1629_v3 = vadd.f32 %v12590_v45, %v1554_v52  ;;  %v1379_v29 = vmul.f32 0.00390625, %v12628_v63  ;;  %v1328_v55 = vpop.xlane.xlu0 %1327  ;;  %v1555_v49 = vmul.f32 %v12584_v43, %v1480_v60  ;;  %v1556_v39 = vmul.f32 %v12586_v10, %v1481_v53  ;;  %v12706_v0 = vld [vmem:[#allocation6 + $0x80] sm:$0xff] }
 0x2c3   : > { %1786 = vst [vmem:[#allocation2 + $0x60] sm:$0xff] %v1722_v1  ;;  %1787 = vst [vmem:[#allocation2 + $0x68] sm:$0xff] %v1723_v23  ;;  %v1380_v12 = vmul.f32 0.00390625, %v12630_v54  ;;  %v1381_v46 = vmul.f32 0.00390625, %v1313_v17  ;;  %v1724_v57 = vadd.f32 %v12692_v27, %v1628_v40  ;;  %10078 = vrsqrt.f32 %v1410_v31 }
 0x2c4   : > { %v1725_v59 = vadd.f32 %v12694_v48, %v1629_v3  ;;  %v1411_v63 = vadd.f32 1e-05, %v1379_v29  ;;  %v1630_v6 = vadd.f32 %v12588_v28, %v1555_v49  ;;  %v1631_v52 = vadd.f32 %v12590_v45, %v1556_v39 }
 0x2c5   : > { %v1412_v1 = vadd.f32 1e-05, %v1380_v12  ;;  %v1413_v23 = vadd.f32 1e-05, %v1381_v46  ;;  %1788 = vst [vmem:[#allocation2 + $0x70] sm:$0xff] %v1724_v57  ;;  %v1382_v17 = vmul.f32 0.00390625, %v12656_v62  ;;  %v1331_v53 = vpop.xlane.xlu1 %1330  ;;  %v10077_v46 = vpop.eup %10076 }
 0x2c6   : > { %1789 = vst [vmem:[#allocation2 + $0x78] sm:$0xff] %v1725_v59  ;;  %10080 = vrsqrt.f32 %v1411_v63  ;;  %v1383_v54 = vmul.f32 0.00390625, %v1319_v33  ;;  %v1384_v60 = vmul.f32 0.00390625, %v1322_v11  ;;  %v1334_v40 = vpop.xlane.xlu0 %1333  ;;  %v1726_v3 = vadd.f32 %v12706_v0, %v1630_v6 }
 0x2c7   : > { %v1727_v31 = vadd.f32 %v12708_v7, %v1631_v52  ;;  %10082 = vrsqrt.f32 %v1412_v1  ;;  %v1385_v29 = vmul.f32 0.00390625, %v1325_v61  ;;  %v1414_v49 = vadd.f32 1e-05, %v1382_v17 }
 0x2c8   : > { %10084 = vrsqrt.f32 %v1413_v23  ;;  %v1415_v39 = vadd.f32 1e-05, %v1383_v54  ;;  %v1416_v12 = vadd.f32 1e-05, %v1384_v60  ;;  %1790 = vst [vmem:[#allocation2 + $0x80] sm:$0xff] %v1726_v3  ;;  %v1386_v59 = vmul.f32 0.00390625, %v1328_v55 }
 0x2c9   : > { %1791 = vst [vmem:[#allocation2 + $0x88] sm:$0xff] %v1727_v31  ;;  %v1417_v57 = vadd.f32 1e-05, %v1385_v29  ;;  %v1387_v62 = vmul.f32 0.00390625, %v1331_v53  ;;  %v1388_v33 = vmul.f32 0.00390625, %v1334_v40  ;;  %v1482_v11 = vmul.f32 %v10077_v46, %v12351_v34  ;;  %v1337_v6 = vpop.xlane.xlu1 %1336  ;;  %v12719_v55 = vld [vmem:[#allocation6 + $0x90] sm:$0xff] }
 0x2ca   : > { %v1483_v63 = vmul.f32 %v10077_v46, %v12354_v14  ;;  %10086 = vrsqrt.f32 %v1414_v49  ;;  %v1340_v52 = vpop.xlane.xlu0 %1339  ;;  %v1418_v61 = vadd.f32 1e-05, %v1386_v59  ;;  %v1389_v60 = vmul.f32 0.00390625, %v1337_v6  ;;  %v12721_v53 = vld [vmem:[#allocation6 + $0x98] sm:$0xff] }
 0x2cb   : > { %10088 = vrsqrt.f32 %v1415_v39  ;;  %v1419_v1 = vadd.f32 1e-05, %v1387_v62  ;;  %v1420_v23 = vadd.f32 1e-05, %v1388_v33  ;;  %v1557_v17 = vmul.f32 %v12584_v43, %v1482_v11 }
 0x2cc   : > { %v1558_v54 = vmul.f32 %v12586_v10, %v1483_v63  ;;  %10090 = vrsqrt.f32 %v1416_v12  ;;  %v1390_v34 = vmul.f32 0.00390625, %v1340_v52  ;;  %v1421_v31 = vadd.f32 1e-05, %v1389_v60  ;;  %v12735_v52 = vld [vmem:[#allocation6 + $0xa0] sm:$0xff] }
 0x2cd   : > { %10092 = vrsqrt.f32 %v1417_v57  ;;  %v10079_v14 = vpop.eup %10078  ;;  %v1632_v40 = vadd.f32 %v12588_v28, %v1557_v17  ;;  %v1343_v29 = vpop.xlane.xlu1 %1342 }
 0x2ce   : > { %v1633_v3 = vadd.f32 %v12590_v45, %v1558_v54  ;;  %10094 = vrsqrt.f32 %v1418_v61  ;;  %v1484_v49 = vmul.f32 %v10079_v14, %v12365_v18  ;;  %v1485_v39 = vmul.f32 %v10079_v14, %v12368_v47  ;;  %v12737_v61 = vld [vmem:[#allocation6 + $0xa8] sm:$0xff]  ;;  %v12747_v14 = vld [vmem:[#allocation6 + $0xb0] sm:$0xff] }
 0x2cf   : > { %10096 = vrsqrt.f32 %v1419_v1  ;;  %v12727_v12 = vadd.f32 1e-05, %v1390_v34  ;;  %v1728_v59 = vadd.f32 %v12719_v55, %v1632_v40  ;;  %v1391_v62 = vmul.f32 0.00390625, %v1343_v29  ;;  %v12749_v40 = vld [vmem:[#allocation6 + $0xb8] sm:$0xff] }
 0x2d0   : > { %v10081_v46 = vpop.eup %10080  ;;  %v1729_v57 = vadd.f32 %v12721_v53, %v1633_v3  ;;  %10098 = vrsqrt.f32 %v1420_v23  ;;  %v1559_v11 = vmul.f32 %v12584_v43, %v1484_v49  ;;  %v1560_v63 = vmul.f32 %v12586_v10, %v1485_v39 }
 0x2d1   : > { %v10083_v33 = vpop.eup %10082  ;;  %v1486_v6 = vmul.f32 %v10081_v46, %v12371_v2  ;;  %v1487_v18 = vmul.f32 %v10081_v46, %v12374_v20  ;;  %1792 = vst [vmem:[#allocation2 + $0x90] sm:$0xff] %v1728_v59  ;;  %10100 = vrsqrt.f32 %v1421_v31  ;;  %v12741_v17 = vadd.f32 1e-05, %v1391_v62  ;;  %v12761_v62 = vld [vmem:[#allocation6 + $0xc8] sm:$0xff] }
 0x2d2   : > { %v10085_v47 = vpop.eup %10084  ;;  %1793 = vst [vmem:[#allocation2 + $0x98] sm:$0xff] %v1729_v57  ;;  %v1488_v1 = vmul.f32 %v10083_v33, %v12385_v24  ;;  %v1489_v23 = vmul.f32 %v10083_v33, %v12388_v35  ;;  %v1634_v54 = vadd.f32 %v12588_v28, %v1559_v11  ;;  %v1635_v2 = vadd.f32 %v12590_v45, %v1560_v63  ;;  %v12759_v57 = vld [vmem:[#allocation6 + $0xc0] sm:$0xff] }
 0x2d3   : > { %v1561_v20 = vmul.f32 %v12584_v43, %v1486_v6  ;;  %v1562_v60 = vmul.f32 %v12586_v10, %v1487_v18  ;;  %v1490_v3 = vmul.f32 %v10085_v47, %v12391_v22  ;;  %v1491_v31 = vmul.f32 %v10085_v47, %v12394_v26 }
 0x2d4   : > { %v10087_v34 = vpop.eup %10086  ;;  %v1563_v24 = vmul.f32 %v12584_v43, %v1488_v1  ;;  %v1564_v35 = vmul.f32 %v12586_v10, %v1489_v23  ;;  %v1730_v49 = vadd.f32 %v12735_v52, %v1634_v54  ;;  %v1731_v39 = vadd.f32 %v12737_v61, %v1635_v2  ;;  %v12769_v1 = vld [vmem:[#allocation6 + $0xd0] sm:$0xff]  ;;  %v12771_v23 = vld [vmem:[#allocation6 + $0xd8] sm:$0xff] }
 0x2d5   : > { %v10089_v29 = vpop.eup %10088  ;;  %v1636_v46 = vadd.f32 %v12588_v28, %v1561_v20  ;;  %v1637_v59 = vadd.f32 %v12590_v45, %v1562_v60  ;;  %v1565_v26 = vmul.f32 %v12584_v43, %v1490_v3  ;;  %v1566_v63 = vmul.f32 %v12586_v10, %v1491_v31  ;;  %v12779_v31 = vpop.xlane.xlu0 %1345 }
 0x2d6   : > { %v10091_v33 = vpop.eup %10090  ;;  %v1638_v11 = vadd.f32 %v12588_v28, %v1563_v24  ;;  %v1639_v22 = vadd.f32 %v12590_v45, %v1564_v35  ;;  %1794 = vst [vmem:[#allocation2 + $0xa0] sm:$0xff] %v1730_v49  ;;  %1795 = vst [vmem:[#allocation2 + $0xa8] sm:$0xff] %v1731_v39  ;;  %v1492_v54 = vmul.f32 %v10087_v34, %v12405_v30  ;;  %10102 = vrsqrt.f32 %v12727_v12 }
 0x2d7   : > { %v10093_v6 = vpop.eup %10092  ;;  %v1732_v18 = vadd.f32 %v12747_v14, %v1636_v46  ;;  %v1733_v47 = vadd.f32 %v12749_v40, %v1637_v59  ;;  %v1493_v2 = vmul.f32 %v10087_v34, %v12408_v8  ;;  %v1640_v35 = vadd.f32 %v12588_v28, %v1565_v26  ;;  %v12789_v26 = vld [vmem:[#allocation6 + $0xe8] sm:$0xff] }
 0x2d8   : > { %v10095_v20 = vpop.eup %10094  ;;  %v1734_v60 = vadd.f32 %v12759_v57, %v1638_v11  ;;  %v1735_v24 = vadd.f32 %v12761_v62, %v1639_v22  ;;  %v1641_v3 = vadd.f32 %v12590_v45, %v1566_v63  ;;  %v1567_v39 = vmul.f32 %v12584_v43, %v1492_v54  ;;  %v12787_v22 = vld [vmem:[#allocation6 + $0xe0] sm:$0xff] }
 0x2d9   : > { %v10097_v49 = vpop.eup %10096  ;;  %1796 = vst [vmem:[#allocation2 + $0xb0] sm:$0xff] %v1732_v18  ;;  %1797 = vst [vmem:[#allocation2 + $0xb8] sm:$0xff] %v1733_v47  ;;  %v1568_v30 = vmul.f32 %v12586_v10, %v1493_v2  ;;  %v1494_v8 = vmul.f32 %v10089_v29, %v12411_v5  ;;  %v1495_v34 = vmul.f32 %v10089_v29, %v12414_v32  ;;  %v12793_v47 = vpop.xlane.xlu1 %1348  ;;  %10104 = vrsqrt.f32 %v12741_v17 }
 0x2da   : > { %v10099_v46 = vpop.eup %10098  ;;  %1798 = vst [vmem:[#allocation2 + $0xc0] sm:$0xff] %v1734_v60  ;;  %1799 = vst [vmem:[#allocation2 + $0xc8] sm:$0xff] %v1735_v24  ;;  %v1736_v59 = vadd.f32 %v12769_v1, %v1640_v35  ;;  %v1737_v11 = vadd.f32 %v12771_v23, %v1641_v3  ;;  %v1496_v63 = vmul.f32 %v10091_v33, %v12425_v36  ;;  %v12799_v60 = vld [vmem:[#allocation6 + $0xf0] sm:$0xff]  ;;  %v12801_v24 = vld [vmem:[#allocation6 + $0xf8] sm:$0xff] }
 0x2db   : > { %v1497_v18 = vmul.f32 %v10091_v33, %v12428_v15  ;;  %v1642_v5 = vadd.f32 %v12588_v28, %v1567_v39  ;;  %v1643_v32 = vadd.f32 %v12590_v45, %v1568_v30  ;;  %v1569_v29 = vmul.f32 %v12584_v43, %v1494_v8  ;;  %v10101_v2 = vpop.eup %10100 }
 0x2dc   : > { %v1570_v54 = vmul.f32 %v12586_v10, %v1495_v34  ;;  %1800 = vst [vmem:[#allocation2 + $0xd0] sm:$0xff] %v1736_v59  ;;  %1801 = vst [vmem:[#allocation2 + $0xd8] sm:$0xff] %v1737_v11  ;;  %v1571_v36 = vmul.f32 %v12584_v43, %v1496_v63  ;;  %v1498_v33 = vmul.f32 %v10093_v6, %v12431_v13 }
 0x2dd   : > { %v1572_v15 = vmul.f32 %v12586_v10, %v1497_v18  ;;  %v1499_v35 = vmul.f32 %v10093_v6, %v12434_v38  ;;  %v1738_v3 = vadd.f32 %v12787_v22, %v1642_v5  ;;  %v1739_v39 = vadd.f32 %v12789_v26, %v1643_v32  ;;  %v1352_v18 = vpop.xlane.xlu0 %1351 }
 0x2de   : > { %v1644_v30 = vadd.f32 %v12588_v28, %v1569_v29  ;;  %v1645_v8 = vadd.f32 %v12590_v45, %v1570_v54  ;;  %v1646_v34 = vadd.f32 %v12588_v28, %v1571_v36  ;;  %v1573_v11 = vmul.f32 %v12584_v43, %v1498_v33 }
 0x2df   : > { %v1647_v59 = vadd.f32 %v12590_v45, %v1572_v15  ;;  %v1574_v63 = vmul.f32 %v12586_v10, %v1499_v35  ;;  %1802 = vst [vmem:[#allocation2 + $0xe0] sm:$0xff] %v1738_v3  ;;  %1803 = vst [vmem:[#allocation2 + $0xe8] sm:$0xff] %v1739_v39  ;;  %v1500_v6 = vmul.f32 %v10095_v20, %v12445_v42  ;;  %v1355_v15 = vpop.xlane.xlu1 %1354  ;;  %v17925_v39 = vld [vmem:[#allocation56_spill] sm:$0xff] }
 0x2e0   : > { %v1740_v13 = vadd.f32 %v12799_v60, %v1644_v30  ;;  %v1741_v38 = vadd.f32 %v12801_v24, %v1645_v8  ;;  %v1501_v5 = vmul.f32 %v10095_v20, %v12448_v21  ;;  %v1742_v32 = vadd.f32 %v12596_v56, %v1646_v34 }
 0x2e1   : > { %v1743_v29 = vadd.f32 %v12598_v41, %v1647_v59  ;;  %v1648_v54 = vadd.f32 %v12588_v28, %v1573_v11  ;;  %v1649_v36 = vadd.f32 %v12590_v45, %v1574_v63  ;;  %v1575_v33 = vmul.f32 %v12584_v43, %v1500_v6  ;;  %v17924_v41 = vld [vmem:[#allocation55_spill] sm:$0xff]  ;;  %v17927_v11 = vld [vmem:[#allocation58_spill] sm:$0xff]  ;;  %v17929_v6 = vld [vmem:[#allocation52_spill] sm:$0xff] }
 0x2e2   : > { %1804 = vst [vmem:[#allocation2 + $0xf0] sm:$0xff] %v1740_v13  ;;  %1805 = vst [vmem:[#allocation2 + $0xf8] sm:$0xff] %v1741_v38  ;;  %v1576_v35 = vmul.f32 %v12586_v10, %v1501_v5  ;;  %v1502_v3 = vmul.f32 %v10097_v49, %v12451_v19  ;;  %v1503_v42 = vmul.f32 %v10097_v49, %v12454_v44  ;;  %v17926_v49 = vld [vmem:[#allocation57_spill] sm:$0xff]  ;;  %v1358_v13 = vpop.xlane.xlu0 %1357 }
 0x2e3   : > { %1806 = vst [vmem:[#allocation2 + $0x100] sm:$0xff] %v1742_v32  ;;  %1807 = vst [vmem:[#allocation2 + $0x108] sm:$0xff] %v1743_v29  ;;  %v1744_v21 = vadd.f32 %v12612_v25, %v1648_v54  ;;  %v1745_v56 = vadd.f32 %v12614_v4, %v1649_v36  ;;  %v1504_v20 = vmul.f32 %v10099_v46, %v17924_v41 }
 0x2e4   : > { %v1505_v30 = vmul.f32 %v10099_v46, %v17925_v39  ;;  %v1650_v8 = vadd.f32 %v12588_v28, %v1575_v33  ;;  %v1651_v34 = vadd.f32 %v12590_v45, %v1576_v35  ;;  %v1577_v59 = vmul.f32 %v12584_v43, %v1502_v3  ;;  %v17928_v46 = vld [vmem:[#allocation51_spill] sm:$0xff]  ;;  %v1361_v3 = vpop.xlane.xlu1 %1360 }
 0x2e5   : > { %v1578_v19 = vmul.f32 %v12586_v10, %v1503_v42  ;;  %1808 = vst [vmem:[#allocation2 + $0x110] sm:$0xff] %v1744_v21  ;;  %1809 = vst [vmem:[#allocation2 + $0x118] sm:$0xff] %v1745_v56  ;;  %v1579_v44 = vmul.f32 %v12584_v43, %v1504_v20  ;;  %v1506_v4 = vmul.f32 %v10101_v2, %v17926_v49  ;;  %v1392_v21 = vmul.f32 0.00390625, %v12779_v31  ;;  %v17930_v56 = vld [vmem:[#allocation53_spill] sm:$0xff]  ;;  %v17931_v20 = vld [vmem:[#allocation54_spill] sm:$0xff] }
 0x2e6   : > { %v1580_v25 = vmul.f32 %v12586_v10, %v1505_v30  ;;  %v1507_v63 = vmul.f32 %v10101_v2, %v17927_v11  ;;  %v1746_v38 = vadd.f32 %v17928_v46, %v1650_v8  ;;  %v1747_v5 = vadd.f32 %v17929_v6, %v1651_v34  ;;  %v10103_v46 = vpop.eup %10102 }
 0x2e7   : > { %v1652_v32 = vadd.f32 %v12588_v28, %v1577_v59  ;;  %v1653_v29 = vadd.f32 %v12590_v45, %v1578_v19  ;;  %v1654_v54 = vadd.f32 %v12588_v28, %v1579_v44  ;;  %v1581_v33 = vmul.f32 %v12584_v43, %v1506_v4  ;;  %v1364_v44 = vpop.xlane.xlu0 %1363 }
 0x2e8   : > { %v1655_v36 = vadd.f32 %v12590_v45, %v1580_v25  ;;  %v1582_v35 = vmul.f32 %v12586_v10, %v1507_v63  ;;  %1810 = vst [vmem:[#allocation2 + $0x120] sm:$0xff] %v1746_v38  ;;  %1811 = vst [vmem:[#allocation2 + $0x128] sm:$0xff] %v1747_v5  ;;  %v1424_v34 = vadd.f32 1e-05, %v1392_v21  ;;  %v1395_v59 = vmul.f32 0.00390625, %v1355_v15  ;;  %v1367_v11 = vpop.xlane.xlu1 %1366  ;;  %v17932_v15 = vld [vmem:[#allocation59_spill] sm:$0xff]  ;;  %v10105_v5 = vpop.eup %10104 }
 0x2e9   : > { %v1748_v2 = vadd.f32 %v12642_v51, %v1652_v32  ;;  %v1749_v42 = vadd.f32 %v12644_v16, %v1653_v29  ;;  %v1750_v41 = vadd.f32 %v17930_v56, %v1654_v54  ;;  %v1656_v30 = vadd.f32 %v12588_v28, %v1581_v33  ;;  %v17933_v38 = vld [vmem:[#allocation60_spill] sm:$0xff] }
 0x2ea   : > { %v1751_v39 = vadd.f32 %v17931_v20, %v1655_v36  ;;  %v1657_v8 = vadd.f32 %v12590_v45, %v1582_v35  ;;  %v1393_v51 = vmul.f32 0.00390625, %v12793_v47  ;;  %v1394_v16 = vmul.f32 0.00390625, %v1352_v18  ;;  %v17934_v36 = vld [vmem:[#allocation61_spill] sm:$0xff]  ;;  %v17935_v35 = vld [vmem:[#allocation62_spill] sm:$0xff] }
 0x2eb   : > { %1812 = vst [vmem:[#allocation2 + $0x130] sm:$0xff] %v1748_v2  ;;  %1813 = vst [vmem:[#allocation2 + $0x138] sm:$0xff] %v1749_v42  ;;  %v1752_v12 = vadd.f32 %v12668_v9, %v1656_v30  ;;  %v1396_v19 = vmul.f32 0.00390625, %v1358_v13  ;;  %10106 = vrsqrt.f32 %v1424_v34  ;;  %v1397_v4 = vmul.f32 0.00390625, %v1361_v3 }
 0x2ec   : > { %1814 = vst [vmem:[#allocation2 + $0x140] sm:$0xff] %v1750_v41  ;;  %1815 = vst [vmem:[#allocation2 + $0x148] sm:$0xff] %v1751_v39  ;;  %v1753_v31 = vadd.f32 %v12670_v58, %v1657_v8  ;;  %v1425_v25 = vadd.f32 1e-05, %v1393_v51  ;;  %v1426_v49 = vadd.f32 1e-05, %v1394_v16  ;;  %v1508_v13 = vmul.f32 %v10103_v46, %v17932_v15 }
 0x2ed   : > { %1816 = vst [vmem:[#allocation2 + $0x150] sm:$0xff] %v1752_v12  ;;  %v1427_v17 = vadd.f32 1e-05, %v1395_v59  ;;  %v1398_v47 = vmul.f32 0.00390625, %v1364_v44  ;;  %v1428_v18 = vadd.f32 1e-05, %v1396_v19  ;;  %v1509_v6 = vmul.f32 %v10103_v46, %v17933_v38 }
 0x2ee   : > { %1817 = vst [vmem:[#allocation2 + $0x158] sm:$0xff] %v1753_v31  ;;  %10108 = vrsqrt.f32 %v1425_v25  ;;  %v1429_v63 = vadd.f32 1e-05, %v1397_v4  ;;  %v1399_v9 = vmul.f32 0.00390625, %v1367_v11  ;;  %v1583_v29 = vmul.f32 %v12584_v43, %v1508_v13  ;;  %v17936_v39 = vld [vmem:[#allocation63_spill] sm:$0xff]  ;;  %v17937_v8 = vld [vmem:[#allocation64_spill] sm:$0xff] }
 0x2ef   : > { %10110 = vrsqrt.f32 %v1426_v49  ;;  %v1430_v58 = vadd.f32 1e-05, %v1398_v47  ;;  %v1584_v54 = vmul.f32 %v12586_v10, %v1509_v6  ;;  %v1510_v33 = vmul.f32 %v10105_v5, %v17934_v36  ;;  %v17938_v49 = vld [vmem:[#allocation39_spill] sm:$0xff] }
 0x2f0   : > { %10112 = vrsqrt.f32 %v1427_v17  ;;  %v1431_v32 = vadd.f32 1e-05, %v1399_v9  ;;  %v1511_v3 = vmul.f32 %v10105_v5, %v17935_v35  ;;  %v1658_v42 = vadd.f32 %v12588_v28, %v1583_v29  ;;  %v17939_v17 = vld [vmem:[#allocation40_spill] sm:$0xff] }
 0x2f1   : > { %10114 = vrsqrt.f32 %v1428_v18  ;;  %v1659_v21 = vadd.f32 %v12590_v45, %v1584_v54  ;;  %v1585_v56 = vmul.f32 %v12584_v43, %v1510_v33 }
 0x2f2   : > { %10116 = vrsqrt.f32 %v1429_v63  ;;  %v1586_v41 = vmul.f32 %v12586_v10, %v1511_v3  ;;  %v1754_v16 = vadd.f32 %v12676_v37, %v1658_v42  ;;  %v17941_v63 = vld [vmem:[#allocation42_spill] sm:$0xff] }
 0x2f3   : > { %10118 = vrsqrt.f32 %v1430_v58  ;;  %v1755_v12 = vadd.f32 %v12678_v50, %v1659_v21  ;;  %v1660_v31 = vadd.f32 %v12588_v28, %v1585_v56  ;;  %v17940_v50 = vld [vmem:[#allocation41_spill] sm:$0xff] }
 0x2f4   : > { %10120 = vrsqrt.f32 %v1431_v32  ;;  %v1661_v59 = vadd.f32 %v12590_v45, %v1586_v41  ;;  %1818 = vst [vmem:[#allocation2 + $0x160] sm:$0xff] %v1754_v16  ;;  %v17943_v32 = vld [vmem:[#allocation44_spill] sm:$0xff] }
 0x2f5   : > { %v10107_v2 = vpop.eup %10106  ;;  %1819 = vst [vmem:[#allocation2 + $0x168] sm:$0xff] %v1755_v12  ;;  %v1756_v47 = vadd.f32 %v12692_v27, %v1660_v31 }
 0x2f6   : > { %v1512_v30 = vmul.f32 %v10107_v2, %v17936_v39  ;;  %v1513_v34 = vmul.f32 %v10107_v2, %v17937_v8  ;;  %v1757_v37 = vadd.f32 %v12694_v48, %v1661_v59  ;;  %v17942_v48 = vld [vmem:[#allocation43_spill] sm:$0xff] }
 0x2f7   : > { %1820 = vst [vmem:[#allocation2 + $0x170] sm:$0xff] %v1756_v47 }
 0x2f8   : > { %v10109_v20 = vpop.eup %10108  ;;  %v1587_v44 = vmul.f32 %v12584_v43, %v1512_v30  ;;  %v1588_v25 = vmul.f32 %v12586_v10, %v1513_v34  ;;  %1821 = vst [vmem:[#allocation2 + $0x178] sm:$0xff] %v1757_v37  ;;  %v17945_v30 = vld [vmem:[#allocation46_spill] sm:$0xff] }
 0x2f9   : > { %v10111_v51 = vpop.eup %10110  ;;  %v1514_v4 = vmul.f32 %v10109_v20, %v17938_v49  ;;  %v1515_v11 = vmul.f32 %v10109_v20, %v17939_v17  ;;  %v17948_v49 = vld [vmem:[#allocation65_spill] sm:$0xff] }
 0x2fa   : > { %v10113_v19 = vpop.eup %10112  ;;  %v1516_v18 = vmul.f32 %v10111_v51, %v17940_v50  ;;  %v1517_v9 = vmul.f32 %v10111_v51, %v17941_v63  ;;  %v1662_v46 = vadd.f32 %v12588_v28, %v1587_v44  ;;  %v1663_v58 = vadd.f32 %v12590_v45, %v1588_v25  ;;  %v17947_v44 = vld [vmem:[#allocation48_spill] sm:$0xff]  ;;  %v17949_v17 = vld [vmem:[#allocation49_spill] sm:$0xff] }
 0x2fb   : > { %v1589_v15 = vmul.f32 %v12584_v43, %v1514_v4  ;;  %v1590_v13 = vmul.f32 %v12586_v10, %v1515_v11  ;;  %v10115_v38 = vpop.eup %10114  ;;  %v1518_v5 = vmul.f32 %v10113_v19, %v17942_v48  ;;  %v1519_v29 = vmul.f32 %v10113_v19, %v17943_v32 }
 0x2fc   : > { %v1591_v6 = vmul.f32 %v12584_v43, %v1516_v18  ;;  %v1592_v27 = vmul.f32 %v12586_v10, %v1517_v9  ;;  %v10117_v54 = vpop.eup %10116  ;;  %v1758_v36 = vadd.f32 %v12706_v0, %v1662_v46  ;;  %v1759_v33 = vadd.f32 %v12708_v7, %v1663_v58  ;;  %v17944_v7 = vld [vmem:[#allocation45_spill] sm:$0xff]  ;;  %v17950_v9 = vld [vmem:[#allocation66_spill] sm:$0xff] }
 0x2fd   : > { %v1664_v35 = vadd.f32 %v12588_v28, %v1589_v15  ;;  %v1665_v3 = vadd.f32 %v12590_v45, %v1590_v13  ;;  %v1593_v21 = vmul.f32 %v12584_v43, %v1518_v5  ;;  %v1594_v56 = vmul.f32 %v12586_v10, %v1519_v29  ;;  %v10119_v41 = vpop.eup %10118  ;;  %v17951_v46 = vld [vmem:[#allocation50_spill] sm:$0xff] }
 0x2fe   : > { %v1666_v2 = vadd.f32 %v12588_v28, %v1591_v6  ;;  %v1667_v42 = vadd.f32 %v12590_v45, %v1592_v27  ;;  %1822 = vst [vmem:[#allocation2 + $0x180] sm:$0xff] %v1758_v36  ;;  %1823 = vst [vmem:[#allocation2 + $0x188] sm:$0xff] %v1759_v33  ;;  %v1520_v39 = vmul.f32 %v10115_v38, %v17944_v7  ;;  %v10121_v31 = vpop.eup %10120 }
 0x2ff   : > { %v1760_v20 = vadd.f32 %v12719_v55, %v1664_v35  ;;  %v1761_v0 = vadd.f32 %v12721_v53, %v1665_v3  ;;  %v1521_v8 = vmul.f32 %v10115_v38, %v17945_v30  ;;  %v1668_v16 = vadd.f32 %v12588_v28, %v1593_v21  ;;  %v17946_v53 = vld [vmem:[#allocation47_spill] sm:$0xff] }
 0x300   : > { %v1762_v34 = vadd.f32 %v12735_v52, %v1666_v2  ;;  %v1763_v51 = vadd.f32 %v12737_v61, %v1667_v42  ;;  %v1669_v12 = vadd.f32 %v12590_v45, %v1594_v56  ;;  %v1595_v59 = vmul.f32 %v12584_v43, %v1520_v39 }
 0x301   : > { %1824 = vst [vmem:[#allocation2 + $0x190] sm:$0xff] %v1760_v20  ;;  %1825 = vst [vmem:[#allocation2 + $0x198] sm:$0xff] %v1761_v0  ;;  %v1596_v55 = vmul.f32 %v12586_v10, %v1521_v8  ;;  %v1522_v19 = vmul.f32 %v10117_v54, %v17946_v53  ;;  %v1523_v25 = vmul.f32 %v10117_v54, %v17947_v44 }
 0x302   : > { %1826 = vst [vmem:[#allocation2 + $0x1a0] sm:$0xff] %v1762_v34  ;;  %1827 = vst [vmem:[#allocation2 + $0x1a8] sm:$0xff] %v1763_v51  ;;  %v1764_v52 = vadd.f32 %v12747_v14, %v1668_v16  ;;  %v1765_v61 = vadd.f32 %v12749_v40, %v1669_v12  ;;  %v1524_v4 = vmul.f32 %v10119_v41, %v17948_v49 }
 0x303   : > { %v1525_v11 = vmul.f32 %v10119_v41, %v17949_v17  ;;  %v1670_v47 = vadd.f32 %v12588_v28, %v1595_v59  ;;  %v1671_v37 = vadd.f32 %v12590_v45, %v1596_v55  ;;  %v1597_v50 = vmul.f32 %v12584_v43, %v1522_v19 }
 0x304   : > { %v1598_v18 = vmul.f32 %v12586_v10, %v1523_v25  ;;  %1828 = vst [vmem:[#allocation2 + $0x1b0] sm:$0xff] %v1764_v52  ;;  %1829 = vst [vmem:[#allocation2 + $0x1b8] sm:$0xff] %v1765_v61  ;;  %v1599_v63 = vmul.f32 %v12584_v43, %v1524_v4  ;;  %v1526_v40 = vmul.f32 %v10121_v31, %v17950_v9 }
 0x305   : > { %v1600_v14 = vmul.f32 %v12586_v10, %v1525_v11  ;;  %v1527_v58 = vmul.f32 %v10121_v31, %v17951_v46  ;;  %v1766_v15 = vadd.f32 %v12759_v57, %v1670_v47  ;;  %v1767_v13 = vadd.f32 %v12761_v62, %v1671_v37 }
 0x306   : > { %v1672_v38 = vadd.f32 %v12588_v28, %v1597_v50  ;;  %v1673_v6 = vadd.f32 %v12590_v45, %v1598_v18  ;;  %v1674_v27 = vadd.f32 %v12588_v28, %v1599_v63  ;;  %v1601_v5 = vmul.f32 %v12584_v43, %v1526_v40 }
 0x307   : > { %v1675_v48 = vadd.f32 %v12590_v45, %v1600_v14  ;;  %v1602_v32 = vmul.f32 %v12586_v10, %v1527_v58  ;;  %1830 = vst [vmem:[#allocation2 + $0x1c0] sm:$0xff] %v1766_v15  ;;  %1831 = vst [vmem:[#allocation2 + $0x1c8] sm:$0xff] %v1767_v13 }
 0x308   : > { %v1768_v29 = vadd.f32 %v12769_v1, %v1672_v38  ;;  %v1769_v57 = vadd.f32 %v12771_v23, %v1673_v6  ;;  %v1770_v62 = vadd.f32 %v12787_v22, %v1674_v27  ;;  %v1676_v36 = vadd.f32 %v12588_v28, %v1601_v5 }
 0x309   : > { %v1771_v54 = vadd.f32 %v12789_v26, %v1675_v48  ;;  %v1677_v33 = vadd.f32 %v12590_v45, %v1602_v32 }
 0x30a   : > { %1832 = vst [vmem:[#allocation2 + $0x1d0] sm:$0xff] %v1768_v29  ;;  %1833 = vst [vmem:[#allocation2 + $0x1d8] sm:$0xff] %v1769_v57  ;;  %v1772_v43 = vadd.f32 %v12799_v60, %v1676_v36 }
 0x30b   : > { %1834 = vst [vmem:[#allocation2 + $0x1e0] sm:$0xff] %v1770_v62  ;;  %1835 = vst [vmem:[#allocation2 + $0x1e8] sm:$0xff] %v1771_v54  ;;  %v1773_v10 = vadd.f32 %v12801_v24, %v1677_v33 }
 0x30c   : > { %1836 = vst [vmem:[#allocation2 + $0x1f0] sm:$0xff] %v1772_v43 }
 0x30d   : > { %1837 = vst [vmem:[#allocation2 + $0x1f8] sm:$0xff] %v1773_v10 }
 0x30e PF: > { %v10122_v28 = vld [vmem:[%s11954_s1 + $0x4] ss:$24 sps:$4 sm:$0xff]   ;;  %v10126_v1 = vld [vmem:[%s11954_s1] ss:$24 sps:$4 sm:$0xff]   ;;  %v10128_v22 = vld [vmem:[%s11954_s1 + $0x34] ss:$24 sps:$4 sm:$0xff]  }
 0x30f   : > { %v10124_v45 = vld [vmem:[%s11954_s1 + $0xc] ss:$24 sps:$4 sm:$0xff]   ;;  %2542 = vmatprep.subr.bf16.mxu0 %v10122_v28  ;;  %v10127_v23 = vld [vmem:[%s11954_s1 + $0x8] ss:$24 sps:$4 sm:$0xff]   ;;  %v10130_v26 = vld [vmem:[%s11954_s1 + $0x3c] ss:$24 sps:$4 sm:$0xff]  }
 0x310   : > { %2735 = vmatprep.subr.bf16.mxu1 %v10124_v45  ;;  %2543 = vmatpush1.bf16.msra.mxu0 %v10126_v1  ;;  %v10132_v60 = vld [vmem:[%s11954_s1 + $0x30] ss:$24 sps:$4 sm:$0xff]   ;;  %v10134_v35 = vld [vmem:[%s11954_s1 + $0x64] ss:$24 sps:$4 sm:$0xff]   ;;  %v10138_v2 = vld [vmem:[%s11954_s1 + $0x60] ss:$24 sps:$4 sm:$0xff]  }
 0x311   : > { %2736 = vmatpush1.bf16.msra.mxu1 %v10127_v23  ;;  %2544 = vmatprep.subr.bf16.mxu0 %v10128_v22  ;;  %v10133_v24 = vld [vmem:[%s11954_s1 + $0x38] ss:$24 sps:$4 sm:$0xff]   ;;  %v10136_v3 = vld [vmem:[%s11954_s1 + $0x6c] ss:$24 sps:$4 sm:$0xff]   ;;  %v10139_v42 = vld [vmem:[%s11954_s1 + $0x68] ss:$24 sps:$4 sm:$0xff]  }
 0x312   : > { %2737 = vmatprep.subr.bf16.mxu1 %v10130_v26  ;;  %v10140_v21 = vld [vmem:[%s11954_s1 + $0x94] ss:$24 sps:$4 sm:$0xff]   ;;  %v10144_v41 = vld [vmem:[%s11954_s1 + $0x90] ss:$24 sps:$4 sm:$0xff]   ;;  %v10146_v0 = vld [vmem:[%s11954_s1 + $0xc4] ss:$24 sps:$4 sm:$0xff]  }
 0x313   : > { %v10142_v56 = vld [vmem:[%s11954_s1 + $0x9c] ss:$24 sps:$4 sm:$0xff]   ;;  %v10145_v20 = vld [vmem:[%s11954_s1 + $0x98] ss:$24 sps:$4 sm:$0xff]   ;;  %v10148_v7 = vld [vmem:[%s11954_s1 + $0xcc] ss:$24 sps:$4 sm:$0xff]  }
 0x314   : > { %2545 = vmatpush1.bf16.msra.mxu0 %v10132_v60  ;;  %v10150_v39 = vld [vmem:[%s11954_s1 + $0xc0] ss:$24 sps:$4 sm:$0xff]   ;;  %v10152_v8 = vld [vmem:[%s11954_s1 + $0xf4] ss:$24 sps:$4 sm:$0xff]   ;;  %v10156_v51 = vld [vmem:[%s11954_s1 + $0xf0] ss:$24 sps:$4 sm:$0xff]  }
 0x315   : > { %2738 = vmatpush1.bf16.msra.mxu1 %v10133_v24  ;;  %2546 = vmatprep.subr.bf16.mxu0 %v10134_v35  ;;  %v10151_v30 = vld [vmem:[%s11954_s1 + $0xc8] ss:$24 sps:$4 sm:$0xff]   ;;  %v10154_v34 = vld [vmem:[%s11954_s1 + $0xfc] ss:$24 sps:$4 sm:$0xff]   ;;  %v10157_v16 = vld [vmem:[%s11954_s1 + $0xf8] ss:$24 sps:$4 sm:$0xff]  }
 0x316   : > { %2739 = vmatprep.subr.bf16.mxu1 %v10136_v3  ;;  %v10158_v12 = vld [vmem:[%s11954_s1 + $0x124] ss:$24 sps:$4 sm:$0xff]   ;;  %v10162_v59 = vld [vmem:[%s11954_s1 + $0x120] ss:$24 sps:$4 sm:$0xff]   ;;  %v10164_v53 = vld [vmem:[%s11954_s1 + $0x154] ss:$24 sps:$4 sm:$0xff]  }
 0x317   : > { %v10160_v31 = vld [vmem:[%s11954_s1 + $0x12c] ss:$24 sps:$4 sm:$0xff]   ;;  %v10163_v55 = vld [vmem:[%s11954_s1 + $0x128] ss:$24 sps:$4 sm:$0xff]   ;;  %v10166_v19 = vld [vmem:[%s11954_s1 + $0x15c] ss:$24 sps:$4 sm:$0xff]  }
 0x318   : > { %2547 = vmatpush1.bf16.msra.mxu0 %v10138_v2  ;;  %v10168_v44 = vld [vmem:[%s11954_s1 + $0x150] ss:$24 sps:$4 sm:$0xff]   ;;  %v10170_v52 = vld [vmem:[%s11954_s1 + $0x184] ss:$24 sps:$4 sm:$0xff]   ;;  %v10174_v49 = vld [vmem:[%s11954_s1 + $0x180] ss:$24 sps:$4 sm:$0xff]  }
 0x319   : > { %2740 = vmatpush1.bf16.msra.mxu1 %v10139_v42  ;;  %2548 = vmatprep.subr.bf16.mxu0 %v10140_v21  ;;  %v10169_v25 = vld [vmem:[%s11954_s1 + $0x158] ss:$24 sps:$4 sm:$0xff]   ;;  %v10172_v61 = vld [vmem:[%s11954_s1 + $0x18c] ss:$24 sps:$4 sm:$0xff]   ;;  %v10175_v4 = vld [vmem:[%s11954_s1 + $0x188] ss:$24 sps:$4 sm:$0xff]  }
 0x31a   : > { %2741 = vmatprep.subr.bf16.mxu1 %v10142_v56  ;;  %v10176_v17 = vld [vmem:[%s11954_s1 + $0x1b4] ss:$24 sps:$4 sm:$0xff]   ;;  %v10180_v47 = vld [vmem:[%s11954_s1 + $0x1b0] ss:$24 sps:$4 sm:$0xff]   ;;  %v10182_v50 = vld [vmem:[%s11954_s1 + $0x1e4] ss:$24 sps:$4 sm:$0xff]  }
 0x31b   : > { %v10178_v11 = vld [vmem:[%s11954_s1 + $0x1bc] ss:$24 sps:$4 sm:$0xff]   ;;  %v10181_v37 = vld [vmem:[%s11954_s1 + $0x1b8] ss:$24 sps:$4 sm:$0xff]   ;;  %v10184_v18 = vld [vmem:[%s11954_s1 + $0x1ec] ss:$24 sps:$4 sm:$0xff]  }
 0x31c   : > { %2549 = vmatpush1.bf16.msra.mxu0 %v10144_v41  ;;  %v10186_v63 = vld [vmem:[%s11954_s1 + $0x1e0] ss:$24 sps:$4 sm:$0xff]   ;;  %v10188_v9 = vld [vmem:[%s11954_s1 + $0x214] ss:$24 sps:$4 sm:$0xff]   ;;  %v10192_v15 = vld [vmem:[%s11954_s1 + $0x210] ss:$24 sps:$4 sm:$0xff]  }
 0x31d   : > { %2742 = vmatpush1.bf16.msra.mxu1 %v10145_v20  ;;  %2550 = vmatprep.subr.bf16.mxu0 %v10146_v0  ;;  %v10187_v14 = vld [vmem:[%s11954_s1 + $0x1e8] ss:$24 sps:$4 sm:$0xff]   ;;  %v10190_v40 = vld [vmem:[%s11954_s1 + $0x21c] ss:$24 sps:$4 sm:$0xff]   ;;  %v10193_v13 = vld [vmem:[%s11954_s1 + $0x218] ss:$24 sps:$4 sm:$0xff]  }
 0x31e   : > { %2743 = vmatprep.subr.bf16.mxu1 %v10148_v7  ;;  %v1839_v46 = vld [vmem:[#allocation2 + $0x8] sm:$0xff]  ;;  %v1841_v58 = vld [vmem:[#allocation2 + $0x18] sm:$0xff]  ;;  %v1838_v23 = vld [vmem:[#allocation2] sm:$0xff]  ;;  %s18153_s12 = sld [smem:[#allocation133_spill]]  ;;  %s18198_s30 = sld [smem:[#allocation134_spill]] }
 0x31f   : > { %v12987_v38 = vpack.c.bf16 %v1841_v58, %v1839_v46  ;;  %v10194_v6 = vld [vmem:[%s11954_s1 + $0x244] ss:$24 sps:$4 sm:$0xff]   ;;  %v10198_v48 = vld [vmem:[%s11954_s1 + $0x240] ss:$24 sps:$4 sm:$0xff]   ;;  %v10200_v32 = vld [vmem:[%s11954_s1 + $0x274] ss:$24 sps:$4 sm:$0xff]  }
 0x320   : > { %2551 = vmatpush1.bf16.msra.mxu0 %v10150_v39  ;;  %v10196_v27 = vld [vmem:[%s11954_s1 + $0x24c] ss:$24 sps:$4 sm:$0xff]   ;;  %v10199_v5 = vld [vmem:[%s11954_s1 + $0x248] ss:$24 sps:$4 sm:$0xff]   ;;  %v10202_v29 = vld [vmem:[%s11954_s1 + $0x27c] ss:$24 sps:$4 sm:$0xff]  }
 0x321   : > { %2744 = vmatpush1.bf16.msra.mxu1 %v10151_v30  ;;  %2552 = vmatprep.subr.bf16.mxu0 %v10152_v8  ;;  %v10204_v57 = vld [vmem:[%s11954_s1 + $0x270] ss:$24 sps:$4 sm:$0xff]   ;;  %v10206_v54 = vld [vmem:[%s11954_s1 + $0x2a4] ss:$24 sps:$4 sm:$0xff]   ;;  %v10210_v33 = vld [vmem:[%s11954_s1 + $0x2a0] ss:$24 sps:$4 sm:$0xff]  }
 0x322   : > { %2745 = vmatprep.subr.bf16.mxu1 %v10154_v34  ;;  %2574 = vmatprep.mubr.bf16.mxu0 %v12987_v38  ;;  %v10205_v62 = vld [vmem:[%s11954_s1 + $0x278] ss:$24 sps:$4 sm:$0xff]   ;;  %v10208_v36 = vld [vmem:[%s11954_s1 + $0x2ac] ss:$24 sps:$4 sm:$0xff]   ;;  %v10211_v43 = vld [vmem:[%s11954_s1 + $0x2a8] ss:$24 sps:$4 sm:$0xff]  }
 0x323   : > { %2767 = vmatprep.mubr.bf16.mxu1 %v12987_v38  ;;  %v10212_v10 = vld [vmem:[%s11954_s1 + $0x2d4] ss:$24 sps:$4 sm:$0xff]   ;;  %v10216_v45 = vld [vmem:[%s11954_s1 + $0x2d0] ss:$24 sps:$4 sm:$0xff]   ;;  %v1843_v26 = vld [vmem:[#allocation2 + $0x28] sm:$0xff] }
 0x324   : > { %2553 = vmatpush1.bf16.msra.mxu0 %v10156_v51  ;;  %v10214_v28 = vld [vmem:[%s11954_s1 + $0x2dc] ss:$24 sps:$4 sm:$0xff]   ;;  %v10217_v1 = vld [vmem:[%s11954_s1 + $0x2d8] ss:$24 sps:$4 sm:$0xff]   ;;  %v1840_v22 = vld [vmem:[#allocation2 + $0x10] sm:$0xff]  ;;  %s18154_s19 = scalar_lea.vmem %s18153_s12, %s11962_s20  ;;  %s18199_s6 = scalar_lea.vmem %s18198_s30, %s11962_s20 }
 0x325   : > { %2746 = vmatpush1.bf16.msra.mxu1 %v10157_v16  ;;  %2554 = vmatprep.subr.bf16.mxu0 %v10158_v12  ;;  %v1845_v60 = vld [vmem:[#allocation2 + $0x38] sm:$0xff]  ;;  %v13008_v35 = vpack.c.bf16 %v1840_v22, %v1838_v23  ;;  %v10223_v42 = vld [vmem:[%s11954_s1 + $0x44] ss:$24 sps:$4 sm:$0xff]   ;;  %v1844_v56 = vld [vmem:[#allocation2 + $0x30] sm:$0xff]  ;;  %s18437_s20 = sld [smem:[#allocation28_spill]] }
 0x326   : > { %2747 = vmatprep.subr.bf16.mxu1 %v10160_v31  ;;  %v10220_v24 = vld [vmem:[%s11954_s1 + $0x14] ss:$24 sps:$4 sm:$0xff]   ;;  %v13010_v3 = vpack.c.bf16 %v1845_v60, %v1843_v26  ;;  %v10218_v2 = vld [vmem:[%s11954_s1 + $0x10] ss:$24 sps:$4 sm:$0xff]   ;;  %v1842_v21 = vld [vmem:[#allocation2 + $0x20] sm:$0xff] }
 0x327   : > { %v1847_v41 = vld [vmem:[#allocation2 + $0x48] sm:$0xff]  ;;  %v1849_v20 = vld [vmem:[#allocation2 + $0x58] sm:$0xff]  ;;  %v13020_v39 = vpack.c.bf16 %v1844_v56, %v1842_v21  ;;  %v1846_v51 = vld [vmem:[#allocation2 + $0x40] sm:$0xff] }
 0x328   : > { %2555 = vmatpush1.bf16.msra.mxu0 %v10162_v59  ;;  %v10221_v0 = vld [vmem:[%s11954_s1 + $0x40] ss:$24 sps:$4 sm:$0xff]   ;;  %v10226_v7 = vld [vmem:[%s11954_s1 + $0x74] ss:$24 sps:$4 sm:$0xff]   ;;  %v13022_v30 = vpack.c.bf16 %v1849_v20, %v1847_v41  ;;  %v10224_v8 = vld [vmem:[%s11954_s1 + $0x70] ss:$24 sps:$4 sm:$0xff]  }
 0x329   : > { %2748 = vmatpush1.bf16.msra.mxu1 %v10163_v55  ;;  %2556 = vmatprep.subr.bf16.mxu0 %v10164_v53  ;;  %v10229_v34 = vld [vmem:[%s11954_s1 + $0xa4] ss:$24 sps:$4 sm:$0xff]   ;;  %v1848_v16 = vld [vmem:[#allocation2 + $0x50] sm:$0xff]  ;;  %v1853_v31 = vld [vmem:[#allocation2 + $0x78] sm:$0xff] }
 0x32a   : > { %2749 = vmatprep.subr.bf16.mxu1 %v10166_v19  ;;  %v1851_v12 = vld [vmem:[#allocation2 + $0x68] sm:$0xff]  ;;  %v10232_v55 = vld [vmem:[%s11954_s1 + $0xd4] ss:$24 sps:$4 sm:$0xff]   ;;  %v13032_v53 = vpack.c.bf16 %v1848_v16, %v1846_v51  ;;  %v10254_v60 = vld [vmem:[%s11954_s1 + $0x250] ss:$24 sps:$4 sm:$0xff]  }
 0x32b   : > { %v10227_v59 = vld [vmem:[%s11954_s1 + $0xa0] ss:$24 sps:$4 sm:$0xff]   ;;  %v13034_v19 = vpack.c.bf16 %v1853_v31, %v1851_v12  ;;  %v10244_v58 = vld [vmem:[%s11954_s1 + $0x194] ss:$24 sps:$4 sm:$0xff]   ;;  %v10265_v51 = vld [vmem:[%s11954_s1 + $0x2e4] ss:$24 sps:$4 sm:$0xff]  }
 0x32c   : > { %2557 = vmatpush1.bf16.msra.mxu0 %v10168_v44  ;;  %v10230_v44 = vld [vmem:[%s11954_s1 + $0xd0] ss:$24 sps:$4 sm:$0xff]   ;;  %v10239_v46 = vld [vmem:[%s11954_s1 + $0x160] ss:$24 sps:$4 sm:$0xff]   ;;  %v10256_v22 = vld [vmem:[%s11954_s1 + $0x254] ss:$24 sps:$4 sm:$0xff]  }
 0x32d   : > { %2750 = vmatpush1.bf16.msra.mxu1 %v10169_v25  ;;  %2558 = vmatprep.subr.bf16.mxu0 %v10170_v52  ;;  %v1850_v25 = vld [vmem:[#allocation2 + $0x60] sm:$0xff]  ;;  %v1852_v52 = vld [vmem:[#allocation2 + $0x70] sm:$0xff]  ;;  %v1871_v56 = vld [vmem:[#allocation2 + $0x108] sm:$0xff]  ;;  %p9295_p4 = scmp.ne.s32.totalorder %s18437_s20, 1 }
 0x32e   : > { %2751 = vmatprep.subr.bf16.mxu1 %v10172_v61  ;;  %v10235_v61 = vld [vmem:[%s11954_s1 + $0x104] ss:$24 sps:$4 sm:$0xff]   ;;  %v10251_v23 = vld [vmem:[%s11954_s1 + $0x220] ss:$24 sps:$4 sm:$0xff]   ;;  %v1868_v21 = vld [vmem:[#allocation2 + $0xf0] sm:$0xff] }
 0x32f   : > { %v1873_v41 = vld [vmem:[#allocation2 + $0x118] sm:$0xff]  ;;  %v10257_v20 = vld [vmem:[%s11954_s1 + $0x280] ss:$24 sps:$4 sm:$0xff]   ;;  %v1872_v12 = vld [vmem:[#allocation2 + $0x110] sm:$0xff] }
 0x330   : > { %2559 = vmatpush1.bf16.msra.mxu0 %v10174_v49  ;;  %v1855_v49 = vld [vmem:[#allocation2 + $0x88] sm:$0xff]  ;;  %v1870_v16 = vld [vmem:[#allocation2 + $0x100] sm:$0xff] }
 0x331   : > { %2752 = vmatpush1.bf16.msra.mxu1 %v10175_v4  ;;  %2560 = vmatprep.subr.bf16.mxu0 %v10176_v17  ;;  %v1857_v4 = vld [vmem:[#allocation2 + $0x98] sm:$0xff]  ;;  %v10233_v17 = vld [vmem:[%s11954_s1 + $0x100] ss:$24 sps:$4 sm:$0xff]  }
 0x332   : > { %2753 = vmatprep.subr.bf16.mxu1 %v10178_v11  ;;  %v10238_v11 = vld [vmem:[%s11954_s1 + $0x134] ss:$24 sps:$4 sm:$0xff]   ;;  %v1875_v31 = vld [vmem:[#allocation2 + $0x128] sm:$0xff] }
 0x334   : > { %2561 = vmatpush1.bf16.msra.mxu0 %v10180_v47  ;;  %v13044_v47 = vpack.c.bf16 %v1852_v52, %v1850_v25  ;;  %v1874_v52 = vld [vmem:[#allocation2 + $0x120] sm:$0xff] }
 0x335   : > { %2754 = vmatpush1.bf16.msra.mxu1 %v10181_v37  ;;  %2562 = vmatprep.subr.bf16.mxu0 %v10182_v50  ;;  %v10236_v37 = vld [vmem:[%s11954_s1 + $0x130] ss:$24 sps:$4 sm:$0xff]   ;;  %v13047_v50 = vpack.c.bf16 %v1857_v4, %v1855_v49  ;;  %v1879_v49 = vld [vmem:[#allocation2 + $0x148] sm:$0xff] }
 0x336   : > { %2755 = vmatprep.subr.bf16.mxu1 %v10184_v18  ;;  %v10241_v18 = vld [vmem:[%s11954_s1 + $0x164] ss:$24 sps:$4 sm:$0xff]   ;;  %v1881_v4 = vld [vmem:[#allocation2 + $0x158] sm:$0xff] }
 0x338   : > { %2563 = vmatpush1.bf16.msra.mxu0 %v10186_v63  ;;  %v1854_v63 = vld [vmem:[#allocation2 + $0x80] sm:$0xff] }
 0x339   : > { %2756 = vmatpush1.bf16.msra.mxu1 %v10187_v14  ;;  %2564 = vmatprep.subr.bf16.mxu0 %v10188_v9  ;;  %v1856_v14 = vld [vmem:[#allocation2 + $0x90] sm:$0xff]  ;;  %v1859_v9 = vld [vmem:[#allocation2 + $0xa8] sm:$0xff] }
 0x33a   : > { %2757 = vmatprep.subr.bf16.mxu1 %v10190_v40  ;;  %v1861_v40 = vld [vmem:[#allocation2 + $0xb8] sm:$0xff] }
 0x33c   : > { %2565 = vmatpush1.bf16.msra.mxu0 %v10192_v15  ;;  %v13056_v15 = vpack.c.bf16 %v1856_v14, %v1854_v63  ;;  %v1883_v63 = vld [vmem:[#allocation2 + $0x168] sm:$0xff]  ;;  %v1885_v14 = vld [vmem:[#allocation2 + $0x178] sm:$0xff] }
 0x33d   : > { %2758 = vmatpush1.bf16.msra.mxu1 %v10193_v13  ;;  %2566 = vmatprep.subr.bf16.mxu0 %v10194_v6  ;;  %v10242_v13 = vld [vmem:[%s11954_s1 + $0x190] ss:$24 sps:$4 sm:$0xff]   ;;  %v13059_v6 = vpack.c.bf16 %v1861_v40, %v1859_v9  ;;  %v13121_v40 = vpack.c.bf16 %v1885_v14, %v1883_v63 }
 0x33e   : > { %2759 = vmatprep.subr.bf16.mxu1 %v10196_v27  ;;  %v10247_v27 = vld [vmem:[%s11954_s1 + $0x1c4] ss:$24 sps:$4 sm:$0xff]  }
 0x340   : > { %2567 = vmatpush1.bf16.msra.mxu0 %v10198_v48  ;;  %v1858_v48 = vld [vmem:[#allocation2 + $0xa0] sm:$0xff] }
 0x341   : > { %2760 = vmatpush1.bf16.msra.mxu1 %v10199_v5  ;;  %2568 = vmatprep.subr.bf16.mxu0 %v10200_v32  ;;  %v1860_v5 = vld [vmem:[#allocation2 + $0xb0] sm:$0xff]  ;;  %v1863_v32 = vld [vmem:[#allocation2 + $0xc8] sm:$0xff] }
 0x342   : > { %2761 = vmatprep.subr.bf16.mxu1 %v10202_v29  ;;  %v1865_v29 = vld [vmem:[#allocation2 + $0xd8] sm:$0xff] }
 0x344   : > { %2569 = vmatpush1.bf16.msra.mxu0 %v10204_v57  ;;  %v10245_v57 = vld [vmem:[%s11954_s1 + $0x1c0] ss:$24 sps:$4 sm:$0xff]  }
 0x345   : > { %2762 = vmatpush1.bf16.msra.mxu1 %v10205_v62  ;;  %2570 = vmatprep.subr.bf16.mxu0 %v10206_v54  ;;  %v10250_v62 = vld [vmem:[%s11954_s1 + $0x1f4] ss:$24 sps:$4 sm:$0xff]   ;;  %v13068_v54 = vpack.c.bf16 %v1860_v5, %v1858_v48 }
 0x346   : > { %2763 = vmatprep.subr.bf16.mxu1 %v10208_v36  ;;  %v10248_v36 = vld [vmem:[%s11954_s1 + $0x1f0] ss:$24 sps:$4 sm:$0xff]  }
 0x348   : > { %2571 = vmatpush1.bf16.msra.mxu0 %v10210_v33  ;;  %v13071_v33 = vpack.c.bf16 %v1865_v29, %v1863_v32  ;;  %v1886_v32 = vld [vmem:[#allocation2 + $0x180] sm:$0xff]  ;;  %v1888_v29 = vld [vmem:[#allocation2 + $0x190] sm:$0xff] }
 0x349   : > { %2764 = vmatpush1.bf16.msra.mxu1 %v10211_v43  ;;  %2572 = vmatprep.subr.bf16.mxu0 %v10212_v10  ;;  %v10253_v43 = vld [vmem:[%s11954_s1 + $0x224] ss:$24 sps:$4 sm:$0xff]  }
 0x34a   : > { %2765 = vmatprep.subr.bf16.mxu1 %v10214_v28  ;;  %v1862_v10 = vld [vmem:[#allocation2 + $0xc0] sm:$0xff]  ;;  %v1864_v28 = vld [vmem:[#allocation2 + $0xd0] sm:$0xff] }
 0x34b   : > { %v13080_v26 = vpack.c.bf16 %v1864_v28, %v1862_v10  ;;  %v1890_v10 = vld [vmem:[#allocation2 + $0x1a0] sm:$0xff]  ;;  %v1892_v28 = vld [vmem:[#allocation2 + $0x1b0] sm:$0xff] }
 0x34c   : > { %2573 = vmatpush1.bf16.msra.mxu0 %v10216_v45  ;;  %v1867_v45 = vld [vmem:[#allocation2 + $0xe8] sm:$0xff] }
 0x34d   : > { %2766 = vmatpush1.bf16.msra.mxu1 %v10217_v1  ;;  %2928 = vmatprep.subr.bf16.mxu0 %v10220_v24  ;;  %v1869_v1 = vld [vmem:[#allocation2 + $0xf8] sm:$0xff] }
 0x34e   : > { %v13083_v24 = vpack.c.bf16 %v1869_v1, %v1867_v45  ;;  %v1895_v45 = vld [vmem:[#allocation2 + $0x1c8] sm:$0xff]  ;;  %v1897_v1 = vld [vmem:[#allocation2 + $0x1d8] sm:$0xff] }
 0x34f   : > { %2575 = vmatmul.mubr.bf16.vlgmr.msra.gmra.mrb[0].mxu0 %v13008_v35 }
 0x350   : > { %2768 = vmatmul.mubr.bf16.vlgmr.msra.gmra.mrb[0].mxu1 %v13008_v35  ;;  %2584 = vmatprep.mubr.bf16.mxu0 %v13010_v3 }
 0x351   : > { %2777 = vmatprep.mubr.bf16.mxu1 %v13010_v3  ;;  %2929 = vmatpush1.bf16.msra.mxu0 %v10218_v2  ;;  %v10259_v2 = vld [vmem:[%s11954_s1 + $0x284] ss:$24 sps:$4 sm:$0xff]  }
 0x352   : > { %2930 = vmatprep.subr.bf16.mxu0 %v10223_v42  ;;  %v1866_v42 = vld [vmem:[#allocation2 + $0xe0] sm:$0xff] }
 0x355   : > { %2931 = vmatpush1.bf16.msra.mxu0 %v10221_v0  ;;  %v10262_v0 = vld [vmem:[%s11954_s1 + $0x2b4] ss:$24 sps:$4 sm:$0xff]  }
 0x356   : > { %2932 = vmatprep.subr.bf16.mxu0 %v10226_v7  ;;  %v13092_v7 = vpack.c.bf16 %v1868_v21, %v1866_v42  ;;  %v1899_v42 = vld [vmem:[#allocation2 + $0x1e8] sm:$0xff]  ;;  %v1901_v21 = vld [vmem:[#allocation2 + $0x1f8] sm:$0xff] }
 0x357   : > { %2585 = vmatmul.mubr.bf16.gmra.mrb[4].mxu0 %v13020_v39 }
 0x358   : > { %2778 = vmatmul.mubr.bf16.gmra.mrb[4].mxu1 %v13020_v39  ;;  %2594 = vmatprep.mubr.bf16.mxu0 %v13022_v30 }
 0x359   : > { %2787 = vmatprep.mubr.bf16.mxu1 %v13022_v30  ;;  %2933 = vmatpush1.bf16.msra.mxu0 %v10224_v8  ;;  %v10260_v8 = vld [vmem:[%s11954_s1 + $0x2b0] ss:$24 sps:$4 sm:$0xff]  }
 0x35a   : > { %2934 = vmatprep.subr.bf16.mxu0 %v10229_v34  ;;  %v13095_v34 = vpack.c.bf16 %v1873_v41, %v1871_v56  ;;  %v13153_v41 = vpack.c.bf16 %v1901_v21, %v1899_v42 }
 0x35d   : > { %2935 = vmatpush1.bf16.msra.mxu0 %v10227_v59  ;;  %v1877_v59 = vld [vmem:[#allocation2 + $0x138] sm:$0xff] }
 0x35e   : > { %2936 = vmatprep.subr.bf16.mxu0 %v10232_v55  ;;  %v10263_v55 = vld [vmem:[%s11954_s1 + $0x2e0] ss:$24 sps:$4 sm:$0xff]   ;;  %v13105_v25 = vpack.c.bf16 %v1877_v59, %v1875_v31 }
 0x35f   : > { %2595 = vmatmul.mubr.bf16.gmra.mrb[8].mxu0 %v13032_v53 }
 0x360   : > { %2788 = vmatmul.mubr.bf16.gmra.mrb[8].mxu1 %v13032_v53  ;;  %2604 = vmatprep.mubr.bf16.mxu0 %v13034_v19 }
 0x361   : > { %2797 = vmatprep.mubr.bf16.mxu1 %v13034_v19  ;;  %2937 = vmatpush1.bf16.msra.mxu0 %v10230_v44  ;;  %v13103_v44 = vpack.c.bf16 %v1872_v12, %v1870_v16 }
 0x362   : > { %2938 = vmatprep.subr.bf16.mxu0 %v10235_v61  ;;  %v1876_v61 = vld [vmem:[#allocation2 + $0x130] sm:$0xff] }
 0x365   : > { %2939 = vmatpush1.bf16.msra.mxu0 %v10233_v17  ;;  %v13111_v17 = vpack.c.bf16 %v1876_v61, %v1874_v52 }
 0x366   : > { %2940 = vmatprep.subr.bf16.mxu0 %v10238_v11  ;;  %v13113_v11 = vpack.c.bf16 %v1881_v4, %v1879_v49 }
 0x367   : > { %2605 = vmatmul.mubr.bf16.gmra.mrb[12].mxu0 %v13044_v47 }
 0x368   : > { %2798 = vmatmul.mubr.bf16.gmra.mrb[12].mxu1 %v13044_v47  ;;  %2614 = vmatprep.mubr.bf16.mxu0 %v13047_v50 }
 0x369   : > { %2807 = vmatprep.mubr.bf16.mxu1 %v13047_v50  ;;  %2941 = vmatpush1.bf16.msra.mxu0 %v10236_v37  ;;  %v1878_v37 = vld [vmem:[#allocation2 + $0x140] sm:$0xff] }
 0x36a   : > { %2942 = vmatprep.subr.bf16.mxu0 %v10241_v18  ;;  %v1880_v18 = vld [vmem:[#allocation2 + $0x150] sm:$0xff] }
 0x36b   : > { %v13119_v9 = vpack.c.bf16 %v1880_v18, %v1878_v37 }
 0x36d   : > { %2943 = vmatpush1.bf16.msra.mxu0 %v10239_v46  ;;  %v1882_v46 = vld [vmem:[#allocation2 + $0x160] sm:$0xff] }
 0x36e   : > { %2944 = vmatprep.subr.bf16.mxu0 %v10244_v58  ;;  %v1884_v58 = vld [vmem:[#allocation2 + $0x170] sm:$0xff] }
 0x36f   : > { %2615 = vmatmul.mubr.bf16.gmra.mrb[16].mxu0 %v13056_v15  ;;  %v13127_v48 = vpack.c.bf16 %v1884_v58, %v1882_v46 }
 0x370   : > { %2808 = vmatmul.mubr.bf16.gmra.mrb[16].mxu1 %v13056_v15  ;;  %2624 = vmatprep.mubr.bf16.mxu0 %v13059_v6 }
 0x371   : > { %2817 = vmatprep.mubr.bf16.mxu1 %v13059_v6  ;;  %2945 = vmatpush1.bf16.msra.mxu0 %v10242_v13  ;;  %v1887_v13 = vld [vmem:[#allocation2 + $0x188] sm:$0xff] }
 0x372   : > { %2946 = vmatprep.subr.bf16.mxu0 %v10247_v27  ;;  %v1889_v27 = vld [vmem:[#allocation2 + $0x198] sm:$0xff] }
 0x373   : > { %v13129_v5 = vpack.c.bf16 %v1889_v27, %v1887_v13 }
 0x375   : > { %2947 = vmatpush1.bf16.msra.mxu0 %v10245_v57  ;;  %v1891_v57 = vld [vmem:[#allocation2 + $0x1a8] sm:$0xff] }
 0x376   : > { %2948 = vmatprep.subr.bf16.mxu0 %v10250_v62  ;;  %v1893_v62 = vld [vmem:[#allocation2 + $0x1b8] sm:$0xff] }
 0x377   : > { %2625 = vmatmul.mubr.bf16.gmra.mrb[20].mxu0 %v13068_v54 }
 0x378   : > { %2818 = vmatmul.mubr.bf16.gmra.mrb[20].mxu1 %v13068_v54  ;;  %2634 = vmatprep.mubr.bf16.mxu0 %v13071_v33 }
 0x379   : > { %2827 = vmatprep.mubr.bf16.mxu1 %v13071_v33  ;;  %2949 = vmatpush1.bf16.msra.mxu0 %v10248_v36  ;;  %v13135_v36 = vpack.c.bf16 %v1888_v29, %v1886_v32 }
 0x37a   : > { %2950 = vmatprep.subr.bf16.mxu0 %v10253_v43  ;;  %v13137_v43 = vpack.c.bf16 %v1893_v62, %v1891_v57 }
 0x37d   : > { %2951 = vmatpush1.bf16.msra.mxu0 %v10251_v23  ;;  %v13143_v23 = vpack.c.bf16 %v1892_v28, %v1890_v10 }
 0x37e   : > { %2952 = vmatprep.subr.bf16.mxu0 %v10256_v22  ;;  %v13145_v22 = vpack.c.bf16 %v1897_v1, %v1895_v45 }
 0x37f   : > { %2635 = vmatmul.mubr.bf16.gmra.mrb[24].mxu0 %v13080_v26 }
 0x380   : > { %2828 = vmatmul.mubr.bf16.gmra.mrb[24].mxu1 %v13080_v26  ;;  %2644 = vmatprep.mubr.bf16.mxu0 %v13083_v24 }
 0x381   : > { %2837 = vmatprep.mubr.bf16.mxu1 %v13083_v24  ;;  %2953 = vmatpush1.bf16.msra.mxu0 %v10254_v60  ;;  %v1894_v60 = vld [vmem:[#allocation2 + $0x1c0] sm:$0xff] }
 0x382   : > { %2954 = vmatprep.subr.bf16.mxu0 %v10259_v2  ;;  %v1896_v2 = vld [vmem:[#allocation2 + $0x1d0] sm:$0xff] }
 0x383   : > { %v13151_v56 = vpack.c.bf16 %v1896_v2, %v1894_v60 }
 0x385   : > { %2955 = vmatpush1.bf16.msra.mxu0 %v10257_v20  ;;  %v1898_v20 = vld [vmem:[#allocation2 + $0x1e0] sm:$0xff] }
 0x386   : > { %2956 = vmatprep.subr.bf16.mxu0 %v10262_v0  ;;  %v1900_v0 = vld [vmem:[#allocation2 + $0x1f0] sm:$0xff] }
 0x387   : > { %2645 = vmatmul.mubr.bf16.gmra.mrb[28].mxu0 %v13092_v7 }
 0x388   : > { %2838 = vmatmul.mubr.bf16.gmra.mrb[28].mxu1 %v13092_v7  ;;  %2654 = vmatprep.mubr.bf16.mxu0 %v13095_v34 }
 0x389   : > { %2847 = vmatprep.mubr.bf16.mxu1 %v13095_v34  ;;  %2957 = vmatpush1.bf16.msra.mxu0 %v10260_v8  ;;  %v13159_v8 = vpack.c.bf16 %v1900_v0, %v1898_v20 }
 0x38a   : > { %2958 = vmatprep.subr.bf16.mxu0 %v10265_v51 }
 0x38d   : > { %2959 = vmatpush1.bf16.msra.mxu0 %v10263_v55 }
 0x38f   : > { %2655 = vmatmul.mubr.bf16.gmra.mrb[32].mxu0 %v13103_v44 }
 0x390   : > { %2848 = vmatmul.mubr.bf16.gmra.mrb[32].mxu1 %v13103_v44  ;;  %2664 = vmatprep.mubr.bf16.mxu0 %v13105_v25 }
 0x391   : > { %2857 = vmatprep.mubr.bf16.mxu1 %v13105_v25 }
 0x397   : > { %2665 = vmatmul.mubr.bf16.gmra.mrb[36].mxu0 %v13111_v17 }
 0x398   : > { %2858 = vmatmul.mubr.bf16.gmra.mrb[36].mxu1 %v13111_v17  ;;  %2674 = vmatprep.mubr.bf16.mxu0 %v13113_v11 }
 0x399   : > { %2867 = vmatprep.mubr.bf16.mxu1 %v13113_v11 }
 0x39f   : > { %2675 = vmatmul.mubr.bf16.gmra.mrb[40].mxu0 %v13119_v9 }
 0x3a0   : > { %2868 = vmatmul.mubr.bf16.gmra.mrb[40].mxu1 %v13119_v9  ;;  %2684 = vmatprep.mubr.bf16.mxu0 %v13121_v40 }
 0x3a1   : > { %2877 = vmatprep.mubr.bf16.mxu1 %v13121_v40 }
 0x3a7   : > { %2685 = vmatmul.mubr.bf16.gmra.mrb[44].mxu0 %v13127_v48 }
 0x3a8   : > { %2878 = vmatmul.mubr.bf16.gmra.mrb[44].mxu1 %v13127_v48  ;;  %2694 = vmatprep.mubr.bf16.mxu0 %v13129_v5 }
 0x3a9   : > { %2887 = vmatprep.mubr.bf16.mxu1 %v13129_v5 }
 0x3af   : > { %2695 = vmatmul.mubr.bf16.gmra.mrb[48].mxu0 %v13135_v36 }
 0x3b0   : > { %2888 = vmatmul.mubr.bf16.gmra.mrb[48].mxu1 %v13135_v36  ;;  %2704 = vmatprep.mubr.bf16.mxu0 %v13137_v43 }
 0x3b1   : > { %2897 = vmatprep.mubr.bf16.mxu1 %v13137_v43 }
 0x3b7   : > { %2705 = vmatmul.mubr.bf16.gmra.mrb[52].mxu0 %v13143_v23 }
 0x3b8   : > { %2898 = vmatmul.mubr.bf16.gmra.mrb[52].mxu1 %v13143_v23  ;;  %2714 = vmatprep.mubr.bf16.mxu0 %v13145_v22 }
 0x3b9   : > { %2907 = vmatprep.mubr.bf16.mxu1 %v13145_v22 }
 0x3bf   : > { %2715 = vmatmul.mubr.bf16.gmra.mrb[56].mxu0 %v13151_v56 }
 0x3c0   : > { %2908 = vmatmul.mubr.bf16.gmra.mrb[56].mxu1 %v13151_v56  ;;  %2724 = vmatprep.mubr.bf16.mxu0 %v13153_v41 }
 0x3c1   : > { %2917 = vmatprep.mubr.bf16.mxu1 %v13153_v41 }
 0x3c7   : > { %2725 = vmatmul.mubr.bf16.gmra.mrb[60].mxu0 %v13159_v8 }
 0x3c8   : > { %2918 = vmatmul.mubr.bf16.gmra.mrb[60].mxu1 %v13159_v8  ;;  %2960 = vmatprep.mubr.bf16.mxu0 %v12987_v38  ;;  %v2032_v38 = vlaneseq }
 0x3cf   : > { %2961 = vmatmul.mubr.bf16.vlgmr.msra.gmra.mrb[64].mxu0 %v13008_v35  ;;  %v13184_v35 = vshrl.u32 %v2032_v38, 7 }
 0x3d0   : > { %2970 = vmatprep.mubr.bf16.mxu0 %v13010_v3 }
 0x3d1   : > { %17952 = vst [vmem:[#allocation67_spill] sm:$0xff] %v13184_v35  ;;  %v13187_v3 = vsub.s32 0, %v13184_v35 }
 0x3d3   : > { %17953 = vst [vmem:[#allocation68_spill] sm:$0xff] %v13187_v3 }
 0x3d7   : > { %2971 = vmatmul.mubr.bf16.gmra.mrb[68].mxu0 %v13020_v39  ;;  %v13190_v39 = vsub.s32 1, %v13184_v35 }
 0x3d8   : > { %2980 = vmatprep.mubr.bf16.mxu0 %v13022_v30  ;;  %v17571_v30 = vsub.s32 2, %v13184_v35 }
 0x3d9   : > { %17954 = vst [vmem:[#allocation69_spill] sm:$0xff] %v13190_v39 }
 0x3df   : > { %2981 = vmatmul.mubr.bf16.gmra.mrb[72].mxu0 %v13032_v53  ;;  %v13194_v53 = vld [vmem:[%s11975_s23] sm:$0x3f] }
 0x3e0   : > { %2990 = vmatprep.mubr.bf16.mxu0 %v13034_v19  ;;  %v17570_v19 = vsub.s32 3, %v13184_v35 }
 0x3e7   : > { %2991 = vmatmul.mubr.bf16.gmra.mrb[76].mxu0 %v13044_v47  ;;  %v13200_v47 = vrot.slane %v13194_v53, %v13187_v3 }
 0x3e8   : > { %3000 = vmatprep.mubr.bf16.mxu0 %v13047_v50  ;;  %v13205_v50 = vrot.slane %v13194_v53, %v13190_v39 }
 0x3ef   : > { %3001 = vmatmul.mubr.bf16.gmra.mrb[80].mxu0 %v13056_v15  ;;  %v13210_v15 = vrot.slane %v13194_v53, %v17571_v30 }
 0x3f0   : > { %3010 = vmatprep.mubr.bf16.mxu0 %v13059_v6 }
 0x3f7   : > { %3011 = vmatmul.mubr.bf16.gmra.mrb[84].mxu0 %v13068_v54  ;;  %v13215_v54 = vrot.slane %v13194_v53, %v17570_v19 }
 0x3f8   : > { %3020 = vmatprep.mubr.bf16.mxu0 %v13071_v33 }
 0x3ff   : > { %3021 = vmatmul.mubr.bf16.gmra.mrb[88].mxu0 %v13080_v26 }
 0x400   : > { %3030 = vmatprep.mubr.bf16.mxu0 %v13083_v24 }
 0x407   : > { %3031 = vmatmul.mubr.bf16.gmra.mrb[92].mxu0 %v13092_v7 }
 0x408   : > { %3040 = vmatprep.mubr.bf16.mxu0 %v13095_v34 }
 0x40f   : > { %3041 = vmatmul.mubr.bf16.gmra.mrb[96].mxu0 %v13103_v44 }
 0x410   : > { %3050 = vmatprep.mubr.bf16.mxu0 %v13105_v25 }
 0x417   : > { %3051 = vmatmul.mubr.bf16.gmra.mrb[100].mxu0 %v13111_v17 }
 0x418   : > { %3060 = vmatprep.mubr.bf16.mxu0 %v13113_v11 }
 0x41f   : > { %3061 = vmatmul.mubr.bf16.gmra.mrb[104].mxu0 %v13119_v9 }
 0x420   : > { %3070 = vmatprep.mubr.bf16.mxu0 %v13121_v40 }
 0x422   : > { %v2576_v33 = vpop.f32.mrb[0].mxu0 }
 0x423   : > { %v2769_v6 = vpop.f32.mrb[0].mxu1  ;;  %v2577_v24 = vadd.f32 %v2576_v33, %v13200_v47  ;;  %v2578_v7 = vpop.f32.mrb[1].mxu0 }
 0x424   : > { %v2771_v26 = vpop.f32.mrb[1].mxu1  ;;  %v13219_v51 = vadd.f32 %v2578_v7, %v13205_v50  ;;  %v2580_v16 = vpop.f32.mrb[2].mxu0  ;;  %v2770_v12 = vadd.f32 %v2769_v6, %v13210_v15 }
 0x425   : > { %v2773_v34 = vpop.f32.mrb[2].mxu1  ;;  %v2581_v55 = vadd.f32 %v2580_v16, %v13200_v47  ;;  %v2582_v44 = vpop.f32.mrb[3].mxu0  ;;  %v2772_v25 = vadd.f32 %v2771_v26, %v13215_v54 }
 0x426   : > { %17955 = vst [vmem:[#allocation70_spill] sm:$0xff] %v13219_v51  ;;  %v2774_v31 = vadd.f32 %v2773_v34, %v13210_v15  ;;  %v2775_v59 = vpop.f32.mrb[3].mxu1  ;;  %v13227_v61 = vadd.f32 %v2582_v44, %v13205_v50 }
 0x427   : > { %v2776_v52 = vadd.f32 %v2775_v59, %v13215_v54  ;;  %3071 = vmatmul.mubr.bf16.gmra.mrb[108].mxu0 %v13127_v48  ;;  %v3153_v4 = vpack.c.bf16 %v2581_v55, %v2577_v24 }
 0x428   : > { %17956 = vst [vmem:[#allocation71_spill] sm:$0xff] %v13227_v61  ;;  %v3169_v49 = vpack.c.bf16 %v2774_v31, %v2770_v12  ;;  %3080 = vmatprep.mubr.bf16.mxu0 %v13129_v5 }
 0x429   : > { %v13231_v17 = vpack.c.bf16 %v2776_v52, %v2772_v25  ;;  %9454 = vmatprep.mubr.bf16.mxu1 %v3153_v4 }
 0x42a   : > { %9438 = vmatprep.subr.bf16.mxu1 %v3169_v49  ;;  %v2586_v18 = vpop.f32.mrb[4].mxu0 }
 0x42b   : > { %17957 = vst [vmem:[#allocation72_spill] sm:$0xff] %v13231_v17  ;;  %v2779_v37 = vpop.f32.mrb[4].mxu1  ;;  %9439 = vmatpush3.bf16.xpose.msra.mxu1 %v3169_v49  ;;  %v13236_v14 = vadd.f32 %v2586_v18, %v13200_v47  ;;  %v2588_v9 = vpop.f32.mrb[5].mxu0 }
 0x42c   : > { %v2781_v63 = vpop.f32.mrb[5].mxu1  ;;  %v13239_v46 = vadd.f32 %v2588_v9, %v13205_v50  ;;  %v2590_v58 = vpop.f32.mrb[6].mxu0  ;;  %v2780_v13 = vadd.f32 %v2779_v37, %v13210_v15 }
 0x42d   : > { %v2783_v40 = vpop.f32.mrb[6].mxu1  ;;  %v13244_v5 = vadd.f32 %v2590_v58, %v13200_v47  ;;  %v2592_v32 = vpop.f32.mrb[7].mxu0  ;;  %v2782_v29 = vadd.f32 %v2781_v63, %v13215_v54 }
 0x42e   : > { %17958 = vst [vmem:[#allocation73_spill] sm:$0xff] %v13239_v46  ;;  %v2784_v27 = vadd.f32 %v2783_v40, %v13210_v15  ;;  %v2785_v48 = vpop.f32.mrb[7].mxu1  ;;  %v13249_v62 = vadd.f32 %v2592_v32, %v13205_v50 }
 0x42f   : > { %v2786_v57 = vadd.f32 %v2785_v48, %v13215_v54  ;;  %3081 = vmatmul.mubr.bf16.gmra.mrb[112].mxu0 %v13135_v36  ;;  %v3154_v28 = vpack.c.bf16 %v13244_v5, %v13236_v14 }
 0x430   : > { %17959 = vst [vmem:[#allocation74_spill] sm:$0xff] %v13249_v62  ;;  %v3170_v10 = vpack.c.bf16 %v2784_v27, %v2780_v13  ;;  %3090 = vmatprep.mubr.bf16.mxu0 %v13137_v43 }
 0x431   : > { %v13257_v1 = vpack.c.bf16 %v2786_v57, %v2782_v29 }
 0x432   : > { %9440 = vmatprep.subr.bf16.mxu1 %v3170_v10  ;;  %v2596_v2 = vpop.f32.mrb[8].mxu0 }
 0x433   : > { %17960 = vst [vmem:[#allocation75_spill] sm:$0xff] %v13257_v1  ;;  %v2789_v60 = vpop.f32.mrb[8].mxu1  ;;  %9441 = vmatpush3.bf16.xpose.msra.mxu1 %v3170_v10  ;;  %v13260_v21 = vadd.f32 %v2596_v2, %v13200_v47  ;;  %v2598_v36 = vpop.f32.mrb[9].mxu0 }
 0x434   : > { %v2791_v42 = vpop.f32.mrb[9].mxu1  ;;  %v13263_v0 = vadd.f32 %v2598_v36, %v13205_v50  ;;  %v2600_v38 = vpop.f32.mrb[10].mxu0  ;;  %v2790_v43 = vadd.f32 %v2789_v60, %v13210_v15 }
 0x435   : > { %v2793_v20 = vpop.f32.mrb[10].mxu1  ;;  %v13268_v26 = vadd.f32 %v2600_v38, %v13200_v47  ;;  %v2602_v24 = vpop.f32.mrb[11].mxu0  ;;  %v2792_v7 = vadd.f32 %v2791_v42, %v13215_v54 }
 0x436   : > { %17961 = vst [vmem:[#allocation76_spill] sm:$0xff] %v13263_v0  ;;  %v2794_v6 = vadd.f32 %v2793_v20, %v13210_v15  ;;  %v2795_v33 = vpop.f32.mrb[11].mxu1  ;;  %v13273_v16 = vadd.f32 %v2602_v24, %v13205_v50 }
 0x437   : > { %v2796_v34 = vadd.f32 %v2795_v33, %v13215_v54  ;;  %3091 = vmatmul.mubr.bf16.gmra.mrb[116].mxu0 %v13143_v23  ;;  %v3155_v31 = vpack.c.bf16 %v13268_v26, %v13260_v21 }
 0x438   : > { %17962 = vst [vmem:[#allocation77_spill] sm:$0xff] %v13273_v16  ;;  %v3171_v12 = vpack.c.bf16 %v2794_v6, %v2790_v43  ;;  %3100 = vmatprep.mubr.bf16.mxu0 %v13145_v22 }
 0x439   : > { %v13279_v59 = vpack.c.bf16 %v2796_v34, %v2792_v7 }
 0x43a   : > { %9442 = vmatprep.subr.bf16.mxu1 %v3171_v12  ;;  %v2606_v25 = vpop.f32.mrb[12].mxu0 }
 0x43b   : > { %17963 = vst [vmem:[#allocation78_spill] sm:$0xff] %v13279_v59  ;;  %v2799_v44 = vpop.f32.mrb[12].mxu1  ;;  %9443 = vmatpush3.bf16.xpose.msra.mxu1 %v3171_v12  ;;  %v13284_v49 = vadd.f32 %v2606_v25, %v13200_v47  ;;  %v2608_v23 = vpop.f32.mrb[13].mxu0 }
 0x43c   : > { %v2801_v52 = vpop.f32.mrb[13].mxu1  ;;  %v13287_v37 = vadd.f32 %v2608_v23, %v13205_v50  ;;  %v2610_v18 = vpop.f32.mrb[14].mxu0  ;;  %v2800_v22 = vadd.f32 %v2799_v44, %v13210_v15 }
 0x43d   : > { %v2803_v4 = vpop.f32.mrb[14].mxu1  ;;  %v13292_v40 = vadd.f32 %v2610_v18, %v13200_v47  ;;  %v2612_v58 = vpop.f32.mrb[15].mxu0  ;;  %v2802_v13 = vadd.f32 %v2801_v52, %v13215_v54 }
 0x43e   : > { %17964 = vst [vmem:[#allocation79_spill] sm:$0xff] %v13287_v37  ;;  %v2804_v63 = vadd.f32 %v2803_v4, %v13210_v15  ;;  %v2805_v9 = vpop.f32.mrb[15].mxu1  ;;  %v13297_v48 = vadd.f32 %v2612_v58, %v13205_v50 }
 0x43f   : > { %v2806_v27 = vadd.f32 %v2805_v9, %v13215_v54  ;;  %3101 = vmatmul.mubr.bf16.gmra.mrb[120].mxu0 %v13151_v56 }
 0x440   : > { %17965 = vst [vmem:[#allocation80_spill] sm:$0xff] %v13297_v48  ;;  %v3172_v32 = vpack.c.bf16 %v2804_v63, %v2800_v22  ;;  %3110 = vmatprep.mubr.bf16.mxu0 %v13153_v41 }
 0x441   : > { %v13303_v57 = vpack.c.bf16 %v2806_v27, %v2802_v13 }
 0x442   : > { %9444 = vmatprep.subr.bf16.mxu1 %v3172_v32  ;;  %v2616_v2 = vpop.f32.mrb[16].mxu0 }
 0x443   : > { %17966 = vst [vmem:[#allocation81_spill] sm:$0xff] %v13303_v57  ;;  %v2809_v60 = vpop.f32.mrb[16].mxu1  ;;  %9445 = vmatpush3.bf16.xpose.msra.mxu1 %v3172_v32  ;;  %v13308_v36 = vadd.f32 %v2616_v2, %v13200_v47  ;;  %v2618_v56 = vpop.f32.mrb[17].mxu0 }
 0x444   : > { %v2811_v42 = vpop.f32.mrb[17].mxu1  ;;  %v13311_v38 = vadd.f32 %v2618_v56, %v13205_v50  ;;  %v2620_v43 = vpop.f32.mrb[18].mxu0  ;;  %v2810_v41 = vadd.f32 %v2809_v60, %v13210_v15 }
 0x445   : > { %v2813_v20 = vpop.f32.mrb[18].mxu1  ;;  %v13316_v24 = vadd.f32 %v2620_v43, %v13200_v47  ;;  %v2622_v7 = vpop.f32.mrb[19].mxu0  ;;  %v2812_v34 = vadd.f32 %v2811_v42, %v13215_v54 }
 0x446   : > { %17967 = vst [vmem:[#allocation82_spill] sm:$0xff] %v13311_v38  ;;  %v2814_v6 = vadd.f32 %v2813_v20, %v13210_v15  ;;  %v2815_v33 = vpop.f32.mrb[19].mxu1  ;;  %v13321_v44 = vadd.f32 %v2622_v7, %v13205_v50 }
 0x447   : > { %v2816_v12 = vadd.f32 %v2815_v33, %v13215_v54  ;;  %3111 = vmatmul.mubr.bf16.gmra.mrb[124].mxu0 %v13159_v8 }
 0x448   : > { %17968 = vst [vmem:[#allocation83_spill] sm:$0xff] %v13321_v44  ;;  %v3173_v25 = vpack.c.bf16 %v2814_v6, %v2810_v41 }
 0x449   : > { %v13326_v23 = vpack.c.bf16 %v2816_v12, %v2812_v34 }
 0x44a   : > { %9446 = vmatprep.subr.bf16.mxu1 %v3173_v25  ;;  %v2626_v22 = vpop.f32.mrb[20].mxu0 }
 0x44b   : > { %17969 = vst [vmem:[#allocation84_spill] sm:$0xff] %v13326_v23  ;;  %v2819_v18 = vpop.f32.mrb[20].mxu1  ;;  %9447 = vmatpush3.bf16.xpose.msra.mxu1 %v3173_v25  ;;  %v13331_v9 = vadd.f32 %v2626_v22, %v13200_v47  ;;  %v2628_v58 = vpop.f32.mrb[21].mxu0 }
 0x44c   : > { %v2821_v63 = vpop.f32.mrb[21].mxu1  ;;  %v13334_v8 = vadd.f32 %v2628_v58, %v13205_v50  ;;  %v2630_v27 = vpop.f32.mrb[22].mxu0  ;;  %v2820_v32 = vadd.f32 %v2819_v18, %v13210_v15 }
 0x44d   : > { %v2823_v13 = vpop.f32.mrb[22].mxu1  ;;  %v13339_v42 = vadd.f32 %v2630_v27, %v13200_v47  ;;  %v2632_v56 = vpop.f32.mrb[23].mxu0  ;;  %v2822_v20 = vadd.f32 %v2821_v63, %v13215_v54 }
 0x44e   : > { %17970 = vst [vmem:[#allocation85_spill] sm:$0xff] %v13334_v8  ;;  %v2824_v60 = vadd.f32 %v2823_v13, %v13210_v15  ;;  %v2825_v2 = vpop.f32.mrb[23].mxu1  ;;  %v13344_v41 = vadd.f32 %v2632_v56, %v13205_v50 }
 0x44f   : > { %v2826_v43 = vadd.f32 %v2825_v2, %v13215_v54 }
 0x450   : > { %17971 = vst [vmem:[#allocation86_spill] sm:$0xff] %v13344_v41  ;;  %v3174_v6 = vpack.c.bf16 %v2824_v60, %v2820_v32 }
 0x451   : > { %v13348_v7 = vpack.c.bf16 %v2826_v43, %v2822_v20 }
 0x452   : > { %9448 = vmatprep.subr.bf16.mxu1 %v3174_v6  ;;  %v2636_v25 = vpop.f32.mrb[24].mxu0 }
 0x453   : > { %17972 = vst [vmem:[#allocation87_spill] sm:$0xff] %v13348_v7  ;;  %v2829_v12 = vpop.f32.mrb[24].mxu1  ;;  %9449 = vmatpush3.bf16.xpose.msra.mxu1 %v3174_v6  ;;  %v13353_v22 = vadd.f32 %v2636_v25, %v13200_v47  ;;  %v2638_v63 = vpop.f32.mrb[25].mxu0 }
 0x454   : > { %v2831_v18 = vpop.f32.mrb[25].mxu1  ;;  %v13356_v13 = vadd.f32 %v2638_v63, %v13205_v50  ;;  %v2640_v27 = vpop.f32.mrb[26].mxu0  ;;  %v2830_v32 = vadd.f32 %v2829_v12, %v13210_v15 }
 0x455   : > { %v2833_v58 = vpop.f32.mrb[26].mxu1  ;;  %v13361_v56 = vadd.f32 %v2640_v27, %v13200_v47  ;;  %v2642_v20 = vpop.f32.mrb[27].mxu0  ;;  %v2832_v43 = vadd.f32 %v2831_v18, %v13215_v54 }
 0x456   : > { %17973 = vst [vmem:[#allocation88_spill] sm:$0xff] %v13356_v13  ;;  %v2834_v60 = vadd.f32 %v2833_v58, %v13210_v15  ;;  %v2835_v2 = vpop.f32.mrb[27].mxu1  ;;  %v13366_v25 = vadd.f32 %v2642_v20, %v13205_v50 }
 0x457   : > { %v2836_v6 = vadd.f32 %v2835_v2, %v13215_v54 }
 0x458   : > { %17974 = vst [vmem:[#allocation89_spill] sm:$0xff] %v13366_v25  ;;  %v3175_v19 = vpack.c.bf16 %v2834_v60, %v2830_v32 }
 0x459   : > { %v13370_v30 = vpack.c.bf16 %v2836_v6, %v2832_v43 }
 0x45a   : > { %9450 = vmatprep.subr.bf16.mxu1 %v3175_v19  ;;  %v2646_v27 = vpop.f32.mrb[28].mxu0 }
 0x45b   : > { %17975 = vst [vmem:[#allocation90_spill] sm:$0xff] %v13370_v30  ;;  %v2839_v58 = vpop.f32.mrb[28].mxu1  ;;  %9451 = vmatpush3.bf16.xpose.msra.mxu1 %v3175_v19  ;;  %v13375_v18 = vadd.f32 %v2646_v27, %v13200_v47  ;;  %v2648_v2 = vpop.f32.mrb[29].mxu0 }
 0x45c   : > { %v2841_v34 = vpop.f32.mrb[29].mxu1  ;;  %v13378_v32 = vadd.f32 %v2648_v2, %v13205_v50  ;;  %v2650_v60 = vpop.f32.mrb[30].mxu0  ;;  %v2840_v43 = vadd.f32 %v2839_v58, %v13210_v15 }
 0x45d   : > { %v2843_v20 = vpop.f32.mrb[30].mxu1  ;;  %v13383_v12 = vadd.f32 %v2650_v60, %v13200_v47  ;;  %v2652_v19 = vpop.f32.mrb[31].mxu0  ;;  %v2842_v10 = vadd.f32 %v2841_v34, %v13215_v54 }
 0x45e   : > { %17976 = vst [vmem:[#allocation91_spill] sm:$0xff] %v13378_v32  ;;  %v2844_v6 = vadd.f32 %v2843_v20, %v13210_v15  ;;  %v2845_v4 = vpop.f32.mrb[31].mxu1  ;;  %v13388_v55 = vadd.f32 %v2652_v19, %v13205_v50 }
 0x45f   : > { %v2846_v27 = vadd.f32 %v2845_v4, %v13215_v54 }
 0x460   : > { %17977 = vst [vmem:[#allocation92_spill] sm:$0xff] %v13388_v55  ;;  %v3176_v45 = vpack.c.bf16 %v2844_v6, %v2840_v43 }
 0x461   : > { %v13392_v11 = vpack.c.bf16 %v2846_v27, %v2842_v10 }
 0x462   : > { %9452 = vmatprep.subr.bf16.mxu1 %v3176_v45  ;;  %v2656_v60 = vpop.f32.mrb[32].mxu0 }
 0x463   : > { %17978 = vst [vmem:[#allocation93_spill] sm:$0xff] %v13392_v11  ;;  %v2849_v20 = vpop.f32.mrb[32].mxu1  ;;  %9453 = vmatpush3.bf16.xpose.msra.mxu1 %v3176_v45  ;;  %v13398_v4 = vadd.f32 %v2656_v60, %v13200_v47  ;;  %v2658_v19 = vpop.f32.mrb[33].mxu0 }
 0x464   : > { %v2850_v34 = vadd.f32 %v2849_v20, %v13210_v15  ;;  %v2851_v63 = vpop.f32.mrb[33].mxu1  ;;  %v13402_v10 = vadd.f32 %v2658_v19, %v13205_v50  ;;  %v2660_v27 = vpop.f32.mrb[34].mxu0 }
 0x465   : > { %v2852_v43 = vadd.f32 %v2851_v63, %v13215_v54  ;;  %v2853_v6 = vpop.f32.mrb[34].mxu1  ;;  %v13406_v45 = vadd.f32 %v2660_v27, %v13200_v47  ;;  %v2662_v33 = vpop.f32.mrb[35].mxu0 }
 0x466   : > { %17979 = vst [vmem:[#allocation94_spill] sm:$0xff] %v13402_v10  ;;  %v2854_v58 = vadd.f32 %v2853_v6, %v13210_v15  ;;  %v2855_v2 = vpop.f32.mrb[35].mxu1  ;;  %v13410_v60 = vadd.f32 %v2662_v33, %v13205_v50 }
 0x467   : > { %v2856_v20 = vadd.f32 %v2855_v2, %v13215_v54 }
 0x468   : > { %17980 = vst [vmem:[#allocation95_spill] sm:$0xff] %v13410_v60  ;;  %v3177_v52 = vpack.c.bf16 %v2854_v58, %v2850_v34 }
 0x469   : > { %v13414_v29 = vpack.c.bf16 %v2856_v20, %v2852_v43 }
 0x46a   : > { %9455 = vmatmul.mubr.bf16.vlgmr.msra.gmra.mrb[64].mxu1 %v3154_v28  ;;  %9470 = vmatprep.subr.bf16.mxu1 %v3177_v52  ;;  %v2666_v33 = vpop.f32.mrb[36].mxu0 }
 0x46b   : > { %17981 = vst [vmem:[#allocation96_spill] sm:$0xff] %v13414_v29  ;;  %v2859_v6 = vpop.f32.mrb[36].mxu1  ;;  %9471 = vmatpush3.bf16.xpose.msra.mxu1 %v3177_v52  ;;  %9458 = vmatprep.mubr.bf16.mxu1 %v3155_v31  ;;  %v13426_v34 = vadd.f32 %v2666_v33, %v13200_v47  ;;  %v2668_v43 = vpop.f32.mrb[37].mxu0 }
 0x46c   : > { %v2860_v2 = vadd.f32 %v2859_v6, %v13210_v15  ;;  %v2861_v58 = vpop.f32.mrb[37].mxu1  ;;  %v13430_v14 = vadd.f32 %v2668_v43, %v13205_v50  ;;  %v2670_v5 = vpop.f32.mrb[38].mxu0 }
 0x46d   : > { %v2862_v27 = vadd.f32 %v2861_v58, %v13215_v54  ;;  %v2863_v20 = vpop.f32.mrb[38].mxu1  ;;  %v13434_v21 = vadd.f32 %v2670_v5, %v13200_v47  ;;  %v2672_v26 = vpop.f32.mrb[39].mxu0 }
 0x46e   : > { %17982 = vst [vmem:[#allocation97_spill] sm:$0xff] %v13430_v14  ;;  %v2864_v28 = vadd.f32 %v2863_v20, %v13210_v15  ;;  %v2865_v52 = vpop.f32.mrb[39].mxu1  ;;  %v13438_v6 = vadd.f32 %v2672_v26, %v13205_v50  ;;  %v17985_v20 = vpack.c.bf16 %v13292_v40, %v13284_v49 }
 0x46f   : > { %v2866_v31 = vadd.f32 %v2865_v52, %v13215_v54  ;;  %v17986_v52 = vpack.c.bf16 %v13316_v24, %v13308_v36 }
 0x470   : > { %17983 = vst [vmem:[#allocation98_spill] sm:$0xff] %v13438_v6  ;;  %v3178_v33 = vpack.c.bf16 %v2864_v28, %v2860_v2 }
 0x471   : > { %v13442_v19 = vpack.c.bf16 %v2866_v31, %v2862_v27 }
 0x472   : > { %9459 = vmatmul.mubr.bf16.gmra.mrb[68].mxu1 %v17985_v20  ;;  %9472 = vmatprep.subr.bf16.mxu1 %v3178_v33  ;;  %v2676_v2 = vpop.f32.mrb[40].mxu0 }
 0x473   : > { %17984 = vst [vmem:[#allocation99_spill] sm:$0xff] %v13442_v19  ;;  %v2869_v5 = vpop.f32.mrb[40].mxu1  ;;  %9473 = vmatpush3.bf16.xpose.msra.mxu1 %v3178_v33  ;;  %9462 = vmatprep.mubr.bf16.mxu1 %v17986_v52  ;;  %v2678_v27 = vpop.f32.mrb[41].mxu0  ;;  %v13457_v39 = vadd.f32 %v2676_v2, %v13200_v47 }
 0x474   : > { %v2870_v28 = vadd.f32 %v2869_v5, %v13210_v15  ;;  %v2871_v26 = vpop.f32.mrb[41].mxu1  ;;  %v2680_v43 = vpop.f32.mrb[42].mxu0  ;;  %v17988_v5 = vpack.c.bf16 %v13339_v42, %v13331_v9 }
 0x475   : > { %v2872_v31 = vadd.f32 %v2871_v26, %v13215_v54  ;;  %v2873_v58 = vpop.f32.mrb[42].mxu1  ;;  %v2682_v40 = vpop.f32.mrb[43].mxu0  ;;  %v13460_v36 = vadd.f32 %v2680_v43, %v13200_v47 }
 0x476   : > { %v2874_v63 = vadd.f32 %v2873_v58, %v13210_v15  ;;  %v2875_v49 = vpop.f32.mrb[43].mxu1  ;;  %v17989_v58 = vpack.c.bf16 %v13361_v56, %v13353_v22  ;;  %v13474_v2 = vadd.f32 %v2682_v40, %v13205_v50 }
 0x477   : > { %v2876_v20 = vadd.f32 %v2875_v49, %v13215_v54 }
 0x478   : > { %v3179_v33 = vpack.c.bf16 %v2874_v63, %v2870_v28  ;;  %v13471_v63 = vadd.f32 %v2678_v27, %v13205_v50  ;;  %17991 = vst [vmem:[#allocation102_spill] sm:$0xff] %v13474_v2 }
 0x479   : > { %v13462_v24 = vpack.c.bf16 %v2876_v20, %v2872_v31 }
 0x47a   : > { %9463 = vmatmul.mubr.bf16.gmra.mrb[72].mxu1 %v17988_v5  ;;  %9474 = vmatprep.subr.bf16.mxu1 %v3179_v33  ;;  %17990 = vst [vmem:[#allocation101_spill] sm:$0xff] %v13471_v63  ;;  %v2686_v43 = vpop.f32.mrb[44].mxu0 }
 0x47b   : > { %17987 = vst [vmem:[#allocation100_spill] sm:$0xff] %v13462_v24  ;;  %v2879_v52 = vpop.f32.mrb[44].mxu1  ;;  %9475 = vmatpush3.bf16.xpose.msra.mxu1 %v3179_v33  ;;  %9466 = vmatprep.mubr.bf16.mxu1 %v17989_v58  ;;  %v2688_v31 = vpop.f32.mrb[45].mxu0  ;;  %v13481_v22 = vadd.f32 %v2686_v43, %v13200_v47 }
 0x47c   : > { %v2880_v28 = vadd.f32 %v2879_v52, %v13210_v15  ;;  %v2881_v26 = vpop.f32.mrb[45].mxu1  ;;  %v2690_v56 = vpop.f32.mrb[46].mxu0 }
 0x47d   : > { %v2882_v42 = vadd.f32 %v2881_v26, %v13215_v54  ;;  %v2883_v49 = vpop.f32.mrb[46].mxu1  ;;  %v13485_v40 = vadd.f32 %v2690_v56, %v13200_v47  ;;  %v2692_v33 = vpop.f32.mrb[47].mxu0  ;;  %v17993_v26 = vpack.c.bf16 %v13383_v12, %v13375_v18  ;;  %v17994_v56 = vpack.c.bf16 %v13406_v45, %v13398_v4 }
 0x47e   : > { %v2884_v27 = vadd.f32 %v2883_v49, %v13210_v15  ;;  %v2885_v20 = vpop.f32.mrb[47].mxu1 }
 0x47f   : > { %v2886_v5 = vadd.f32 %v2885_v20, %v13215_v54  ;;  %v13501_v20 = vadd.f32 %v2688_v31, %v13205_v50 }
 0x480   : > { %v3180_v58 = vpack.c.bf16 %v2884_v27, %v2880_v28  ;;  %v13504_v28 = vadd.f32 %v2692_v33, %v13205_v50 }
 0x481   : > { %v13490_v9 = vpack.c.bf16 %v2886_v5, %v2882_v42  ;;  %17995 = vst [vmem:[#allocation104_spill] sm:$0xff] %v13501_v20 }
 0x482   : > { %9467 = vmatmul.mubr.bf16.gmra.mrb[76].mxu1 %v17993_v26  ;;  %9476 = vmatprep.subr.bf16.mxu1 %v3180_v58  ;;  %17996 = vst [vmem:[#allocation105_spill] sm:$0xff] %v13504_v28  ;;  %v2696_v42 = vpop.f32.mrb[48].mxu0 }
 0x483   : > { %17992 = vst [vmem:[#allocation103_spill] sm:$0xff] %v13490_v9  ;;  %v2889_v49 = vpop.f32.mrb[48].mxu1  ;;  %9477 = vmatpush3.bf16.xpose.msra.mxu1 %v3180_v58  ;;  %9486 = vmatprep.mubr.bf16.mxu1 %v17994_v56  ;;  %v2698_v52 = vpop.f32.mrb[49].mxu0  ;;  %v13513_v56 = vadd.f32 %v2696_v42, %v13200_v47 }
 0x484   : > { %v2890_v27 = vadd.f32 %v2889_v49, %v13210_v15  ;;  %v2891_v5 = vpop.f32.mrb[49].mxu1  ;;  %v2700_v26 = vpop.f32.mrb[50].mxu0 }
 0x485   : > { %v2892_v12 = vadd.f32 %v2891_v5, %v13215_v54  ;;  %v2893_v18 = vpop.f32.mrb[50].mxu1  ;;  %v2702_v4 = vpop.f32.mrb[51].mxu0  ;;  %v13516_v49 = vadd.f32 %v2700_v26, %v13200_v47 }
 0x486   : > { %v2894_v58 = vadd.f32 %v2893_v18, %v13210_v15  ;;  %v2895_v43 = vpop.f32.mrb[51].mxu1  ;;  %v13521_v18 = vadd.f32 %v2698_v52, %v13205_v50 }
 0x487   : > { %v2896_v45 = vadd.f32 %v2895_v43, %v13215_v54  ;;  %v13524_v43 = vadd.f32 %v2702_v4, %v13205_v50 }
 0x488   : > { %v3181_v33 = vpack.c.bf16 %v2894_v58, %v2890_v27  ;;  %17998 = vst [vmem:[#allocation107_spill] sm:$0xff] %v13521_v18 }
 0x489   : > { %v13518_v3 = vpack.c.bf16 %v2896_v45, %v2892_v12  ;;  %17999 = vst [vmem:[#allocation108_spill] sm:$0xff] %v13524_v43 }
 0x48a   : > { %9478 = vmatprep.subr.bf16.mxu1 %v3181_v33  ;;  %v2706_v63 = vpop.f32.mrb[52].mxu0 }
 0x48b   : > { %17997 = vst [vmem:[#allocation106_spill] sm:$0xff] %v13518_v3  ;;  %v2899_v5 = vpop.f32.mrb[52].mxu1  ;;  %9479 = vmatpush3.bf16.xpose.msra.mxu1 %v3181_v33  ;;  %v2708_v42 = vpop.f32.mrb[53].mxu0  ;;  %v13531_v31 = vadd.f32 %v2706_v63, %v13200_v47 }
 0x48c   : > { %v2900_v27 = vadd.f32 %v2899_v5, %v13210_v15  ;;  %v2901_v58 = vpop.f32.mrb[53].mxu1  ;;  %v2710_v33 = vpop.f32.mrb[54].mxu0 }
 0x48d   : > { %v2902_v12 = vadd.f32 %v2901_v58, %v13215_v54  ;;  %v2903_v45 = vpop.f32.mrb[54].mxu1  ;;  %v13535_v4 = vadd.f32 %v2710_v33, %v13200_v47  ;;  %v2712_v28 = vpop.f32.mrb[55].mxu0 }
 0x48e   : > { %v2904_v52 = vadd.f32 %v2903_v45, %v13210_v15  ;;  %v2905_v20 = vpop.f32.mrb[55].mxu1  ;;  %v13545_v45 = vadd.f32 %v2708_v42, %v13205_v50  ;;  %v13548_v33 = vadd.f32 %v2712_v28, %v13205_v50 }
 0x48f   : > { %v2906_v5 = vadd.f32 %v2905_v20, %v13215_v54 }
 0x490   : > { %v3182_v26 = vpack.c.bf16 %v2904_v52, %v2900_v27  ;;  %18001 = vst [vmem:[#allocation110_spill] sm:$0xff] %v13545_v45  ;;  %18002 = vst [vmem:[#allocation111_spill] sm:$0xff] %v13548_v33 }
 0x491   : > { %v13540_v14 = vpack.c.bf16 %v2906_v5, %v2902_v12 }
 0x492   : > { %9480 = vmatprep.subr.bf16.mxu1 %v3182_v26  ;;  %v2716_v6 = vpop.f32.mrb[56].mxu0 }
 0x493   : > { %18000 = vst [vmem:[#allocation109_spill] sm:$0xff] %v13540_v14  ;;  %v2909_v58 = vpop.f32.mrb[56].mxu1  ;;  %9481 = vmatpush3.bf16.xpose.msra.mxu1 %v3182_v26  ;;  %v2718_v2 = vpop.f32.mrb[57].mxu0  ;;  %v13557_v43 = vadd.f32 %v2716_v6, %v13200_v47 }
 0x494   : > { %v2910_v20 = vadd.f32 %v2909_v58, %v13210_v15  ;;  %v2911_v10 = vpop.f32.mrb[57].mxu1  ;;  %v2720_v52 = vpop.f32.mrb[58].mxu0 }
 0x495   : > { %v2912_v27 = vadd.f32 %v2911_v10, %v13215_v54  ;;  %v2913_v12 = vpop.f32.mrb[58].mxu1  ;;  %v2722_v18 = vpop.f32.mrb[59].mxu0  ;;  %v13560_v58 = vadd.f32 %v2720_v52, %v13200_v47 }
 0x496   : > { %v2914_v5 = vadd.f32 %v2913_v12, %v13210_v15  ;;  %v2915_v63 = vpop.f32.mrb[59].mxu1  ;;  %v13565_v12 = vadd.f32 %v2718_v2, %v13205_v50 }
 0x497   : > { %v2916_v26 = vadd.f32 %v2915_v63, %v13215_v54  ;;  %v13568_v63 = vadd.f32 %v2722_v18, %v13205_v50 }
 0x498   : > { %v3183_v28 = vpack.c.bf16 %v2914_v5, %v2910_v20  ;;  %18004 = vst [vmem:[#allocation113_spill] sm:$0xff] %v13565_v12 }
 0x499   : > { %v13562_v60 = vpack.c.bf16 %v2916_v26, %v2912_v27  ;;  %18005 = vst [vmem:[#allocation114_spill] sm:$0xff] %v13568_v63  ;;  %v2050_v27 = vsub.s32 4, %v13184_v35  ;;  %v3167_v26 = vpack.c.bf16 %v13560_v58, %v13557_v43 }
 0x49a   : > { %9482 = vmatprep.subr.bf16.mxu1 %v3183_v28  ;;  %v2726_v14 = vpop.f32.mrb[60].mxu0 }
 0x49b   : > { %18003 = vst [vmem:[#allocation112_spill] sm:$0xff] %v13562_v60  ;;  %v2919_v10 = vpop.f32.mrb[60].mxu1  ;;  %9483 = vmatpush3.bf16.xpose.msra.mxu1 %v3183_v28  ;;  %v13572_v6 = vadd.f32 %v2726_v14, %v13200_v47  ;;  %v2728_v52 = vpop.f32.mrb[61].mxu0  ;;  %v13584_v55 = vrot.slane %v13194_v53, %v2050_v27 }
 0x49c   : > { %v2920_v20 = vadd.f32 %v2919_v10, %v13210_v15  ;;  %v2921_v5 = vpop.f32.mrb[61].mxu1  ;;  %v2730_v42 = vpop.f32.mrb[62].mxu0 }
 0x49d   : > { %v2922_v28 = vadd.f32 %v2921_v5, %v13215_v54  ;;  %v2923_v2 = vpop.f32.mrb[62].mxu1  ;;  %v2731_v45 = vadd.f32 %v2730_v42, %v13200_v47  ;;  %v2732_v33 = vpop.f32.mrb[63].mxu0 }
 0x49e   : > { %v2924_v18 = vadd.f32 %v2923_v2, %v13210_v15  ;;  %v2925_v10 = vpop.f32.mrb[63].mxu1  ;;  %v13590_v15 = vadd.f32 %v2728_v52, %v13205_v50  ;;  %v13593_v47 = vadd.f32 %v2732_v33, %v13205_v50  ;;  %v18010_v33 = vpack.c.bf16 %v13460_v36, %v13457_v39 }
 0x49f   : > { %v2926_v60 = vadd.f32 %v2925_v10, %v13215_v54  ;;  %v3168_v43 = vpack.c.bf16 %v2731_v45, %v13572_v6  ;;  %v18009_v45 = vpack.c.bf16 %v13434_v21, %v13426_v34  ;;  %v18011_v34 = vpack.c.bf16 %v13485_v40, %v13481_v22 }
 0x4a0   : > { %v3184_v32 = vpack.c.bf16 %v2924_v18, %v2920_v20  ;;  %18007 = vst [vmem:[#allocation116_spill] sm:$0xff] %v13590_v15  ;;  %18008 = vst [vmem:[#allocation117_spill] sm:$0xff] %v13593_v47  ;;  %v18012_v39 = vpack.c.bf16 %v13516_v49, %v13513_v56  ;;  %v18013_v22 = vpack.c.bf16 %v13535_v4, %v13531_v31 }
 0x4a1   : > { %v13587_v58 = vpack.c.bf16 %v2926_v60, %v2922_v28 }
 0x4a2   : > { %9484 = vmatprep.subr.bf16.mxu1 %v3184_v32  ;;  %v2962_v54 = vpop.f32.mrb[64].mxu0 }
 0x4a3   : > { %18006 = vst [vmem:[#allocation115_spill] sm:$0xff] %v13587_v58  ;;  %9485 = vmatpush3.bf16.xpose.msra.mxu1 %v3184_v32  ;;  %v2963_v42 = vadd.f32 %v2962_v54, %v13584_v55  ;;  %v13596_v5 = vpop.f32.mrb[65].mxu0 }
 0x4a4   : > { %v2966_v20 = vpop.f32.mrb[66].mxu0 }
 0x4a5   : > { %v2967_v27 = vadd.f32 %v2966_v20, %v13584_v55  ;;  %v13599_v2 = vpop.f32.mrb[67].mxu0 }
 0x4a7   : > { %v3185_v32 = vpack.c.bf16 %v2967_v27, %v2963_v42 }
 0x4a9   : > { %9502 = vmatprep.subr.bf16.mxu1 %v3185_v32 }
 0x4aa   : > { %9487 = vmatmul.mubr.bf16.vlgmr.msra.gmra.mrb[80].mxu1 %v18009_v45  ;;  %v2972_v50 = vpop.f32.mrb[68].mxu0 }
 0x4ab   : > { %9503 = vmatpush3.bf16.msra.mxu1 %v3185_v32  ;;  %9490 = vmatprep.mubr.bf16.mxu1 %v18010_v33  ;;  %v2973_v6 = vadd.f32 %v2972_v50, %v13584_v55  ;;  %v13610_v52 = vpop.f32.mrb[69].mxu0 }
 0x4ac   : > { %v2976_v28 = vpop.f32.mrb[70].mxu0 }
 0x4ad   : > { %v2977_v18 = vadd.f32 %v2976_v28, %v13584_v55  ;;  %v13613_v10 = vpop.f32.mrb[71].mxu0 }
 0x4af   : > { %v3186_v54 = vpack.c.bf16 %v2977_v18, %v2973_v6 }
 0x4b1   : > { %9504 = vmatprep.subr.bf16.mxu1 %v3186_v54 }
 0x4b2   : > { %9491 = vmatmul.mubr.bf16.gmra.mrb[84].mxu1 %v18011_v34  ;;  %v2982_v21 = vpop.f32.mrb[72].mxu0 }
 0x4b3   : > { %9505 = vmatpush3.bf16.msra.mxu1 %v3186_v54  ;;  %9494 = vmatprep.mubr.bf16.mxu1 %v18012_v39  ;;  %v2983_v36 = vadd.f32 %v2982_v21, %v13584_v55  ;;  %v13622_v42 = vpop.f32.mrb[73].mxu0 }
 0x4b4   : > { %v2986_v20 = vpop.f32.mrb[74].mxu0 }
 0x4b5   : > { %v2987_v27 = vadd.f32 %v2986_v20, %v13584_v55  ;;  %v13625_v32 = vpop.f32.mrb[75].mxu0 }
 0x4b7   : > { %v3187_v45 = vpack.c.bf16 %v2987_v27, %v2983_v36 }
 0x4b9   : > { %9506 = vmatprep.subr.bf16.mxu1 %v3187_v45 }
 0x4ba   : > { %9495 = vmatmul.mubr.bf16.gmra.mrb[88].mxu1 %v18013_v22  ;;  %v2992_v40 = vpop.f32.mrb[76].mxu0 }
 0x4bb   : > { %9507 = vmatpush3.bf16.msra.mxu1 %v3187_v45  ;;  %9498 = vmatprep.mubr.bf16.mxu1 %v3167_v26  ;;  %v2993_v56 = vadd.f32 %v2992_v40, %v13584_v55  ;;  %v13631_v49 = vpop.f32.mrb[77].mxu0 }
 0x4bc   : > { %v2996_v50 = vpop.f32.mrb[78].mxu0 }
 0x4bd   : > { %v2997_v33 = vadd.f32 %v2996_v50, %v13584_v55  ;;  %v13634_v6 = vpop.f32.mrb[79].mxu0 }
 0x4bf   : > { %v3188_v28 = vpack.c.bf16 %v2997_v33, %v2993_v56 }
 0x4c1   : > { %9508 = vmatprep.subr.bf16.mxu1 %v3188_v28 }
 0x4c2   : > { %9499 = vmatmul.mubr.bf16.gmra.mrb[92].mxu1 %v3168_v43  ;;  %v3002_v18 = vpop.f32.mrb[80].mxu0 }
 0x4c3   : > { %9509 = vmatpush3.bf16.msra.mxu1 %v3188_v28  ;;  %v3003_v31 = vadd.f32 %v3002_v18, %v13584_v55  ;;  %v13637_v4 = vpop.f32.mrb[81].mxu0 }
 0x4c4   : > { %v3006_v54 = vpop.f32.mrb[82].mxu0 }
 0x4c5   : > { %v3007_v26 = vadd.f32 %v3006_v54, %v13584_v55  ;;  %v13640_v34 = vpop.f32.mrb[83].mxu0 }
 0x4c7   : > { %v3189_v21 = vpack.c.bf16 %v3007_v26, %v3003_v31 }
 0x4c9   : > { %9510 = vmatprep.subr.bf16.mxu1 %v3189_v21 }
 0x4ca   : > { %v3012_v39 = vpop.f32.mrb[84].mxu0  ;;  %9511 = vmatpush3.bf16.msra.mxu1 %v3189_v21 }
 0x4cb   : > { %v3013_v36 = vadd.f32 %v3012_v39, %v13584_v55  ;;  %v13643_v20 = vpop.f32.mrb[85].mxu0 }
 0x4cc   : > { %v3016_v43 = vpop.f32.mrb[86].mxu0 }
 0x4cd   : > { %v3017_v27 = vadd.f32 %v3016_v43, %v13584_v55  ;;  %v13646_v45 = vpop.f32.mrb[87].mxu0 }
 0x4cf   : > { %v3190_v22 = vpack.c.bf16 %v3017_v27, %v3013_v36 }
 0x4d1   : > { %9512 = vmatprep.subr.bf16.mxu1 %v3190_v22 }
 0x4d2   : > { %v3022_v40 = vpop.f32.mrb[88].mxu0  ;;  %9513 = vmatpush3.bf16.msra.mxu1 %v3190_v22 }
 0x4d3   : > { %v3023_v56 = vadd.f32 %v3022_v40, %v13584_v55  ;;  %v13649_v50 = vpop.f32.mrb[89].mxu0 }
 0x4d4   : > { %v3026_v33 = vpop.f32.mrb[90].mxu0 }
 0x4d5   : > { %v3027_v28 = vadd.f32 %v3026_v33, %v13584_v55  ;;  %v13652_v18 = vpop.f32.mrb[91].mxu0 }
 0x4d7   : > { %v3191_v31 = vpack.c.bf16 %v3027_v28, %v3023_v56 }
 0x4d9   : > { %9514 = vmatprep.subr.bf16.mxu1 %v3191_v31 }
 0x4da   : > { %v3032_v54 = vpop.f32.mrb[92].mxu0  ;;  %9515 = vmatpush3.bf16.msra.mxu1 %v3191_v31 }
 0x4db   : > { %v3033_v26 = vadd.f32 %v3032_v54, %v13584_v55  ;;  %v13655_v21 = vpop.f32.mrb[93].mxu0 }
 0x4dc   : > { %v3036_v39 = vpop.f32.mrb[94].mxu0 }
 0x4dd   : > { %v3037_v36 = vadd.f32 %v3036_v39, %v13584_v55  ;;  %v13658_v43 = vpop.f32.mrb[95].mxu0 }
 0x4df   : > { %v3192_v27 = vpack.c.bf16 %v3037_v36, %v3033_v26 }
 0x4e1   : > { %9516 = vmatprep.subr.bf16.mxu1 %v3192_v27 }
 0x4e2   : > { %9517 = vmatpush3.bf16.msra.mxu1 %v3192_v27  ;;  %v3042_v22 = vpop.f32.mrb[96].mxu0 }
 0x4e3   : > { %9566 = vmatprep.subr.bf16.mxu1 %v13231_v17  ;;  %v3043_v40 = vadd.f32 %v3042_v22, %v13584_v55  ;;  %v13662_v56 = vpop.f32.mrb[97].mxu0 }
 0x4e4   : > { %v3046_v33 = vpop.f32.mrb[98].mxu0 }
 0x4e5   : > { %v3047_v28 = vadd.f32 %v3046_v33, %v13584_v55  ;;  %v13665_v31 = vpop.f32.mrb[99].mxu0 }
 0x4e7   : > { %v3193_v54 = vpack.c.bf16 %v3047_v28, %v3043_v40 }
 0x4e9   : > { %9534 = vmatprep.subr.bf16.mxu0 %v3193_v54 }
 0x4ea   : > { %v3052_v39 = vpop.f32.mrb[100].mxu0  ;;  %9535 = vmatpush3.bf16.msra.mxu0 %v3193_v54 }
 0x4eb   : > { %v3053_v26 = vadd.f32 %v3052_v39, %v13584_v55  ;;  %v13668_v36 = vpop.f32.mrb[101].mxu0 }
 0x4ec   : > { %v3056_v27 = vpop.f32.mrb[102].mxu0 }
 0x4ed   : > { %v3057_v60 = vadd.f32 %v3056_v27, %v13584_v55  ;;  %v13671_v14 = vpop.f32.mrb[103].mxu0 }
 0x4ef   : > { %v3194_v22 = vpack.c.bf16 %v3057_v60, %v3053_v26 }
 0x4f1   : > { %9536 = vmatprep.subr.bf16.mxu0 %v3194_v22 }
 0x4f2   : > { %v3062_v15 = vpop.f32.mrb[104].mxu0  ;;  %9537 = vmatpush3.bf16.msra.mxu0 %v3194_v22 }
 0x4f3   : > { %v3063_v33 = vadd.f32 %v3062_v15, %v13584_v55  ;;  %v13674_v47 = vpop.f32.mrb[105].mxu0  ;;  %v2054_v15 = vsub.s32 5, %v13184_v35 }
 0x4f4   : > { %v3066_v40 = vpop.f32.mrb[106].mxu0 }
 0x4f5   : > { %v3067_v28 = vadd.f32 %v3066_v40, %v13584_v55  ;;  %v13677_v54 = vpop.f32.mrb[107].mxu0  ;;  %v13687_v40 = vrot.slane %v13194_v53, %v2054_v15 }
 0x4f7   : > { %v3195_v39 = vpack.c.bf16 %v3067_v28, %v3063_v33  ;;  %v2965_v7 = vadd.f32 %v13596_v5, %v13687_v40  ;;  %v2969_v23 = vadd.f32 %v13599_v2, %v13687_v40  ;;  %v2975_v59 = vadd.f32 %v13610_v52, %v13687_v40 }
 0x4f8   : > { %v2979_v1 = vadd.f32 %v13613_v10, %v13687_v40 }
 0x4f9   : > { %9538 = vmatprep.subr.bf16.mxu0 %v3195_v39  ;;  %v13800_v57 = vpack.c.bf16 %v2969_v23, %v2965_v7 }
 0x4fa   : > { %v3072_v12 = vpop.f32.mrb[108].mxu0  ;;  %9539 = vmatpush3.bf16.msra.mxu0 %v3195_v39  ;;  %v13806_v17 = vpack.c.bf16 %v2979_v1, %v2975_v59  ;;  %v2995_v1 = vadd.f32 %v13631_v49, %v13687_v40 }
 0x4fb   : > { %v3073_v27 = vadd.f32 %v3072_v12, %v13584_v55  ;;  %v13680_v63 = vpop.f32.mrb[109].mxu0  ;;  %18020 = vst [vmem:[#allocation124_spill] sm:$0xff] %v13800_v57 }
 0x4fc   : > { %18014 = vst [vmem:[#allocation118_spill] sm:$0xff] %v13680_v63  ;;  %v3076_v60 = vpop.f32.mrb[110].mxu0 }
 0x4fd   : > { %v3077_v26 = vadd.f32 %v3076_v60, %v13584_v55  ;;  %v13683_v22 = vpop.f32.mrb[111].mxu0 }
 0x4fe   : > { %18015 = vst [vmem:[#allocation119_spill] sm:$0xff] %v13683_v22  ;;  %v2989_v22 = vadd.f32 %v13625_v32, %v13687_v40 }
 0x4ff   : > { %v3196_v58 = vpack.c.bf16 %v3077_v26, %v3073_v27 }
 0x501   : > { %9540 = vmatprep.subr.bf16.mxu0 %v3196_v58 }
 0x502   : > { %v3082_v33 = vpop.f32.mrb[112].mxu0  ;;  %9541 = vmatpush3.bf16.msra.mxu0 %v3196_v58 }
 0x503   : > { %v3083_v28 = vadd.f32 %v3082_v33, %v13584_v55  ;;  %v3084_v39 = vpop.f32.mrb[113].mxu0 }
 0x504   : > { %v3085_v12 = vadd.f32 %v3084_v39, %v13687_v40  ;;  %v3086_v3 = vpop.f32.mrb[114].mxu0 }
 0x505   : > { %v3087_v13 = vadd.f32 %v3086_v3, %v13584_v55  ;;  %v3088_v60 = vpop.f32.mrb[115].mxu0 }
 0x506   : > { %v3089_v25 = vadd.f32 %v3088_v60, %v13687_v40 }
 0x507   : > { %v3197_v8 = vpack.c.bf16 %v3087_v13, %v3083_v28 }
 0x508   : > { %v13693_v35 = vpack.c.bf16 %v3089_v25, %v3085_v12 }
 0x509   : > { %9542 = vmatprep.subr.bf16.mxu0 %v3197_v8 }
 0x50a   : > { %18016 = vst [vmem:[#allocation120_spill] sm:$0xff] %v13693_v35  ;;  %v3092_v27 = vpop.f32.mrb[116].mxu0  ;;  %9543 = vmatpush3.bf16.msra.mxu0 %v3197_v8 }
 0x50b   : > { %v3093_v53 = vadd.f32 %v3092_v27, %v13584_v55  ;;  %v3094_v58 = vpop.f32.mrb[117].mxu0 }
 0x50c   : > { %v3095_v26 = vadd.f32 %v3094_v58, %v13687_v40  ;;  %v3096_v15 = vpop.f32.mrb[118].mxu0 }
 0x50d   : > { %v3097_v33 = vadd.f32 %v3096_v15, %v13584_v55  ;;  %v3098_v39 = vpop.f32.mrb[119].mxu0 }
 0x50e   : > { %v3099_v3 = vadd.f32 %v3098_v39, %v13687_v40 }
 0x50f   : > { %v3198_v41 = vpack.c.bf16 %v3097_v33, %v3093_v53 }
 0x510   : > { %v13699_v9 = vpack.c.bf16 %v3099_v3, %v3095_v26 }
 0x511   : > { %9544 = vmatprep.subr.bf16.mxu0 %v3198_v41 }
 0x512   : > { %18017 = vst [vmem:[#allocation121_spill] sm:$0xff] %v13699_v9  ;;  %v3102_v13 = vpop.f32.mrb[120].mxu0  ;;  %9545 = vmatpush3.bf16.msra.mxu0 %v3198_v41 }
 0x513   : > { %v3103_v25 = vadd.f32 %v3102_v13, %v13584_v55  ;;  %v3104_v8 = vpop.f32.mrb[121].mxu0 }
 0x514   : > { %v3105_v28 = vadd.f32 %v3104_v8, %v13687_v40  ;;  %v3106_v12 = vpop.f32.mrb[122].mxu0 }
 0x515   : > { %v3107_v60 = vadd.f32 %v3106_v12, %v13584_v55  ;;  %v3108_v27 = vpop.f32.mrb[123].mxu0 }
 0x516   : > { %v3109_v58 = vadd.f32 %v3108_v27, %v13687_v40 }
 0x517   : > { %v3199_v15 = vpack.c.bf16 %v3107_v60, %v3103_v25 }
 0x518   : > { %v13705_v35 = vpack.c.bf16 %v3109_v58, %v3105_v28 }
 0x519   : > { %9546 = vmatprep.subr.bf16.mxu0 %v3199_v15 }
 0x51a   : > { %18018 = vst [vmem:[#allocation122_spill] sm:$0xff] %v13705_v35  ;;  %v3112_v53 = vpop.f32.mrb[124].mxu0  ;;  %9547 = vmatpush3.bf16.msra.mxu0 %v3199_v15 }
 0x51b   : > { %v3113_v26 = vadd.f32 %v3112_v53, %v13584_v55  ;;  %v13708_v41 = vpop.f32.mrb[125].mxu0 }
 0x51c   : > { %18019 = vst [vmem:[#allocation123_spill] sm:$0xff] %v13708_v41  ;;  %v3116_v33 = vpop.f32.mrb[126].mxu0  ;;  %v2985_v41 = vadd.f32 %v13622_v42, %v13687_v40  ;;  %v2999_v42 = vadd.f32 %v13634_v6, %v13687_v40 }
 0x51d   : > { %v3117_v39 = vadd.f32 %v3116_v33, %v13584_v55 }
 0x51e   : > { %v13814_v7 = vpack.c.bf16 %v2989_v22, %v2985_v41  ;;  %v13822_v22 = vpack.c.bf16 %v2999_v42, %v2995_v1  ;;  %v3005_v41 = vadd.f32 %v13637_v4, %v13687_v40  ;;  %v3015_v4 = vadd.f32 %v13643_v20, %v13687_v40 }
 0x51f   : > { %v3200_v3 = vpack.c.bf16 %v3117_v39, %v3113_v26  ;;  %v3025_v20 = vadd.f32 %v13649_v50, %v13687_v40  ;;  %v3035_v50 = vadd.f32 %v13655_v21, %v13687_v40 }
 0x521   : > { %9548 = vmatprep.subr.bf16.mxu0 %v3200_v3 }
 0x522   : > { %9549 = vmatpush3.bf16.msra.mxu0 %v3200_v3 }
 0x523   : > { %9598 = vmatprep.subr.bf16.mxu0 %v13414_v29 }
 0x53d   : > { %v13712_v13 = vpop.f32.mrb[64].mxu1 }
 0x53e   : > { %3399 = vmax.xlane.f32.xlu1 %v13712_v13  ;;  %v13715_v25 = vpop.f32.mrb[65].mxu1 }
 0x53f   : > { %3395 = vmax.xlane.f32.xlu0 %v13715_v25  ;;  %v13718_v8 = vpop.f32.mrb[66].mxu1 }
 0x540   : > { %v13720_v28 = vpop.f32.mrb[67].mxu1 }
 0x542   : > { %3401 = vmax.xlane.f32.xlu1 %v13718_v8 }
 0x543   : > { %3397 = vmax.xlane.f32.xlu0 %v13720_v28 }
 0x545   : > { %v13724_v55 = vpop.f32.mrb[68].mxu1 }
 0x546   : > { %v13726_v12 = vpop.f32.mrb[69].mxu1 }
 0x547   : > { %3403 = vmax.xlane.f32.xlu0 %v13726_v12  ;;  %v13729_v60 = vpop.f32.mrb[70].mxu1 }
 0x548   : > { %v13731_v27 = vpop.f32.mrb[71].mxu1 }
 0x549   : > { %3405 = vmax.xlane.f32.xlu1 %v13731_v27 }
 0x54b   : > { %3407 = vmax.xlane.f32.xlu0 %v13724_v55 }
 0x54d   : > { %3409 = vmax.xlane.f32.xlu1 %v13729_v60  ;;  %v13736_v58 = vpop.f32.mrb[72].mxu1 }
 0x54e   : > { %v13738_v15 = vpop.f32.mrb[73].mxu1 }
 0x54f   : > { %3411 = vmax.xlane.f32.xlu0 %v13738_v15  ;;  %v13741_v53 = vpop.f32.mrb[74].mxu1 }
 0x550   : > { %v13743_v26 = vpop.f32.mrb[75].mxu1 }
 0x551   : > { %3413 = vmax.xlane.f32.xlu1 %v13743_v26 }
 0x553   : > { %3415 = vmax.xlane.f32.xlu0 %v13736_v58 }
 0x555   : > { %3417 = vmax.xlane.f32.xlu1 %v13741_v53  ;;  %v13748_v33 = vpop.f32.mrb[76].mxu1 }
 0x556   : > { %v13750_v39 = vpop.f32.mrb[77].mxu1 }
 0x557   : > { %3419 = vmax.xlane.f32.xlu0 %v13750_v39  ;;  %v13753_v3 = vpop.f32.mrb[78].mxu1 }
 0x558   : > { %v13755_v35 = vpop.f32.mrb[79].mxu1 }
 0x559   : > { %3421 = vmax.xlane.f32.xlu1 %v13755_v35 }
 0x55b   : > { %3423 = vmax.xlane.f32.xlu0 %v13748_v33 }
 0x55d   : > { %3425 = vmax.xlane.f32.xlu1 %v13753_v3 }
 0x57d   : > { %v13760_v9 = vpop.f32.mrb[80].mxu1 }
 0x57e   : > { %v13762_v38 = vpop.f32.mrb[81].mxu1 }
 0x57f   : > { %3427 = vmax.xlane.f32.xlu0 %v13762_v38  ;;  %v13765_v44 = vpop.f32.mrb[82].mxu1 }
 0x580   : > { %v13767_v37 = vpop.f32.mrb[83].mxu1 }
 0x581   : > { %3429 = vmax.xlane.f32.xlu1 %v13767_v37 }
 0x583   : > { %3431 = vmax.xlane.f32.xlu0 %v13760_v9 }
 0x585   : > { %3433 = vmax.xlane.f32.xlu1 %v13765_v44  ;;  %v13772_v48 = vpop.f32.mrb[84].mxu1 }
 0x586   : > { %v13774_v24 = vpop.f32.mrb[85].mxu1 }
 0x587   : > { %v13776_v0 = vpop.f32.mrb[86].mxu1 }
 0x588   : > { %v13778_v16 = vpop.f32.mrb[87].mxu1 }
 0x58d   : > { %v13780_v46 = vpop.f32.mrb[88].mxu1 }
 0x58e   : > { %v13782_v62 = vpop.f32.mrb[89].mxu1 }
 0x58f   : > { %v13784_v19 = vpop.f32.mrb[90].mxu1 }
 0x590   : > { %v13786_v29 = vpop.f32.mrb[91].mxu1 }
 0x595   : > { %v13788_v11 = vpop.f32.mrb[92].mxu1 }
 0x596   : > { %v13790_v51 = vpop.f32.mrb[93].mxu1 }
 0x597   : > { %v13792_v61 = vpop.f32.mrb[94].mxu1 }
 0x598   : > { %v13794_v30 = vpop.f32.mrb[95].mxu1 }
 0x5cb   : > { %v3400_v5 = vpop.xlane.xlu1 %3399 }
 0x5cc   : > { %v3461_v63 = vsub.f32 %v13712_v13, %v3400_v5  ;;  %v3396_v2 = vpop.xlane.xlu0 %3395 }
 0x5cd   : > { %v3459_v23 = vsub.f32 %v13715_v25, %v3396_v2 }
 0x5ce   : > { %v3495_v59 = vmul.f32 1.442695, %v3461_v63  ;;  %v3009_v63 = vadd.f32 %v13640_v34, %v13687_v40  ;;  %v3019_v34 = vadd.f32 %v13646_v45, %v13687_v40  ;;  %v3029_v45 = vadd.f32 %v13652_v18, %v13687_v40 }
 0x5cf   : > { %v3491_v52 = vmul.f32 1.442695, %v3459_v23  ;;  %v3402_v57 = vpop.xlane.xlu1 %3401 }
 0x5d0   : > { %v3398_v10 = vpop.xlane.xlu0 %3397  ;;  %v3462_v32 = vsub.f32 %v13718_v8, %v3402_v57  ;;  %v13831_v57 = vpack.c.bf16 %v3009_v63, %v3005_v41  ;;  %v13847_v1 = vpack.c.bf16 %v3019_v34, %v3015_v4  ;;  %v13860_v41 = vpack.c.bf16 %v3029_v45, %v3025_v20 }
 0x5d1   : > { %10506 = vpow2.f32 %v3491_v52  ;;  %v3460_v13 = vsub.f32 %v13720_v28, %v3398_v10 }
 0x5d2   : > { %10508 = vpow2.f32 %v3495_v59  ;;  %v3497_v25 = vmul.f32 1.442695, %v3462_v32 }
 0x5d3   : > { %v3493_v5 = vmul.f32 1.442695, %v3460_v13 }
 0x5d4   : > { %v3404_v6 = vpop.xlane.xlu0 %3403 }
 0x5d5   : > { %10510 = vpow2.f32 %v3493_v5  ;;  %v3463_v42 = vsub.f32 %v13726_v12, %v3404_v6  ;;  %v3039_v12 = vadd.f32 %v13658_v43, %v13687_v40 }
 0x5d6   : > { %10512 = vpow2.f32 %v3497_v25  ;;  %v3406_v2 = vpop.xlane.xlu1 %3405 }
 0x5d7   : > { %v3464_v32 = vsub.f32 %v13731_v27, %v3406_v2  ;;  %v3499_v5 = vmul.f32 1.442695, %v3463_v42 }
 0x5d8   : > { %v3408_v23 = vpop.xlane.xlu0 %3407 }
 0x5d9   : > { %v3465_v25 = vsub.f32 %v13724_v55, %v3408_v23  ;;  %v3501_v4 = vmul.f32 1.442695, %v3464_v32  ;;  %10514 = vpow2.f32 %v3499_v5 }
 0x5da   : > { %v3410_v59 = vpop.xlane.xlu1 %3409 }
 0x5db   : > { %v13828_v49 = vpop.eup %10506  ;;  %v3466_v18 = vsub.f32 %v13729_v60, %v3410_v59  ;;  %v3503_v27 = vmul.f32 1.442695, %v3465_v25  ;;  %10516 = vpow2.f32 %v3501_v4  ;;  %v13874_v59 = vpack.c.bf16 %v3039_v12, %v3035_v50 }
 0x5dc   : > { %3555 = vadd.xlane.f32.xlu0 %v13828_v49  ;;  %v13833_v8 = vpop.eup %10508  ;;  %v3412_v10 = vpop.xlane.xlu0 %3411 }
 0x5dd   : > { %v3467_v55 = vsub.f32 %v13738_v15, %v3412_v10  ;;  %v3505_v2 = vmul.f32 1.442695, %v3466_v18  ;;  %10518 = vpow2.f32 %v3503_v27 }
 0x5de   : > { %v3414_v13 = vpop.xlane.xlu1 %3413 }
 0x5df   : > { %v13835_v28 = vpop.eup %10510  ;;  %v3468_v34 = vsub.f32 %v13743_v26, %v3414_v13  ;;  %v3507_v60 = vmul.f32 1.442695, %v3467_v55  ;;  %10520 = vpow2.f32 %v3505_v2 }
 0x5e0   : > { %3559 = vadd.xlane.f32.xlu0 %v13833_v8  ;;  %3557 = vadd.xlane.f32.xlu1 %v13835_v28  ;;  %v13843_v52 = vpop.eup %10512  ;;  %v3416_v63 = vpop.xlane.xlu0 %3415 }
 0x5e1   : > { %v3469_v23 = vsub.f32 %v13736_v58, %v3416_v63  ;;  %v3509_v43 = vmul.f32 1.442695, %v3468_v34  ;;  %10522 = vpow2.f32 %v3507_v60 }
 0x5e2   : > { %v3418_v6 = vpop.xlane.xlu1 %3417 }
 0x5e3   : > { %v3470_v15 = vsub.f32 %v13741_v53, %v3418_v6  ;;  %v3511_v26 = vmul.f32 1.442695, %v3469_v23  ;;  %v13880_v42 = vpop.eup %10514  ;;  %10524 = vpow2.f32 %v3509_v43 }
 0x5e4   : > { %3561 = vadd.xlane.f32.xlu1 %v13843_v52  ;;  %3435 = vmax.xlane.f32.xlu0 %v13774_v24  ;;  %v3420_v21 = vpop.xlane.xlu0 %3419 }
 0x5e5   : > { %v3471_v20 = vsub.f32 %v13750_v39, %v3420_v21  ;;  %v3513_v58 = vmul.f32 1.442695, %v3470_v15  ;;  %10526 = vpow2.f32 %v3511_v26  ;;  %v13886_v5 = vpop.eup %10516 }
 0x5e6   : > { %v3422_v10 = vpop.xlane.xlu1 %3421 }
 0x5e7   : > { %v3472_v32 = vsub.f32 %v13755_v35, %v3422_v10  ;;  %v3515_v53 = vmul.f32 1.442695, %v3471_v20  ;;  %v13888_v63 = vpop.eup %10518  ;;  %10528 = vpow2.f32 %v3513_v58 }
 0x5e8   : > { %3439 = vmax.xlane.f32.xlu0 %v13772_v48  ;;  %3437 = vmax.xlane.f32.xlu1 %v13778_v16  ;;  %v3424_v45 = vpop.xlane.xlu0 %3423 }
 0x5e9   : > { %v3473_v13 = vsub.f32 %v13748_v33, %v3424_v45  ;;  %v3517_v39 = vmul.f32 1.442695, %v3472_v32  ;;  %10530 = vpow2.f32 %v3515_v53  ;;  %v13893_v4 = vpop.eup %10520 }
 0x5ea   : > { %v3426_v25 = vpop.xlane.xlu1 %3425 }
 0x5eb   : > { %v3519_v35 = vmul.f32 1.442695, %v3473_v13  ;;  %v3474_v50 = vsub.f32 %v13753_v3, %v3426_v25  ;;  %v13895_v18 = vpop.eup %10522  ;;  %10532 = vpow2.f32 %v3517_v39  ;;  %v3049_v25 = vadd.f32 %v13665_v31, %v13687_v40  ;;  %v18021_v31 = vld [vmem:[#allocation118_spill] sm:$0xff] }
 0x5ec   : > { %3441 = vmax.xlane.f32.xlu1 %v13776_v0  ;;  %3443 = vmax.xlane.f32.xlu0 %v13782_v62 }
 0x5ed   : > { %10534 = vpow2.f32 %v3519_v35  ;;  %v3521_v33 = vmul.f32 1.442695, %v3474_v50  ;;  %v13899_v12 = vpop.eup %10524  ;;  %v3055_v35 = vadd.f32 %v13668_v36, %v13687_v40  ;;  %v3059_v50 = vadd.f32 %v13671_v14, %v13687_v40 }
 0x5ef   : > { %v13901_v27 = vpop.eup %10526  ;;  %10536 = vpow2.f32 %v3521_v33  ;;  %v13946_v33 = vpack.c.bf16 %v3059_v50, %v3055_v35  ;;  %v18023_v35 = vld [vmem:[#allocation123_spill] sm:$0xff] }
 0x5f0   : > { %3447 = vmax.xlane.f32.xlu0 %v13780_v46  ;;  %3445 = vmax.xlane.f32.xlu1 %v13786_v29  ;;  %v3115_v50 = vadd.f32 %v18023_v35, %v13687_v40 }
 0x5f1   : > { %v13905_v3 = vpop.eup %10528 }
 0x5f3   : > { %v13907_v55 = vpop.eup %10530 }
 0x5f4   : > { %3449 = vmax.xlane.f32.xlu1 %v13784_v19  ;;  %3451 = vmax.xlane.f32.xlu0 %v13790_v51 }
 0x5f5   : > { %v13912_v34 = vpop.eup %10532 }
 0x5f7   : > { %v13914_v60 = vpop.eup %10534 }
 0x5f8   : > { %3455 = vmax.xlane.f32.xlu0 %v13788_v11  ;;  %3453 = vmax.xlane.f32.xlu1 %v13794_v30 }
 0x5f9   : > { %v13920_v45 = vpop.eup %10536 }
 0x5fc   : > { %3563 = vadd.xlane.f32.xlu0 %v13880_v42  ;;  %3457 = vmax.xlane.f32.xlu1 %v13792_v61 }
 0x600   : > { %3567 = vadd.xlane.f32.xlu0 %v13888_v63  ;;  %3565 = vadd.xlane.f32.xlu1 %v13886_v5 }
 0x604   : > { %3571 = vadd.xlane.f32.xlu0 %v13895_v18  ;;  %3569 = vadd.xlane.f32.xlu1 %v13893_v4 }
 0x608   : > { %3575 = vadd.xlane.f32.xlu0 %v13901_v27  ;;  %3573 = vadd.xlane.f32.xlu1 %v13899_v12 }
 0x60c   : > { %v3428_v6 = vpop.xlane.xlu0 %3427  ;;  %3579 = vadd.xlane.f32.xlu0 %v13907_v55  ;;  %3577 = vadd.xlane.f32.xlu1 %v13905_v3 }
 0x60d   : > { %v3475_v2 = vsub.f32 %v13762_v38, %v3428_v6  ;;  %v3065_v6 = vadd.f32 %v13674_v47, %v13687_v40 }
 0x60e   : > { %v3430_v21 = vpop.xlane.xlu1 %3429 }
 0x60f   : > { %v3523_v23 = vmul.f32 1.442695, %v3475_v2  ;;  %v3476_v43 = vsub.f32 %v13767_v37, %v3430_v21  ;;  %v3069_v2 = vadd.f32 %v13677_v54, %v13687_v40  ;;  %v3075_v21 = vadd.f32 %v18021_v31, %v13687_v40 }
 0x610   : > { %v3432_v15 = vpop.xlane.xlu0 %3431  ;;  %3583 = vadd.xlane.f32.xlu0 %v13914_v60  ;;  %3581 = vadd.xlane.f32.xlu1 %v13912_v34 }
 0x611   : > { %10538 = vpow2.f32 %v3523_v23  ;;  %v3525_v10 = vmul.f32 1.442695, %v3476_v43  ;;  %v3477_v26 = vsub.f32 %v13760_v9, %v3432_v15  ;;  %v18022_v23 = vld [vmem:[#allocation119_spill] sm:$0xff] }
 0x612   : > { %v3434_v20 = vpop.xlane.xlu1 %3433  ;;  %v3079_v43 = vadd.f32 %v18022_v23, %v13687_v40 }
 0x613   : > { %10540 = vpow2.f32 %v3525_v10  ;;  %v3527_v38 = vmul.f32 1.442695, %v3477_v26  ;;  %v3478_v58 = vsub.f32 %v13765_v44, %v3434_v20  ;;  %v3045_v44 = vadd.f32 %v13662_v56, %v13687_v40 }
 0x614   : > { %3585 = vadd.xlane.f32.xlu1 %v13920_v45  ;;  %v13952_v56 = vpack.c.bf16 %v3069_v2, %v3065_v6  ;;  %v13958_v36 = vpack.c.bf16 %v3079_v43, %v3075_v21  ;;  %v3118_v6 = vpop.f32.mrb[127].mxu0 }
 0x615   : > { %10542 = vpow2.f32 %v3527_v38  ;;  %v3529_v37 = vmul.f32 1.442695, %v3478_v58  ;;  %v13940_v39 = vpack.c.bf16 %v3049_v25, %v3045_v44  ;;  %v3119_v21 = vadd.f32 %v3118_v6, %v13687_v40 }
 0x617   : > { %10544 = vpow2.f32 %v3529_v37 }
 0x61b   : > { %v13924_v32 = vpop.eup %10538 }
 0x61c   : > { %3587 = vadd.xlane.f32.xlu0 %v13924_v32 }
 0x61d   : > { %v13927_v53 = vpop.eup %10540 }
 0x61e   : > { %3589 = vadd.xlane.f32.xlu1 %v13927_v53 }
 0x61f   : > { %v13930_v9 = vpop.eup %10542 }
 0x620   : > { %3591 = vadd.xlane.f32.xlu0 %v13930_v9 }
 0x621   : > { %v13933_v13 = vpop.eup %10544 }
 0x622   : > { %3593 = vadd.xlane.f32.xlu1 %v13933_v13 }
 0x669   : > { %v3556_v15 = vpop.xlane.xlu0 %3555 }
 0x66a   : > { %10546 = vrcp.f32 %v3556_v15 }
 0x66d   : > { %v3560_v14 = vpop.xlane.xlu0 %3559  ;;  %v3558_v10 = vpop.xlane.xlu1 %3557 }
 0x66e   : > { %10548 = vrcp.f32 %v3558_v10 }
 0x66f   : > { %10550 = vrcp.f32 %v3560_v14 }
 0x671   : > { %v3562_v47 = vpop.xlane.xlu1 %3561  ;;  %v3436_v26 = vpop.xlane.xlu0 %3435 }
 0x672   : > { %10552 = vrcp.f32 %v3562_v47  ;;  %v3479_v54 = vsub.f32 %v13774_v24, %v3436_v26  ;;  %v13970_v47 = vpack.c.bf16 %v3119_v21, %v3115_v50 }
 0x674   : > { %v3531_v20 = vmul.f32 1.442695, %v3479_v54  ;;  %v10547_v37 = vpop.eup %10546 }
 0x675   : > { %v3440_v38 = vpop.xlane.xlu0 %3439  ;;  %v3438_v58 = vpop.xlane.xlu1 %3437  ;;  %v3651_v15 = vmul.f32 %v10547_v37, %v13828_v49 }
 0x676   : > { %10554 = vpow2.f32 %v3531_v20  ;;  %v3481_v44 = vsub.f32 %v13772_v48, %v3440_v38  ;;  %v3480_v25 = vsub.f32 %v13778_v16, %v3438_v58 }
 0x678   : > { %v3535_v2 = vmul.f32 1.442695, %v3481_v44  ;;  %v3533_v31 = vmul.f32 1.442695, %v3480_v25  ;;  %v10549_v23 = vpop.eup %10548 }
 0x679   : > { %v3442_v43 = vpop.xlane.xlu1 %3441  ;;  %v3444_v24 = vpop.xlane.xlu0 %3443  ;;  %v3652_v16 = vmul.f32 %v10549_v23, %v13835_v28 }
 0x67a   : > { %v10551_v14 = vpop.eup %10550  ;;  %10556 = vpow2.f32 %v3535_v2  ;;  %v3482_v10 = vsub.f32 %v13776_v0, %v3442_v43  ;;  %v3483_v48 = vsub.f32 %v13782_v62, %v3444_v24 }
 0x67b   : > { %10558 = vpow2.f32 %v3533_v31  ;;  %v3683_v40 = vpack.c.bf16 %v3652_v16, %v3651_v15  ;;  %v3653_v38 = vmul.f32 %v10551_v14, %v13833_v8 }
 0x67c   : > { %v10553_v26 = vpop.eup %10552  ;;  %v3537_v54 = vmul.f32 1.442695, %v3482_v10  ;;  %v3539_v20 = vmul.f32 1.442695, %v3483_v48 }
 0x67d   : > { %v3654_v58 = vmul.f32 %v10553_v26, %v13843_v52  ;;  %v3448_v49 = vpop.xlane.xlu0 %3447  ;;  %v3446_v37 = vpop.xlane.xlu1 %3445  ;;  %9518 = vmatprep.mubr.bf16.mxu1 %v3683_v40  ;;  %v18024_v52 = vld [vmem:[#allocation72_spill] sm:$0xff] }
 0x67e   : > { %10560 = vpow2.f32 %v3537_v54  ;;  %v3485_v0 = vsub.f32 %v13780_v46, %v3448_v49  ;;  %v3484_v62 = vsub.f32 %v13786_v29, %v3446_v37  ;;  %v18025_v29 = vld [vmem:[#allocation75_spill] sm:$0xff] }
 0x67f   : > { %10562 = vpow2.f32 %v3539_v20  ;;  %v3684_v28 = vpack.c.bf16 %v3654_v58, %v3653_v38 }
 0x680   : > { %v13976_v44 = vpop.eup %10554  ;;  %v3543_v25 = vmul.f32 1.442695, %v3485_v0  ;;  %v3541_v35 = vmul.f32 1.442695, %v3484_v62  ;;  %v18027_v62 = vld [vmem:[#allocation81_spill] sm:$0xff] }
 0x681   : > { %9519 = vmatmul.mubr.bf16.vlgmr.msra.gmra.mrb[96].mxu1 %v3684_v28  ;;  %v3450_v50 = vpop.xlane.xlu1 %3449  ;;  %3595 = vadd.xlane.f32.xlu0 %v13976_v44  ;;  %v3452_v8 = vpop.xlane.xlu0 %3451 }
 0x682   : > { %10564 = vpow2.f32 %v3543_v25  ;;  %9567 = vmatpush3.bf16.xpose.msra.mxu1 %v18024_v52  ;;  %v3486_v6 = vsub.f32 %v13784_v19, %v3450_v50  ;;  %v3487_v46 = vsub.f32 %v13790_v51, %v3452_v8 }
 0x683   : > { %10566 = vpow2.f32 %v3541_v35  ;;  %9568 = vmatprep.subr.bf16.mxu1 %v18025_v29 }
 0x684   : > { %v13983_v2 = vpop.eup %10556  ;;  %v3545_v31 = vmul.f32 1.442695, %v3486_v6  ;;  %v3547_v21 = vmul.f32 1.442695, %v3487_v46 }
 0x685   : > { %v13985_v23 = vpop.eup %10558  ;;  %3599 = vadd.xlane.f32.xlu0 %v13983_v2  ;;  %v3456_v43 = vpop.xlane.xlu0 %3455 }
 0x686   : > { %v3454_v24 = vpop.xlane.xlu1 %3453  ;;  %10568 = vpow2.f32 %v3545_v31  ;;  %v3489_v15 = vsub.f32 %v13788_v11, %v3456_v43  ;;  %3597 = vadd.xlane.f32.xlu1 %v13985_v23 }
 0x687   : > { %v3488_v51 = vsub.f32 %v13794_v30, %v3454_v24  ;;  %10570 = vpow2.f32 %v3547_v21  ;;  %v18026_v30 = vld [vmem:[#allocation78_spill] sm:$0xff]  ;;  %v18028_v21 = vld [vmem:[#allocation84_spill] sm:$0xff] }
 0x688   : > { %v13991_v19 = vpop.eup %10560  ;;  %v3551_v14 = vmul.f32 1.442695, %v3489_v15 }
 0x689   : > { %v3549_v10 = vmul.f32 1.442695, %v3488_v51  ;;  %v13993_v48 = vpop.eup %10562  ;;  %v3564_v16 = vpop.xlane.xlu0 %3563 }
 0x68a   : > { %v3458_v26 = vpop.xlane.xlu1 %3457  ;;  %10572 = vpow2.f32 %v3551_v14  ;;  %9569 = vmatpush3.bf16.xpose.msra.mxu1 %v18025_v29  ;;  %3603 = vadd.xlane.f32.xlu0 %v13993_v48 }
 0x68b   : > { %v3490_v11 = vsub.f32 %v13792_v61, %v3458_v26  ;;  %10574 = vpow2.f32 %v3549_v10  ;;  %3601 = vadd.xlane.f32.xlu1 %v13991_v19  ;;  %9570 = vmatprep.subr.bf16.mxu1 %v18026_v30 }
 0x68c   : > { %v14000_v54 = vpop.eup %10564  ;;  %10576 = vrcp.f32 %v3564_v16 }
 0x68d   : > { %v3553_v20 = vmul.f32 1.442695, %v3490_v11  ;;  %v14002_v40 = vpop.eup %10566  ;;  %v3568_v38 = vpop.xlane.xlu0 %3567 }
 0x68e   : > { %v3566_v58 = vpop.xlane.xlu1 %3565  ;;  %3607 = vadd.xlane.f32.xlu0 %v14000_v54 }
 0x68f   : > { %10578 = vpow2.f32 %v3553_v20  ;;  %3605 = vadd.xlane.f32.xlu1 %v14002_v40 }
 0x690   : > { %v14006_v49 = vpop.eup %10568  ;;  %10580 = vrcp.f32 %v3566_v58 }
 0x691   : > { %v14008_v61 = vpop.eup %10570  ;;  %10582 = vrcp.f32 %v3568_v38  ;;  %v3572_v37 = vpop.xlane.xlu0 %3571 }
 0x692   : > { %v3570_v0 = vpop.xlane.xlu1 %3569  ;;  %9571 = vmatpush3.bf16.xpose.msra.mxu1 %v18026_v30  ;;  %3611 = vadd.xlane.f32.xlu0 %v14008_v61 }
 0x693   : > { %3609 = vadd.xlane.f32.xlu1 %v14006_v49  ;;  %10584 = vrcp.f32 %v3570_v0  ;;  %9572 = vmatprep.subr.bf16.mxu1 %v18027_v62 }
 0x694   : > { %v14014_v28 = vpop.eup %10572  ;;  %10586 = vrcp.f32 %v3572_v37  ;;  %v18029_v37 = vld [vmem:[#allocation87_spill] sm:$0xff] }
 0x695   : > { %v14016_v25 = vpop.eup %10574  ;;  %v3576_v35 = vpop.xlane.xlu0 %3575 }
 0x696   : > { %v3574_v50 = vpop.xlane.xlu1 %3573  ;;  %3615 = vadd.xlane.f32.xlu0 %v14014_v28  ;;  %v10577_v8 = vpop.eup %10576 }
 0x697   : > { %3613 = vadd.xlane.f32.xlu1 %v14016_v25  ;;  %10588 = vrcp.f32 %v3574_v50  ;;  %v3655_v43 = vmul.f32 %v10577_v8, %v13880_v42 }
 0x698   : > { %10590 = vrcp.f32 %v3576_v35 }
 0x699   : > { %v14020_v52 = vpop.eup %10578  ;;  %v3580_v6 = vpop.xlane.xlu0 %3579 }
 0x69a   : > { %v3578_v46 = vpop.xlane.xlu1 %3577  ;;  %v10581_v29 = vpop.eup %10580  ;;  %9573 = vmatpush3.bf16.xpose.msra.mxu1 %v18027_v62 }
 0x69b   : > { %v10583_v31 = vpop.eup %10582  ;;  %3617 = vadd.xlane.f32.xlu1 %v14020_v52  ;;  %10592 = vrcp.f32 %v3578_v46  ;;  %9574 = vmatprep.subr.bf16.mxu1 %v18028_v21  ;;  %v3656_v24 = vmul.f32 %v10581_v29, %v13886_v5 }
 0x69c   : > { %10594 = vrcp.f32 %v3580_v6  ;;  %v3657_v16 = vmul.f32 %v10583_v31, %v13888_v63 }
 0x69d   : > { %v10585_v15 = vpop.eup %10584  ;;  %v3584_v51 = vpop.xlane.xlu0 %3583  ;;  %v3685_v14 = vpack.c.bf16 %v3656_v24, %v3655_v43 }
 0x69e   : > { %v3582_v10 = vpop.xlane.xlu1 %3581  ;;  %v3658_v26 = vmul.f32 %v10585_v15, %v13893_v4  ;;  %v10587_v11 = vpop.eup %10586 }
 0x69f   : > { %9522 = vmatprep.mubr.bf16.mxu1 %v3685_v14  ;;  %10596 = vrcp.f32 %v3582_v10  ;;  %v3659_v42 = vmul.f32 %v10587_v11, %v13895_v18 }
 0x6a0   : > { %10598 = vrcp.f32 %v3584_v51  ;;  %v3686_v30 = vpack.c.bf16 %v3658_v26, %v3657_v16  ;;  %v18034_v16 = vld [vmem:[#allocation93_spill] sm:$0xff] }
 0x6a1   : > { %v10589_v20 = vpop.eup %10588 }
 0x6a2   : > { %v3586_v38 = vpop.xlane.xlu1 %3585  ;;  %9523 = vmatmul.mubr.bf16.gmra.mrb[100].mxu1 %v3686_v30  ;;  %v3660_v5 = vmul.f32 %v10589_v20, %v13899_v12  ;;  %v10591_v58 = vpop.eup %10590 }
 0x6a3   : > { %10600 = vrcp.f32 %v3586_v38  ;;  %9575 = vmatpush3.bf16.xpose.msra.mxu1 %v18028_v21  ;;  %v3661_v0 = vmul.f32 %v10591_v58, %v13901_v27  ;;  %v18030_v21 = vld [vmem:[#allocation90_spill] sm:$0xff] }
 0x6a4   : > { %9576 = vmatprep.subr.bf16.mxu1 %v18029_v37  ;;  %v3687_v63 = vpack.c.bf16 %v3660_v5, %v3659_v42  ;;  %v18035_v5 = vld [vmem:[#allocation124_spill] sm:$0xff] }
 0x6a5   : > { %v10593_v4 = vpop.eup %10592 }
 0x6a6   : > { %9526 = vmatprep.mubr.bf16.mxu1 %v3687_v63  ;;  %v3662_v62 = vmul.f32 %v10593_v4, %v13905_v3  ;;  %v10595_v35 = vpop.eup %10594  ;;  %v18037_v63 = vld [vmem:[#allocation99_spill] sm:$0xff] }
 0x6a7   : > { %v3663_v18 = vmul.f32 %v10595_v35, %v13907_v55  ;;  %v18031_v55 = vld [vmem:[#allocation71_spill] sm:$0xff]  ;;  %v18045_v35 = vld [vmem:[#allocation80_spill] sm:$0xff] }
 0x6a8   : > { %v3688_v50 = vpack.c.bf16 %v3662_v62, %v3661_v0  ;;  %v18041_v0 = vld [vmem:[#allocation77_spill] sm:$0xff]  ;;  %v18042_v62 = vld [vmem:[#allocation76_spill] sm:$0xff] }
 0x6a9   : > { %v10597_v8 = vpop.eup %10596  ;;  %v3588_v6 = vpop.xlane.xlu0 %3587 }
 0x6aa   : > { %v10599_v46 = vpop.eup %10598  ;;  %10602 = vrcp.f32 %v3588_v6  ;;  %9527 = vmatmul.mubr.bf16.gmra.mrb[104].mxu1 %v3688_v50  ;;  %v3664_v12 = vmul.f32 %v10597_v8, %v13912_v34  ;;  %v18032_v34 = vld [vmem:[#allocation70_spill] sm:$0xff]  ;;  %v18046_v50 = vld [vmem:[#allocation79_spill] sm:$0xff] }
 0x6ab   : > { %9577 = vmatpush3.bf16.xpose.msra.mxu1 %v18029_v37  ;;  %v3590_v29 = vpop.xlane.xlu1 %3589  ;;  %v3665_v43 = vmul.f32 %v10599_v46, %v13914_v60  ;;  %v18033_v14 = vpack.c.bf16 %v18031_v55, %v18032_v34  ;;  %v18036_v37 = vld [vmem:[#allocation96_spill] sm:$0xff]  ;;  %v18047_v8 = vpack.c.bf16 %v18045_v35, %v18046_v50  ;;  %v18048_v6 = vld [vmem:[#allocation83_spill] sm:$0xff]  ;;  %v18049_v46 = vld [vmem:[#allocation82_spill] sm:$0xff] }
 0x6ac   : > { %9578 = vmatprep.subr.bf16.mxu1 %v18030_v21  ;;  %10604 = vrcp.f32 %v3590_v29  ;;  %v3689_v27 = vpack.c.bf16 %v3664_v12, %v3663_v18  ;;  %v18050_v18 = vpack.c.bf16 %v18048_v6, %v18049_v46  ;;  %v18052_v12 = vld [vmem:[#allocation86_spill] sm:$0xff]  ;;  %v18053_v29 = vld [vmem:[#allocation85_spill] sm:$0xff] }
 0x6ad   : > { %v10601_v31 = vpop.eup %10600  ;;  %v3592_v3 = vpop.xlane.xlu0 %3591 }
 0x6ae   : > { %v3666_v24 = vmul.f32 %v10601_v31, %v13920_v45  ;;  %10606 = vrcp.f32 %v3592_v3  ;;  %9530 = vmatprep.mubr.bf16.mxu1 %v3689_v27  ;;  %v18054_v31 = vpack.c.bf16 %v18052_v12, %v18053_v29  ;;  %v18056_v27 = vld [vmem:[#allocation88_spill] sm:$0xff] }
 0x6af   : > { %v3594_v15 = vpop.xlane.xlu1 %3593 }
 0x6b0   : > { %v3690_v51 = vpack.c.bf16 %v3666_v24, %v3665_v43  ;;  %10608 = vrcp.f32 %v3594_v15  ;;  %v18060_v43 = vld [vmem:[#allocation91_spill] sm:$0xff] }
 0x6b1   : > { %v18064_v15 = vld [vmem:[#allocation115_spill] sm:$0xff] }
 0x6b2   : > { %9531 = vmatmul.mubr.bf16.gmra.mrb[108].mxu1 %v3690_v51 }
 0x6b3   : > { %9579 = vmatpush3.bf16.xpose.msra.mxu1 %v18030_v21  ;;  %9582 = vmatprep.mubr.bf16.mxu1 %v18033_v14  ;;  %v18055_v21 = vld [vmem:[#allocation89_spill] sm:$0xff] }
 0x6b4   : > { %v10603_v10 = vpop.eup %10602  ;;  %9580 = vmatprep.subr.bf16.mxu1 %v18034_v16  ;;  %v18057_v3 = vpack.c.bf16 %v18055_v21, %v18056_v27  ;;  %v18068_v21 = vld [vmem:[#allocation98_spill] sm:$0xff]  ;;  %v18069_v27 = vld [vmem:[#allocation97_spill] sm:$0xff] }
 0x6b5   : > { %v3667_v60 = vmul.f32 %v10603_v10, %v13924_v32  ;;  %v18038_v32 = vld [vmem:[#allocation74_spill] sm:$0xff] }
 0x6b6   : > { %v10605_v26 = vpop.eup %10604 }
 0x6b7   : > { %v3668_v45 = vmul.f32 %v10605_v26, %v13927_v53  ;;  %v18039_v53 = vld [vmem:[#allocation73_spill] sm:$0xff] }
 0x6b8   : > { %v10607_v11 = vpop.eup %10606  ;;  %v18040_v4 = vpack.c.bf16 %v18038_v32, %v18039_v53 }
 0x6b9   : > { %v3691_v30 = vpack.c.bf16 %v3668_v45, %v3667_v60  ;;  %v3669_v38 = vmul.f32 %v10607_v11, %v13930_v9  ;;  %v18043_v9 = vpack.c.bf16 %v18041_v0, %v18042_v62 }
 0x6ba   : > { %v10609_v20 = vpop.eup %10608 }
 0x6bb   : > { %v3670_v42 = vmul.f32 %v10609_v20, %v13933_v13  ;;  %9581 = vmatpush3.bf16.xpose.msra.mxu1 %v18034_v16  ;;  %9550 = vmatprep.mubr.bf16.mxu0 %v3691_v30  ;;  %v18044_v13 = vld [vmem:[#allocation100_spill] sm:$0xff] }
 0x6bc   : > { %9630 = vmatprep.subr.bf16.mxu1 %v18035_v5 }
 0x6bd   : > { %v3692_v58 = vpack.c.bf16 %v3670_v42, %v3669_v38 }
 0x6bf   : > { %9551 = vmatmul.mubr.bf16.vlgmr.msra.gmra.mrb[128].mxu0 %v3692_v58 }
 0x6c0   : > { %9599 = vmatpush3.bf16.xpose.msra.mxu0 %v18036_v37 }
 0x6c1   : > { %9600 = vmatprep.subr.bf16.mxu0 %v18037_v63 }
 0x6c2   : > { %9583 = vmatmul.mubr.bf16.vlgmr.msra.gmra.mrb[112].mxu1 %v18040_v4 }
 0x6c3   : > { %9586 = vmatprep.mubr.bf16.mxu1 %v18043_v9  ;;  %9631 = vmatpush3.bf16.msra.mxu1 %v18035_v5 }
 0x6c4   : > { %9632 = vmatprep.subr.bf16.mxu1 %v13806_v17 }
 0x6c7   : > { %9633 = vmatpush3.bf16.msra.mxu1 %v13806_v17  ;;  %v18051_v17 = vld [vmem:[#allocation103_spill] sm:$0xff] }
 0x6c8   : > { %9634 = vmatprep.subr.bf16.mxu1 %v13814_v7  ;;  %9601 = vmatpush3.bf16.xpose.msra.mxu0 %v18037_v63 }
 0x6c9   : > { %9602 = vmatprep.subr.bf16.mxu0 %v18044_v13 }
 0x6ca   : > { %9587 = vmatmul.mubr.bf16.gmra.mrb[116].mxu1 %v18047_v8 }
 0x6cb   : > { %9590 = vmatprep.mubr.bf16.mxu1 %v18050_v18  ;;  %9635 = vmatpush3.bf16.msra.mxu1 %v13814_v7  ;;  %v18058_v7 = vld [vmem:[#allocation106_spill] sm:$0xff] }
 0x6cc   : > { %9636 = vmatprep.subr.bf16.mxu1 %v13822_v22 }
 0x6cf   : > { %9637 = vmatpush3.bf16.msra.mxu1 %v13822_v22  ;;  %v18059_v22 = vld [vmem:[#allocation92_spill] sm:$0xff] }
 0x6d0   : > { %9638 = vmatprep.subr.bf16.mxu1 %v13831_v57  ;;  %9603 = vmatpush3.bf16.xpose.msra.mxu0 %v18044_v13  ;;  %v18061_v24 = vpack.c.bf16 %v18059_v22, %v18060_v43  ;;  %v18077_v43 = vld [vmem:[#allocation108_spill] sm:$0xff] }
 0x6d1   : > { %9604 = vmatprep.subr.bf16.mxu0 %v18051_v17 }
 0x6d2   : > { %9591 = vmatmul.mubr.bf16.gmra.mrb[120].mxu1 %v18054_v31 }
 0x6d3   : > { %9594 = vmatprep.mubr.bf16.mxu1 %v18057_v3  ;;  %9639 = vmatpush3.bf16.msra.mxu1 %v13831_v57  ;;  %v18062_v57 = vld [vmem:[#allocation109_spill] sm:$0xff]  ;;  %v18070_v3 = vpack.c.bf16 %v18068_v21, %v18069_v27 }
 0x6d4   : > { %9640 = vmatprep.subr.bf16.mxu1 %v13847_v1 }
 0x6d7   : > { %9641 = vmatpush3.bf16.msra.mxu1 %v13847_v1  ;;  %v18063_v1 = vld [vmem:[#allocation112_spill] sm:$0xff] }
 0x6d8   : > { %9642 = vmatprep.subr.bf16.mxu1 %v13860_v41  ;;  %9605 = vmatpush3.bf16.xpose.msra.mxu0 %v18051_v17 }
 0x6d9   : > { %9606 = vmatprep.subr.bf16.mxu0 %v18058_v7 }
 0x6da   : > { %9595 = vmatmul.mubr.bf16.gmra.mrb[124].mxu1 %v18061_v24  ;;  %v18078_v24 = vld [vmem:[#allocation107_spill] sm:$0xff] }
 0x6db   : > { %9643 = vmatpush3.bf16.msra.mxu1 %v13860_v41 }
 0x6dc   : > { %9644 = vmatprep.subr.bf16.mxu1 %v13874_v59 }
 0x6df   : > { %9645 = vmatpush3.bf16.msra.mxu1 %v13874_v59 }
 0x6e0   : > { %9607 = vmatpush3.bf16.xpose.msra.mxu0 %v18058_v7 }
 0x6e1   : > { %9608 = vmatprep.subr.bf16.mxu0 %v18062_v57 }
 0x6e8   : > { %9609 = vmatpush3.bf16.xpose.msra.mxu0 %v18062_v57  ;;  %v18079_v57 = vpack.c.bf16 %v18077_v43, %v18078_v24 }
 0x6e9   : > { %9610 = vmatprep.subr.bf16.mxu0 %v18063_v1 }
 0x6f0   : > { %9611 = vmatpush3.bf16.xpose.msra.mxu0 %v18063_v1  ;;  %v18081_v1 = vld [vmem:[#allocation111_spill] sm:$0xff] }
 0x6f1   : > { %9612 = vmatprep.subr.bf16.mxu0 %v18064_v15 }
 0x6f8   : > { %9613 = vmatpush3.bf16.xpose.msra.mxu0 %v18064_v15 }
 0x6f9   : > { %9662 = vmatprep.subr.bf16.mxu0 %v13940_v39 }
 0x70e   : > { %v3596_v41 = vpop.xlane.xlu0 %3595 }
 0x70f   : > { %10610 = vrcp.f32 %v3596_v41  ;;  %v18084_v41 = vld [vmem:[#allocation114_spill] sm:$0xff] }
 0x712   : > { %v3600_v51 = vpop.xlane.xlu0 %3599 }
 0x713   : > { %v3598_v59 = vpop.xlane.xlu1 %3597 }
 0x714   : > { %10612 = vrcp.f32 %v3598_v59 }
 0x715   : > { %10614 = vrcp.f32 %v3600_v51  ;;  %v18085_v51 = vld [vmem:[#allocation113_spill] sm:$0xff] }
 0x716   : > { %v18086_v59 = vpack.c.bf16 %v18084_v41, %v18085_v51 }
 0x717   : > { %v3604_v55 = vpop.xlane.xlu0 %3603 }
 0x718   : > { %v3602_v34 = vpop.xlane.xlu1 %3601 }
 0x719   : > { %10616 = vrcp.f32 %v3602_v34  ;;  %v10611_v10 = vpop.eup %10610 }
 0x71a   : > { %10618 = vrcp.f32 %v3604_v55  ;;  %v3671_v45 = vmul.f32 %v10611_v10, %v13976_v44 }
 0x71b   : > { %v3608_v14 = vpop.xlane.xlu0 %3607 }
 0x71c   : > { %v3606_v16 = vpop.xlane.xlu1 %3605 }
 0x71d   : > { %10620 = vrcp.f32 %v3606_v16 }
 0x71e   : > { %v10613_v26 = vpop.eup %10612  ;;  %10622 = vrcp.f32 %v3608_v14 }
 0x71f   : > { %v3612_v60 = vpop.xlane.xlu0 %3611  ;;  %v3672_v11 = vmul.f32 %v10613_v26, %v13985_v23  ;;  %v10615_v20 = vpop.eup %10614  ;;  %v18089_v26 = vld [vmem:[#allocation117_spill] sm:$0xff] }
 0x720   : > { %v3610_v30 = vpop.xlane.xlu1 %3609  ;;  %v3673_v37 = vmul.f32 %v10615_v20, %v13983_v2 }
 0x721   : > { %10624 = vrcp.f32 %v3610_v30  ;;  %v3693_v38 = vpack.c.bf16 %v3672_v11, %v3671_v45 }
 0x722   : > { %10626 = vrcp.f32 %v3612_v60  ;;  %v18090_v60 = vld [vmem:[#allocation116_spill] sm:$0xff] }
 0x723   : > { %v10617_v42 = vpop.eup %10616  ;;  %9554 = vmatprep.mubr.bf16.mxu0 %v3693_v38  ;;  %v3616_v5 = vpop.xlane.xlu0 %3615  ;;  %v18091_v45 = vpack.c.bf16 %v18089_v26, %v18090_v60 }
 0x724   : > { %v3614_v58 = vpop.xlane.xlu1 %3613  ;;  %v3674_v63 = vmul.f32 %v10617_v42, %v13991_v19  ;;  %v10619_v32 = vpop.eup %10618 }
 0x725   : > { %10628 = vrcp.f32 %v3614_v58  ;;  %v3675_v23 = vmul.f32 %v10619_v32, %v13993_v48 }
 0x726   : > { %v3694_v53 = vpack.c.bf16 %v3674_v63, %v3673_v37  ;;  %10630 = vrcp.f32 %v3616_v5 }
 0x727   : > { %v10621_v4 = vpop.eup %10620 }
 0x728   : > { %9555 = vmatmul.mubr.bf16.gmra.mrb[132].mxu0 %v3694_v53  ;;  %v3618_v44 = vpop.xlane.xlu1 %3617  ;;  %v3676_v0 = vmul.f32 %v10621_v4, %v14002_v40  ;;  %v10623_v62 = vpop.eup %10622 }
 0x729   : > { %10632 = vrcp.f32 %v3618_v44  ;;  %v3677_v2 = vmul.f32 %v10623_v62, %v14000_v54  ;;  %v18065_v54 = vld [vmem:[#allocation95_spill] sm:$0xff] }
 0x72a   : > { %v3695_v9 = vpack.c.bf16 %v3676_v0, %v3675_v23 }
 0x72b   : > { %v10625_v13 = vpop.eup %10624 }
 0x72c   : > { %9558 = vmatprep.mubr.bf16.mxu0 %v3695_v9  ;;  %v3678_v19 = vmul.f32 %v10625_v13, %v14006_v49  ;;  %v10627_v35 = vpop.eup %10626  ;;  %v18066_v49 = vld [vmem:[#allocation94_spill] sm:$0xff] }
 0x72d   : > { %v3679_v6 = vmul.f32 %v10627_v35, %v14008_v61  ;;  %v18067_v31 = vpack.c.bf16 %v18065_v54, %v18066_v49  ;;  %v18071_v61 = vld [vmem:[#allocation102_spill] sm:$0xff] }
 0x72e   : > { %v3696_v50 = vpack.c.bf16 %v3678_v19, %v3677_v2 }
 0x72f   : > { %v10629_v8 = vpop.eup %10628 }
 0x730   : > { %9559 = vmatmul.mubr.bf16.gmra.mrb[136].mxu0 %v3696_v50  ;;  %v3680_v46 = vmul.f32 %v10629_v8, %v14016_v25  ;;  %v10631_v48 = vpop.eup %10630  ;;  %v18072_v25 = vld [vmem:[#allocation101_spill] sm:$0xff] }
 0x731   : > { %v3681_v17 = vmul.f32 %v10631_v48, %v14014_v28  ;;  %v18073_v7 = vpack.c.bf16 %v18071_v61, %v18072_v25  ;;  %v18074_v28 = vld [vmem:[#allocation105_spill] sm:$0xff] }
 0x732   : > { %v3697_v18 = vpack.c.bf16 %v3680_v46, %v3679_v6 }
 0x733   : > { %v10633_v40 = vpop.eup %10632 }
 0x734   : > { %9562 = vmatprep.mubr.bf16.mxu0 %v3697_v18  ;;  %v3682_v12 = vmul.f32 %v10633_v40, %v14020_v52  ;;  %v18075_v52 = vld [vmem:[#allocation104_spill] sm:$0xff] }
 0x735   : > { %v18076_v22 = vpack.c.bf16 %v18074_v28, %v18075_v52 }
 0x736   : > { %v3698_v29 = vpack.c.bf16 %v3682_v12, %v3681_v17 }
 0x738   : > { %9563 = vmatmul.mubr.bf16.gmra.mrb[140].mxu0 %v3698_v29 }
 0x739   : > { %9614 = vmatprep.mubr.bf16.mxu0 %v18067_v31 }
 0x740   : > { %9615 = vmatmul.mubr.bf16.vlgmr.msra.gmra.mrb[144].mxu0 %v18070_v3 }
 0x741   : > { %9663 = vmatpush3.bf16.msra.mxu0 %v13940_v39  ;;  %9618 = vmatprep.mubr.bf16.mxu0 %v18073_v7  ;;  %v18080_v39 = vld [vmem:[#allocation120_spill] sm:$0xff] }
 0x742   : > { %9664 = vmatprep.subr.bf16.mxu0 %v13946_v33 }
 0x745   : > { %9665 = vmatpush3.bf16.msra.mxu0 %v13946_v33  ;;  %v18082_v33 = vld [vmem:[#allocation110_spill] sm:$0xff] }
 0x746   : > { %9666 = vmatprep.subr.bf16.mxu0 %v13952_v56  ;;  %v18083_v15 = vpack.c.bf16 %v18081_v1, %v18082_v33 }
 0x748   : > { %9619 = vmatmul.mubr.bf16.gmra.mrb[148].mxu0 %v18076_v22 }
 0x749   : > { %9667 = vmatpush3.bf16.msra.mxu0 %v13952_v56  ;;  %9622 = vmatprep.mubr.bf16.mxu0 %v18079_v57  ;;  %v18087_v56 = vld [vmem:[#allocation121_spill] sm:$0xff] }
 0x74a   : > { %9668 = vmatprep.subr.bf16.mxu0 %v13958_v36 }
 0x74d   : > { %9669 = vmatpush3.bf16.msra.mxu0 %v13958_v36  ;;  %v18088_v36 = vld [vmem:[#allocation122_spill] sm:$0xff] }
 0x74e   : > { %9670 = vmatprep.subr.bf16.mxu0 %v18080_v39 }
 0x750   : > { %9623 = vmatmul.mubr.bf16.gmra.mrb[152].mxu0 %v18083_v15 }
 0x751   : > { %9671 = vmatpush3.bf16.msra.mxu0 %v18080_v39  ;;  %9626 = vmatprep.mubr.bf16.mxu0 %v18086_v59 }
 0x752   : > { %9672 = vmatprep.subr.bf16.mxu0 %v18087_v56 }
 0x754   : > { %v14147_v55 = vpop.f32.mrb[96].mxu1 }
 0x755   : > { %9673 = vmatpush3.bf16.msra.mxu0 %v18087_v56  ;;  %v14150_v34 = vpop.f32.mrb[97].mxu1 }
 0x756   : > { %9674 = vmatprep.subr.bf16.mxu0 %v18088_v36  ;;  %v14153_v14 = vpop.f32.mrb[98].mxu1 }
 0x757   : > { %v14157_v16 = vpop.f32.mrb[99].mxu1 }
 0x758   : > { %9627 = vmatmul.mubr.bf16.gmra.mrb[156].mxu0 %v18091_v45 }
 0x759   : > { %9675 = vmatpush3.bf16.msra.mxu0 %v18088_v36 }
 0x75a   : > { %9676 = vmatprep.subr.bf16.mxu0 %v13970_v47 }
 0x75d   : > { %9677 = vmatpush3.bf16.msra.mxu0 %v13970_v47 }
 0x775   : > { %v14167_v30 = vpop.f32.mrb[100].mxu1 }
 0x776   : > { %v14169_v20 = vpop.f32.mrb[101].mxu1 }
 0x777   : > { %v14171_v38 = vpop.f32.mrb[102].mxu1 }
 0x778   : > { %v14175_v5 = vpop.f32.mrb[103].mxu1 }
 0x77d   : > { %v14179_v37 = vpop.f32.mrb[104].mxu1 }
 0x77e   : > { %v14181_v63 = vpop.f32.mrb[105].mxu1 }
 0x77f   : > { %v14183_v32 = vpop.f32.mrb[106].mxu1 }
 0x780   : > { %v14187_v53 = vpop.f32.mrb[107].mxu1 }
 0x785   : > { %v14191_v44 = vpop.f32.mrb[108].mxu1 }
 0x786   : > { %v14193_v23 = vpop.f32.mrb[109].mxu1 }
 0x787   : > { %v14195_v0 = vpop.f32.mrb[110].mxu1 }
 0x788   : > { %v14199_v9 = vpop.f32.mrb[111].mxu1 }
 0x792   : > { %v14203_v2 = vpop.f32.mrb[128].mxu0 }
 0x793   : > { %18092 = vst [vmem:[#allocation118_spill] sm:$0xff] %v14203_v2  ;;  %v14205_v19 = vpop.f32.mrb[129].mxu0 }
 0x794   : > { %v14207_v35 = vpop.f32.mrb[130].mxu0 }
 0x795   : > { %18093 = vst [vmem:[#allocation119_spill] sm:$0xff] %v14207_v35  ;;  %v14209_v50 = vpop.f32.mrb[112].mxu1  ;;  %v14213_v6 = vpop.f32.mrb[131].mxu0 }
 0x796   : > { %v14215_v46 = vpop.f32.mrb[113].mxu1 }
 0x797   : > { %4151 = vmax.xlane.f32.xlu0 %v14215_v46  ;;  %v14220_v18 = vpop.f32.mrb[114].mxu1 }
 0x798   : > { %v14222_v40 = vpop.f32.mrb[115].mxu1 }
 0x799   : > { %4153 = vmax.xlane.f32.xlu1 %v14222_v40 }
 0x79b   : > { %4155 = vmax.xlane.f32.xlu0 %v14209_v50 }
 0x79d   : > { %4157 = vmax.xlane.f32.xlu1 %v14220_v18  ;;  %v14227_v17 = vpop.f32.mrb[116].mxu1 }
 0x79e   : > { %v14229_v12 = vpop.f32.mrb[117].mxu1 }
 0x79f   : > { %4159 = vmax.xlane.f32.xlu0 %v14229_v12  ;;  %v14232_v29 = vpop.f32.mrb[118].mxu1 }
 0x7a0   : > { %v14234_v54 = vpop.f32.mrb[119].mxu1 }
 0x7a1   : > { %4161 = vmax.xlane.f32.xlu1 %v14234_v54 }
 0x7a3   : > { %4163 = vmax.xlane.f32.xlu0 %v14227_v17 }
 0x7a5   : > { %4165 = vmax.xlane.f32.xlu1 %v14232_v29  ;;  %v14239_v49 = vpop.f32.mrb[120].mxu1 }
 0x7a6   : > { %v14241_v31 = vpop.f32.mrb[121].mxu1 }
 0x7a7   : > { %4167 = vmax.xlane.f32.xlu0 %v14241_v31  ;;  %v14244_v21 = vpop.f32.mrb[122].mxu1 }
 0x7a8   : > { %v14246_v27 = vpop.f32.mrb[123].mxu1 }
 0x7a9   : > { %4169 = vmax.xlane.f32.xlu1 %v14246_v27 }
 0x7ab   : > { %4171 = vmax.xlane.f32.xlu0 %v14239_v49 }
 0x7ad   : > { %4173 = vmax.xlane.f32.xlu1 %v14244_v21  ;;  %v14251_v3 = vpop.f32.mrb[124].mxu1 }
 0x7ae   : > { %v14253_v61 = vpop.f32.mrb[125].mxu1 }
 0x7af   : > { %4175 = vmax.xlane.f32.xlu0 %v14253_v61  ;;  %v14256_v25 = vpop.f32.mrb[126].mxu1 }
 0x7b0   : > { %v14258_v7 = vpop.f32.mrb[127].mxu1 }
 0x7b1   : > { %4177 = vmax.xlane.f32.xlu1 %v14258_v7 }
 0x7b3   : > { %4179 = vmax.xlane.f32.xlu0 %v14251_v3 }
 0x7b5   : > { %4181 = vmax.xlane.f32.xlu1 %v14256_v25 }
 0x7fb   : > { %v14263_v28 = vpop.f32.mrb[132].mxu0 }
 0x7fc   : > { %18094 = vst [vmem:[#allocation123_spill] sm:$0xff] %v14263_v28  ;;  %v14265_v52 = vpop.f32.mrb[133].mxu0 }
 0x7fd   : > { %18095 = vst [vmem:[#allocation72_spill] sm:$0xff] %v14265_v52  ;;  %v14267_v22 = vpop.f32.mrb[134].mxu0 }
 0x7fe   : > { %18096 = vst [vmem:[#allocation75_spill] sm:$0xff] %v14267_v22  ;;  %v14271_v24 = vpop.f32.mrb[135].mxu0 }
 0x7ff   : > { %18097 = vst [vmem:[#allocation78_spill] sm:$0xff] %v14271_v24 }
 0x803   : > { %v14275_v39 = vpop.f32.mrb[136].mxu0 }
 0x804   : > { %18098 = vst [vmem:[#allocation81_spill] sm:$0xff] %v14275_v39  ;;  %v14277_v1 = vpop.f32.mrb[137].mxu0 }
 0x805   : > { %18099 = vst [vmem:[#allocation84_spill] sm:$0xff] %v14277_v1  ;;  %v14279_v33 = vpop.f32.mrb[138].mxu0 }
 0x806   : > { %18100 = vst [vmem:[#allocation87_spill] sm:$0xff] %v14279_v33  ;;  %v14283_v41 = vpop.f32.mrb[139].mxu0 }
 0x807   : > { %18101 = vst [vmem:[#allocation90_spill] sm:$0xff] %v14283_v41 }
 0x80b   : > { %v14287_v59 = vpop.f32.mrb[140].mxu0 }
 0x80c   : > { %18102 = vst [vmem:[#allocation71_spill] sm:$0xff] %v14287_v59  ;;  %v14289_v56 = vpop.f32.mrb[141].mxu0 }
 0x80d   : > { %18103 = vst [vmem:[#allocation70_spill] sm:$0xff] %v14289_v56  ;;  %v14291_v36 = vpop.f32.mrb[142].mxu0 }
 0x80e   : > { %18104 = vst [vmem:[#allocation93_spill] sm:$0xff] %v14291_v36  ;;  %v14295_v60 = vpop.f32.mrb[143].mxu0 }
 0x80f   : > { %18105 = vst [vmem:[#allocation124_spill] sm:$0xff] %v14295_v60 }
 0x813   : > { %v14299_v15 = vpop.f32.mrb[144].mxu0 }
 0x814   : > { %v14301_v43 = vpop.f32.mrb[145].mxu0 }
 0x815   : > { %v14303_v57 = vpop.f32.mrb[146].mxu0  ;;  %4183 = vmax.xlane.f32.xlu0 %v14301_v43 }
 0x816   : > { %v14306_v51 = vpop.f32.mrb[147].mxu0 }
 0x817   : > { %4185 = vmax.xlane.f32.xlu1 %v14306_v51 }
 0x819   : > { %4187 = vmax.xlane.f32.xlu0 %v14299_v15 }
 0x81b   : > { %v14310_v26 = vpop.f32.mrb[148].mxu0  ;;  %4189 = vmax.xlane.f32.xlu1 %v14303_v57 }
 0x81c   : > { %v14313_v8 = vpop.f32.mrb[149].mxu0 }
 0x81d   : > { %v14315_v45 = vpop.f32.mrb[150].mxu0  ;;  %4195 = vmax.xlane.f32.xlu0 %v14310_v26 }
 0x81e   : > { %v14318_v48 = vpop.f32.mrb[151].mxu0 }
 0x81f   : > { %4197 = vmax.xlane.f32.xlu1 %v14315_v45 }
 0x821   : > { %4191 = vmax.xlane.f32.xlu0 %v14313_v8 }
 0x823   : > { %v14322_v62 = vpop.f32.mrb[152].mxu0  ;;  %4193 = vmax.xlane.f32.xlu1 %v14318_v48 }
 0x824   : > { %v14325_v13 = vpop.f32.mrb[153].mxu0  ;;  %v4152_v47 = vpop.xlane.xlu0 %4151 }
 0x825   : > { %v4215_v4 = vsub.f32 %v14215_v46, %v4152_v47  ;;  %v14328_v42 = vpop.f32.mrb[154].mxu0 }
 0x826   : > { %v14330_v58 = vpop.f32.mrb[155].mxu0  ;;  %v4154_v10 = vpop.xlane.xlu1 %4153 }
 0x827   : > { %v4247_v11 = vmul.f32 1.442695, %v4215_v4  ;;  %v4216_v59 = vsub.f32 %v14222_v40, %v4154_v10 }
 0x828   : > { %v4156_v36 = vpop.xlane.xlu0 %4155 }
 0x829   : > { %10634 = vpow2.f32 %v4247_v11  ;;  %v4249_v56 = vmul.f32 1.442695, %v4216_v59  ;;  %v4217_v60 = vsub.f32 %v14209_v50, %v4156_v36 }
 0x82a   : > { %v4158_v39 = vpop.xlane.xlu1 %4157 }
 0x82b   : > { %10636 = vpow2.f32 %v4249_v56  ;;  %v4251_v33 = vmul.f32 1.442695, %v4217_v60  ;;  %v4218_v1 = vsub.f32 %v14220_v18, %v4158_v39  ;;  %v14335_v41 = vpop.f32.mrb[156].mxu0 }
 0x82c   : > { %v14337_v47 = vpop.f32.mrb[157].mxu0  ;;  %v4160_v46 = vpop.xlane.xlu0 %4159 }
 0x82d   : > { %10638 = vpow2.f32 %v4251_v33  ;;  %v4253_v28 = vmul.f32 1.442695, %v4218_v1  ;;  %v14339_v4 = vpop.f32.mrb[158].mxu0  ;;  %v4219_v50 = vsub.f32 %v14229_v12, %v4160_v46 }
 0x82e   : > { %v14341_v10 = vpop.f32.mrb[159].mxu0  ;;  %v4162_v11 = vpop.xlane.xlu1 %4161 }
 0x82f   : > { %10640 = vpow2.f32 %v4253_v28  ;;  %v4220_v18 = vsub.f32 %v14234_v54, %v4162_v11  ;;  %v4255_v33 = vmul.f32 1.442695, %v4219_v50 }
 0x830   : > { %v4164_v40 = vpop.xlane.xlu0 %4163 }
 0x831   : > { %v4221_v1 = vsub.f32 %v14227_v17, %v4164_v40  ;;  %v4257_v28 = vmul.f32 1.442695, %v4220_v18  ;;  %10642 = vpow2.f32 %v4255_v33 }
 0x832   : > { %v4166_v39 = vpop.xlane.xlu1 %4165 }
 0x833   : > { %v14344_v59 = vpop.eup %10634  ;;  %v4222_v12 = vsub.f32 %v14232_v29, %v4166_v39  ;;  %v4259_v54 = vmul.f32 1.442695, %v4221_v1  ;;  %10644 = vpow2.f32 %v4257_v28 }
 0x834   : > { %4311 = vadd.xlane.f32.xlu0 %v14344_v59  ;;  %v4168_v60 = vpop.xlane.xlu0 %4167 }
 0x835   : > { %v14348_v56 = vpop.eup %10636  ;;  %v4261_v50 = vmul.f32 1.442695, %v4222_v12  ;;  %10646 = vpow2.f32 %v4259_v54  ;;  %v4223_v40 = vsub.f32 %v14241_v31, %v4168_v60 }
 0x836   : > { %4313 = vadd.xlane.f32.xlu1 %v14348_v56  ;;  %v4170_v11 = vpop.xlane.xlu1 %4169 }
 0x837   : > { %v14352_v36 = vpop.eup %10638  ;;  %10648 = vpow2.f32 %v4261_v50  ;;  %v4224_v39 = vsub.f32 %v14246_v27, %v4170_v11  ;;  %v4263_v28 = vmul.f32 1.442695, %v4223_v40 }
 0x838   : > { %4315 = vadd.xlane.f32.xlu0 %v14352_v36  ;;  %v4172_v17 = vpop.xlane.xlu0 %4171 }
 0x839   : > { %v14356_v46 = vpop.eup %10640  ;;  %v4225_v12 = vsub.f32 %v14239_v49, %v4172_v17  ;;  %v4265_v31 = vmul.f32 1.442695, %v4224_v39  ;;  %10650 = vpow2.f32 %v4263_v28 }
 0x83a   : > { %4317 = vadd.xlane.f32.xlu1 %v14356_v46  ;;  %v4174_v29 = vpop.xlane.xlu1 %4173 }
 0x83b   : > { %v14364_v18 = vpop.eup %10642  ;;  %v4226_v60 = vsub.f32 %v14244_v21, %v4174_v29  ;;  %v4267_v27 = vmul.f32 1.442695, %v4225_v12  ;;  %10652 = vpow2.f32 %v4265_v31 }
 0x83c   : > { %4199 = vmax.xlane.f32.xlu0 %v14325_v13  ;;  %v4176_v33 = vpop.xlane.xlu0 %4175 }
 0x83d   : > { %v14368_v1 = vpop.eup %10644  ;;  %v4227_v11 = vsub.f32 %v14253_v61, %v4176_v33  ;;  %v4269_v49 = vmul.f32 1.442695, %v4226_v60  ;;  %10654 = vpow2.f32 %v4267_v27  ;;  %v10268_v27 = vld [vmem:[%s11998_s10 + $0x4] ss:$8 sps:$4 sm:$0xff]  }
 0x83e   : > { %4201 = vmax.xlane.f32.xlu1 %v14330_v58  ;;  %v4178_v54 = vpop.xlane.xlu1 %4177  ;;  %5018 = vmatprep.subr.bf16.mxu1 %v10268_v27 }
 0x83f   : > { %v14372_v50 = vpop.eup %10646  ;;  %v4228_v17 = vsub.f32 %v14258_v7, %v4178_v54  ;;  %v4271_v21 = vmul.f32 1.442695, %v4227_v11  ;;  %10656 = vpow2.f32 %v4269_v49 }
 0x840   : > { %4203 = vmax.xlane.f32.xlu0 %v14322_v62  ;;  %v4180_v52 = vpop.xlane.xlu0 %4179 }
 0x841   : > { %v14376_v22 = vpop.eup %10648  ;;  %v4229_v29 = vsub.f32 %v14251_v3, %v4180_v52  ;;  %v4273_v39 = vmul.f32 1.442695, %v4228_v17  ;;  %10658 = vpow2.f32 %v4271_v21 }
 0x842   : > { %4205 = vmax.xlane.f32.xlu1 %v14328_v42  ;;  %v4182_v40 = vpop.xlane.xlu1 %4181 }
 0x843   : > { %v4230_v61 = vsub.f32 %v14256_v25, %v4182_v40  ;;  %v4275_v33 = vmul.f32 1.442695, %v4229_v29  ;;  %v14387_v7 = vpop.eup %10650  ;;  %10660 = vpow2.f32 %v4273_v39 }
 0x844   : > { %4319 = vadd.xlane.f32.xlu0 %v14364_v18 }
 0x845   : > { %v4277_v28 = vmul.f32 1.442695, %v4230_v61  ;;  %v14390_v12 = vpop.eup %10652  ;;  %10662 = vpow2.f32 %v4275_v33 }
 0x846   : > { %4321 = vadd.xlane.f32.xlu1 %v14368_v1 }
 0x847   : > { %v14393_v3 = vpop.eup %10654  ;;  %10664 = vpow2.f32 %v4277_v28 }
 0x848   : > { %4323 = vadd.xlane.f32.xlu0 %v14372_v50 }
 0x849   : > { %v14396_v25 = vpop.eup %10656 }
 0x84a   : > { %4325 = vadd.xlane.f32.xlu1 %v14376_v22 }
 0x84b   : > { %v14399_v52 = vpop.eup %10658 }
 0x84c   : > { %4207 = vmax.xlane.f32.xlu0 %v14337_v47 }
 0x84d   : > { %v14402_v54 = vpop.eup %10660 }
 0x84e   : > { %4209 = vmax.xlane.f32.xlu1 %v14341_v10 }
 0x84f   : > { %v14405_v31 = vpop.eup %10662 }
 0x850   : > { %4211 = vmax.xlane.f32.xlu0 %v14335_v41 }
 0x851   : > { %v14408_v60 = vpop.eup %10664 }
 0x852   : > { %4213 = vmax.xlane.f32.xlu1 %v14339_v4 }
 0x854   : > { %4327 = vadd.xlane.f32.xlu0 %v14387_v7 }
 0x856   : > { %4329 = vadd.xlane.f32.xlu1 %v14390_v12 }
 0x858   : > { %4331 = vadd.xlane.f32.xlu0 %v14393_v3 }
 0x85a   : > { %4333 = vadd.xlane.f32.xlu1 %v14396_v25 }
 0x85c   : > { %4335 = vadd.xlane.f32.xlu0 %v14399_v52 }
 0x85e   : > { %4337 = vadd.xlane.f32.xlu1 %v14402_v54 }
 0x860   : > { %4339 = vadd.xlane.f32.xlu0 %v14405_v31 }
 0x862   : > { %4341 = vadd.xlane.f32.xlu1 %v14408_v60 }
 0x8a2   : > { %v4184_v11 = vpop.xlane.xlu0 %4183 }
 0x8a3   : > { %v4231_v49 = vsub.f32 %v14301_v43, %v4184_v11 }
 0x8a4   : > { %v4186_v17 = vpop.xlane.xlu1 %4185 }
 0x8a5   : > { %v4279_v40 = vmul.f32 1.442695, %v4231_v49  ;;  %v4232_v21 = vsub.f32 %v14306_v51, %v4186_v17 }
 0x8a6   : > { %v4188_v29 = vpop.xlane.xlu0 %4187 }
 0x8a7   : > { %10666 = vpow2.f32 %v4279_v40  ;;  %v4281_v39 = vmul.f32 1.442695, %v4232_v21  ;;  %v4233_v61 = vsub.f32 %v14299_v15, %v4188_v29 }
 0x8a8   : > { %v4190_v33 = vpop.xlane.xlu1 %4189 }
 0x8a9   : > { %10668 = vpow2.f32 %v4281_v39  ;;  %v4283_v28 = vmul.f32 1.442695, %v4233_v61  ;;  %v4234_v24 = vsub.f32 %v14303_v57, %v4190_v33 }
 0x8aa   : > { %v4196_v2 = vpop.xlane.xlu0 %4195 }
 0x8ab   : > { %10670 = vpow2.f32 %v4283_v28  ;;  %v4285_v27 = vmul.f32 1.442695, %v4234_v24  ;;  %v4237_v11 = vsub.f32 %v14310_v26, %v4196_v2 }
 0x8ac   : > { %v4198_v35 = vpop.xlane.xlu1 %4197 }
 0x8ad   : > { %10672 = vpow2.f32 %v4285_v27  ;;  %v4238_v15 = vsub.f32 %v14315_v45, %v4198_v35  ;;  %v4291_v24 = vmul.f32 1.442695, %v4237_v11 }
 0x8ae   : > { %v4192_v43 = vpop.xlane.xlu0 %4191 }
 0x8af   : > { %v4235_v51 = vsub.f32 %v14313_v8, %v4192_v43  ;;  %v4293_v8 = vmul.f32 1.442695, %v4238_v15 }
 0x8b0   : > { %v4194_v49 = vpop.xlane.xlu1 %4193 }
 0x8b1   : > { %v14418_v17 = vpop.eup %10666  ;;  %v4287_v40 = vmul.f32 1.442695, %v4235_v51  ;;  %v4236_v21 = vsub.f32 %v14318_v48, %v4194_v49 }
 0x8b2   : > { %4343 = vadd.xlane.f32.xlu0 %v14418_v17 }
 0x8b3   : > { %v14423_v57 = vpop.eup %10668  ;;  %10674 = vpow2.f32 %v4287_v40  ;;  %v4289_v29 = vmul.f32 1.442695, %v4236_v21 }
 0x8b4   : > { %4345 = vadd.xlane.f32.xlu1 %v14423_v57 }
 0x8b5   : > { %v14426_v2 = vpop.eup %10670  ;;  %10676 = vpow2.f32 %v4289_v29 }
 0x8b6   : > { %4347 = vadd.xlane.f32.xlu0 %v14426_v2  ;;  %10678 = vpow2.f32 %v4291_v24 }
 0x8b7   : > { %v14429_v26 = vpop.eup %10672  ;;  %10680 = vpow2.f32 %v4293_v8 }
 0x8b8   : > { %4349 = vadd.xlane.f32.xlu1 %v14429_v26 }
 0x8bd   : > { %v14432_v35 = vpop.eup %10674 }
 0x8be   : > { %4351 = vadd.xlane.f32.xlu0 %v14432_v35 }
 0x8bf   : > { %v14435_v48 = vpop.eup %10676 }
 0x8c0   : > { %4353 = vadd.xlane.f32.xlu1 %v14435_v48  ;;  %v14438_v45 = vpop.eup %10678 }
 0x8c1   : > { %v4312_v39 = vpop.xlane.xlu0 %4311  ;;  %v14441_v61 = vpop.eup %10680 }
 0x8c2   : > { %10682 = vrcp.f32 %v4312_v39  ;;  %4355 = vadd.xlane.f32.xlu0 %v14438_v45 }
 0x8c3   : > { %v4314_v33 = vpop.xlane.xlu1 %4313 }
 0x8c4   : > { %10684 = vrcp.f32 %v4314_v33  ;;  %4357 = vadd.xlane.f32.xlu1 %v14441_v61 }
 0x8c5   : > { %v4316_v28 = vpop.xlane.xlu0 %4315 }
 0x8c6   : > { %10686 = vrcp.f32 %v4316_v28 }
 0x8c7   : > { %v4318_v27 = vpop.xlane.xlu1 %4317 }
 0x8c8   : > { %10688 = vrcp.f32 %v4318_v27 }
 0x8c9   : > { %v4200_v43 = vpop.xlane.xlu0 %4199 }
 0x8ca   : > { %v4239_v11 = vsub.f32 %v14325_v13, %v4200_v43 }
 0x8cb   : > { %v4202_v51 = vpop.xlane.xlu1 %4201 }
 0x8cc   : > { %v10683_v49 = vpop.eup %10682  ;;  %v4295_v15 = vmul.f32 1.442695, %v4239_v11  ;;  %v4240_v40 = vsub.f32 %v14330_v58, %v4202_v51 }
 0x8cd   : > { %v4204_v21 = vpop.xlane.xlu0 %4203  ;;  %v4407_v33 = vmul.f32 %v10683_v49, %v14344_v59 }
 0x8ce   : > { %v10685_v24 = vpop.eup %10684  ;;  %10690 = vpow2.f32 %v4295_v15  ;;  %v4297_v29 = vmul.f32 1.442695, %v4240_v40  ;;  %v4241_v8 = vsub.f32 %v14322_v62, %v4204_v21  ;;  %v10271_v21 = vld [vmem:[%s11998_s10 + $0x14] ss:$8 sps:$4 sm:$0xff]  }
 0x8cf   : > { %v4206_v39 = vpop.xlane.xlu1 %4205  ;;  %v4408_v28 = vmul.f32 %v10685_v24, %v14348_v56  ;;  %v10266_v56 = vld [vmem:[%s11998_s10] ss:$8 sps:$4 sm:$0xff]  }
 0x8d0   : > { %v10687_v27 = vpop.eup %10686  ;;  %10692 = vpow2.f32 %v4297_v29  ;;  %v4299_v13 = vmul.f32 1.442695, %v4241_v8  ;;  %v4242_v43 = vsub.f32 %v14328_v42, %v4206_v39  ;;  %v10274_v8 = vld [vmem:[%s11998_s10 + $0x24] ss:$8 sps:$4 sm:$0xff]  }
 0x8d1   : > { %v4320_v11 = vpop.xlane.xlu0 %4319  ;;  %v4439_v58 = vpack.c.bf16 %v4408_v28, %v4407_v33  ;;  %v4409_v40 = vmul.f32 %v10687_v27, %v14352_v36  ;;  %v10269_v36 = vld [vmem:[%s11998_s10 + $0x10] ss:$8 sps:$4 sm:$0xff]  }
 0x8d2   : > { %v10689_v51 = vpop.eup %10688  ;;  %10694 = vpow2.f32 %v4299_v13  ;;  %v4301_v15 = vmul.f32 1.442695, %v4242_v43 }
 0x8d3   : > { %v4410_v62 = vmul.f32 %v10689_v51, %v14356_v46  ;;  %10696 = vrcp.f32 %v4320_v11  ;;  %9646 = vmatprep.mubr.bf16.mxu1 %v4439_v58  ;;  %v4322_v59 = vpop.xlane.xlu1 %4321  ;;  %v10272_v11 = vld [vmem:[%s11998_s10 + $0x20] ss:$8 sps:$4 sm:$0xff]  }
 0x8d4   : > { %10698 = vpow2.f32 %v4301_v15  ;;  %v10277_v15 = vld [vmem:[%s11998_s10 + $0x34] ss:$8 sps:$4 sm:$0xff]  }
 0x8d5   : > { %10700 = vrcp.f32 %v4322_v59  ;;  %v4324_v49 = vpop.xlane.xlu0 %4323  ;;  %v4440_v42 = vpack.c.bf16 %v4410_v62, %v4409_v40 }
 0x8d6   : > { %10702 = vrcp.f32 %v4324_v49 }
 0x8d7   : > { %9647 = vmatmul.mubr.bf16.vlgmr.msra.gmra.mrb[128].mxu1 %v4440_v42  ;;  %v4326_v24 = vpop.xlane.xlu1 %4325 }
 0x8d8   : > { %v14454_v29 = vpop.eup %10690  ;;  %10704 = vrcp.f32 %v4326_v24  ;;  %5019 = vmatpush1.bf16.msra.mxu1 %v10266_v56 }
 0x8d9   : > { %4359 = vadd.xlane.f32.xlu0 %v14454_v29  ;;  %v4208_v46 = vpop.xlane.xlu0 %4207  ;;  %5020 = vmatprep.subr.bf16.mxu1 %v10271_v21 }
 0x8da   : > { %v14459_v39 = vpop.eup %10692  ;;  %v4243_v33 = vsub.f32 %v14337_v47, %v4208_v46 }
 0x8db   : > { %4361 = vadd.xlane.f32.xlu1 %v14459_v39  ;;  %v4210_v28 = vpop.xlane.xlu1 %4209 }
 0x8dc   : > { %v14463_v27 = vpop.eup %10694  ;;  %v4303_v13 = vmul.f32 1.442695, %v4243_v33  ;;  %v4244_v43 = vsub.f32 %v14341_v10, %v4210_v28  ;;  %5021 = vmatpush1.bf16.msra.mxu1 %v10269_v36  ;;  %v10275_v36 = vld [vmem:[%s11998_s10 + $0x30] ss:$8 sps:$4 sm:$0xff]  }
 0x8dd   : > { %v10697_v58 = vpop.eup %10696  ;;  %4363 = vadd.xlane.f32.xlu0 %v14463_v27  ;;  %v4212_v51 = vpop.xlane.xlu0 %4211  ;;  %5022 = vmatprep.subr.bf16.mxu1 %v10274_v8  ;;  %v10280_v8 = vld [vmem:[%s11998_s10 + $0x44] ss:$8 sps:$4 sm:$0xff]  }
 0x8de   : > { %v14469_v40 = vpop.eup %10698  ;;  %10706 = vpow2.f32 %v4303_v13  ;;  %v4305_v47 = vmul.f32 1.442695, %v4244_v43  ;;  %v4245_v62 = vsub.f32 %v14335_v41, %v4212_v51  ;;  %v4411_v56 = vmul.f32 %v10697_v58, %v14364_v18  ;;  %v10283_v58 = vld [vmem:[%s11998_s10 + $0x54] ss:$8 sps:$4 sm:$0xff]  }
 0x8df   : > { %v10701_v59 = vpop.eup %10700  ;;  %4365 = vadd.xlane.f32.xlu1 %v14469_v40  ;;  %v4214_v10 = vpop.xlane.xlu1 %4213 }
 0x8e0   : > { %v10703_v49 = vpop.eup %10702  ;;  %10708 = vpow2.f32 %v4305_v47  ;;  %v4307_v42 = vmul.f32 1.442695, %v4245_v62  ;;  %v4246_v21 = vsub.f32 %v14339_v4, %v4214_v10  ;;  %v4412_v24 = vmul.f32 %v10701_v59, %v14368_v1  ;;  %5023 = vmatpush1.bf16.msra.mxu1 %v10272_v11  ;;  %v10278_v4 = vld [vmem:[%s11998_s10 + $0x40] ss:$8 sps:$4 sm:$0xff]   ;;  %v10286_v47 = vld [vmem:[%s11998_s10 + $0x64] ss:$8 sps:$4 sm:$0xff]  }
 0x8e1   : > { %v4328_v46 = vpop.xlane.xlu0 %4327  ;;  %5024 = vmatprep.subr.bf16.mxu1 %v10277_v15  ;;  %v4413_v13 = vmul.f32 %v10703_v49, %v14372_v50 }
 0x8e2   : > { %v10705_v41 = vpop.eup %10704  ;;  %10710 = vpow2.f32 %v4307_v42  ;;  %v4309_v33 = vmul.f32 1.442695, %v4246_v21  ;;  %v4441_v28 = vpack.c.bf16 %v4412_v24, %v4411_v56  ;;  %v10284_v56 = vld [vmem:[%s11998_s10 + $0x60] ss:$8 sps:$4 sm:$0xff]   ;;  %v10289_v21 = vld [vmem:[%s11998_s10 + $0x74] ss:$8 sps:$4 sm:$0xff]  }
 0x8e3   : > { %10712 = vrcp.f32 %v4328_v46  ;;  %v4330_v18 = vpop.xlane.xlu1 %4329  ;;  %v4414_v43 = vmul.f32 %v10705_v41, %v14376_v22  ;;  %v10281_v22 = vld [vmem:[%s11998_s10 + $0x50] ss:$8 sps:$4 sm:$0xff]  }
 0x8e4   : > { %10714 = vpow2.f32 %v4309_v33  ;;  %9650 = vmatprep.mubr.bf16.mxu1 %v4441_v28  ;;  %5025 = vmatpush1.bf16.msra.mxu1 %v10275_v36  ;;  %v10287_v28 = vld [vmem:[%s11998_s10 + $0x70] ss:$8 sps:$4 sm:$0xff]  }
 0x8e5   : > { %10716 = vrcp.f32 %v4330_v18  ;;  %v4332_v1 = vpop.xlane.xlu0 %4331  ;;  %v4442_v11 = vpack.c.bf16 %v4414_v43, %v4413_v13  ;;  %5026 = vmatprep.subr.bf16.mxu1 %v10280_v8 }
 0x8e6   : > { %10718 = vrcp.f32 %v4332_v1 }
 0x8e7   : > { %9651 = vmatmul.mubr.bf16.gmra.mrb[132].mxu1 %v4442_v11  ;;  %v4334_v51 = vpop.xlane.xlu1 %4333 }
 0x8e8   : > { %v14482_v15 = vpop.eup %10706  ;;  %10720 = vrcp.f32 %v4334_v51  ;;  %5027 = vmatpush1.bf16.msra.mxu1 %v10278_v4 }
 0x8e9   : > { %4367 = vadd.xlane.f32.xlu0 %v14482_v15  ;;  %v4336_v50 = vpop.xlane.xlu0 %4335  ;;  %5028 = vmatprep.subr.bf16.mxu1 %v10283_v58 }
 0x8ea   : > { %v14487_v62 = vpop.eup %10708  ;;  %10722 = vrcp.f32 %v4336_v50 }
 0x8eb   : > { %4369 = vadd.xlane.f32.xlu1 %v14487_v62  ;;  %v4338_v59 = vpop.xlane.xlu1 %4337 }
 0x8ec   : > { %v14490_v10 = vpop.eup %10710  ;;  %10724 = vrcp.f32 %v4338_v59  ;;  %5029 = vmatpush1.bf16.msra.mxu1 %v10281_v22  ;;  %v17644_v59 = vmov 0  }
 0x8ed   : > { %v10713_v49 = vpop.eup %10712  ;;  %4371 = vadd.xlane.f32.xlu0 %v14490_v10  ;;  %v4340_v42 = vpop.xlane.xlu0 %4339  ;;  %5030 = vmatprep.subr.bf16.mxu1 %v10286_v47 }
 0x8ee   : > { %v14495_v24 = vpop.eup %10714  ;;  %10726 = vrcp.f32 %v4340_v42  ;;  %v4415_v41 = vmul.f32 %v10713_v49, %v14387_v7  ;;  %v18115_v42 = vld [vmem:[#allocation119_spill] sm:$0xff] }
 0x8ef   : > { %v10717_v36 = vpop.eup %10716  ;;  %4373 = vadd.xlane.f32.xlu1 %v14495_v24  ;;  %v4342_v46 = vpop.xlane.xlu1 %4341 }
 0x8f0   : > { %v10719_v8 = vpop.eup %10718  ;;  %10728 = vrcp.f32 %v4342_v46  ;;  %v4416_v33 = vmul.f32 %v10717_v36, %v14390_v12  ;;  %5031 = vmatpush1.bf16.msra.mxu1 %v10284_v56  ;;  %v18106_v56 = vpack.c.bf16 %v14157_v16, %v14150_v34  ;;  %v18109_v34 = vpack.c.bf16 %v14171_v38, %v14167_v30 }
 0x8f1   : > { %5032 = vmatprep.subr.bf16.mxu1 %v10289_v21  ;;  %v4417_v43 = vmul.f32 %v10719_v8, %v14393_v3  ;;  %v18110_v16 = vpack.c.bf16 %v14187_v53, %v14181_v63  ;;  %v18114_v63 = vpack.c.bf16 %v14213_v6, %v14205_v19  ;;  %v18116_v21 = vld [vmem:[#allocation118_spill] sm:$0xff]  ;;  %v10290_v8 = vld [vmem:[%s11998_s10 + $0x80] ss:$8 sps:$4 sm:$0xff]  }
 0x8f2   : > { %v10721_v18 = vpop.eup %10720  ;;  %v4443_v13 = vpack.c.bf16 %v4416_v33, %v4415_v41  ;;  %v18117_v19 = vpack.c.bf16 %v18115_v42, %v18116_v21  ;;  %v10295_v33 = vld [vmem:[%s11998_s10 + $0x94] ss:$8 sps:$4 sm:$0xff]  }
 0x8f3   : > { %v4418_v4 = vmul.f32 %v10721_v18, %v14396_v25  ;;  %v10293_v18 = vld [vmem:[%s11998_s10 + $0x90] ss:$8 sps:$4 sm:$0xff]  }
 0x8f4   : > { %v10723_v1 = vpop.eup %10722  ;;  %9654 = vmatprep.mubr.bf16.mxu1 %v4443_v13  ;;  %5033 = vmatpush1.bf16.msra.mxu1 %v10287_v28  ;;  %v18118_v13 = vld [vmem:[#allocation78_spill] sm:$0xff] }
 0x8f5   : > { %v4444_v11 = vpack.c.bf16 %v4418_v4, %v4417_v43  ;;  %v4419_v7 = vmul.f32 %v10723_v1, %v14399_v52  ;;  %v10292_v52 = vld [vmem:[%s11998_s10 + $0x84] ss:$8 sps:$4 sm:$0xff]  }
 0x8f6   : > { %v10725_v58 = vpop.eup %10724  ;;  %4745 = vmatprep.subr.bf16.mxu0 %v10292_v52  ;;  %v18119_v43 = vld [vmem:[#allocation72_spill] sm:$0xff] }
 0x8f7   : > { %9655 = vmatmul.mubr.bf16.gmra.mrb[136].mxu1 %v4444_v11  ;;  %v4420_v12 = vmul.f32 %v10725_v58, %v14402_v54  ;;  %v18107_v54 = vpack.c.bf16 %v14153_v14, %v14147_v55  ;;  %v18111_v55 = vpack.c.bf16 %v14183_v32, %v14179_v37  ;;  %v18112_v14 = vpack.c.bf16 %v14199_v9, %v14193_v23  ;;  %v10304_v52 = vld [vmem:[%s11998_s10 + $0xc4] ss:$8 sps:$4 sm:$0xff]  }
 0x8f8   : > { %v10727_v51 = vpop.eup %10726  ;;  %v18120_v4 = vpack.c.bf16 %v18118_v13, %v18119_v43 }
 0x8f9   : > { %v4445_v22 = vpack.c.bf16 %v4420_v12, %v4419_v7  ;;  %v4421_v47 = vmul.f32 %v10727_v51, %v14405_v31  ;;  %v18108_v31 = vpack.c.bf16 %v14175_v5, %v14169_v20  ;;  %v18113_v20 = vpack.c.bf16 %v14195_v0, %v14191_v44  ;;  %v10296_v7 = vld [vmem:[%s11998_s10 + $0xa0] ss:$8 sps:$4 sm:$0xff]   ;;  %v10301_v51 = vld [vmem:[%s11998_s10 + $0xb4] ss:$8 sps:$4 sm:$0xff]  }
 0x8fa   : > { %v10729_v50 = vpop.eup %10728 }
 0x8fb   : > { %9658 = vmatprep.mubr.bf16.mxu1 %v4445_v22  ;;  %v4422_v3 = vmul.f32 %v10729_v50, %v14408_v60 }
 0x8fd   : > { %v4446_v25 = vpack.c.bf16 %v4422_v3, %v4421_v47  ;;  %v18121_v3 = vld [vmem:[#allocation75_spill] sm:$0xff] }
 0x8ff   : > { %9659 = vmatmul.mubr.bf16.gmra.mrb[140].mxu1 %v4446_v25 }
 0x900   : > { %5050 = vmatprep.mubr.bf16.mxu1 %v17644_v59 }
 0x907   : > { %5051 = vmatmul.mubr.bf16.vlgmr.msra.gmra.mrb[144].mxu1 %v18106_v56 }
 0x908   : > { %5060 = vmatprep.mubr.bf16.mxu1 %v17644_v59 }
 0x90f   : > { %5061 = vmatmul.mubr.bf16.gmra.mrb[148].mxu1 %v18107_v54  ;;  %v10302_v54 = vld [vmem:[%s11998_s10 + $0xc0] ss:$8 sps:$4 sm:$0xff]  }
 0x910   : > { %5070 = vmatprep.mubr.bf16.mxu1 %v17644_v59 }
 0x917   : > { %5071 = vmatmul.mubr.bf16.gmra.mrb[152].mxu1 %v18108_v31  ;;  %v10305_v31 = vld [vmem:[%s11998_s10 + $0xd0] ss:$8 sps:$4 sm:$0xff]  }
 0x918   : > { %5080 = vmatprep.mubr.bf16.mxu1 %v17644_v59 }
 0x91f   : > { %5081 = vmatmul.mubr.bf16.gmra.mrb[156].mxu1 %v18109_v34  ;;  %v18124_v34 = vld [vmem:[#allocation90_spill] sm:$0xff] }
 0x920   : > { %5090 = vmatprep.mubr.bf16.mxu1 %v17644_v59 }
 0x927   : > { %5091 = vmatmul.mubr.bf16.gmra.mrb[160].mxu1 %v18110_v16  ;;  %v18125_v16 = vld [vmem:[#allocation84_spill] sm:$0xff] }
 0x928   : > { %5100 = vmatprep.mubr.bf16.mxu1 %v17644_v59 }
 0x92f   : > { %5101 = vmatmul.mubr.bf16.gmra.mrb[164].mxu1 %v18111_v55  ;;  %v18126_v55 = vpack.c.bf16 %v18124_v34, %v18125_v16 }
 0x930   : > { %5110 = vmatprep.mubr.bf16.mxu1 %v17644_v59 }
 0x937   : > { %5111 = vmatmul.mubr.bf16.gmra.mrb[168].mxu1 %v18112_v14  ;;  %v10310_v14 = vld [vmem:[%s11998_s10 + $0xe4] ss:$8 sps:$4 sm:$0xff]  }
 0x938   : > { %5120 = vmatprep.mubr.bf16.mxu1 %v17644_v59 }
 0x93f   : > { %v4344_v30 = vpop.xlane.xlu0 %4343  ;;  %5121 = vmatmul.mubr.bf16.gmra.mrb[172].mxu1 %v18113_v20 }
 0x940   : > { %10730 = vrcp.f32 %v4344_v30  ;;  %5130 = vmatprep.mubr.bf16.mxu1 %v17644_v59 }
 0x941   : > { %v4346_v38 = vpop.xlane.xlu1 %4345 }
 0x942   : > { %10732 = vrcp.f32 %v4346_v38  ;;  %v10308_v38 = vld [vmem:[%s11998_s10 + $0xe0] ss:$8 sps:$4 sm:$0xff]  }
 0x943   : > { %v4348_v5 = vpop.xlane.xlu0 %4347 }
 0x944   : > { %10734 = vrcp.f32 %v4348_v5  ;;  %v10313_v5 = vld [vmem:[%s11998_s10 + $0xf4] ss:$8 sps:$4 sm:$0xff]  }
 0x945   : > { %v4350_v37 = vpop.xlane.xlu1 %4349 }
 0x946   : > { %10736 = vrcp.f32 %v4350_v37 }
 0x947   : > { %5131 = vmatmul.mubr.bf16.gmra.mrb[176].mxu1 %v18114_v63  ;;  %v10311_v63 = vld [vmem:[%s11998_s10 + $0xf0] ss:$8 sps:$4 sm:$0xff]  }
 0x948   : > { %5140 = vmatprep.mubr.bf16.mxu1 %v17644_v59 }
 0x94a   : > { %v10731_v32 = vpop.eup %10730 }
 0x94b   : > { %v4352_v53 = vpop.xlane.xlu0 %4351  ;;  %v4423_v0 = vmul.f32 %v10731_v32, %v14418_v17  ;;  %v18127_v32 = vld [vmem:[#allocation87_spill] sm:$0xff] }
 0x94c   : > { %v10733_v23 = vpop.eup %10732  ;;  %10738 = vrcp.f32 %v4352_v53  ;;  %v18128_v53 = vld [vmem:[#allocation81_spill] sm:$0xff] }
 0x94d   : > { %v4354_v44 = vpop.xlane.xlu1 %4353  ;;  %v4424_v9 = vmul.f32 %v10733_v23, %v14423_v57  ;;  %v18129_v23 = vpack.c.bf16 %v18127_v32, %v18128_v53 }
 0x94e   : > { %v10735_v60 = vpop.eup %10734  ;;  %10740 = vrcp.f32 %v4354_v44 }
 0x94f   : > { %v4356_v49 = vpop.xlane.xlu0 %4355  ;;  %5141 = vmatmul.mubr.bf16.gmra.mrb[180].mxu1 %v18117_v19  ;;  %v4447_v6 = vpack.c.bf16 %v4424_v9, %v4423_v0  ;;  %v4425_v46 = vmul.f32 %v10735_v60, %v14426_v2  ;;  %v10298_v2 = vld [vmem:[%s11998_s10 + $0xa4] ss:$8 sps:$4 sm:$0xff]  }
 0x950   : > { %v10737_v36 = vpop.eup %10736  ;;  %10742 = vrcp.f32 %v4356_v49  ;;  %5150 = vmatprep.mubr.bf16.mxu1 %v17644_v59 }
 0x951   : > { %v4426_v17 = vmul.f32 %v10737_v36, %v14429_v26  ;;  %9678 = vmatprep.mubr.bf16.mxu0 %v4447_v6  ;;  %v4358_v57 = vpop.xlane.xlu1 %4357  ;;  %v18130_v6 = vld [vmem:[#allocation124_spill] sm:$0xff]  ;;  %v18131_v36 = vld [vmem:[#allocation70_spill] sm:$0xff] }
 0x952   : > { %10744 = vrcp.f32 %v4358_v57 }
 0x953   : > { %v4448_v41 = vpack.c.bf16 %v4426_v17, %v4425_v46  ;;  %v18132_v46 = vpack.c.bf16 %v18130_v6, %v18131_v36 }
 0x955   : > { %9679 = vmatmul.mubr.bf16.vlgmr.msra.gmra.mrb[160].mxu0 %v4448_v41 }
 0x956   : > { %v10739_v28 = vpop.eup %10738  ;;  %4746 = vmatpush1.bf16.msra.mxu0 %v10290_v8 }
 0x957   : > { %5151 = vmatmul.mubr.bf16.gmra.mrb[184].mxu1 %v18120_v4  ;;  %4747 = vmatprep.subr.bf16.mxu0 %v10295_v33  ;;  %v4427_v1 = vmul.f32 %v10739_v28, %v14432_v35  ;;  %v10299_v35 = vld [vmem:[%s11998_s10 + $0xb0] ss:$8 sps:$4 sm:$0xff]   ;;  %v18134_v28 = vld [vmem:[#allocation71_spill] sm:$0xff] }
 0x958   : > { %v10741_v26 = vpop.eup %10740  ;;  %5160 = vmatprep.mubr.bf16.mxu1 %v17644_v59  ;;  %v18133_v33 = vld [vmem:[#allocation93_spill] sm:$0xff] }
 0x959   : > { %v4428_v11 = vmul.f32 %v10741_v26, %v14435_v48  ;;  %v18122_v48 = vld [vmem:[#allocation123_spill] sm:$0xff] }
 0x95a   : > { %v10743_v58 = vpop.eup %10742  ;;  %4748 = vmatpush1.bf16.msra.mxu0 %v10293_v18  ;;  %v18123_v25 = vpack.c.bf16 %v18121_v3, %v18122_v48  ;;  %v18135_v18 = vpack.c.bf16 %v18133_v33, %v18134_v28 }
 0x95b   : > { %v4449_v12 = vpack.c.bf16 %v4428_v11, %v4427_v1  ;;  %4749 = vmatprep.subr.bf16.mxu0 %v10298_v2  ;;  %v4429_v50 = vmul.f32 %v10743_v58, %v14438_v45  ;;  %v10307_v45 = vld [vmem:[%s11998_s10 + $0xd4] ss:$8 sps:$4 sm:$0xff]  }
 0x95c   : > { %v10745_v22 = vpop.eup %10744 }
 0x95d   : > { %9682 = vmatprep.mubr.bf16.mxu0 %v4449_v12  ;;  %v4430_v47 = vmul.f32 %v10745_v22, %v14441_v61 }
 0x95e   : > { %4750 = vmatpush1.bf16.msra.mxu0 %v10296_v7 }
 0x95f   : > { %5161 = vmatmul.mubr.bf16.gmra.mrb[188].mxu1 %v18123_v25  ;;  %v4450_v56 = vpack.c.bf16 %v4430_v47, %v4429_v50  ;;  %4751 = vmatprep.subr.bf16.mxu0 %v10301_v51 }
 0x960   : > { %5170 = vmatprep.mubr.bf16.mxu1 %v17644_v59 }
 0x961   : > { %9683 = vmatmul.mubr.bf16.gmra.mrb[164].mxu0 %v4450_v56 }
 0x962   : > { %4752 = vmatpush1.bf16.msra.mxu0 %v10299_v35 }
 0x963   : > { %4753 = vmatprep.subr.bf16.mxu0 %v10304_v52 }
 0x966   : > { %v4360_v61 = vpop.xlane.xlu0 %4359  ;;  %4754 = vmatpush1.bf16.msra.mxu0 %v10302_v54 }
 0x967   : > { %10746 = vrcp.f32 %v4360_v61  ;;  %5171 = vmatmul.mubr.bf16.gmra.mrb[192].mxu1 %v18126_v55  ;;  %4755 = vmatprep.subr.bf16.mxu0 %v10307_v45 }
 0x968   : > { %v4362_v30 = vpop.xlane.xlu1 %4361  ;;  %5180 = vmatprep.mubr.bf16.mxu1 %v17644_v59 }
 0x969   : > { %10748 = vrcp.f32 %v4362_v30 }
 0x96a   : > { %v4364_v20 = vpop.xlane.xlu0 %4363  ;;  %4756 = vmatpush1.bf16.msra.mxu0 %v10305_v31 }
 0x96b   : > { %10750 = vrcp.f32 %v4364_v20  ;;  %4757 = vmatprep.subr.bf16.mxu0 %v10310_v14 }
 0x96c   : > { %v4366_v37 = vpop.xlane.xlu1 %4365 }
 0x96d   : > { %10752 = vrcp.f32 %v4366_v37 }
 0x96e   : > { %4758 = vmatpush1.bf16.msra.mxu0 %v10308_v38 }
 0x96f   : > { %5181 = vmatmul.mubr.bf16.gmra.mrb[196].mxu1 %v18129_v23  ;;  %4759 = vmatprep.subr.bf16.mxu0 %v10313_v5 }
 0x970   : > { %5190 = vmatprep.mubr.bf16.mxu1 %v17644_v59 }
 0x971   : > { %v10747_v44 = vpop.eup %10746 }
 0x972   : > { %4760 = vmatpush1.bf16.msra.mxu0 %v10311_v63  ;;  %v4431_v9 = vmul.f32 %v10747_v44, %v14454_v29 }
 0x973   : > { %v10749_v0 = vpop.eup %10748 }
 0x974   : > { %v4432_v60 = vmul.f32 %v10749_v0, %v14459_v39 }
 0x975   : > { %v10751_v49 = vpop.eup %10750 }
 0x976   : > { %v4368_v42 = vpop.xlane.xlu0 %4367  ;;  %v4451_v21 = vpack.c.bf16 %v4432_v60, %v4431_v9  ;;  %v4433_v57 = vmul.f32 %v10751_v49, %v14463_v27 }
 0x977   : > { %v10753_v19 = vpop.eup %10752  ;;  %10754 = vrcp.f32 %v4368_v42  ;;  %5191 = vmatmul.mubr.bf16.gmra.mrb[200].mxu1 %v18132_v46 }
 0x978   : > { %9686 = vmatprep.mubr.bf16.mxu0 %v4451_v21  ;;  %v4370_v17 = vpop.xlane.xlu1 %4369  ;;  %v4434_v8 = vmul.f32 %v10753_v19, %v14469_v40  ;;  %5200 = vmatprep.mubr.bf16.mxu1 %v17644_v59 }
 0x979   : > { %10756 = vrcp.f32 %v4370_v17 }
 0x97a   : > { %v4372_v29 = vpop.xlane.xlu0 %4371  ;;  %v4452_v39 = vpack.c.bf16 %v4434_v8, %v4433_v57 }
 0x97b   : > { %10758 = vrcp.f32 %v4372_v29 }
 0x97c   : > { %9687 = vmatmul.mubr.bf16.gmra.mrb[168].mxu0 %v4452_v39  ;;  %v4374_v41 = vpop.xlane.xlu1 %4373 }
 0x97d   : > { %10760 = vrcp.f32 %v4374_v41 }
 0x97f   : > { %5201 = vmatmul.mubr.bf16.gmra.mrb[204].mxu1 %v18135_v18 }
 0x981   : > { %v10755_v13 = vpop.eup %10754 }
 0x982   : > { %v4435_v4 = vmul.f32 %v10755_v13, %v14482_v15 }
 0x983   : > { %v10757_v43 = vpop.eup %10756 }
 0x984   : > { %v4436_v27 = vmul.f32 %v10757_v43, %v14487_v62 }
 0x985   : > { %v10759_v40 = vpop.eup %10758 }
 0x986   : > { %v4453_v2 = vpack.c.bf16 %v4436_v27, %v4435_v4  ;;  %v4437_v1 = vmul.f32 %v10759_v40, %v14490_v10 }
 0x987   : > { %v10761_v26 = vpop.eup %10760 }
 0x988   : > { %9690 = vmatprep.mubr.bf16.mxu0 %v4453_v2  ;;  %v4438_v11 = vmul.f32 %v10761_v26, %v14495_v24 }
 0x98a   : > { %v4454_v58 = vpack.c.bf16 %v4438_v11, %v4437_v1 }
 0x98c   : > { %9691 = vmatmul.mubr.bf16.gmra.mrb[172].mxu0 %v4454_v58 }
 0x98d   : > { %4777 = vmatprep.mubr.bf16.mxu0 %v17644_v59 }
 0x9aa   : > { %v9648_v7 = vpop.f32.mrb[128].mxu1 }
 0x9ab   : > { %v4489_v12 = vpop.f32.mrb[129].mxu1 }
 0x9ac   : > { %v9649_v51 = vpop.f32.mrb[130].mxu1 }
 0x9ad   : > { %v4650_v22 = vpack.c.bf16 %v9649_v51, %v9648_v7  ;;  %v4492_v50 = vpop.f32.mrb[131].mxu1 }
 0x9ae   : > { %v4649_v15 = vpack.c.bf16 %v4492_v50, %v4489_v12 }
 0x9b0   : > { %4778 = vmatmul.mubr.bf16.vlgmr.msra.gmra.mrb[176].mxu0 %v4649_v15 }
 0x9b1   : > { %4787 = vmatprep.mubr.bf16.mxu0 %v17644_v59 }
 0x9b8   : > { %4788 = vmatmul.mubr.bf16.gmra.mrb[180].mxu0 %v4650_v22 }
 0x9b9   : > { %4797 = vmatprep.mubr.bf16.mxu0 %v17644_v59 }
 0x9ba   : > { %v9652_v62 = vpop.f32.mrb[132].mxu1 }
 0x9bb   : > { %v4505_v10 = vpop.f32.mrb[133].mxu1 }
 0x9bc   : > { %v9653_v47 = vpop.f32.mrb[134].mxu1 }
 0x9bd   : > { %v4652_v24 = vpack.c.bf16 %v9653_v47, %v9652_v62  ;;  %v4508_v35 = vpop.f32.mrb[135].mxu1 }
 0x9be   : > { %v4651_v3 = vpack.c.bf16 %v4508_v35, %v4505_v10 }
 0x9c0   : > { %4798 = vmatmul.mubr.bf16.gmra.mrb[184].mxu0 %v4651_v3 }
 0x9c1   : > { %4807 = vmatprep.mubr.bf16.mxu0 %v17644_v59 }
 0x9c8   : > { %4808 = vmatmul.mubr.bf16.gmra.mrb[188].mxu0 %v4652_v24 }
 0x9c9   : > { %4817 = vmatprep.mubr.bf16.mxu0 %v17644_v59 }
 0x9ca   : > { %v9656_v48 = vpop.f32.mrb[136].mxu1 }
 0x9cb   : > { %v4521_v25 = vpop.f32.mrb[137].mxu1 }
 0x9cc   : > { %v9657_v56 = vpop.f32.mrb[138].mxu1 }
 0x9cd   : > { %v4654_v52 = vpack.c.bf16 %v9657_v56, %v9656_v48  ;;  %v4524_v54 = vpop.f32.mrb[139].mxu1 }
 0x9ce   : > { %v4653_v45 = vpack.c.bf16 %v4524_v54, %v4521_v25 }
 0x9d0   : > { %4818 = vmatmul.mubr.bf16.gmra.mrb[192].mxu0 %v4653_v45 }
 0x9d1   : > { %4827 = vmatprep.mubr.bf16.mxu0 %v17644_v59 }
 0x9d2   : > { %v9660_v61 = vpop.f32.mrb[140].mxu1 }
 0x9d3   : > { %v4537_v31 = vpop.f32.mrb[141].mxu1 }
 0x9d4   : > { %v9661_v34 = vpop.f32.mrb[142].mxu1 }
 0x9d5   : > { %v4656_v16 = vpack.c.bf16 %v9661_v34, %v9660_v61  ;;  %v4540_v55 = vpop.f32.mrb[143].mxu1 }
 0x9d6   : > { %v4655_v14 = vpack.c.bf16 %v4540_v55, %v4537_v31 }
 0x9d8   : > { %4828 = vmatmul.mubr.bf16.gmra.mrb[196].mxu0 %v4654_v52 }
 0x9d9   : > { %4837 = vmatprep.mubr.bf16.mxu0 %v17644_v59 }
 0x9da   : > { %v14610_v30 = vpop.f32.mrb[144].mxu1 }
 0x9db   : > { %v14612_v20 = vpop.f32.mrb[145].mxu1 }
 0x9dc   : > { %v14614_v38 = vpop.f32.mrb[146].mxu1 }
 0x9dd   : > { %v14616_v5 = vpop.f32.mrb[147].mxu1 }
 0x9e0   : > { %4838 = vmatmul.mubr.bf16.gmra.mrb[200].mxu0 %v4655_v14 }
 0x9e1   : > { %4847 = vmatprep.mubr.bf16.mxu0 %v17644_v59 }
 0x9e2   : > { %v14619_v37 = vpop.f32.mrb[148].mxu1 }
 0x9e3   : > { %v14621_v63 = vpop.f32.mrb[149].mxu1 }
 0x9e4   : > { %v14623_v32 = vpop.f32.mrb[150].mxu1 }
 0x9e5   : > { %v14625_v53 = vpop.f32.mrb[151].mxu1 }
 0x9e8   : > { %4848 = vmatmul.mubr.bf16.gmra.mrb[204].mxu0 %v4656_v16 }
 0x9e9   : > { %4857 = vmatprep.mubr.bf16.mxu0 %v17644_v59 }
 0x9ea   : > { %v14628_v23 = vpop.f32.mrb[152].mxu1 }
 0x9eb   : > { %v14630_v44 = vpop.f32.mrb[153].mxu1 }
 0x9ec   : > { %v14632_v0 = vpop.f32.mrb[154].mxu1 }
 0x9ed   : > { %v14634_v9 = vpop.f32.mrb[155].mxu1 }
 0x9f2   : > { %v14636_v60 = vpop.f32.mrb[156].mxu1 }
 0x9f3   : > { %v14638_v49 = vpop.f32.mrb[157].mxu1 }
 0x9f4   : > { %v14640_v42 = vpop.f32.mrb[158].mxu1 }
 0x9f5   : > { %v14642_v21 = vpop.f32.mrb[159].mxu1 }
 0x9fa   : > { %v14644_v19 = vpop.f32.mrb[160].mxu1 }
 0x9fb   : > { %v14646_v6 = vpop.f32.mrb[161].mxu1 }
 0x9fc   : > { %v14648_v36 = vpop.f32.mrb[162].mxu1 }
 0x9fd   : > { %v14650_v46 = vpop.f32.mrb[163].mxu1 }
 0xa02   : > { %v14652_v17 = vpop.f32.mrb[164].mxu1 }
 0xa03   : > { %v14654_v57 = vpop.f32.mrb[165].mxu1 }
 0xa04   : > { %v14656_v8 = vpop.f32.mrb[166].mxu1 }
 0xa05   : > { %v14658_v29 = vpop.f32.mrb[167].mxu1 }
 0xa0a   : > { %v14660_v39 = vpop.f32.mrb[168].mxu1 }
 0xa0b   : > { %v14662_v41 = vpop.f32.mrb[169].mxu1 }
 0xa0c   : > { %v14664_v33 = vpop.f32.mrb[170].mxu1 }
 0xa0d   : > { %v14666_v28 = vpop.f32.mrb[171].mxu1 }
 0xa12   : > { %v14668_v18 = vpop.f32.mrb[172].mxu1 }
 0xa13   : > { %v14670_v13 = vpop.f32.mrb[173].mxu1 }
 0xa14   : > { %v14672_v43 = vpop.f32.mrb[174].mxu1 }
 0xa15   : > { %v14674_v4 = vpop.f32.mrb[175].mxu1 }
 0xa1a   : > { %v14676_v27 = vpop.f32.mrb[176].mxu1 }
 0xa1b   : > { %v14678_v40 = vpop.f32.mrb[177].mxu1 }
 0xa1c   : > { %v14680_v2 = vpop.f32.mrb[178].mxu1 }
 0xa1d   : > { %v14682_v26 = vpop.f32.mrb[179].mxu1 }
 0xa22   : > { %v14684_v1 = vpop.f32.mrb[180].mxu1 }
 0xa23   : > { %v14686_v11 = vpop.f32.mrb[181].mxu1 }
 0xa24   : > { %v14688_v58 = vpop.f32.mrb[182].mxu1 }
 0xa25   : > { %v14690_v7 = vpop.f32.mrb[183].mxu1 }
 0xa28   : > { %v9680_v12 = vpop.f32.mrb[160].mxu0 }
 0xa29   : > { %v4586_v51 = vpop.f32.mrb[161].mxu0 }
 0xa2a   : > { %v9681_v22 = vpop.f32.mrb[162].mxu0  ;;  %v14692_v50 = vpop.f32.mrb[184].mxu1 }
 0xa2b   : > { %v4658_v15 = vpack.c.bf16 %v9681_v22, %v9680_v12  ;;  %v4589_v62 = vpop.f32.mrb[163].mxu0  ;;  %v14694_v10 = vpop.f32.mrb[185].mxu1 }
 0xa2c   : > { %v4657_v47 = vpack.c.bf16 %v4589_v62, %v4586_v51  ;;  %v14696_v24 = vpop.f32.mrb[186].mxu1 }
 0xa2d   : > { %v14698_v35 = vpop.f32.mrb[187].mxu1 }
 0xa2e   : > { %4858 = vmatmul.mubr.bf16.gmra.mrb[208].mxu0 %v4657_v47 }
 0xa2f   : > { %4867 = vmatprep.mubr.bf16.mxu0 %v17644_v59 }
 0xa32   : > { %v14701_v3 = vpop.f32.mrb[188].mxu1 }
 0xa33   : > { %v14703_v48 = vpop.f32.mrb[189].mxu1 }
 0xa34   : > { %v9684_v25 = vpop.f32.mrb[164].mxu0  ;;  %v14705_v56 = vpop.f32.mrb[190].mxu1 }
 0xa35   : > { %v4602_v52 = vpop.f32.mrb[165].mxu0  ;;  %v14707_v54 = vpop.f32.mrb[191].mxu1 }
 0xa36   : > { %v9685_v45 = vpop.f32.mrb[166].mxu0  ;;  %4868 = vmatmul.mubr.bf16.gmra.mrb[212].mxu0 %v4658_v15 }
 0xa37   : > { %v4660_v61 = vpack.c.bf16 %v9685_v45, %v9684_v25  ;;  %v4605_v31 = vpop.f32.mrb[167].mxu0  ;;  %4877 = vmatprep.mubr.bf16.mxu0 %v17644_v59 }
 0xa38   : > { %v4659_v34 = vpack.c.bf16 %v4605_v31, %v4602_v52 }
 0xa3a   : > { %v14710_v16 = vpop.f32.mrb[192].mxu1 }
 0xa3b   : > { %18136 = vst [vmem:[#allocation96_spill] sm:$0xff] %v14710_v16  ;;  %v14712_v55 = vpop.f32.mrb[193].mxu1 }
 0xa3c   : > { %18137 = vst [vmem:[#allocation99_spill] sm:$0xff] %v14712_v55  ;;  %v14714_v14 = vpop.f32.mrb[194].mxu1  ;;  %v10890_v55 = vld [vmem:[#allocation2] sm:$0xff] }
 0xa3d   : > { %18138 = vst [vmem:[#allocation74_spill] sm:$0xff] %v14714_v14  ;;  %v14716_v12 = vpop.f32.mrb[195].mxu1 }
 0xa3e   : > { %18139 = vst [vmem:[#allocation73_spill] sm:$0xff] %v14716_v12  ;;  %4878 = vmatmul.mubr.bf16.gmra.mrb[216].mxu0 %v4659_v34 }
 0xa3f   : > { %4887 = vmatprep.mubr.bf16.mxu0 %v17644_v59 }
 0xa42   : > { %v14719_v51 = vpop.f32.mrb[196].mxu1 }
 0xa43   : > { %18140 = vst [vmem:[#allocation77_spill] sm:$0xff] %v14719_v51  ;;  %v14721_v22 = vpop.f32.mrb[197].mxu1 }
 0xa44   : > { %18141 = vst [vmem:[#allocation76_spill] sm:$0xff] %v14721_v22  ;;  %v14723_v15 = vpop.f32.mrb[198].mxu1 }
 0xa45   : > { %18142 = vst [vmem:[#allocation100_spill] sm:$0xff] %v14723_v15  ;;  %v14725_v62 = vpop.f32.mrb[199].mxu1 }
 0xa46   : > { %18143 = vst [vmem:[#allocation80_spill] sm:$0xff] %v14725_v62  ;;  %4888 = vmatmul.mubr.bf16.gmra.mrb[220].mxu0 %v4660_v61 }
 0xa47   : > { %4897 = vmatprep.mubr.bf16.mxu0 %v17644_v59 }
 0xa4a   : > { %v14728_v47 = vpop.f32.mrb[200].mxu1 }
 0xa4b   : > { %18144 = vst [vmem:[#allocation79_spill] sm:$0xff] %v14728_v47  ;;  %v14730_v25 = vpop.f32.mrb[201].mxu1 }
 0xa4c   : > { %18145 = vst [vmem:[#allocation83_spill] sm:$0xff] %v14730_v25  ;;  %v14732_v52 = vpop.f32.mrb[202].mxu1  ;;  %v18152_v25 = vmov 0  }
 0xa4d   : > { %18146 = vst [vmem:[#allocation82_spill] sm:$0xff] %v14732_v52  ;;  %v14734_v45 = vpop.f32.mrb[203].mxu1 }
 0xa4e   : > { %18147 = vst [vmem:[#allocation103_spill] sm:$0xff] %v14734_v45 }
 0xa4f   : > { %v9688_v31 = vpop.f32.mrb[168].mxu0 }
 0xa50   : > { %v4618_v34 = vpop.f32.mrb[169].mxu0 }
 0xa51   : > { %v9689_v51 = vpop.f32.mrb[170].mxu0 }
 0xa52   : > { %v4662_v12 = vpack.c.bf16 %v9689_v51, %v9688_v31  ;;  %v4621_v22 = vpop.f32.mrb[171].mxu0  ;;  %v14736_v14 = vpop.f32.mrb[204].mxu1 }
 0xa53   : > { %18148 = vst [vmem:[#allocation86_spill] sm:$0xff] %v14736_v14  ;;  %v4661_v15 = vpack.c.bf16 %v4621_v22, %v4618_v34  ;;  %v14738_v62 = vpop.f32.mrb[205].mxu1  ;;  %v5211_v22 = vld [vmem:[%s18154_s19] sm:$0x3] }
 0xa54   : > { %18149 = vst [vmem:[#allocation85_spill] sm:$0xff] %v14738_v62  ;;  %v14740_v61 = vpop.f32.mrb[206].mxu1 }
 0xa55   : > { %18150 = vst [vmem:[#allocation89_spill] sm:$0xff] %v14740_v61  ;;  %4898 = vmatmul.mubr.bf16.gmra.mrb[224].mxu0 %v4661_v15  ;;  %v14742_v59 = vpop.f32.mrb[207].mxu1  ;;  %v18155_v15 = vld [vmem:[#allocation68_spill] sm:$0xff] }
 0xa56   : > { %18151 = vst [vmem:[#allocation88_spill] sm:$0xff] %v14742_v59  ;;  %4907 = vmatprep.mubr.bf16.mxu0 %v18152_v25  ;;  %v14753_v34 = vrot.slane %v5211_v22, %v18155_v15  ;;  %v18156_v59 = vld [vmem:[#allocation69_spill] sm:$0xff] }
 0xa57   : > { %v14756_v61 = vrot.slane %v5211_v22, %v18156_v59  ;;  %v10891_v59 = vld [vmem:[#allocation2 + $0x8] sm:$0xff] }
 0xa5d   : > { %4908 = vmatmul.mubr.bf16.gmra.mrb[228].mxu0 %v4662_v12 }
 0xa5e   : > { %4917 = vmatprep.mubr.bf16.mxu0 %v18152_v25 }
 0xa5f   : > { %v9692_v45 = vpop.f32.mrb[172].mxu0 }
 0xa60   : > { %v4634_v52 = vpop.f32.mrb[173].mxu0 }
 0xa61   : > { %v9693_v51 = vpop.f32.mrb[174].mxu0 }
 0xa62   : > { %v4664_v31 = vpack.c.bf16 %v9693_v51, %v9692_v45  ;;  %v4637_v47 = vpop.f32.mrb[175].mxu0 }
 0xa63   : > { %v4663_v14 = vpack.c.bf16 %v4637_v47, %v4634_v52 }
 0xa65   : > { %4918 = vmatmul.mubr.bf16.gmra.mrb[232].mxu0 %v4663_v14 }
 0xa66   : > { %4927 = vmatprep.mubr.bf16.mxu0 %v18152_v25 }
 0xa6d   : > { %4928 = vmatmul.mubr.bf16.gmra.mrb[236].mxu0 %v4664_v31 }
 0xa83   : > { %v4779_v12 = vpop.f32.mrb[176].mxu0 }
 0xa84   : > { %v5053_v45 = vadd.f32 %v14610_v30, %v4779_v12  ;;  %v4781_v51 = vpop.f32.mrb[177].mxu0  ;;  %v10892_v12 = vld [vmem:[#allocation2 + $0x10] sm:$0xff] }
 0xa85   : > { %v5055_v14 = vadd.f32 %v14612_v20, %v4781_v51  ;;  %v4783_v47 = vpop.f32.mrb[178].mxu0 }
 0xa86   : > { %v5223_v25 = vadd.f32 %v14753_v34, %v5053_v45  ;;  %v5057_v52 = vadd.f32 %v14614_v38, %v4783_v47  ;;  %v4785_v31 = vpop.f32.mrb[179].mxu0  ;;  %v10893_v45 = vld [vmem:[#allocation2 + $0x18] sm:$0xff] }
 0xa87   : > { %v5224_v62 = vadd.f32 %v14756_v61, %v5055_v14  ;;  %v5059_v15 = vadd.f32 %v14616_v5, %v4785_v31 }
 0xa88   : > { %v14764_v16 = vadd.f32 %v10890_v55, %v5223_v25  ;;  %v5225_v22 = vadd.f32 %v14753_v34, %v5057_v52 }
 0xa89   : > { %v14767_v30 = vadd.f32 %v10891_v59, %v5224_v62  ;;  %v5226_v20 = vadd.f32 %v14756_v61, %v5059_v15 }
 0xa8a   : > { %v14770_v51 = vadd.f32 %v10892_v12, %v5225_v22  ;;  %v10894_v12 = vld [vmem:[#allocation2 + $0x20] sm:$0xff] }
 0xa8b   : > { %v14772_v38 = vadd.f32 %v10893_v45, %v5226_v20  ;;  %v4789_v47 = vpop.f32.mrb[180].mxu0  ;;  %v5353_v5 = vadd.f32 %v14767_v30, %v14764_v16  ;;  %v10895_v45 = vld [vmem:[#allocation2 + $0x28] sm:$0xff] }
 0xa8c   : > { %v5063_v55 = vadd.f32 %v14619_v37, %v4789_v47  ;;  %v4791_v14 = vpop.f32.mrb[181].mxu0 }
 0xa8d   : > { %v5065_v25 = vadd.f32 %v14621_v63, %v4791_v14  ;;  %5354 = vadd.xlane.f32.xlu0 %v5353_v5  ;;  %v4793_v59 = vpop.f32.mrb[182].mxu0  ;;  %v5356_v62 = vadd.f32 %v14772_v38, %v14770_v51  ;;  %v10896_v14 = vld [vmem:[#allocation2 + $0x30] sm:$0xff] }
 0xa8e   : > { %v5227_v15 = vadd.f32 %v14753_v34, %v5063_v55  ;;  %v5067_v52 = vadd.f32 %v14623_v32, %v4793_v59  ;;  %v4795_v31 = vpop.f32.mrb[183].mxu0  ;;  %v10897_v32 = vld [vmem:[#allocation2 + $0x38] sm:$0xff] }
 0xa8f   : > { %v5228_v22 = vadd.f32 %v14756_v61, %v5065_v25  ;;  %v5069_v20 = vadd.f32 %v14625_v53, %v4795_v31  ;;  %5357 = vadd.xlane.f32.xlu1 %v5356_v62 }
 0xa90   : > { %v14784_v37 = vadd.f32 %v10894_v12, %v5227_v15  ;;  %v5229_v63 = vadd.f32 %v14753_v34, %v5067_v52 }
 0xa91   : > { %v14787_v47 = vadd.f32 %v10895_v45, %v5228_v22  ;;  %v5230_v5 = vadd.f32 %v14756_v61, %v5069_v20 }
 0xa92   : > { %v14790_v55 = vadd.f32 %v10896_v14, %v5229_v63  ;;  %v10898_v14 = vld [vmem:[#allocation2 + $0x40] sm:$0xff] }
 0xa93   : > { %v14792_v59 = vadd.f32 %v10897_v32, %v5230_v5  ;;  %v4799_v25 = vpop.f32.mrb[184].mxu0  ;;  %v5359_v53 = vadd.f32 %v14787_v47, %v14784_v37  ;;  %v10899_v32 = vld [vmem:[#allocation2 + $0x48] sm:$0xff] }
 0xa94   : > { %v5073_v62 = vadd.f32 %v14628_v23, %v4799_v25  ;;  %v4801_v15 = vpop.f32.mrb[185].mxu0 }
 0xa95   : > { %v5075_v52 = vadd.f32 %v14630_v44, %v4801_v15  ;;  %5360 = vadd.xlane.f32.xlu0 %v5359_v53  ;;  %v4803_v31 = vpop.f32.mrb[186].mxu0  ;;  %v5362_v22 = vadd.f32 %v14792_v59, %v14790_v55  ;;  %v10900_v15 = vld [vmem:[#allocation2 + $0x50] sm:$0xff] }
 0xa96   : > { %v5231_v20 = vadd.f32 %v14753_v34, %v5073_v62  ;;  %v5077_v12 = vadd.f32 %v14632_v0, %v4803_v31  ;;  %v4805_v63 = vpop.f32.mrb[187].mxu0  ;;  %v10901_v0 = vld [vmem:[#allocation2 + $0x58] sm:$0xff] }
 0xa97   : > { %v5232_v45 = vadd.f32 %v14756_v61, %v5075_v52  ;;  %v5079_v5 = vadd.f32 %v14634_v9, %v4805_v63  ;;  %5363 = vadd.xlane.f32.xlu1 %v5362_v22 }
 0xa98   : > { %v14804_v23 = vadd.f32 %v10898_v14, %v5231_v20  ;;  %v5233_v44 = vadd.f32 %v14753_v34, %v5077_v12 }
 0xa99   : > { %v14807_v25 = vadd.f32 %v10899_v32, %v5232_v45  ;;  %v5234_v53 = vadd.f32 %v14756_v61, %v5079_v5 }
 0xa9a   : > { %v14810_v62 = vadd.f32 %v10900_v15, %v5233_v44  ;;  %v10902_v15 = vld [vmem:[#allocation2 + $0x60] sm:$0xff] }
 0xa9b   : > { %v14812_v31 = vadd.f32 %v10901_v0, %v5234_v53  ;;  %v4809_v52 = vpop.f32.mrb[188].mxu0  ;;  %v5365_v9 = vadd.f32 %v14807_v25, %v14804_v23  ;;  %v10903_v0 = vld [vmem:[#allocation2 + $0x68] sm:$0xff] }
 0xa9c   : > { %v5083_v22 = vadd.f32 %v14636_v60, %v4809_v52  ;;  %v4811_v20 = vpop.f32.mrb[189].mxu0 }
 0xa9d   : > { %v5085_v12 = vadd.f32 %v14638_v49, %v4811_v20  ;;  %5366 = vadd.xlane.f32.xlu0 %v5365_v9  ;;  %v4813_v63 = vpop.f32.mrb[190].mxu0  ;;  %v5368_v45 = vadd.f32 %v14812_v31, %v14810_v62  ;;  %v10904_v20 = vld [vmem:[#allocation2 + $0x70] sm:$0xff] }
 0xa9e   : > { %v5235_v5 = vadd.f32 %v14753_v34, %v5083_v22  ;;  %v5087_v14 = vadd.f32 %v14640_v42, %v4813_v63  ;;  %v4815_v44 = vpop.f32.mrb[191].mxu0  ;;  %v10905_v42 = vld [vmem:[#allocation2 + $0x78] sm:$0xff] }
 0xa9f   : > { %v5236_v32 = vadd.f32 %v14756_v61, %v5085_v12  ;;  %v5089_v53 = vadd.f32 %v14642_v21, %v4815_v44  ;;  %5369 = vadd.xlane.f32.xlu1 %v5368_v45 }
 0xaa0   : > { %v14824_v60 = vadd.f32 %v10902_v15, %v5235_v5  ;;  %v5237_v49 = vadd.f32 %v14753_v34, %v5087_v14 }
 0xaa1   : > { %v14827_v52 = vadd.f32 %v10903_v0, %v5236_v32  ;;  %v5238_v9 = vadd.f32 %v14756_v61, %v5089_v53 }
 0xaa2   : > { %v14830_v22 = vadd.f32 %v10904_v20, %v5237_v49  ;;  %v10906_v20 = vld [vmem:[#allocation2 + $0x80] sm:$0xff] }
 0xaa3   : > { %v14832_v63 = vadd.f32 %v10905_v42, %v5238_v9  ;;  %v4819_v12 = vpop.f32.mrb[192].mxu0  ;;  %v5371_v21 = vadd.f32 %v14827_v52, %v14824_v60  ;;  %v10907_v42 = vld [vmem:[#allocation2 + $0x88] sm:$0xff] }
 0xaa4   : > { %v5093_v45 = vadd.f32 %v14644_v19, %v4819_v12  ;;  %v4821_v5 = vpop.f32.mrb[193].mxu0 }
 0xaa5   : > { %v5095_v14 = vadd.f32 %v14646_v6, %v4821_v5  ;;  %5372 = vadd.xlane.f32.xlu0 %v5371_v21  ;;  %v4823_v44 = vpop.f32.mrb[194].mxu0  ;;  %v5374_v32 = vadd.f32 %v14832_v63, %v14830_v22  ;;  %v10908_v5 = vld [vmem:[#allocation2 + $0x90] sm:$0xff] }
 0xaa6   : > { %v5239_v53 = vadd.f32 %v14753_v34, %v5093_v45  ;;  %v5097_v15 = vadd.f32 %v14648_v36, %v4823_v44  ;;  %v4825_v49 = vpop.f32.mrb[195].mxu0  ;;  %v10909_v36 = vld [vmem:[#allocation2 + $0x98] sm:$0xff] }
 0xaa7   : > { %v5240_v0 = vadd.f32 %v14756_v61, %v5095_v14  ;;  %v5099_v9 = vadd.f32 %v14650_v46, %v4825_v49  ;;  %5375 = vadd.xlane.f32.xlu1 %v5374_v32 }
 0xaa8   : > { %v14844_v19 = vadd.f32 %v10906_v20, %v5239_v53  ;;  %v5241_v6 = vadd.f32 %v14753_v34, %v5097_v15 }
 0xaa9   : > { %v14847_v12 = vadd.f32 %v10907_v42, %v5240_v0  ;;  %v5242_v21 = vadd.f32 %v14756_v61, %v5099_v9 }
 0xaaa   : > { %v14850_v45 = vadd.f32 %v10908_v5, %v5241_v6  ;;  %v10910_v5 = vld [vmem:[#allocation2 + $0xa0] sm:$0xff] }
 0xaab   : > { %v14852_v44 = vadd.f32 %v10909_v36, %v5242_v21  ;;  %v4829_v14 = vpop.f32.mrb[196].mxu0  ;;  %v5377_v46 = vadd.f32 %v14847_v12, %v14844_v19  ;;  %v10911_v36 = vld [vmem:[#allocation2 + $0xa8] sm:$0xff] }
 0xaac   : > { %v5103_v32 = vadd.f32 %v14652_v17, %v4829_v14  ;;  %v4831_v53 = vpop.f32.mrb[197].mxu0 }
 0xaad   : > { %v5105_v15 = vadd.f32 %v14654_v57, %v4831_v53  ;;  %5378 = vadd.xlane.f32.xlu0 %v5377_v46  ;;  %v4833_v49 = vpop.f32.mrb[198].mxu0  ;;  %v5380_v0 = vadd.f32 %v14852_v44, %v14850_v45  ;;  %v10912_v53 = vld [vmem:[#allocation2 + $0xb0] sm:$0xff] }
 0xaae   : > { %v5243_v9 = vadd.f32 %v14753_v34, %v5103_v32  ;;  %v5107_v20 = vadd.f32 %v14656_v8, %v4833_v49  ;;  %v4835_v6 = vpop.f32.mrb[199].mxu0  ;;  %v10913_v8 = vld [vmem:[#allocation2 + $0xb8] sm:$0xff] }
 0xaaf   : > { %v5244_v42 = vadd.f32 %v14756_v61, %v5105_v15  ;;  %v5109_v21 = vadd.f32 %v14658_v29, %v4835_v6  ;;  %5381 = vadd.xlane.f32.xlu1 %v5380_v0 }
 0xab0   : > { %v14864_v17 = vadd.f32 %v10910_v5, %v5243_v9  ;;  %v5245_v57 = vadd.f32 %v14753_v34, %v5107_v20 }
 0xab1   : > { %v14867_v14 = vadd.f32 %v10911_v36, %v5244_v42  ;;  %v5246_v46 = vadd.f32 %v14756_v61, %v5109_v21 }
 0xab2   : > { %v14870_v32 = vadd.f32 %v10912_v53, %v5245_v57  ;;  %v10914_v53 = vld [vmem:[#allocation2 + $0xc0] sm:$0xff] }
 0xab3   : > { %v14872_v49 = vadd.f32 %v10913_v8, %v5246_v46  ;;  %v4839_v15 = vpop.f32.mrb[200].mxu0  ;;  %v5383_v29 = vadd.f32 %v14867_v14, %v14864_v17  ;;  %v10915_v8 = vld [vmem:[#allocation2 + $0xc8] sm:$0xff] }
 0xab4   : > { %v5113_v0 = vadd.f32 %v14660_v39, %v4839_v15  ;;  %v4841_v9 = vpop.f32.mrb[201].mxu0 }
 0xab5   : > { %v5115_v20 = vadd.f32 %v14662_v41, %v4841_v9  ;;  %5384 = vadd.xlane.f32.xlu0 %v5383_v29  ;;  %v4843_v6 = vpop.f32.mrb[202].mxu0  ;;  %v5386_v42 = vadd.f32 %v14872_v49, %v14870_v32  ;;  %v10916_v9 = vld [vmem:[#allocation2 + $0xd0] sm:$0xff] }
 0xab6   : > { %v5247_v21 = vadd.f32 %v14753_v34, %v5113_v0  ;;  %v5117_v5 = vadd.f32 %v14664_v33, %v4843_v6  ;;  %v4845_v57 = vpop.f32.mrb[203].mxu0  ;;  %v10917_v33 = vld [vmem:[#allocation2 + $0xd8] sm:$0xff] }
 0xab7   : > { %v5248_v36 = vadd.f32 %v14756_v61, %v5115_v20  ;;  %v5119_v46 = vadd.f32 %v14666_v28, %v4845_v57  ;;  %5387 = vadd.xlane.f32.xlu1 %v5386_v42 }
 0xab8   : > { %v14884_v39 = vadd.f32 %v10914_v53, %v5247_v21  ;;  %v5249_v41 = vadd.f32 %v14753_v34, %v5117_v5 }
 0xab9   : > { %v14887_v15 = vadd.f32 %v10915_v8, %v5248_v36  ;;  %v5250_v29 = vadd.f32 %v14756_v61, %v5119_v46 }
 0xaba   : > { %v14890_v0 = vadd.f32 %v10916_v9, %v5249_v41 }
 0xabb   : > { %v14892_v6 = vadd.f32 %v10917_v33, %v5250_v29  ;;  %v4849_v20 = vpop.f32.mrb[204].mxu0  ;;  %v5389_v28 = vadd.f32 %v14887_v15, %v14884_v39  ;;  %v10919_v33 = vld [vmem:[#allocation2 + $0xe8] sm:$0xff] }
 0xabc   : > { %v5123_v42 = vadd.f32 %v14668_v18, %v4849_v20  ;;  %v4851_v21 = vpop.f32.mrb[205].mxu0  ;;  %v10918_v18 = vld [vmem:[#allocation2 + $0xe0] sm:$0xff] }
 0xabd   : > { %v5125_v5 = vadd.f32 %v14670_v13, %v4851_v21  ;;  %v4853_v57 = vpop.f32.mrb[206].mxu0  ;;  %5390 = vadd.xlane.f32.xlu0 %v5389_v28  ;;  %v5392_v36 = vadd.f32 %v14892_v6, %v14890_v0  ;;  %v10920_v28 = vld [vmem:[#allocation2 + $0xf0] sm:$0xff] }
 0xabe   : > { %v5251_v46 = vadd.f32 %v14753_v34, %v5123_v42  ;;  %v5127_v53 = vadd.f32 %v14672_v43, %v4853_v57  ;;  %v4855_v41 = vpop.f32.mrb[207].mxu0 }
 0xabf   : > { %v5252_v8 = vadd.f32 %v14756_v61, %v5125_v5  ;;  %v5129_v29 = vadd.f32 %v14674_v4, %v4855_v41  ;;  %5393 = vadd.xlane.f32.xlu1 %v5392_v36  ;;  %v10921_v4 = vld [vmem:[#allocation2 + $0xf8] sm:$0xff] }
 0xac0   : > { %v14904_v13 = vadd.f32 %v10918_v18, %v5251_v46  ;;  %v5253_v9 = vadd.f32 %v14753_v34, %v5127_v53  ;;  %v10314_v36 = vld [vmem:[%s12000_s27] ss:$16 sps:$4 sm:$0xff]   ;;  %v10316_v46 = vld [vmem:[%s12000_s27 + $0x4] ss:$16 sps:$4 sm:$0xff]  }
 0xac1   : > { %v14907_v20 = vadd.f32 %v10919_v33, %v5252_v8  ;;  %v5254_v43 = vadd.f32 %v14756_v61, %v5129_v29  ;;  %v10319_v53 = vld [vmem:[%s12000_s27 + $0x24] ss:$16 sps:$4 sm:$0xff]   ;;  %6454 = vmatprep.subr.bf16.mxu0 %v10316_v46  ;;  %v10317_v41 = vld [vmem:[%s12000_s27 + $0x20] ss:$16 sps:$4 sm:$0xff]  }
 0xac2   : > { %v14910_v42 = vadd.f32 %v10920_v28, %v5253_v9  ;;  %6455 = vmatpush1.bf16.msra.mxu0 %v10314_v36  ;;  %v10322_v8 = vld [vmem:[%s12000_s27 + $0x44] ss:$16 sps:$4 sm:$0xff]   ;;  %v10320_v29 = vld [vmem:[%s12000_s27 + $0x40] ss:$16 sps:$4 sm:$0xff]  }
 0xac3   : > { %v14912_v21 = vadd.f32 %v10921_v4, %v5254_v43  ;;  %v5395_v5 = vadd.f32 %v14907_v20, %v14904_v13  ;;  %6456 = vmatprep.subr.bf16.mxu0 %v10319_v53  ;;  %v10325_v18 = vld [vmem:[%s12000_s27 + $0x64] ss:$16 sps:$4 sm:$0xff]   ;;  %v10323_v9 = vld [vmem:[%s12000_s27 + $0x60] ss:$16 sps:$4 sm:$0xff]  }
 0xac5   : > { %5396 = vadd.xlane.f32.xlu0 %v5395_v5  ;;  %v5398_v57 = vadd.f32 %v14912_v21, %v14910_v42 }
 0xac6   : > { %6457 = vmatpush1.bf16.msra.mxu0 %v10317_v41 }
 0xac7   : > { %5399 = vadd.xlane.f32.xlu1 %v5398_v57  ;;  %6458 = vmatprep.subr.bf16.mxu0 %v10322_v8  ;;  %v10922_v8 = vld [vmem:[#allocation2 + $0x100] sm:$0xff] }
 0xaca   : > { %6459 = vmatpush1.bf16.msra.mxu0 %v10320_v29 }
 0xacb   : > { %6460 = vmatprep.subr.bf16.mxu0 %v10325_v18 }
 0xace   : > { %6461 = vmatpush1.bf16.msra.mxu0 %v10323_v9  ;;  %v10923_v9 = vld [vmem:[#allocation2 + $0x108] sm:$0xff] }
 0xb01   : > { %v4859_v33 = vpop.f32.mrb[208].mxu0 }
 0xb02   : > { %v5133_v43 = vadd.f32 %v14676_v27, %v4859_v33  ;;  %v4861_v28 = vpop.f32.mrb[209].mxu0  ;;  %v10924_v33 = vld [vmem:[#allocation2 + $0x110] sm:$0xff] }
 0xb03   : > { %v5135_v4 = vadd.f32 %v14678_v40, %v4861_v28  ;;  %v4863_v5 = vpop.f32.mrb[210].mxu0 }
 0xb04   : > { %v5255_v57 = vadd.f32 %v14753_v34, %v5133_v43  ;;  %v5137_v36 = vadd.f32 %v14680_v2, %v4863_v5  ;;  %v4865_v46 = vpop.f32.mrb[211].mxu0  ;;  %v10925_v43 = vld [vmem:[#allocation2 + $0x118] sm:$0xff] }
 0xb05   : > { %v5256_v53 = vadd.f32 %v14756_v61, %v5135_v4  ;;  %v5139_v41 = vadd.f32 %v14682_v26, %v4865_v46 }
 0xb06   : > { %v14932_v29 = vadd.f32 %v10922_v8, %v5255_v57  ;;  %v5257_v18 = vadd.f32 %v14753_v34, %v5137_v36 }
 0xb07   : > { %v14935_v27 = vadd.f32 %v10923_v9, %v5256_v53  ;;  %v5258_v40 = vadd.f32 %v14756_v61, %v5139_v41 }
 0xb08   : > { %v14938_v28 = vadd.f32 %v10924_v33, %v5257_v18  ;;  %v10926_v33 = vld [vmem:[#allocation2 + $0x120] sm:$0xff] }
 0xb09   : > { %v14940_v2 = vadd.f32 %v10925_v43, %v5258_v40  ;;  %v4869_v5 = vpop.f32.mrb[212].mxu0  ;;  %v5401_v26 = vadd.f32 %v14935_v27, %v14932_v29  ;;  %v10927_v43 = vld [vmem:[#allocation2 + $0x128] sm:$0xff] }
 0xb0a   : > { %v5143_v4 = vadd.f32 %v14684_v1, %v4869_v5  ;;  %v4871_v57 = vpop.f32.mrb[213].mxu0 }
 0xb0b   : > { %v5145_v36 = vadd.f32 %v14686_v11, %v4871_v57  ;;  %v4873_v46 = vpop.f32.mrb[214].mxu0  ;;  %5402 = vadd.xlane.f32.xlu0 %v5401_v26  ;;  %v5404_v53 = vadd.f32 %v14940_v2, %v14938_v28  ;;  %v10928_v57 = vld [vmem:[#allocation2 + $0x130] sm:$0xff] }
 0xb0c   : > { %v5259_v41 = vadd.f32 %v14753_v34, %v5143_v4  ;;  %v5147_v8 = vadd.f32 %v14688_v58, %v4873_v46  ;;  %v4875_v18 = vpop.f32.mrb[215].mxu0  ;;  %v10929_v58 = vld [vmem:[#allocation2 + $0x138] sm:$0xff] }
 0xb0d   : > { %v5260_v9 = vadd.f32 %v14756_v61, %v5145_v36  ;;  %v5149_v40 = vadd.f32 %v14690_v7, %v4875_v18  ;;  %5405 = vadd.xlane.f32.xlu1 %v5404_v53 }
 0xb0e   : > { %v14952_v1 = vadd.f32 %v10926_v33, %v5259_v41  ;;  %v5261_v11 = vadd.f32 %v14753_v34, %v5147_v8 }
 0xb0f   : > { %v14955_v5 = vadd.f32 %v10927_v43, %v5260_v9  ;;  %v5262_v26 = vadd.f32 %v14756_v61, %v5149_v40 }
 0xb10   : > { %v14958_v4 = vadd.f32 %v10928_v57, %v5261_v11 }
 0xb11   : > { %v14960_v46 = vadd.f32 %v10929_v58, %v5262_v26  ;;  %v4879_v36 = vpop.f32.mrb[216].mxu0  ;;  %v5407_v7 = vadd.f32 %v14955_v5, %v14952_v1  ;;  %v10931_v58 = vld [vmem:[#allocation2 + $0x148] sm:$0xff] }
 0xb12   : > { %v5153_v53 = vadd.f32 %v14692_v50, %v4879_v36  ;;  %v4881_v41 = vpop.f32.mrb[217].mxu0  ;;  %v10930_v50 = vld [vmem:[#allocation2 + $0x140] sm:$0xff] }
 0xb13   : > { %v5155_v8 = vadd.f32 %v14694_v10, %v4881_v41  ;;  %v4883_v18 = vpop.f32.mrb[218].mxu0  ;;  %5408 = vadd.xlane.f32.xlu0 %v5407_v7  ;;  %v5410_v9 = vadd.f32 %v14960_v46, %v14958_v4  ;;  %v10933_v41 = vld [vmem:[#allocation2 + $0x158] sm:$0xff] }
 0xb14   : > { %v5263_v40 = vadd.f32 %v14753_v34, %v5153_v53  ;;  %v5157_v33 = vadd.f32 %v14696_v24, %v4883_v18  ;;  %v4885_v11 = vpop.f32.mrb[219].mxu0  ;;  %v10932_v53 = vld [vmem:[#allocation2 + $0x150] sm:$0xff] }
 0xb15   : > { %v5264_v43 = vadd.f32 %v14756_v61, %v5155_v8  ;;  %v5159_v26 = vadd.f32 %v14698_v35, %v4885_v11  ;;  %5411 = vadd.xlane.f32.xlu1 %v5410_v9  ;;  %v10328_v11 = vld [vmem:[%s12000_s27 + $0x84] ss:$16 sps:$4 sm:$0xff]  }
 0xb16   : > { %v14972_v57 = vadd.f32 %v10930_v50, %v5263_v40  ;;  %v5265_v10 = vadd.f32 %v14753_v34, %v5157_v33  ;;  %6462 = vmatprep.subr.bf16.mxu0 %v10328_v11 }
 0xb17   : > { %v14975_v36 = vadd.f32 %v10931_v58, %v5264_v43  ;;  %v5266_v7 = vadd.f32 %v14756_v61, %v5159_v26  ;;  %v10326_v58 = vld [vmem:[%s12000_s27 + $0x80] ss:$16 sps:$4 sm:$0xff]  }
 0xb18   : > { %v14978_v24 = vadd.f32 %v10932_v53, %v5265_v10  ;;  %6463 = vmatpush1.bf16.msra.mxu0 %v10326_v58  ;;  %v10935_v58 = vld [vmem:[#allocation2 + $0x168] sm:$0xff] }
 0xb19   : > { %v14980_v8 = vadd.f32 %v10933_v41, %v5266_v7  ;;  %v4889_v35 = vpop.f32.mrb[220].mxu0  ;;  %v5413_v18 = vadd.f32 %v14975_v36, %v14972_v57 }
 0xb1a   : > { %v5163_v9 = vadd.f32 %v14701_v3, %v4889_v35  ;;  %v5355_v40 = vpop.xlane.xlu0 %5354  ;;  %v4891_v33 = vpop.f32.mrb[221].mxu0 }
 0xb1b   : > { %v5450_v43 = vmul.f32 0.00390625, %v5355_v40  ;;  %v5165_v50 = vadd.f32 %v14703_v48, %v4891_v33  ;;  %v4893_v26 = vpop.f32.mrb[222].mxu0  ;;  %5414 = vadd.xlane.f32.xlu0 %v5413_v18  ;;  %v5416_v10 = vadd.f32 %v14980_v8, %v14978_v24 }
 0xb1c   : > { %v5267_v7 = vadd.f32 %v14753_v34, %v5163_v9  ;;  %v5167_v53 = vadd.f32 %v14705_v56, %v4893_v26  ;;  %v5358_v41 = vpop.xlane.xlu1 %5357  ;;  %v4895_v3 = vpop.f32.mrb[223].mxu0  ;;  %v10331_v9 = vld [vmem:[%s12000_s27 + $0xa4] ss:$16 sps:$4 sm:$0xff]   ;;  %v10934_v26 = vld [vmem:[#allocation2 + $0x160] sm:$0xff] }
 0xb1d   : > { %v14993_v35 = vsub.f32 %v14764_v16, %v5450_v43  ;;  %v14996_v48 = vsub.f32 %v14767_v30, %v5450_v43  ;;  %v5268_v18 = vadd.f32 %v14756_v61, %v5165_v50  ;;  %v5451_v40 = vmul.f32 0.00390625, %v5358_v41  ;;  %5417 = vadd.xlane.f32.xlu1 %v5416_v10  ;;  %v10329_v30 = vld [vmem:[%s12000_s27 + $0xa0] ss:$16 sps:$4 sm:$0xff]   ;;  %6464 = vmatprep.subr.bf16.mxu0 %v10331_v9  ;;  %v10936_v9 = vld [vmem:[#allocation2 + $0x170] sm:$0xff] }
 0xb1e   : > { %v5169_v33 = vadd.f32 %v14707_v54, %v4895_v3  ;;  %v5269_v43 = vadd.f32 %v14753_v34, %v5167_v53  ;;  %v15014_v10 = vadd.f32 %v10934_v26, %v5267_v7  ;;  %6465 = vmatpush1.bf16.msra.mxu0 %v10329_v30  ;;  %v10937_v26 = vld [vmem:[#allocation2 + $0x178] sm:$0xff] }
 0xb1f   : > { %18157 = vst [vmem:[#allocation106_spill] sm:$0xff] %v14993_v35  ;;  %18158 = vst [vmem:[#allocation92_spill] sm:$0xff] %v14996_v48  ;;  %v5546_v56 = vmul.f32 %v14993_v35, %v14993_v35  ;;  %v5547_v11 = vmul.f32 %v14996_v48, %v14996_v48  ;;  %v15006_v16 = vsub.f32 %v14770_v51, %v5451_v40 }
 0xb20   : > { %v15011_v50 = vsub.f32 %v14772_v38, %v5451_v40  ;;  %v5270_v54 = vadd.f32 %v14756_v61, %v5169_v33  ;;  %v15016_v41 = vadd.f32 %v10935_v58, %v5268_v18  ;;  %v10334_v38 = vld [vmem:[%s12000_s27 + $0xc4] ss:$16 sps:$4 sm:$0xff]   ;;  %v10332_v33 = vld [vmem:[%s12000_s27 + $0xc0] ss:$16 sps:$4 sm:$0xff]   ;;  %v15024_v7 = vadd.f32 %v10936_v9, %v5269_v43 }
 0xb21   : > { %18159 = vst [vmem:[#allocation91_spill] sm:$0xff] %v15006_v16  ;;  %v5548_v51 = vmul.f32 %v15006_v16, %v15006_v16  ;;  %v5610_v3 = vadd.f32 %v5547_v11, %v5546_v56  ;;  %6466 = vmatprep.subr.bf16.mxu0 %v10334_v38  ;;  %v10337_v43 = vld [vmem:[%s12000_s27 + $0xe4] ss:$16 sps:$4 sm:$0xff]  }
 0xb22   : > { %18160 = vst [vmem:[#allocation109_spill] sm:$0xff] %v15011_v50  ;;  %v5549_v53 = vmul.f32 %v15011_v50, %v15011_v50  ;;  %v5361_v48 = vpop.xlane.xlu0 %5360  ;;  %v15026_v18 = vadd.f32 %v10937_v26, %v5270_v54  ;;  %v5419_v30 = vadd.f32 %v15016_v41, %v15014_v10  ;;  %6467 = vmatpush1.bf16.msra.mxu0 %v10332_v33  ;;  %v18166_v33 = vld [vmem:[#allocation96_spill] sm:$0xff]  ;;  %v18167_v26 = vld [vmem:[#allocation99_spill] sm:$0xff]  ;;  %v18168_v50 = vld [vmem:[#allocation74_spill] sm:$0xff] }
 0xb23   : > { %v5452_v40 = vmul.f32 0.00390625, %v5361_v48  ;;  %5611 = vadd.xlane.f32.xlu0 %v5610_v3  ;;  %6468 = vmatprep.subr.bf16.mxu0 %v10337_v43 }
 0xb24   : > { %18161 = vst [vmem:[#allocation112_spill] sm:$0xff] %v15026_v18  ;;  %v5364_v58 = vpop.xlane.xlu1 %5363  ;;  %v5613_v16 = vadd.f32 %v5549_v53, %v5548_v51 }
 0xb25   : > { %v15029_v56 = vsub.f32 %v14784_v37, %v5452_v40  ;;  %v15032_v11 = vsub.f32 %v14787_v47, %v5452_v40  ;;  %v5453_v48 = vmul.f32 0.00390625, %v5364_v58  ;;  %v10335_v47 = vld [vmem:[%s12000_s27 + $0xe0] ss:$16 sps:$4 sm:$0xff]  }
 0xb26   : > { %5614 = vadd.xlane.f32.xlu1 %v5613_v16  ;;  %v5422_v16 = vadd.f32 %v15026_v18, %v15024_v7  ;;  %6469 = vmatpush1.bf16.msra.mxu0 %v10335_v47  ;;  %v10338_v18 = vld [vmem:[%s12000_s27 + $0x100] ss:$16 sps:$4 sm:$0xff]  }
 0xb27   : > { %18162 = vst [vmem:[#allocation115_spill] sm:$0xff] %v15029_v56  ;;  %18163 = vst [vmem:[#allocation95_spill] sm:$0xff] %v15032_v11  ;;  %v5550_v54 = vmul.f32 %v15029_v56, %v15029_v56  ;;  %v5551_v51 = vmul.f32 %v15032_v11, %v15032_v11  ;;  %v15042_v3 = vsub.f32 %v14790_v55, %v5453_v48  ;;  %5420 = vadd.xlane.f32.xlu0 %v5419_v30  ;;  %v10340_v56 = vld [vmem:[%s12000_s27 + $0x104] ss:$16 sps:$4 sm:$0xff]  }
 0xb28   : > { %v15045_v37 = vsub.f32 %v14792_v59, %v5453_v48  ;;  %v4899_v53 = vpop.f32.mrb[224].mxu0  ;;  %6470 = vmatprep.subr.bf16.mxu0 %v10340_v56  ;;  %v10343_v56 = vld [vmem:[%s12000_s27 + $0x124] ss:$16 sps:$4 sm:$0xff]  }
 0xb29   : > { %18164 = vst [vmem:[#allocation94_spill] sm:$0xff] %v15042_v3  ;;  %v5552_v38 = vmul.f32 %v15042_v3, %v15042_v3  ;;  %v5173_v55 = vadd.f32 %v18166_v33, %v4899_v53  ;;  %v4901_v9 = vpop.f32.mrb[225].mxu0  ;;  %v5616_v59 = vadd.f32 %v5551_v51, %v5550_v54  ;;  %v18169_v54 = vld [vmem:[#allocation73_spill] sm:$0xff] }
 0xb2a   : > { %18165 = vst [vmem:[#allocation98_spill] sm:$0xff] %v15045_v37  ;;  %v5553_v40 = vmul.f32 %v15045_v37, %v15045_v37  ;;  %v5175_v58 = vadd.f32 %v18167_v26, %v4901_v9  ;;  %5423 = vadd.xlane.f32.xlu1 %v5422_v16  ;;  %v5367_v48 = vpop.xlane.xlu0 %5366  ;;  %v4903_v30 = vpop.f32.mrb[226].mxu0  ;;  %v10938_v16 = vld [vmem:[#allocation2 + $0x180] sm:$0xff]  ;;  %6471 = vmatpush1.bf16.msra.mxu0 %v10338_v18 }
 0xb2b   : > { %v5271_v43 = vadd.f32 %v14753_v34, %v5173_v55  ;;  %v5454_v11 = vmul.f32 0.00390625, %v5367_v48  ;;  %v5177_v3 = vadd.f32 %v18168_v50, %v4903_v30  ;;  %v4905_v35 = vpop.f32.mrb[227].mxu0  ;;  %5617 = vadd.xlane.f32.xlu0 %v5616_v59  ;;  %6472 = vmatprep.subr.bf16.mxu0 %v10343_v56 }
 0xb2c   : > { %v5619_v37 = vadd.f32 %v5553_v40, %v5552_v38  ;;  %v5272_v53 = vadd.f32 %v14756_v61, %v5175_v58  ;;  %v5179_v51 = vadd.f32 %v18169_v54, %v4905_v35  ;;  %v5370_v47 = vpop.xlane.xlu1 %5369  ;;  %v10939_v40 = vld [vmem:[#allocation2 + $0x188] sm:$0xff]  ;;  %v10940_v58 = vld [vmem:[#allocation2 + $0x190] sm:$0xff] }
 0xb2d   : > { %v15062_v33 = vadd.f32 %v10938_v16, %v5271_v43  ;;  %v15065_v55 = vsub.f32 %v14804_v23, %v5454_v11  ;;  %v15068_v50 = vsub.f32 %v14807_v25, %v5454_v11  ;;  %v5273_v38 = vadd.f32 %v14753_v34, %v5177_v3  ;;  %v10341_v11 = vld [vmem:[%s12000_s27 + $0x120] ss:$16 sps:$4 sm:$0xff]   ;;  %v18175_v16 = vld [vmem:[#allocation76_spill] sm:$0xff] }
 0xb2e   : > { %v15071_v9 = vadd.f32 %v10939_v40, %v5272_v53  ;;  %v5274_v35 = vadd.f32 %v14756_v61, %v5179_v51  ;;  %v5455_v59 = vmul.f32 0.00390625, %v5370_v47  ;;  %5620 = vadd.xlane.f32.xlu1 %v5619_v37  ;;  %v10941_v3 = vld [vmem:[#allocation2 + $0x198] sm:$0xff]  ;;  %6473 = vmatpush1.bf16.msra.mxu0 %v10341_v11 }
 0xb2f   : > { %18170 = vst [vmem:[#allocation97_spill] sm:$0xff] %v15065_v55  ;;  %18171 = vst [vmem:[#allocation102_spill] sm:$0xff] %v15068_v50  ;;  %v5554_v26 = vmul.f32 %v15065_v55, %v15065_v55  ;;  %v5555_v23 = vmul.f32 %v15068_v50, %v15068_v50  ;;  %v15079_v25 = vadd.f32 %v10940_v58, %v5273_v38  ;;  %v18174_v53 = vld [vmem:[#allocation77_spill] sm:$0xff]  ;;  %v18177_v55 = vld [vmem:[#allocation80_spill] sm:$0xff] }
 0xb30   : > { %v15082_v18 = vadd.f32 %v10941_v3, %v5274_v35  ;;  %v15085_v48 = vsub.f32 %v14810_v62, %v5455_v59  ;;  %v15088_v37 = vsub.f32 %v14812_v31, %v5455_v59  ;;  %v4909_v30 = vpop.f32.mrb[228].mxu0  ;;  %v5425_v43 = vadd.f32 %v15071_v9, %v15062_v33  ;;  %v10346_v59 = vld [vmem:[%s12000_s27 + $0x144] ss:$16 sps:$4 sm:$0xff]   ;;  %v18176_v3 = vld [vmem:[#allocation100_spill] sm:$0xff] }
 0xb31   : > { %v5183_v54 = vadd.f32 %v18174_v53, %v4909_v30  ;;  %v4911_v51 = vpop.f32.mrb[229].mxu0  ;;  %v10344_v53 = vld [vmem:[%s12000_s27 + $0x140] ss:$16 sps:$4 sm:$0xff]   ;;  %6474 = vmatprep.subr.bf16.mxu0 %v10346_v59  ;;  %v10349_v59 = vld [vmem:[%s12000_s27 + $0x164] ss:$16 sps:$4 sm:$0xff]  }
 0xb32   : > { %18172 = vst [vmem:[#allocation101_spill] sm:$0xff] %v15085_v48  ;;  %18173 = vst [vmem:[#allocation105_spill] sm:$0xff] %v15088_v37  ;;  %v5556_v47 = vmul.f32 %v15085_v48, %v15085_v48  ;;  %v5557_v62 = vmul.f32 %v15088_v37, %v15088_v37  ;;  %v5185_v38 = vadd.f32 %v18175_v16, %v4911_v51  ;;  %v5373_v31 = vpop.xlane.xlu0 %5372  ;;  %v4913_v40 = vpop.f32.mrb[230].mxu0  ;;  %5426 = vadd.xlane.f32.xlu0 %v5425_v43  ;;  %v10942_v43 = vld [vmem:[#allocation2 + $0x1a0] sm:$0xff] }
 0xb33   : > { %v5428_v35 = vadd.f32 %v15082_v18, %v15079_v25  ;;  %v5275_v56 = vadd.f32 %v14753_v34, %v5183_v54  ;;  %v5456_v58 = vmul.f32 0.00390625, %v5373_v31  ;;  %v5187_v11 = vadd.f32 %v18176_v3, %v4913_v40  ;;  %v4915_v30 = vpop.f32.mrb[231].mxu0  ;;  %6475 = vmatpush1.bf16.msra.mxu0 %v10344_v53  ;;  %v10347_v3 = vld [vmem:[%s12000_s27 + $0x160] ss:$16 sps:$4 sm:$0xff]  }
 0xb34   : > { %v5276_v48 = vadd.f32 %v14756_v61, %v5185_v38  ;;  %v5189_v37 = vadd.f32 %v18177_v55, %v4915_v30  ;;  %v5376_v50 = vpop.xlane.xlu1 %5375  ;;  %v5622_v51 = vadd.f32 %v5555_v23, %v5554_v26  ;;  %v10943_v38 = vld [vmem:[#allocation2 + $0x1a8] sm:$0xff]  ;;  %v5625_v23 = vadd.f32 %v5557_v62, %v5556_v47  ;;  %6476 = vmatprep.subr.bf16.mxu0 %v10349_v59 }
 0xb35   : > { %5429 = vadd.xlane.f32.xlu1 %v5428_v35  ;;  %v15106_v16 = vadd.f32 %v10942_v43, %v5275_v56  ;;  %v15109_v54 = vsub.f32 %v14824_v60, %v5456_v58  ;;  %v15112_v31 = vsub.f32 %v14827_v52, %v5456_v58  ;;  %v5277_v40 = vadd.f32 %v14753_v34, %v5187_v11  ;;  %v10944_v52 = vld [vmem:[#allocation2 + $0x1b0] sm:$0xff]  ;;  %v10945_v11 = vld [vmem:[#allocation2 + $0x1b8] sm:$0xff]  ;;  %v18183_v62 = vld [vmem:[#allocation79_spill] sm:$0xff] }
 0xb36   : > { %v15115_v55 = vadd.f32 %v10943_v38, %v5276_v48  ;;  %v5278_v35 = vadd.f32 %v14756_v61, %v5189_v37  ;;  %v5457_v26 = vmul.f32 0.00390625, %v5376_v50  ;;  %5623 = vadd.xlane.f32.xlu0 %v5622_v51 }
 0xb37   : > { %18178 = vst [vmem:[#allocation104_spill] sm:$0xff] %v15109_v54  ;;  %18179 = vst [vmem:[#allocation108_spill] sm:$0xff] %v15112_v31  ;;  %v5558_v56 = vmul.f32 %v15109_v54, %v15109_v54  ;;  %v5559_v60 = vmul.f32 %v15112_v31, %v15112_v31  ;;  %v15123_v58 = vadd.f32 %v10944_v52, %v5277_v40  ;;  %v18184_v40 = vld [vmem:[#allocation83_spill] sm:$0xff]  ;;  %6477 = vmatpush1.bf16.msra.mxu0 %v10347_v3 }
 0xb38   : > { %v15126_v30 = vadd.f32 %v10945_v11, %v5278_v35  ;;  %v15129_v48 = vsub.f32 %v14830_v22, %v5457_v26  ;;  %v15132_v50 = vsub.f32 %v14832_v63, %v5457_v26  ;;  %v4919_v37 = vpop.f32.mrb[232].mxu0  ;;  %v5431_v47 = vadd.f32 %v15115_v55, %v15106_v16 }
 0xb39   : > { %5626 = vadd.xlane.f32.xlu1 %v5625_v23  ;;  %v5193_v53 = vadd.f32 %v18183_v62, %v4919_v37  ;;  %v4921_v51 = vpop.f32.mrb[233].mxu0  ;;  %v10352_v23 = vld [vmem:[%s12000_s27 + $0x184] ss:$16 sps:$4 sm:$0xff]   ;;  %v18185_v37 = vld [vmem:[#allocation82_spill] sm:$0xff] }
 0xb3a   : > { %18180 = vst [vmem:[#allocation107_spill] sm:$0xff] %v15126_v30  ;;  %18181 = vst [vmem:[#allocation120_spill] sm:$0xff] %v15129_v48  ;;  %v5560_v43 = vmul.f32 %v15129_v48, %v15129_v48  ;;  %v5561_v22 = vmul.f32 %v15132_v50, %v15132_v50  ;;  %v5195_v38 = vadd.f32 %v18184_v40, %v4921_v51  ;;  %v5379_v63 = vpop.xlane.xlu0 %5378  ;;  %v4923_v35 = vpop.f32.mrb[234].mxu0  ;;  %5432 = vadd.xlane.f32.xlu0 %v5431_v47  ;;  %v10350_v48 = vld [vmem:[%s12000_s27 + $0x180] ss:$16 sps:$4 sm:$0xff]   ;;  %v10946_v40 = vld [vmem:[#allocation2 + $0x1c0] sm:$0xff] }
 0xb3b   : > { %18182 = vst [vmem:[#allocation111_spill] sm:$0xff] %v15132_v50  ;;  %v5434_v26 = vadd.f32 %v15126_v30, %v15123_v58  ;;  %v5279_v52 = vadd.f32 %v14753_v34, %v5193_v53  ;;  %v5458_v11 = vmul.f32 0.00390625, %v5379_v63  ;;  %v5197_v59 = vadd.f32 %v18185_v37, %v4923_v35  ;;  %v4925_v62 = vpop.f32.mrb[235].mxu0  ;;  %v18186_v50 = vld [vmem:[#allocation103_spill] sm:$0xff]  ;;  %6478 = vmatprep.subr.bf16.mxu0 %v10352_v23  ;;  %v10949_v37 = vld [vmem:[#allocation2 + $0x1d8] sm:$0xff] }
 0xb3c   : > { %v5280_v54 = vadd.f32 %v14756_v61, %v5195_v38  ;;  %v5199_v31 = vadd.f32 %v18186_v50, %v4925_v62  ;;  %v5382_v51 = vpop.xlane.xlu1 %5381  ;;  %v5628_v47 = vadd.f32 %v5559_v60, %v5558_v56  ;;  %v10947_v38 = vld [vmem:[#allocation2 + $0x1c8] sm:$0xff]  ;;  %v5631_v56 = vadd.f32 %v5561_v22, %v5560_v43  ;;  %6479 = vmatpush1.bf16.msra.mxu0 %v10350_v48  ;;  %v18191_v62 = vld [vmem:[#allocation86_spill] sm:$0xff] }
 0xb3d   : > { %5435 = vadd.xlane.f32.xlu1 %v5434_v26  ;;  %v15150_v30 = vadd.f32 %v10946_v40, %v5279_v52  ;;  %v15153_v53 = vsub.f32 %v14844_v19, %v5458_v11  ;;  %v15156_v63 = vsub.f32 %v14847_v12, %v5458_v11  ;;  %v5281_v3 = vadd.f32 %v14753_v34, %v5197_v59  ;;  %v10355_v60 = vld [vmem:[%s12000_s27 + $0x1a4] ss:$16 sps:$4 sm:$0xff]   ;;  %v10948_v52 = vld [vmem:[#allocation2 + $0x1d0] sm:$0xff]  ;;  %v10353_v11 = vld [vmem:[%s12000_s27 + $0x1a0] ss:$16 sps:$4 sm:$0xff]  }
 0xb3e   : > { %v15159_v35 = vadd.f32 %v10947_v38, %v5280_v54  ;;  %v5282_v50 = vadd.f32 %v14756_v61, %v5199_v31  ;;  %v5459_v26 = vmul.f32 0.00390625, %v5382_v51  ;;  %5629 = vadd.xlane.f32.xlu0 %v5628_v47  ;;  %6480 = vmatprep.subr.bf16.mxu0 %v10355_v60  ;;  %v18192_v40 = vld [vmem:[#allocation85_spill] sm:$0xff] }
 0xb3f   : > { %18187 = vst [vmem:[#allocation110_spill] sm:$0xff] %v15153_v53  ;;  %18188 = vst [vmem:[#allocation114_spill] sm:$0xff] %v15156_v63  ;;  %v5562_v23 = vmul.f32 %v15153_v53, %v15153_v53  ;;  %v5563_v19 = vmul.f32 %v15156_v63, %v15156_v63  ;;  %v15167_v12 = vadd.f32 %v10948_v52, %v5281_v3 }
 0xb40   : > { %v15170_v54 = vadd.f32 %v10949_v37, %v5282_v50  ;;  %v15173_v31 = vsub.f32 %v14850_v45, %v5459_v26  ;;  %v15176_v43 = vsub.f32 %v14852_v44, %v5459_v26  ;;  %v4929_v22 = vpop.f32.mrb[236].mxu0  ;;  %v5437_v59 = vadd.f32 %v15159_v35, %v15150_v30  ;;  %v10358_v26 = vld [vmem:[%s12000_s27 + $0x1c4] ss:$16 sps:$4 sm:$0xff]   ;;  %6481 = vmatpush1.bf16.msra.mxu0 %v10353_v11 }
 0xb41   : > { %5632 = vadd.xlane.f32.xlu1 %v5631_v56  ;;  %v5203_v51 = vadd.f32 %v18191_v62, %v4929_v22  ;;  %v4931_v48 = vpop.f32.mrb[237].mxu0  ;;  %v18193_v37 = vld [vmem:[#allocation89_spill] sm:$0xff]  ;;  %6482 = vmatprep.subr.bf16.mxu0 %v10358_v26 }
 0xb42   : > { %18189 = vst [vmem:[#allocation113_spill] sm:$0xff] %v15173_v31  ;;  %18190 = vst [vmem:[#allocation121_spill] sm:$0xff] %v15176_v43  ;;  %v5564_v47 = vmul.f32 %v15173_v31, %v15173_v31  ;;  %v5565_v45 = vmul.f32 %v15176_v43, %v15176_v43  ;;  %v5205_v3 = vadd.f32 %v18192_v40, %v4931_v48  ;;  %v5385_v44 = vpop.xlane.xlu0 %5384  ;;  %v4933_v38 = vpop.f32.mrb[238].mxu0  ;;  %5438 = vadd.xlane.f32.xlu0 %v5437_v59  ;;  %v10356_v62 = vld [vmem:[%s12000_s27 + $0x1c0] ss:$16 sps:$4 sm:$0xff]   ;;  %v18194_v43 = vld [vmem:[#allocation88_spill] sm:$0xff] }
 0xb43   : > { %v5440_v50 = vadd.f32 %v15170_v54, %v15167_v12  ;;  %v5283_v56 = vadd.f32 %v14753_v34, %v5203_v51  ;;  %v5460_v52 = vmul.f32 0.00390625, %v5385_v44  ;;  %v5207_v60 = vadd.f32 %v18193_v37, %v4933_v38  ;;  %v4935_v22 = vpop.f32.mrb[239].mxu0  ;;  %v10950_v40 = vld [vmem:[#allocation2 + $0x1e0] sm:$0xff] }
 0xb44   : > { %v5284_v31 = vadd.f32 %v14756_v61, %v5205_v3  ;;  %v5209_v63 = vadd.f32 %v18194_v43, %v4935_v22  ;;  %v5388_v48 = vpop.xlane.xlu1 %5387  ;;  %v5634_v59 = vadd.f32 %v5563_v19, %v5562_v23  ;;  %v10951_v3 = vld [vmem:[#allocation2 + $0x1e8] sm:$0xff]  ;;  %v5637_v23 = vadd.f32 %v5565_v45, %v5564_v47  ;;  %6483 = vmatpush1.bf16.msra.mxu0 %v10356_v62 }
 0xb45   : > { %5441 = vadd.xlane.f32.xlu1 %v5440_v50  ;;  %v15194_v53 = vadd.f32 %v10950_v40, %v5283_v56  ;;  %v15197_v51 = vsub.f32 %v14864_v17, %v5460_v52  ;;  %v15200_v44 = vsub.f32 %v14867_v14, %v5460_v52  ;;  %v5285_v11 = vadd.f32 %v14753_v34, %v5207_v60  ;;  %v10361_v19 = vld [vmem:[%s12000_s27 + $0x1e4] ss:$16 sps:$4 sm:$0xff]   ;;  %v10952_v56 = vld [vmem:[#allocation2 + $0x1f0] sm:$0xff]  ;;  %v10359_v34 = vld [vmem:[%s12000_s27 + $0x1e0] ss:$16 sps:$4 sm:$0xff]  }
 0xb46   : > { %v15203_v38 = vadd.f32 %v10951_v3, %v5284_v31  ;;  %v5286_v43 = vadd.f32 %v14756_v61, %v5209_v63  ;;  %v5461_v50 = vmul.f32 0.00390625, %v5388_v48  ;;  %5635 = vadd.xlane.f32.xlu0 %v5634_v59  ;;  %v10953_v52 = vld [vmem:[#allocation2 + $0x1f8] sm:$0xff]  ;;  %6484 = vmatprep.subr.bf16.mxu0 %v10361_v19 }
 0xb47   : > { %v5566_v26 = vmul.f32 %v15197_v51, %v15197_v51  ;;  %v5567_v17 = vmul.f32 %v15200_v44, %v15200_v44  ;;  %v15211_v14 = vadd.f32 %v10952_v56, %v5285_v11 }
 0xb48   : > { %v15214_v31 = vadd.f32 %v10953_v52, %v5286_v43  ;;  %v15217_v61 = vsub.f32 %v14870_v32, %v5461_v50  ;;  %v15220_v63 = vsub.f32 %v14872_v49, %v5461_v50  ;;  %v5443_v47 = vadd.f32 %v15203_v38, %v15194_v53  ;;  %6485 = vmatpush1.bf16.msra.mxu0 %v10359_v34 }
 0xb49   : > { %5638 = vadd.xlane.f32.xlu1 %v5637_v23  ;;  %v5640_v62 = vadd.f32 %v5567_v17, %v5566_v26 }
 0xb4a   : > { %v5568_v45 = vmul.f32 %v15217_v61, %v15217_v61  ;;  %v5569_v37 = vmul.f32 %v15220_v63, %v15220_v63  ;;  %5444 = vadd.xlane.f32.xlu0 %v5443_v47  ;;  %v5391_v60 = vpop.xlane.xlu0 %5390  ;;  %v5446_v32 = vadd.f32 %v15214_v31, %v15211_v14 }
 0xb4b   : > { %v5462_v22 = vmul.f32 0.00390625, %v5391_v60 }
 0xb4c   : > { %v5394_v49 = vpop.xlane.xlu1 %5393  ;;  %v5643_v11 = vadd.f32 %v5569_v37, %v5568_v45 }
 0xb4d   : > { %5447 = vadd.xlane.f32.xlu1 %v5446_v32  ;;  %v15231_v48 = vsub.f32 %v14884_v39, %v5462_v22  ;;  %v15234_v59 = vsub.f32 %v14887_v15, %v5462_v22  ;;  %v5463_v40 = vmul.f32 0.00390625, %v5394_v49 }
 0xb4e   : > { %5641 = vadd.xlane.f32.xlu0 %v5640_v62 }
 0xb4f   : > { %v5570_v3 = vmul.f32 %v15231_v48, %v15231_v48  ;;  %v5571_v43 = vmul.f32 %v15234_v59, %v15234_v59  ;;  %v15241_v50 = vsub.f32 %v14890_v0, %v5463_v40  ;;  %v15244_v23 = vsub.f32 %v14892_v6, %v5463_v40 }
 0xb51   : > { %5644 = vadd.xlane.f32.xlu1 %v5643_v11  ;;  %v5572_v39 = vmul.f32 %v15241_v50, %v15241_v50  ;;  %v5573_v15 = vmul.f32 %v15244_v23, %v15244_v23  ;;  %v5646_v19 = vadd.f32 %v5571_v43, %v5570_v3 }
 0xb52   : > { %v5397_v26 = vpop.xlane.xlu0 %5396 }
 0xb53   : > { %v5464_v17 = vmul.f32 0.00390625, %v5397_v26  ;;  %5647 = vadd.xlane.f32.xlu0 %v5646_v19  ;;  %v5649_v56 = vadd.f32 %v5573_v15, %v5572_v39 }
 0xb54   : > { %v5400_v34 = vpop.xlane.xlu1 %5399 }
 0xb55   : > { %v15251_v52 = vsub.f32 %v14904_v13, %v5464_v17  ;;  %v15254_v0 = vsub.f32 %v14907_v20, %v5464_v17  ;;  %v5465_v6 = vmul.f32 0.00390625, %v5400_v34  ;;  %5650 = vadd.xlane.f32.xlu1 %v5649_v56 }
 0xb57   : > { %v5574_v47 = vmul.f32 %v15251_v52, %v15251_v52  ;;  %v5575_v45 = vmul.f32 %v15254_v0, %v15254_v0  ;;  %v15261_v37 = vsub.f32 %v14910_v42, %v5465_v6  ;;  %v15264_v60 = vsub.f32 %v14912_v21, %v5465_v6 }
 0xb59   : > { %v5576_v13 = vmul.f32 %v15261_v37, %v15261_v37  ;;  %v5577_v20 = vmul.f32 %v15264_v60, %v15264_v60  ;;  %v5652_v32 = vadd.f32 %v5575_v45, %v5574_v47 }
 0xb5b   : > { %5653 = vadd.xlane.f32.xlu0 %v5652_v32  ;;  %v5655_v22 = vadd.f32 %v5577_v20, %v5576_v13 }
 0xb5d   : > { %5656 = vadd.xlane.f32.xlu1 %v5655_v22 }
 0xb98   : > { %v5403_v49 = vpop.xlane.xlu0 %5402 }
 0xb99   : > { %v5466_v62 = vmul.f32 0.00390625, %v5403_v49 }
 0xb9a   : > { %v5406_v40 = vpop.xlane.xlu1 %5405 }
 0xb9b   : > { %v15271_v11 = vsub.f32 %v14932_v29, %v5466_v62  ;;  %v15274_v42 = vsub.f32 %v14935_v27, %v5466_v62  ;;  %v5467_v21 = vmul.f32 0.00390625, %v5406_v40 }
 0xb9d   : > { %v5578_v3 = vmul.f32 %v15271_v11, %v15271_v11  ;;  %v5579_v43 = vmul.f32 %v15274_v42, %v15274_v42  ;;  %v15281_v39 = vsub.f32 %v14938_v28, %v5467_v21  ;;  %v15284_v15 = vsub.f32 %v14940_v2, %v5467_v21 }
 0xb9f   : > { %v5580_v29 = vmul.f32 %v15281_v39, %v15281_v39  ;;  %v5581_v27 = vmul.f32 %v15284_v15, %v15284_v15  ;;  %v5658_v19 = vadd.f32 %v5579_v43, %v5578_v3 }
 0xba0   : > { %v5409_v26 = vpop.xlane.xlu0 %5408 }
 0xba1   : > { %v5468_v17 = vmul.f32 0.00390625, %v5409_v26  ;;  %5659 = vadd.xlane.f32.xlu0 %v5658_v19  ;;  %v5661_v56 = vadd.f32 %v5581_v27, %v5580_v29 }
 0xba2   : > { %v5412_v34 = vpop.xlane.xlu1 %5411 }
 0xba3   : > { %v15291_v6 = vsub.f32 %v14952_v1, %v5468_v17  ;;  %v15294_v28 = vsub.f32 %v14955_v5, %v5468_v17  ;;  %v5469_v2 = vmul.f32 0.00390625, %v5412_v34  ;;  %5662 = vadd.xlane.f32.xlu1 %v5661_v56 }
 0xba5   : > { %v5582_v47 = vmul.f32 %v15291_v6, %v15291_v6  ;;  %v5583_v45 = vmul.f32 %v15294_v28, %v15294_v28  ;;  %v15301_v13 = vsub.f32 %v14958_v4, %v5469_v2  ;;  %v15304_v20 = vsub.f32 %v14960_v46, %v5469_v2 }
 0xba7   : > { %v5584_v1 = vmul.f32 %v15301_v13, %v15301_v13  ;;  %v5585_v5 = vmul.f32 %v15304_v20, %v15304_v20  ;;  %v5664_v32 = vadd.f32 %v5583_v45, %v5582_v47 }
 0xba8   : > { %v5415_v22 = vpop.xlane.xlu0 %5414 }
 0xba9   : > { %v5470_v49 = vmul.f32 0.00390625, %v5415_v22  ;;  %5665 = vadd.xlane.f32.xlu0 %v5664_v32  ;;  %v5667_v62 = vadd.f32 %v5585_v5, %v5584_v1 }
 0xbaa   : > { %v5418_v40 = vpop.xlane.xlu1 %5417 }
 0xbab   : > { %v15311_v21 = vsub.f32 %v14972_v57, %v5470_v49  ;;  %v15314_v4 = vsub.f32 %v14975_v36, %v5470_v49  ;;  %v5471_v46 = vmul.f32 0.00390625, %v5418_v40  ;;  %5668 = vadd.xlane.f32.xlu1 %v5667_v62 }
 0xbad   : > { %v5586_v3 = vmul.f32 %v15311_v21, %v15311_v21  ;;  %v5587_v43 = vmul.f32 %v15314_v4, %v15314_v4  ;;  %v15321_v29 = vsub.f32 %v14978_v24, %v5471_v46  ;;  %v15324_v27 = vsub.f32 %v14980_v8, %v5471_v46 }
 0xbaf   : > { %v5588_v57 = vmul.f32 %v15321_v29, %v15321_v29  ;;  %v5589_v36 = vmul.f32 %v15324_v27, %v15324_v27  ;;  %v5670_v19 = vadd.f32 %v5587_v43, %v5586_v3 }
 0xbb0   : > { %v5612_v26 = vpop.xlane.xlu0 %5611 }
 0xbb1   : > { %v5706_v17 = vmul.f32 0.00390625, %v5612_v26  ;;  %5671 = vadd.xlane.f32.xlu0 %v5670_v19  ;;  %v5673_v56 = vadd.f32 %v5589_v36, %v5588_v57  ;;  %v5351_v19 = vld [vmem:[%s18199_s6] sm:$0x3] }
 0xbb3   : > { %v5738_v34 = vadd.f32 1e-05, %v5706_v17  ;;  %v5615_v2 = vpop.xlane.xlu1 %5614  ;;  %5674 = vadd.xlane.f32.xlu1 %v5673_v56 }
 0xbb4   : > { %v5707_v47 = vmul.f32 0.00390625, %v5615_v2  ;;  %v5421_v24 = vpop.xlane.xlu0 %5420  ;;  %v5352_v2 = vld [vmem:[%s926_s3] sm:$0x3] }
 0xbb5   : > { %10762 = vrsqrt.f32 %v5738_v34  ;;  %v5472_v45 = vmul.f32 0.00390625, %v5421_v24  ;;  %v18201_v24 = vld [vmem:[#allocation68_spill] sm:$0xff] }
 0xbb6   : > { %v5739_v8 = vadd.f32 1e-05, %v5707_v47 }
 0xbb7   : > { %v15331_v1 = vsub.f32 %v15014_v10, %v5472_v45  ;;  %v15334_v5 = vsub.f32 %v15016_v41, %v5472_v45  ;;  %v5424_v32 = vpop.xlane.xlu1 %5423  ;;  %v18196_v10 = vld [vmem:[#allocation112_spill] sm:$0xff]  ;;  %v15361_v45 = vrot.slane %v5351_v19, %v18201_v24 }
 0xbb8   : > { %10764 = vrsqrt.f32 %v5739_v8  ;;  %v5473_v22 = vmul.f32 0.00390625, %v5424_v32  ;;  %v5618_v49 = vpop.xlane.xlu0 %5617  ;;  %v18202_v32 = vld [vmem:[#allocation69_spill] sm:$0xff] }
 0xbb9   : > { %v5590_v62 = vmul.f32 %v15331_v1, %v15331_v1  ;;  %v5591_v40 = vmul.f32 %v15334_v5, %v15334_v5  ;;  %v5708_v46 = vmul.f32 0.00390625, %v5618_v49  ;;  %v18203_v49 = vld [vmem:[#allocation106_spill] sm:$0xff] }
 0xbba   : > { %v15341_v3 = vsub.f32 %v15024_v7, %v5473_v22  ;;  %v15344_v43 = vsub.f32 %v18196_v10, %v5473_v22  ;;  %v15364_v22 = vrot.slane %v5351_v19, %v18202_v32 }
 0xbbb   : > { %v5740_v41 = vadd.f32 1e-05, %v5708_v46  ;;  %v5621_v57 = vpop.xlane.xlu1 %5620  ;;  %v5676_v36 = vadd.f32 %v5591_v40, %v5590_v62  ;;  %v18204_v46 = vld [vmem:[#allocation92_spill] sm:$0xff] }
 0xbbc   : > { %18195 = vst [vmem:[#allocation122_spill] sm:$0xff] %v15341_v3  ;;  %18197 = vst [vmem:[#allocation117_spill] sm:$0xff] %v15344_v43  ;;  %v5592_v26 = vmul.f32 %v15341_v3, %v15341_v3  ;;  %v5593_v17 = vmul.f32 %v15344_v43, %v15344_v43  ;;  %v5709_v56 = vmul.f32 0.00390625, %v5621_v57  ;;  %v15369_v57 = vrot.slane %v5352_v2, %v18202_v32  ;;  %v18215_v3 = vld [vmem:[#allocation95_spill] sm:$0xff] }
 0xbbd   : > { %10766 = vrsqrt.f32 %v5740_v41  ;;  %5677 = vadd.xlane.f32.xlu0 %v5676_v36 }
 0xbbe   : > { %v5741_v7 = vadd.f32 1e-05, %v5709_v56  ;;  %v5679_v34 = vadd.f32 %v5593_v17, %v5592_v26  ;;  %v15378_v56 = vrot.slane %v5352_v2, %v18201_v24 }
 0xbbf   : > { %v10763_v47 = vpop.eup %10762  ;;  %v5427_v8 = vpop.xlane.xlu0 %5426 }
 0xbc0   : > { %v5802_v62 = vmul.f32 %v10763_v47, %v18203_v49  ;;  %10768 = vrsqrt.f32 %v5741_v7  ;;  %5680 = vadd.xlane.f32.xlu1 %v5679_v34  ;;  %v5474_v40 = vmul.f32 0.00390625, %v5427_v8  ;;  %v5803_v10 = vmul.f32 %v10763_v47, %v18204_v46  ;;  %v18207_v34 = vld [vmem:[#allocation91_spill] sm:$0xff]  ;;  %v18208_v49 = vld [vmem:[#allocation109_spill] sm:$0xff] }
 0xbc2   : > { %v5430_v41 = vpop.xlane.xlu1 %5429  ;;  %v10765_v36 = vpop.eup %10764  ;;  %v15372_v26 = vsub.f32 %v15062_v33, %v5474_v40  ;;  %v15375_v17 = vsub.f32 %v15071_v9, %v5474_v40  ;;  %v5877_v7 = vmul.f32 %v15361_v45, %v5802_v62  ;;  %v5878_v32 = vmul.f32 %v15364_v22, %v5803_v10 }
 0xbc3   : > { %v5475_v19 = vmul.f32 0.00390625, %v5430_v41  ;;  %v5804_v8 = vmul.f32 %v10765_v36, %v18207_v34  ;;  %v5624_v47 = vpop.xlane.xlu0 %5623  ;;  %v5805_v46 = vmul.f32 %v10765_v36, %v18208_v49 }
 0xbc4   : > { %18205 = vst [vmem:[#allocation116_spill] sm:$0xff] %v15372_v26  ;;  %18206 = vst [vmem:[#allocation119_spill] sm:$0xff] %v15375_v17  ;;  %v5594_v33 = vmul.f32 %v15372_v26, %v15372_v26  ;;  %v5595_v9 = vmul.f32 %v15375_v17, %v15375_v17  ;;  %v5710_v41 = vmul.f32 0.00390625, %v5624_v47  ;;  %v15397_v10 = vadd.f32 %v15369_v57, %v5878_v32 }
 0xbc5   : > { %v15389_v40 = vsub.f32 %v15079_v25, %v5475_v19  ;;  %v15392_v2 = vsub.f32 %v15082_v18, %v5475_v19  ;;  %v5879_v62 = vmul.f32 %v15361_v45, %v5804_v8  ;;  %v5880_v36 = vmul.f32 %v15364_v22, %v5805_v46 }
 0xbc6   : > { %v5627_v34 = vpop.xlane.xlu1 %5626  ;;  %18211 = vst [vmem:[#allocation72_spill] sm:$0xff] %v15397_v10  ;;  %v5682_v17 = vadd.f32 %v5595_v9, %v5594_v33  ;;  %v5742_v18 = vadd.f32 1e-05, %v5710_v41  ;;  %v15407_v47 = vadd.f32 %v15378_v56, %v5877_v7  ;;  %v18218_v7 = vld [vmem:[#allocation115_spill] sm:$0xff] }
 0xbc7   : > { %18209 = vst [vmem:[#allocation118_spill] sm:$0xff] %v15389_v40  ;;  %18210 = vst [vmem:[#allocation78_spill] sm:$0xff] %v15392_v2  ;;  %v5596_v49 = vmul.f32 %v15389_v40, %v15389_v40  ;;  %v5597_v24 = vmul.f32 %v15392_v2, %v15392_v2  ;;  %v5711_v25 = vmul.f32 0.00390625, %v5627_v34  ;;  %v10767_v26 = vpop.eup %10766  ;;  %v5433_v19 = vpop.xlane.xlu0 %5432  ;;  %v15404_v8 = vadd.f32 %v15369_v57, %v5880_v36 }
 0xbc8   : > { %18213 = vst [vmem:[#allocation123_spill] sm:$0xff] %v15407_v47  ;;  %v15410_v32 = vadd.f32 %v15378_v56, %v5879_v62  ;;  %v5476_v43 = vmul.f32 0.00390625, %v5433_v19  ;;  %5683 = vadd.xlane.f32.xlu0 %v5682_v17  ;;  %v5807_v2 = vmul.f32 %v10767_v26, %v18215_v3  ;;  %10770 = vrsqrt.f32 %v5742_v18  ;;  %v18220_v19 = vld [vmem:[#allocation94_spill] sm:$0xff] }
 0xbc9   : > { %18212 = vst [vmem:[#allocation75_spill] sm:$0xff] %v15404_v8  ;;  %v5743_v46 = vadd.f32 1e-05, %v5711_v25  ;;  %v5685_v40 = vadd.f32 %v5597_v24, %v5596_v49  ;;  %v15415_v9 = vpack.c.bf16 %v15404_v8, %v15397_v10  ;;  %v5806_v34 = vmul.f32 %v10767_v26, %v18218_v7  ;;  %v18219_v49 = vld [vmem:[#allocation98_spill] sm:$0xff] }
 0xbca   : > { %18214 = vst [vmem:[#allocation90_spill] sm:$0xff] %v15410_v32  ;;  %v5436_v33 = vpop.xlane.xlu1 %5435  ;;  %v15419_v41 = vpack.c.bf16 %v15410_v32, %v15407_v47  ;;  %v10769_v62 = vpop.eup %10768  ;;  %v15423_v36 = vsub.f32 %v15106_v16, %v5476_v43  ;;  %v15426_v24 = vsub.f32 %v15115_v55, %v5476_v43  ;;  %v5882_v18 = vmul.f32 %v15364_v22, %v5807_v2 }
 0xbcb   : > { %18216 = vst [vmem:[#allocation84_spill] sm:$0xff] %v15415_v9  ;;  %10772 = vrsqrt.f32 %v5743_v46  ;;  %v5477_v3 = vmul.f32 0.00390625, %v5436_v33  ;;  %5686 = vadd.xlane.f32.xlu1 %v5685_v40  ;;  %6486 = vmatprep.mubr.bf16.mxu0 %v15415_v9  ;;  %v5630_v17 = vpop.xlane.xlu0 %5629  ;;  %v5809_v25 = vmul.f32 %v10769_v62, %v18219_v49  ;;  %v5808_v8 = vmul.f32 %v10769_v62, %v18220_v19  ;;  %v18221_v40 = vld [vmem:[#allocation107_spill] sm:$0xff] }
 0xbcc   : > { %18217 = vst [vmem:[#allocation87_spill] sm:$0xff] %v15419_v41  ;;  %v5881_v26 = vmul.f32 %v15361_v45, %v5806_v34  ;;  %v5598_v16 = vmul.f32 %v15423_v36, %v15423_v36  ;;  %v5599_v55 = vmul.f32 %v15426_v24, %v15426_v24  ;;  %6487 = vmatmul.mubr.bf16.vlgmr.msra.gmra.mrb[240].mxu0 %v15419_v41  ;;  %v5712_v33 = vmul.f32 0.00390625, %v5630_v17 }
 0xbcd   : > { %v15438_v43 = vsub.f32 %v15123_v58, %v5477_v3  ;;  %v15441_v46 = vsub.f32 %v18221_v40, %v5477_v3  ;;  %v5884_v7 = vmul.f32 %v15364_v22, %v5809_v25  ;;  %v15446_v34 = vadd.f32 %v15369_v57, %v5882_v18 }
 0xbce   : > { %v5633_v2 = vpop.xlane.xlu1 %5632  ;;  %v5883_v62 = vmul.f32 %v15361_v45, %v5808_v8  ;;  %v5688_v3 = vadd.f32 %v5599_v55, %v5598_v16  ;;  %v5744_v40 = vadd.f32 1e-05, %v5712_v33  ;;  %v15457_v25 = vadd.f32 %v15378_v56, %v5881_v26 }
 0xbcf   : > { %18222 = vst [vmem:[#allocation81_spill] sm:$0xff] %v15446_v34  ;;  %v5600_v49 = vmul.f32 %v15438_v43, %v15438_v43  ;;  %v5601_v58 = vmul.f32 %v15441_v46, %v15441_v46  ;;  %v5713_v19 = vmul.f32 0.00390625, %v5633_v2  ;;  %v5439_v32 = vpop.xlane.xlu0 %5438  ;;  %v15454_v17 = vadd.f32 %v15369_v57, %v5884_v7 }
 0xbd0   : > { %18224 = vst [vmem:[#allocation70_spill] sm:$0xff] %v15457_v25  ;;  %v15460_v18 = vadd.f32 %v15378_v56, %v5883_v62  ;;  %v5478_v10 = vmul.f32 0.00390625, %v5439_v32  ;;  %5689 = vadd.xlane.f32.xlu0 %v5688_v3  ;;  %10774 = vrsqrt.f32 %v5744_v40  ;;  %v10364_v62 = vld [vmem:[%s12000_s27 + $0xc] ss:$16 sps:$4 sm:$0xff]  }
 0xbd1   : > { %18223 = vst [vmem:[#allocation124_spill] sm:$0xff] %v15454_v17  ;;  %v5745_v8 = vadd.f32 1e-05, %v5713_v19  ;;  %v5691_v47 = vadd.f32 %v5601_v58, %v5600_v49  ;;  %v15464_v16 = vpack.c.bf16 %v15454_v17, %v15446_v34  ;;  %v18231_v3 = vld [vmem:[#allocation102_spill] sm:$0xff]  ;;  %6647 = vmatprep.subr.bf16.mxu0 %v10364_v62 }
 0xbd2   : > { %18225 = vst [vmem:[#allocation93_spill] sm:$0xff] %v15460_v18  ;;  %v5442_v41 = vpop.xlane.xlu1 %5441  ;;  %v15468_v55 = vpack.c.bf16 %v15460_v18, %v15457_v25  ;;  %v15471_v26 = vsub.f32 %v15150_v30, %v5478_v10  ;;  %v15474_v33 = vsub.f32 %v15159_v35, %v5478_v10  ;;  %v10771_v2 = vpop.eup %10770  ;;  %v10362_v10 = vld [vmem:[%s12000_s27 + $0x8] ss:$16 sps:$4 sm:$0xff]   ;;  %v18233_v18 = vld [vmem:[#allocation97_spill] sm:$0xff] }
 0xbd3   : > { %18226 = vst [vmem:[#allocation71_spill] sm:$0xff] %v15464_v16  ;;  %10776 = vrsqrt.f32 %v5745_v8  ;;  %v5479_v32 = vmul.f32 0.00390625, %v5442_v41  ;;  %5692 = vadd.xlane.f32.xlu1 %v5691_v47  ;;  %6496 = vmatprep.mubr.bf16.mxu0 %v15464_v16  ;;  %v5636_v7 = vpop.xlane.xlu0 %5635  ;;  %v5811_v40 = vmul.f32 %v10771_v2, %v18231_v3  ;;  %v18232_v8 = vld [vmem:[#allocation105_spill] sm:$0xff]  ;;  %v5810_v34 = vmul.f32 %v10771_v2, %v18233_v18  ;;  %v10367_v18 = vld [vmem:[%s12000_s27 + $0x2c] ss:$16 sps:$4 sm:$0xff]  }
 0xbd4   : > { %18227 = vst [vmem:[#allocation96_spill] sm:$0xff] %v15468_v55  ;;  %18228 = vst [vmem:[#allocation99_spill] sm:$0xff] %v15471_v26  ;;  %v5602_v58 = vmul.f32 %v15471_v26, %v15471_v26  ;;  %v5603_v19 = vmul.f32 %v15474_v33, %v15474_v33  ;;  %6497 = vmatmul.mubr.bf16.gmra.mrb[244].mxu0 %v15468_v55  ;;  %v5714_v47 = vmul.f32 0.00390625, %v5636_v7  ;;  %v10365_v26 = vld [vmem:[%s12000_s27 + $0x28] ss:$16 sps:$4 sm:$0xff]  }
 0xbd5   : > { %18229 = vst [vmem:[#allocation74_spill] sm:$0xff] %v15474_v33  ;;  %v10773_v49 = vpop.eup %10772  ;;  %v15483_v30 = vsub.f32 %v15167_v12, %v5479_v32  ;;  %v15486_v35 = vsub.f32 %v15170_v54, %v5479_v32  ;;  %6648 = vmatpush1.bf16.msra.mxu0 %v10362_v10  ;;  %v5886_v16 = vmul.f32 %v15364_v22, %v5811_v40 }
 0xbd6   : > { %v5639_v41 = vpop.xlane.xlu1 %5638  ;;  %v5813_v17 = vmul.f32 %v10773_v49, %v18232_v8  ;;  %v5694_v25 = vadd.f32 %v5603_v19, %v5602_v58  ;;  %v5746_v7 = vadd.f32 1e-05, %v5714_v47  ;;  %v18234_v8 = vld [vmem:[#allocation101_spill] sm:$0xff]  ;;  %v5885_v33 = vmul.f32 %v15361_v45, %v5810_v34  ;;  %6649 = vmatprep.subr.bf16.mxu0 %v10367_v18  ;;  %v18242_v18 = vld [vmem:[#allocation111_spill] sm:$0xff] }
 0xbd7   : > { %18230 = vst [vmem:[#allocation73_spill] sm:$0xff] %v15483_v30  ;;  %v5604_v12 = vmul.f32 %v15483_v30, %v15483_v30  ;;  %v5605_v54 = vmul.f32 %v15486_v35, %v15486_v35  ;;  %v5715_v32 = vmul.f32 0.00390625, %v5639_v41  ;;  %v5445_v55 = vpop.xlane.xlu0 %5444  ;;  %v5812_v9 = vmul.f32 %v10773_v49, %v18234_v8 }
 0xbd8   : > { %v5888_v3 = vmul.f32 %v15364_v22, %v5813_v17  ;;  %v5480_v62 = vmul.f32 0.00390625, %v5445_v55  ;;  %5695 = vadd.xlane.f32.xlu0 %v5694_v25  ;;  %10778 = vrsqrt.f32 %v5746_v7  ;;  %v15504_v58 = vadd.f32 %v15369_v57, %v5886_v16 }
 0xbd9   : > { %v5747_v2 = vadd.f32 1e-05, %v5715_v32  ;;  %v5697_v30 = vadd.f32 %v5605_v54, %v5604_v12  ;;  %v5887_v17 = vmul.f32 %v15361_v45, %v5812_v9  ;;  %6650 = vmatpush1.bf16.msra.mxu0 %v10365_v26  ;;  %v15521_v9 = vadd.f32 %v15378_v56, %v5885_v33  ;;  %v10368_v54 = vld [vmem:[%s12000_s27 + $0x48] ss:$16 sps:$4 sm:$0xff]  }
 0xbda   : > { %v5448_v41 = vpop.xlane.xlu1 %5447  ;;  %18235 = vst [vmem:[#allocation77_spill] sm:$0xff] %v15504_v58  ;;  %v15507_v19 = vadd.f32 %v15369_v57, %v5888_v3  ;;  %v15511_v55 = vsub.f32 %v15194_v53, %v5480_v62  ;;  %v15514_v34 = vsub.f32 %v15203_v38, %v5480_v62  ;;  %v10775_v49 = vpop.eup %10774  ;;  %v10370_v53 = vld [vmem:[%s12000_s27 + $0x4c] ss:$16 sps:$4 sm:$0xff]  }
 0xbdb   : > { %10780 = vrsqrt.f32 %v5747_v2  ;;  %v5481_v25 = vmul.f32 0.00390625, %v5448_v41  ;;  %5698 = vadd.xlane.f32.xlu1 %v5697_v30  ;;  %v5642_v16 = vpop.xlane.xlu0 %5641  ;;  %18238 = vst [vmem:[#allocation80_spill] sm:$0xff] %v15521_v9  ;;  %v15524_v47 = vadd.f32 %v15378_v56, %v5887_v17  ;;  %v18241_v3 = vld [vmem:[#allocation108_spill] sm:$0xff]  ;;  %6651 = vmatprep.subr.bf16.mxu0 %v10370_v53 }
 0xbdc   : > { %18236 = vst [vmem:[#allocation76_spill] sm:$0xff] %v15507_v19  ;;  %v15518_v10 = vpack.c.bf16 %v15507_v19, %v15504_v58  ;;  %v5606_v38 = vmul.f32 %v15511_v55, %v15511_v55  ;;  %v5607_v26 = vmul.f32 %v15514_v34, %v15514_v34  ;;  %v5716_v33 = vmul.f32 0.00390625, %v5642_v16  ;;  %v10373_v53 = vld [vmem:[%s12000_s27 + $0x6c] ss:$16 sps:$4 sm:$0xff]  }
 0xbdd   : > { %18239 = vst [vmem:[#allocation79_spill] sm:$0xff] %v15524_v47  ;;  %v10777_v40 = vpop.eup %10776  ;;  %v15532_v30 = vsub.f32 %v15211_v14, %v5481_v25  ;;  %v15535_v12 = vsub.f32 %v15214_v31, %v5481_v25  ;;  %v15541_v7 = vpack.c.bf16 %v15524_v47, %v15521_v9  ;;  %v5815_v8 = vmul.f32 %v10775_v49, %v18241_v3  ;;  %v18243_v3 = vld [vmem:[#allocation104_spill] sm:$0xff] }
 0xbde   : > { %18237 = vst [vmem:[#allocation100_spill] sm:$0xff] %v15518_v10  ;;  %v5645_v32 = vpop.xlane.xlu1 %5644  ;;  %6506 = vmatprep.mubr.bf16.mxu0 %v15518_v10  ;;  %v5817_v2 = vmul.f32 %v10777_v40, %v18242_v18  ;;  %v5700_v41 = vadd.f32 %v5607_v26, %v5606_v38  ;;  %6652 = vmatpush1.bf16.msra.mxu0 %v10368_v54  ;;  %v5748_v17 = vadd.f32 1e-05, %v5716_v33  ;;  %v18244_v9 = vld [vmem:[#allocation120_spill] sm:$0xff] }
 0xbdf   : > { %18240 = vst [vmem:[#allocation83_spill] sm:$0xff] %v15535_v12  ;;  %v5608_v14 = vmul.f32 %v15532_v30, %v15532_v30  ;;  %v5609_v31 = vmul.f32 %v15535_v12, %v15535_v12  ;;  %v5717_v62 = vmul.f32 0.00390625, %v5645_v32  ;;  %6507 = vmatmul.mubr.bf16.gmra.mrb[248].mxu0 %v15541_v7  ;;  %v5890_v25 = vmul.f32 %v15364_v22, %v5815_v8  ;;  %v10371_v12 = vld [vmem:[%s12000_s27 + $0x68] ss:$16 sps:$4 sm:$0xff]  }
 0xbe0   : > { %v5892_v16 = vmul.f32 %v15364_v22, %v5817_v2  ;;  %v5814_v18 = vmul.f32 %v10775_v49, %v18243_v3  ;;  %5701 = vadd.xlane.f32.xlu0 %v5700_v41  ;;  %v5648_v47 = vpop.xlane.xlu0 %5647  ;;  %v5816_v10 = vmul.f32 %v10777_v40, %v18244_v9  ;;  %10782 = vrsqrt.f32 %v5748_v17  ;;  %6653 = vmatprep.subr.bf16.mxu0 %v10373_v53  ;;  %v10376_v2 = vld [vmem:[%s12000_s27 + $0x8c] ss:$16 sps:$4 sm:$0xff]   ;;  %v18247_v17 = vld [vmem:[#allocation113_spill] sm:$0xff] }
 0xbe1   : > { %v5749_v19 = vadd.f32 1e-05, %v5717_v62  ;;  %v5703_v58 = vadd.f32 %v5609_v31, %v5608_v14  ;;  %v5718_v38 = vmul.f32 0.00390625, %v5648_v47  ;;  %v15557_v26 = vadd.f32 %v15369_v57, %v5890_v25  ;;  %v18245_v31 = vld [vmem:[#allocation110_spill] sm:$0xff]  ;;  %v18248_v3 = vld [vmem:[#allocation121_spill] sm:$0xff] }
 0xbe2   : > { %v15560_v54 = vadd.f32 %v15369_v57, %v5892_v16  ;;  %v5651_v49 = vpop.xlane.xlu1 %5650  ;;  %v5889_v33 = vmul.f32 %v15361_v45, %v5814_v18  ;;  %v5891_v32 = vmul.f32 %v15361_v45, %v5816_v10  ;;  %6654 = vmatpush1.bf16.msra.mxu0 %v10371_v12  ;;  %v10779_v9 = vpop.eup %10778  ;;  %v18246_v41 = vld [vmem:[#allocation114_spill] sm:$0xff] }
 0xbe3   : > { %10784 = vrsqrt.f32 %v5749_v19  ;;  %5704 = vadd.xlane.f32.xlu1 %v5703_v58  ;;  %v5750_v40 = vadd.f32 1e-05, %v5718_v38  ;;  %v5719_v8 = vmul.f32 0.00390625, %v5651_v49  ;;  %v5818_v62 = vmul.f32 %v10779_v9, %v18245_v31  ;;  %v10374_v12 = vld [vmem:[%s12000_s27 + $0x88] ss:$16 sps:$4 sm:$0xff]   ;;  %6655 = vmatprep.subr.bf16.mxu0 %v10376_v2 }
 0xbe4   : > { %v15566_v47 = vpack.c.bf16 %v15560_v54, %v15557_v26  ;;  %v15571_v19 = vadd.f32 %v15378_v56, %v5889_v33  ;;  %v15574_v58 = vadd.f32 %v15378_v56, %v5891_v32  ;;  %v5819_v10 = vmul.f32 %v10779_v9, %v18246_v41  ;;  %v10379_v9 = vld [vmem:[%s12000_s27 + $0xac] ss:$16 sps:$4 sm:$0xff]  }
 0xbe5   : > { %v10781_v14 = vpop.eup %10780  ;;  %10786 = vrsqrt.f32 %v5750_v40  ;;  %v5751_v16 = vadd.f32 1e-05, %v5719_v8  ;;  %v5893_v53 = vmul.f32 %v15361_v45, %v5818_v62  ;;  %v10377_v8 = vld [vmem:[%s12000_s27 + $0xa8] ss:$16 sps:$4 sm:$0xff]  }
 0xbe6   : > { %v5820_v25 = vmul.f32 %v10781_v14, %v18247_v17  ;;  %6516 = vmatprep.mubr.bf16.mxu0 %v15566_v47  ;;  %v5821_v18 = vmul.f32 %v10781_v14, %v18248_v3  ;;  %v15584_v38 = vpack.c.bf16 %v15574_v58, %v15571_v19  ;;  %v5894_v49 = vmul.f32 %v15364_v22, %v5819_v10  ;;  %v10382_v3 = vld [vmem:[%s12000_s27 + $0xcc] ss:$16 sps:$4 sm:$0xff]  }
 0xbe7   : > { %6656 = vmatpush1.bf16.msra.mxu0 %v10374_v12  ;;  %10788 = vrsqrt.f32 %v5751_v16  ;;  %v15602_v41 = vadd.f32 %v15378_v56, %v5893_v53 }
 0xbe8   : > { %v5895_v33 = vmul.f32 %v15361_v45, %v5820_v25  ;;  %v5896_v32 = vmul.f32 %v15364_v22, %v5821_v18  ;;  %6517 = vmatmul.mubr.bf16.gmra.mrb[252].mxu0 %v15584_v38  ;;  %v5654_v40 = vpop.xlane.xlu0 %5653  ;;  %v15596_v31 = vadd.f32 %v15369_v57, %v5894_v49  ;;  %6657 = vmatprep.subr.bf16.mxu0 %v10379_v9  ;;  %v10385_v9 = vld [vmem:[%s12002_s8 + $0x4] ss:$8 sps:$4 sm:$0xff]  }
 0xbe9   : > { %v5720_v14 = vmul.f32 0.00390625, %v5654_v40  ;;  %7428 = vmatprep.subr.bf16.mxu1 %v10385_v9  ;;  %v10389_v9 = vld [vmem:[%s12002_s8 + $0x10] ss:$8 sps:$4 sm:$0xff]  }
 0xbea   : > { %v15593_v2 = vadd.f32 %v15378_v56, %v5895_v33  ;;  %v15599_v62 = vadd.f32 %v15369_v57, %v5896_v32  ;;  %v5657_v10 = vpop.xlane.xlu1 %5656  ;;  %v10783_v12 = vpop.eup %10782  ;;  %v10380_v32 = vld [vmem:[%s12000_s27 + $0xc8] ss:$16 sps:$4 sm:$0xff]  }
 0xbeb   : > { %6658 = vmatpush1.bf16.msra.mxu0 %v10377_v8  ;;  %v5752_v17 = vadd.f32 1e-05, %v5720_v14  ;;  %v5721_v25 = vmul.f32 0.00390625, %v5657_v10  ;;  %v5822_v33 = vmul.f32 %v10783_v12, %v15197_v51  ;;  %v5823_v53 = vmul.f32 %v10783_v12, %v15200_v44  ;;  %v10383_v10 = vld [vmem:[%s12002_s8] ss:$8 sps:$4 sm:$0xff]  }
 0xbec   : > { %18249 = vst [vmem:[#allocation82_spill] sm:$0xff] %v15599_v62  ;;  %v15606_v16 = vpack.c.bf16 %v15599_v62, %v15596_v31  ;;  %v15611_v49 = vpack.c.bf16 %v15593_v2, %v15602_v41  ;;  %6659 = vmatprep.subr.bf16.mxu0 %v10382_v3  ;;  %7429 = vmatpush1.bf16.msra.mxu1 %v10383_v10  ;;  %v10391_v3 = vld [vmem:[%s12002_s8 + $0x14] ss:$8 sps:$4 sm:$0xff]  }
 0xbed   : > { %v10785_v18 = vpop.eup %10784  ;;  %10790 = vrsqrt.f32 %v5752_v17  ;;  %v5753_v8 = vadd.f32 1e-05, %v5721_v25  ;;  %v5897_v62 = vmul.f32 %v15361_v45, %v5822_v33  ;;  %v5898_v51 = vmul.f32 %v15364_v22, %v5823_v53  ;;  %v10388_v17 = vld [vmem:[%s12000_s27 + $0xec] ss:$16 sps:$4 sm:$0xff]   ;;  %v10386_v25 = vld [vmem:[%s12000_s27 + $0xe8] ss:$16 sps:$4 sm:$0xff]   ;;  %7430 = vmatprep.subr.bf16.mxu1 %v10391_v3 }
 0xbee   : > { %v5824_v40 = vmul.f32 %v10785_v18, %v15217_v61  ;;  %6526 = vmatprep.mubr.bf16.mxu0 %v15606_v16  ;;  %v5825_v14 = vmul.f32 %v10785_v18, %v15220_v63 }
 0xbef   : > { %6660 = vmatpush1.bf16.msra.mxu0 %v10380_v32  ;;  %v10787_v44 = vpop.eup %10786  ;;  %10792 = vrsqrt.f32 %v5753_v8  ;;  %v15634_v53 = vadd.f32 %v15369_v57, %v5898_v51  ;;  %v10394_v51 = vld [vmem:[%s12000_s27 + $0x10c] ss:$16 sps:$4 sm:$0xff]  }
 0xbf0   : > { %v5899_v61 = vmul.f32 %v15361_v45, %v5824_v40  ;;  %v5900_v12 = vmul.f32 %v15364_v22, %v5825_v14  ;;  %6527 = vmatmul.mubr.bf16.gmra.mrb[0].mxu0 %v15611_v49  ;;  %v5827_v63 = vmul.f32 %v10787_v44, %v15234_v59  ;;  %6661 = vmatprep.subr.bf16.mxu0 %v10388_v17  ;;  %v10395_v17 = vld [vmem:[%s12002_s8 + $0x20] ss:$8 sps:$4 sm:$0xff]  }
 0xbf1   : > { %v10789_v18 = vpop.eup %10788  ;;  %v15641_v40 = vadd.f32 %v15378_v56, %v5897_v62  ;;  %v5826_v62 = vmul.f32 %v10787_v44, %v15231_v48  ;;  %7431 = vmatpush1.bf16.msra.mxu1 %v10389_v9  ;;  %v10400_v44 = vld [vmem:[%s12000_s27 + $0x12c] ss:$16 sps:$4 sm:$0xff]  }
 0xbf2   : > { %v15631_v33 = vadd.f32 %v15378_v56, %v5899_v61  ;;  %v15637_v32 = vadd.f32 %v15369_v57, %v5900_v12  ;;  %v5828_v59 = vmul.f32 %v10789_v18, %v15241_v50  ;;  %v5829_v8 = vmul.f32 %v10789_v18, %v15244_v23  ;;  %v10392_v23 = vld [vmem:[%s12000_s27 + $0x108] ss:$16 sps:$4 sm:$0xff]   ;;  %v10397_v12 = vld [vmem:[%s12002_s8 + $0x24] ss:$8 sps:$4 sm:$0xff]  }
 0xbf3   : > { %v5902_v14 = vmul.f32 %v15364_v22, %v5827_v63  ;;  %6662 = vmatpush1.bf16.msra.mxu0 %v10386_v25  ;;  %7432 = vmatprep.subr.bf16.mxu1 %v10397_v12  ;;  %v5901_v18 = vmul.f32 %v15361_v45, %v5826_v62 }
 0xbf4   : > { %v15648_v10 = vpack.c.bf16 %v15637_v32, %v15634_v53  ;;  %v15653_v61 = vpack.c.bf16 %v15631_v33, %v15641_v40  ;;  %v5904_v50 = vmul.f32 %v15364_v22, %v5829_v8  ;;  %6663 = vmatprep.subr.bf16.mxu0 %v10394_v51  ;;  %v5903_v63 = vmul.f32 %v15361_v45, %v5828_v59  ;;  %v10398_v8 = vld [vmem:[%s12000_s27 + $0x128] ss:$16 sps:$4 sm:$0xff]  }
 0xbf5   : > { %v15663_v25 = vadd.f32 %v15369_v57, %v5902_v14  ;;  %v10403_v14 = vld [vmem:[%s12002_s8 + $0x34] ss:$8 sps:$4 sm:$0xff]   ;;  %7433 = vmatpush1.bf16.msra.mxu1 %v10395_v17  ;;  %v15688_v17 = vadd.f32 %v15378_v56, %v5901_v18 }
 0xbf6   : > { %6536 = vmatprep.mubr.bf16.mxu0 %v15648_v10  ;;  %v15666_v3 = vadd.f32 %v15369_v57, %v5904_v50  ;;  %v10401_v50 = vld [vmem:[%s12002_s8 + $0x30] ss:$8 sps:$4 sm:$0xff]   ;;  %v15680_v62 = vadd.f32 %v15378_v56, %v5903_v63  ;;  %7434 = vmatprep.subr.bf16.mxu1 %v10403_v14 }
 0xbf7   : > { %18250 = vst [vmem:[#allocation103_spill] sm:$0xff] %v15663_v25  ;;  %6664 = vmatpush1.bf16.msra.mxu0 %v10392_v23  ;;  %v10791_v48 = vpop.eup %10790  ;;  %18253 = vst [vmem:[#allocation89_spill] sm:$0xff] %v15688_v17 }
 0xbf8   : > { %18251 = vst [vmem:[#allocation86_spill] sm:$0xff] %v15666_v3  ;;  %6537 = vmatmul.mubr.bf16.gmra.mrb[4].mxu0 %v15653_v61  ;;  %v15673_v9 = vpack.c.bf16 %v15666_v3, %v15663_v25  ;;  %v5831_v59 = vmul.f32 %v10791_v48, %v15254_v0  ;;  %6665 = vmatprep.subr.bf16.mxu0 %v10400_v44  ;;  %18252 = vst [vmem:[#allocation85_spill] sm:$0xff] %v15680_v62  ;;  %v10406_v3 = vld [vmem:[%s12000_s27 + $0x14c] ss:$16 sps:$4 sm:$0xff]   ;;  %v10404_v25 = vld [vmem:[%s12000_s27 + $0x148] ss:$16 sps:$4 sm:$0xff]  }
 0xbf9   : > { %v10793_v51 = vpop.eup %10792  ;;  %v5830_v44 = vmul.f32 %v10791_v48, %v15251_v52  ;;  %7435 = vmatpush1.bf16.msra.mxu1 %v10401_v50  ;;  %v10412_v48 = vld [vmem:[%s12000_s27 + $0x16c] ss:$16 sps:$4 sm:$0xff]  }
 0xbfa   : > { %v5832_v23 = vmul.f32 %v10793_v51, %v15261_v37  ;;  %6546 = vmatprep.mubr.bf16.mxu0 %v15673_v9  ;;  %v5833_v12 = vmul.f32 %v10793_v51, %v15264_v60  ;;  %v5906_v0 = vmul.f32 %v15364_v22, %v5831_v59  ;;  %v10409_v37 = vld [vmem:[%s12002_s8 + $0x44] ss:$8 sps:$4 sm:$0xff]   ;;  %v10407_v60 = vld [vmem:[%s12002_s8 + $0x40] ss:$8 sps:$4 sm:$0xff]   ;;  %v15697_v59 = vpack.c.bf16 %v15680_v62, %v15688_v17  ;;  %v10415_v50 = vld [vmem:[%s12002_s8 + $0x54] ss:$8 sps:$4 sm:$0xff]  }
 0xbfb   : > { %6666 = vmatpush1.bf16.msra.mxu0 %v10398_v8  ;;  %7436 = vmatprep.subr.bf16.mxu1 %v10409_v37  ;;  %v10410_v51 = vld [vmem:[%s12000_s27 + $0x168] ss:$16 sps:$4 sm:$0xff]  }
 0xbfc   : > { %v5908_v63 = vmul.f32 %v15364_v22, %v5833_v12  ;;  %6667 = vmatprep.subr.bf16.mxu0 %v10406_v3  ;;  %v5907_v8 = vmul.f32 %v15361_v45, %v5832_v23  ;;  %v15701_v18 = vadd.f32 %v15369_v57, %v5906_v0  ;;  %v5905_v3 = vmul.f32 %v15361_v45, %v5830_v44  ;;  %v10413_v23 = vld [vmem:[%s12002_s8 + $0x50] ss:$8 sps:$4 sm:$0xff]   ;;  %v10418_v12 = vld [vmem:[%s12000_s27 + $0x18c] ss:$16 sps:$4 sm:$0xff]   ;;  %v10419_v37 = vld [vmem:[%s12002_s8 + $0x60] ss:$8 sps:$4 sm:$0xff]  }
 0xbfd   : > { %7437 = vmatpush1.bf16.msra.mxu1 %v10407_v60  ;;  %v10416_v44 = vld [vmem:[%s12000_s27 + $0x188] ss:$16 sps:$4 sm:$0xff]   ;;  %v10424_v60 = vld [vmem:[%s12000_s27 + $0x1ac] ss:$16 sps:$4 sm:$0xff]  }
 0xbfe   : > { %18254 = vst [vmem:[#allocation88_spill] sm:$0xff] %v15701_v18  ;;  %v15704_v52 = vadd.f32 %v15369_v57, %v5908_v63  ;;  %7438 = vmatprep.subr.bf16.mxu1 %v10415_v50  ;;  %v15722_v0 = vadd.f32 %v15378_v56, %v5905_v3  ;;  %v10421_v63 = vld [vmem:[%s12002_s8 + $0x64] ss:$8 sps:$4 sm:$0xff]   ;;  %v10422_v3 = vld [vmem:[%s12000_s27 + $0x1a8] ss:$16 sps:$4 sm:$0xff]  }
 0xbff   : > { %6668 = vmatpush1.bf16.msra.mxu0 %v10404_v25  ;;  %v15717_v25 = vadd.f32 %v15378_v56, %v5907_v8  ;;  %v10425_v50 = vld [vmem:[%s12002_s8 + $0x70] ss:$8 sps:$4 sm:$0xff]  }
 0xc00   : > { %18255 = vst [vmem:[#allocation112_spill] sm:$0xff] %v15704_v52  ;;  %6547 = vmatmul.mubr.bf16.gmra.mrb[8].mxu0 %v15697_v59  ;;  %v15711_v14 = vpack.c.bf16 %v15704_v52, %v15701_v18  ;;  %6669 = vmatprep.subr.bf16.mxu0 %v10412_v48  ;;  %18257 = vst [vmem:[#allocation92_spill] sm:$0xff] %v15722_v0  ;;  %v10427_v48 = vld [vmem:[%s12002_s8 + $0x74] ss:$8 sps:$4 sm:$0xff]  }
 0xc01   : > { %18256 = vst [vmem:[#allocation106_spill] sm:$0xff] %v15717_v25  ;;  %7439 = vmatpush1.bf16.msra.mxu1 %v10413_v23  ;;  %v15730_v8 = vpack.c.bf16 %v15717_v25, %v15722_v0  ;;  %v10433_v23 = vld [vmem:[%s12002_s8 + $0x84] ss:$8 sps:$4 sm:$0xff]   ;;  %v10439_v52 = vld [vmem:[%s12002_s8 + $0x94] ss:$8 sps:$4 sm:$0xff]  }
 0xc02   : > { %6556 = vmatprep.mubr.bf16.mxu0 %v15711_v14  ;;  %7440 = vmatprep.subr.bf16.mxu1 %v10421_v63  ;;  %v10436_v63 = vld [vmem:[%s12000_s27 + $0x1ec] ss:$16 sps:$4 sm:$0xff]  }
 0xc03   : > { %6670 = vmatpush1.bf16.msra.mxu0 %v10410_v51  ;;  %v10430_v51 = vld [vmem:[%s12000_s27 + $0x1cc] ss:$16 sps:$4 sm:$0xff]  }
 0xc04   : > { %6671 = vmatprep.subr.bf16.mxu0 %v10418_v12  ;;  %v10428_v12 = vld [vmem:[%s12000_s27 + $0x1c8] ss:$16 sps:$4 sm:$0xff]  }
 0xc05   : > { %7441 = vmatpush1.bf16.msra.mxu1 %v10419_v37  ;;  %v10437_v37 = vld [vmem:[%s12002_s8 + $0x90] ss:$8 sps:$4 sm:$0xff]  }
 0xc06   : > { %7442 = vmatprep.subr.bf16.mxu1 %v10427_v48  ;;  %v10442_v48 = vld [vmem:[%s12002_s8 + $0xa4] ss:$8 sps:$4 sm:$0xff]  }
 0xc07   : > { %6672 = vmatpush1.bf16.msra.mxu0 %v10416_v44  ;;  %v10431_v44 = vld [vmem:[%s12002_s8 + $0x80] ss:$8 sps:$4 sm:$0xff]  }
 0xc08   : > { %6557 = vmatmul.mubr.bf16.gmra.mrb[12].mxu0 %v15730_v8  ;;  %6673 = vmatprep.subr.bf16.mxu0 %v10424_v60  ;;  %v10434_v60 = vld [vmem:[%s12000_s27 + $0x1e8] ss:$16 sps:$4 sm:$0xff]  }
 0xc09   : > { %7443 = vmatpush1.bf16.msra.mxu1 %v10425_v50  ;;  %v10443_v50 = vld [vmem:[%s12002_s8 + $0xb0] ss:$8 sps:$4 sm:$0xff]  }
 0xc0a   : > { %7444 = vmatprep.subr.bf16.mxu1 %v10433_v23  ;;  %v10448_v23 = vld [vmem:[%s12002_s8 + $0xc4] ss:$8 sps:$4 sm:$0xff]  }
 0xc0b   : > { %6674 = vmatpush1.bf16.msra.mxu0 %v10422_v3  ;;  %v10440_v3 = vld [vmem:[%s12002_s8 + $0xa0] ss:$8 sps:$4 sm:$0xff]  }
 0xc0c   : > { %6675 = vmatprep.subr.bf16.mxu0 %v10430_v51  ;;  %v10445_v51 = vld [vmem:[%s12002_s8 + $0xb4] ss:$8 sps:$4 sm:$0xff]  }
 0xc0d   : > { %7445 = vmatpush1.bf16.msra.mxu1 %v10431_v44  ;;  %v10454_v44 = vld [vmem:[%s12002_s8 + $0xe4] ss:$8 sps:$4 sm:$0xff]  }
 0xc0e   : > { %7446 = vmatprep.subr.bf16.mxu1 %v10439_v52  ;;  %v10449_v52 = vld [vmem:[%s12002_s8 + $0xd0] ss:$8 sps:$4 sm:$0xff]  }
 0xc0f   : > { %6676 = vmatpush1.bf16.msra.mxu0 %v10428_v12  ;;  %v10446_v12 = vld [vmem:[%s12002_s8 + $0xc0] ss:$8 sps:$4 sm:$0xff]  }
 0xc10   : > { %6677 = vmatprep.subr.bf16.mxu0 %v10436_v63  ;;  %v10451_v63 = vld [vmem:[%s12002_s8 + $0xd4] ss:$8 sps:$4 sm:$0xff]  }
 0xc11   : > { %7447 = vmatpush1.bf16.msra.mxu1 %v10437_v37  ;;  %v10457_v37 = vld [vmem:[%s12002_s8 + $0xf4] ss:$8 sps:$4 sm:$0xff]  }
 0xc12   : > { %7448 = vmatprep.subr.bf16.mxu1 %v10442_v48  ;;  %v10455_v48 = vld [vmem:[%s12002_s8 + $0xf0] ss:$8 sps:$4 sm:$0xff]  }
 0xc13   : > { %6678 = vmatpush1.bf16.msra.mxu0 %v10434_v60  ;;  %v10452_v60 = vld [vmem:[%s12002_s8 + $0xe0] ss:$8 sps:$4 sm:$0xff]  }
 0xc15   : > { %7449 = vmatpush1.bf16.msra.mxu1 %v10440_v3 }
 0xc16   : > { %7450 = vmatprep.subr.bf16.mxu1 %v10445_v51 }
 0xc19   : > { %7451 = vmatpush1.bf16.msra.mxu1 %v10443_v50 }
 0xc1a   : > { %7452 = vmatprep.subr.bf16.mxu1 %v10448_v23 }
 0xc1d   : > { %7453 = vmatpush1.bf16.msra.mxu1 %v10446_v12 }
 0xc1e   : > { %7454 = vmatprep.subr.bf16.mxu1 %v10451_v63 }
 0xc21   : > { %7455 = vmatpush1.bf16.msra.mxu1 %v10449_v52 }
 0xc22   : > { %7456 = vmatprep.subr.bf16.mxu1 %v10454_v44 }
 0xc25   : > { %7457 = vmatpush1.bf16.msra.mxu1 %v10452_v60 }
 0xc26   : > { %7458 = vmatprep.subr.bf16.mxu1 %v10457_v37 }
 0xc29   : > { %7459 = vmatpush1.bf16.msra.mxu1 %v10455_v48 }
 0xc2e   : > { %v5660_v3 = vpop.xlane.xlu0 %5659 }
 0xc2f   : > { %v5722_v25 = vmul.f32 0.00390625, %v5660_v3 }
 0xc30   : > { %v5663_v51 = vpop.xlane.xlu1 %5662 }
 0xc31   : > { %v5754_v18 = vadd.f32 1e-05, %v5722_v25  ;;  %v5723_v50 = vmul.f32 0.00390625, %v5663_v51 }
 0xc33   : > { %10794 = vrsqrt.f32 %v5754_v18  ;;  %v5755_v23 = vadd.f32 1e-05, %v5723_v50 }
 0xc35   : > { %10796 = vrsqrt.f32 %v5755_v23 }
 0xc36   : > { %v5666_v12 = vpop.xlane.xlu0 %5665 }
 0xc37   : > { %v5724_v0 = vmul.f32 0.00390625, %v5666_v12 }
 0xc38   : > { %v5669_v63 = vpop.xlane.xlu1 %5668 }
 0xc39   : > { %v5756_v62 = vadd.f32 1e-05, %v5724_v0  ;;  %v5725_v52 = vmul.f32 0.00390625, %v5669_v63 }
 0xc3b   : > { %10798 = vrsqrt.f32 %v5756_v62  ;;  %v5757_v44 = vadd.f32 1e-05, %v5725_v52 }
 0xc3d   : > { %v10795_v17 = vpop.eup %10794  ;;  %10800 = vrsqrt.f32 %v5757_v44 }
 0xc3e   : > { %v5834_v60 = vmul.f32 %v10795_v17, %v15271_v11  ;;  %v5672_v37 = vpop.xlane.xlu0 %5671  ;;  %v5835_v48 = vmul.f32 %v10795_v17, %v15274_v42 }
 0xc3f   : > { %v10797_v3 = vpop.eup %10796  ;;  %v5726_v25 = vmul.f32 0.00390625, %v5672_v37 }
 0xc40   : > { %v5909_v18 = vmul.f32 %v15361_v45, %v5834_v60  ;;  %v5836_v51 = vmul.f32 %v10797_v3, %v15281_v39  ;;  %v5675_v50 = vpop.xlane.xlu1 %5674  ;;  %v5837_v23 = vmul.f32 %v10797_v3, %v15284_v15  ;;  %v5910_v0 = vmul.f32 %v15364_v22, %v5835_v48 }
 0xc41   : > { %v5758_v62 = vadd.f32 1e-05, %v5726_v25  ;;  %v5727_v12 = vmul.f32 0.00390625, %v5675_v50 }
 0xc42   : > { %v5911_v63 = vmul.f32 %v15361_v45, %v5836_v51  ;;  %v5912_v11 = vmul.f32 %v15364_v22, %v5837_v23  ;;  %v15765_v42 = vadd.f32 %v15378_v56, %v5909_v18  ;;  %v15771_v39 = vadd.f32 %v15369_v57, %v5910_v0 }
 0xc43   : > { %10802 = vrsqrt.f32 %v5758_v62  ;;  %v5759_v52 = vadd.f32 1e-05, %v5727_v12 }
 0xc44   : > { %v15768_v17 = vadd.f32 %v15378_v56, %v5911_v63  ;;  %v15774_v15 = vadd.f32 %v15369_v57, %v5912_v11 }
 0xc45   : > { %v10799_v44 = vpop.eup %10798  ;;  %10804 = vrsqrt.f32 %v5759_v52 }
 0xc46   : > { %v15778_v60 = vpack.c.bf16 %v15768_v17, %v15765_v42  ;;  %v5838_v37 = vmul.f32 %v10799_v44, %v15291_v6  ;;  %v15783_v48 = vpack.c.bf16 %v15774_v15, %v15771_v39  ;;  %v5839_v3 = vmul.f32 %v10799_v44, %v15294_v28 }
 0xc47   : > { %v10801_v25 = vpop.eup %10800 }
 0xc48   : > { %v5913_v18 = vmul.f32 %v15361_v45, %v5838_v37  ;;  %v5840_v51 = vmul.f32 %v10801_v25, %v15301_v13  ;;  %6566 = vmatprep.mubr.bf16.mxu0 %v15783_v48  ;;  %v5841_v50 = vmul.f32 %v10801_v25, %v15304_v20  ;;  %v5914_v23 = vmul.f32 %v15364_v22, %v5839_v3 }
 0xc49   : > { %6567 = vmatmul.mubr.bf16.gmra.mrb[16].mxu0 %v15778_v60 }
 0xc4a   : > { %v5915_v6 = vmul.f32 %v15361_v45, %v5840_v51  ;;  %v5678_v0 = vpop.xlane.xlu0 %5677  ;;  %v5916_v62 = vmul.f32 %v15364_v22, %v5841_v50  ;;  %v15795_v28 = vadd.f32 %v15378_v56, %v5913_v18  ;;  %v15801_v13 = vadd.f32 %v15369_v57, %v5914_v23 }
 0xc4b   : > { %v5728_v12 = vmul.f32 0.00390625, %v5678_v0 }
 0xc4c   : > { %18258 = vst [vmem:[#allocation91_spill] sm:$0xff] %v15795_v28  ;;  %v15798_v63 = vadd.f32 %v15378_v56, %v5915_v6  ;;  %18260 = vst [vmem:[#allocation95_spill] sm:$0xff] %v15801_v13  ;;  %v15804_v20 = vadd.f32 %v15369_v57, %v5916_v62 }
 0xc4d   : > { %v10803_v11 = vpop.eup %10802  ;;  %v5760_v52 = vadd.f32 1e-05, %v5728_v12  ;;  %v5681_v44 = vpop.xlane.xlu1 %5680 }
 0xc4e   : > { %18259 = vst [vmem:[#allocation109_spill] sm:$0xff] %v15798_v63  ;;  %18261 = vst [vmem:[#allocation115_spill] sm:$0xff] %v15804_v20  ;;  %v15808_v37 = vpack.c.bf16 %v15798_v63, %v15795_v28  ;;  %v5842_v3 = vmul.f32 %v10803_v11, %v15311_v21  ;;  %v5729_v25 = vmul.f32 0.00390625, %v5681_v44  ;;  %v15813_v18 = vpack.c.bf16 %v15804_v20, %v15801_v13 }
 0xc4f   : > { %v10805_v51 = vpop.eup %10804  ;;  %10806 = vrsqrt.f32 %v5760_v52  ;;  %v5843_v50 = vmul.f32 %v10803_v11, %v15314_v4 }
 0xc50   : > { %v5917_v23 = vmul.f32 %v15361_v45, %v5842_v3  ;;  %v5844_v6 = vmul.f32 %v10805_v51, %v15321_v29  ;;  %v5761_v0 = vadd.f32 1e-05, %v5729_v25  ;;  %6576 = vmatprep.mubr.bf16.mxu0 %v15813_v18  ;;  %v5845_v62 = vmul.f32 %v10805_v51, %v15324_v27 }
 0xc51   : > { %6577 = vmatmul.mubr.bf16.gmra.mrb[20].mxu0 %v15808_v37  ;;  %v5918_v21 = vmul.f32 %v15364_v22, %v5843_v50 }
 0xc52   : > { %v5919_v12 = vmul.f32 %v15361_v45, %v5844_v6  ;;  %10808 = vrsqrt.f32 %v5761_v0  ;;  %v5920_v52 = vmul.f32 %v15364_v22, %v5845_v62  ;;  %v15825_v4 = vadd.f32 %v15378_v56, %v5917_v23 }
 0xc53   : > { %v15831_v29 = vadd.f32 %v15369_v57, %v5918_v21 }
 0xc54   : > { %18262 = vst [vmem:[#allocation98_spill] sm:$0xff] %v15825_v4  ;;  %v15828_v11 = vadd.f32 %v15378_v56, %v5919_v12  ;;  %v15834_v27 = vadd.f32 %v15369_v57, %v5920_v52 }
 0xc55   : > { %18264 = vst [vmem:[#allocation107_spill] sm:$0xff] %v15831_v29  ;;  %v5684_v44 = vpop.xlane.xlu0 %5683 }
 0xc56   : > { %18263 = vst [vmem:[#allocation94_spill] sm:$0xff] %v15828_v11  ;;  %18265 = vst [vmem:[#allocation102_spill] sm:$0xff] %v15834_v27  ;;  %v15838_v3 = vpack.c.bf16 %v15828_v11, %v15825_v4  ;;  %v5730_v25 = vmul.f32 0.00390625, %v5684_v44  ;;  %v15842_v51 = vpack.c.bf16 %v15834_v27, %v15831_v29  ;;  %v18266_v27 = vld [vmem:[#allocation122_spill] sm:$0xff] }
 0xc58   : > { %v5687_v50 = vpop.xlane.xlu1 %5686  ;;  %v5762_v23 = vadd.f32 1e-05, %v5730_v25  ;;  %6586 = vmatprep.mubr.bf16.mxu0 %v15842_v51  ;;  %v18267_v25 = vld [vmem:[#allocation117_spill] sm:$0xff] }
 0xc59   : > { %v5731_v6 = vmul.f32 0.00390625, %v5687_v50  ;;  %v10807_v0 = vpop.eup %10806  ;;  %6587 = vmatmul.mubr.bf16.gmra.mrb[24].mxu0 %v15838_v3 }
 0xc5a   : > { %v5846_v62 = vmul.f32 %v10807_v0, %v15331_v1  ;;  %10810 = vrsqrt.f32 %v5762_v23  ;;  %v5847_v12 = vmul.f32 %v10807_v0, %v15334_v5 }
 0xc5b   : > { %v5763_v21 = vadd.f32 1e-05, %v5731_v6 }
 0xc5c   : > { %v10809_v52 = vpop.eup %10808  ;;  %v5921_v44 = vmul.f32 %v15361_v45, %v5846_v62  ;;  %v5922_v4 = vmul.f32 %v15364_v22, %v5847_v12  ;;  %v18273_v12 = vld [vmem:[#allocation119_spill] sm:$0xff] }
 0xc5d   : > { %10812 = vrsqrt.f32 %v5763_v21  ;;  %v5848_v11 = vmul.f32 %v10809_v52, %v18266_v27  ;;  %v5690_v29 = vpop.xlane.xlu0 %5689  ;;  %v5849_v50 = vmul.f32 %v10809_v52, %v18267_v25 }
 0xc5e   : > { %v5732_v20 = vmul.f32 0.00390625, %v5690_v29  ;;  %v15855_v5 = vadd.f32 %v15378_v56, %v5921_v44  ;;  %v15861_v27 = vadd.f32 %v15369_v57, %v5922_v4 }
 0xc5f   : > { %v5923_v63 = vmul.f32 %v15361_v45, %v5848_v11  ;;  %v5924_v1 = vmul.f32 %v15364_v22, %v5849_v50 }
 0xc60   : > { %v5693_v13 = vpop.xlane.xlu1 %5692  ;;  %v5764_v23 = vadd.f32 1e-05, %v5732_v20  ;;  %18268 = vst [vmem:[#allocation105_spill] sm:$0xff] %v15855_v5  ;;  %18270 = vst [vmem:[#allocation101_spill] sm:$0xff] %v15861_v27 }
 0xc61   : > { %v5733_v6 = vmul.f32 0.00390625, %v5693_v13  ;;  %v15858_v0 = vadd.f32 %v15378_v56, %v5923_v63  ;;  %v15864_v62 = vadd.f32 %v15369_v57, %v5924_v1  ;;  %v18272_v63 = vld [vmem:[#allocation116_spill] sm:$0xff]  ;;  %v18274_v1 = vld [vmem:[#allocation118_spill] sm:$0xff] }
 0xc62   : > { %10814 = vrsqrt.f32 %v5764_v23 }
 0xc63   : > { %18269 = vst [vmem:[#allocation97_spill] sm:$0xff] %v15858_v0  ;;  %18271 = vst [vmem:[#allocation108_spill] sm:$0xff] %v15864_v62  ;;  %v5765_v29 = vadd.f32 1e-05, %v5733_v6  ;;  %v15868_v11 = vpack.c.bf16 %v15858_v0, %v15855_v5  ;;  %v15872_v13 = vpack.c.bf16 %v15864_v62, %v15861_v27  ;;  %v18275_v62 = vld [vmem:[#allocation78_spill] sm:$0xff] }
 0xc64   : > { %v10811_v20 = vpop.eup %10810 }
 0xc65   : > { %10816 = vrsqrt.f32 %v5765_v29  ;;  %v5850_v21 = vmul.f32 %v10811_v20, %v18272_v63  ;;  %6596 = vmatprep.mubr.bf16.mxu0 %v15872_v13  ;;  %v5696_v4 = vpop.xlane.xlu0 %5695  ;;  %v5851_v52 = vmul.f32 %v10811_v20, %v18273_v12 }
 0xc66   : > { %6597 = vmatmul.mubr.bf16.gmra.mrb[28].mxu0 %v15868_v11  ;;  %v5734_v25 = vmul.f32 0.00390625, %v5696_v4 }
 0xc67   : > { %v10813_v44 = vpop.eup %10812  ;;  %v5925_v50 = vmul.f32 %v15361_v45, %v5850_v21  ;;  %v5926_v29 = vmul.f32 %v15364_v22, %v5851_v52 }
 0xc68   : > { %v5852_v23 = vmul.f32 %v10813_v44, %v18274_v1  ;;  %v5699_v6 = vpop.xlane.xlu1 %5698  ;;  %v5853_v0 = vmul.f32 %v10813_v44, %v18275_v62  ;;  %v5766_v27 = vadd.f32 1e-05, %v5734_v25 }
 0xc69   : > { %v5735_v63 = vmul.f32 0.00390625, %v5699_v6  ;;  %v15885_v12 = vadd.f32 %v15378_v56, %v5925_v50  ;;  %v15891_v4 = vadd.f32 %v15369_v57, %v5926_v29 }
 0xc6a   : > { %v5927_v5 = vmul.f32 %v15361_v45, %v5852_v23  ;;  %v5928_v28 = vmul.f32 %v15364_v22, %v5853_v0  ;;  %10818 = vrsqrt.f32 %v5766_v27 }
 0xc6b   : > { %v5767_v20 = vadd.f32 1e-05, %v5735_v63 }
 0xc6c   : > { %v15888_v21 = vadd.f32 %v15378_v56, %v5927_v5  ;;  %v15894_v62 = vadd.f32 %v15369_v57, %v5928_v28  ;;  %v10815_v52 = vpop.eup %10814 }
 0xc6d   : > { %10820 = vrsqrt.f32 %v5767_v20  ;;  %v5854_v0 = vmul.f32 %v10815_v52, %v15423_v36  ;;  %v5702_v27 = vpop.xlane.xlu0 %5701  ;;  %v5855_v5 = vmul.f32 %v10815_v52, %v15426_v24 }
 0xc6e   : > { %18276 = vst [vmem:[#allocation111_spill] sm:$0xff] %v15888_v21  ;;  %18277 = vst [vmem:[#allocation104_spill] sm:$0xff] %v15894_v62  ;;  %v15898_v44 = vpack.c.bf16 %v15888_v21, %v15885_v12  ;;  %v15903_v25 = vpack.c.bf16 %v15894_v62, %v15891_v4  ;;  %v5736_v1 = vmul.f32 0.00390625, %v5702_v27 }
 0xc6f   : > { %v10817_v50 = vpop.eup %10816  ;;  %v5929_v28 = vmul.f32 %v15361_v45, %v5854_v0  ;;  %v5930_v36 = vmul.f32 %v15364_v22, %v5855_v5 }
 0xc70   : > { %v5856_v23 = vmul.f32 %v10817_v50, %v15438_v43  ;;  %v5705_v6 = vpop.xlane.xlu1 %5704  ;;  %6606 = vmatprep.mubr.bf16.mxu0 %v15903_v25  ;;  %v5857_v29 = vmul.f32 %v10817_v50, %v15441_v46  ;;  %v5768_v63 = vadd.f32 1e-05, %v5736_v1  ;;  %v18282_v1 = vld [vmem:[#allocation99_spill] sm:$0xff] }
 0xc71   : > { %v5737_v20 = vmul.f32 0.00390625, %v5705_v6  ;;  %6607 = vmatmul.mubr.bf16.gmra.mrb[32].mxu0 %v15898_v44  ;;  %v15915_v0 = vadd.f32 %v15378_v56, %v5929_v28  ;;  %v15921_v46 = vadd.f32 %v15369_v57, %v5930_v36 }
 0xc72   : > { %v5931_v62 = vmul.f32 %v15361_v45, %v5856_v23  ;;  %v5932_v24 = vmul.f32 %v15364_v22, %v5857_v29  ;;  %10822 = vrsqrt.f32 %v5768_v63  ;;  %v18284_v63 = vld [vmem:[#allocation73_spill] sm:$0xff] }
 0xc73   : > { %v5769_v52 = vadd.f32 1e-05, %v5737_v20  ;;  %18278 = vst [vmem:[#allocation120_spill] sm:$0xff] %v15915_v0  ;;  %18280 = vst [vmem:[#allocation114_spill] sm:$0xff] %v15921_v46 }
 0xc74   : > { %v15918_v43 = vadd.f32 %v15378_v56, %v5931_v62  ;;  %v15924_v27 = vadd.f32 %v15369_v57, %v5932_v24  ;;  %v10819_v5 = vpop.eup %10818  ;;  %v18283_v62 = vld [vmem:[#allocation74_spill] sm:$0xff] }
 0xc75   : > { %10824 = vrsqrt.f32 %v5769_v52  ;;  %v5858_v23 = vmul.f32 %v10819_v5, %v18282_v1  ;;  %v5859_v6 = vmul.f32 %v10819_v5, %v18283_v62 }
 0xc76   : > { %18279 = vst [vmem:[#allocation110_spill] sm:$0xff] %v15918_v43  ;;  %18281 = vst [vmem:[#allocation113_spill] sm:$0xff] %v15924_v27  ;;  %v15928_v50 = vpack.c.bf16 %v15918_v43, %v15915_v0  ;;  %v15933_v28 = vpack.c.bf16 %v15924_v27, %v15921_v46 }
 0xc77   : > { %v10821_v29 = vpop.eup %10820  ;;  %v5933_v36 = vmul.f32 %v15361_v45, %v5858_v23  ;;  %v5934_v52 = vmul.f32 %v15364_v22, %v5859_v6 }
 0xc78   : > { %v5860_v20 = vmul.f32 %v10821_v29, %v18284_v63  ;;  %6616 = vmatprep.mubr.bf16.mxu0 %v15933_v28  ;;  %v5861_v24 = vmul.f32 %v10821_v29, %v15486_v35 }
 0xc79   : > { %6617 = vmatmul.mubr.bf16.gmra.mrb[36].mxu0 %v15928_v50  ;;  %v15945_v43 = vadd.f32 %v15378_v56, %v5933_v36  ;;  %v15951_v23 = vadd.f32 %v15369_v57, %v5934_v52 }
 0xc7a   : > { %v5935_v1 = vmul.f32 %v15361_v45, %v5860_v20  ;;  %v5936_v27 = vmul.f32 %v15364_v22, %v5861_v24 }
 0xc7b   : > { %18285 = vst [vmem:[#allocation121_spill] sm:$0xff] %v15945_v43  ;;  %18287 = vst [vmem:[#allocation117_spill] sm:$0xff] %v15951_v23 }
 0xc7c   : > { %v15948_v5 = vadd.f32 %v15378_v56, %v5935_v1  ;;  %v15954_v62 = vadd.f32 %v15369_v57, %v5936_v27  ;;  %v10823_v35 = vpop.eup %10822  ;;  %v18289_v27 = vld [vmem:[#allocation83_spill] sm:$0xff] }
 0xc7d   : > { %v5862_v29 = vmul.f32 %v10823_v35, %v15511_v55  ;;  %v5863_v63 = vmul.f32 %v10823_v35, %v15514_v34 }
 0xc7e   : > { %18286 = vst [vmem:[#allocation122_spill] sm:$0xff] %v15948_v5  ;;  %18288 = vst [vmem:[#allocation116_spill] sm:$0xff] %v15954_v62  ;;  %v15958_v6 = vpack.c.bf16 %v15948_v5, %v15945_v43  ;;  %v15963_v36 = vpack.c.bf16 %v15954_v62, %v15951_v23 }
 0xc7f   : > { %v10825_v20 = vpop.eup %10824  ;;  %v5937_v24 = vmul.f32 %v15361_v45, %v5862_v29  ;;  %v5938_v5 = vmul.f32 %v15364_v22, %v5863_v63 }
 0xc80   : > { %v5864_v52 = vmul.f32 %v10825_v20, %v15532_v30  ;;  %6626 = vmatprep.mubr.bf16.mxu0 %v15963_v36  ;;  %v5865_v1 = vmul.f32 %v10825_v20, %v18289_v27  ;;  %v16002_v20 = vld [vmem:[%s11988_s25] sm:$0xf]  ;;  %v18300_v27 = vld [vmem:[#allocation69_spill] sm:$0xff] }
 0xc81   : > { %6627 = vmatmul.mubr.bf16.gmra.mrb[40].mxu0 %v15958_v6  ;;  %v15975_v34 = vadd.f32 %v15378_v56, %v5937_v24  ;;  %v15981_v30 = vadd.f32 %v15369_v57, %v5938_v5  ;;  %v18296_v5 = vld [vmem:[#allocation71_spill] sm:$0xff]  ;;  %v18299_v24 = vld [vmem:[#allocation68_spill] sm:$0xff] }
 0xc82   : > { %v5939_v55 = vmul.f32 %v15361_v45, %v5864_v52  ;;  %v5940_v62 = vmul.f32 %v15364_v22, %v5865_v1  ;;  %v18294_v22 = vld [vmem:[#allocation84_spill] sm:$0xff]  ;;  %v16006_v52 = vrot.slane %v16002_v20, %v18299_v24  ;;  %v16010_v1 = vrot.slane %v16002_v20, %v18300_v27 }
 0xc83   : > { %18290 = vst [vmem:[#allocation119_spill] sm:$0xff] %v15975_v34  ;;  %18292 = vst [vmem:[#allocation78_spill] sm:$0xff] %v15981_v30 }
 0xc84   : > { %v15978_v35 = vadd.f32 %v15378_v56, %v5939_v55  ;;  %v15984_v29 = vadd.f32 %v15369_v57, %v5940_v62  ;;  %v18295_v56 = vld [vmem:[#allocation87_spill] sm:$0xff]  ;;  %v18297_v57 = vld [vmem:[#allocation96_spill] sm:$0xff] }
 0xc85   : > { %v18298_v62 = vld [vmem:[#allocation100_spill] sm:$0xff] }
 0xc86   : > { %18291 = vst [vmem:[#allocation118_spill] sm:$0xff] %v15978_v35  ;;  %18293 = vst [vmem:[#allocation99_spill] sm:$0xff] %v15984_v29  ;;  %v15988_v63 = vpack.c.bf16 %v15978_v35, %v15975_v34  ;;  %v15992_v45 = vpack.c.bf16 %v15984_v29, %v15981_v30 }
 0xc88   : > { %6636 = vmatprep.mubr.bf16.mxu0 %v15992_v45 }
 0xc89   : > { %6637 = vmatmul.mubr.bf16.gmra.mrb[44].mxu0 %v15988_v63 }
 0xc8a   : > { %6679 = vmatprep.mubr.bf16.mxu0 %v18294_v22 }
 0xc91   : > { %6680 = vmatmul.mubr.bf16.vlgmr.msra.gmra.mrb[48].mxu0 %v18295_v56 }
 0xc92   : > { %6689 = vmatprep.mubr.bf16.mxu0 %v18296_v5 }
 0xc99   : > { %6690 = vmatmul.mubr.bf16.gmra.mrb[52].mxu0 %v18297_v57 }
 0xc9a   : > { %6699 = vmatprep.mubr.bf16.mxu0 %v18298_v62 }
 0xc9f   : > { %v6488_v55 = vpop.f32.mrb[240].mxu0 }
 0xca0   : > { %v6489_v22 = vadd.f32 %v6488_v55, %v16006_v52  ;;  %v6490_v56 = vpop.f32.mrb[241].mxu0 }
 0xca1   : > { %6700 = vmatmul.mubr.bf16.gmra.mrb[56].mxu0 %v15541_v7  ;;  %v6491_v5 = vadd.f32 %v6490_v56, %v16010_v1  ;;  %v6492_v57 = vpop.f32.mrb[242].mxu0 }
 0xca2   : > { %6709 = vmatprep.mubr.bf16.mxu0 %v15566_v47  ;;  %v6493_v62 = vadd.f32 %v6492_v57, %v16006_v52  ;;  %v6494_v29 = vpop.f32.mrb[243].mxu0  ;;  %v6840_v30 = vmax.f32 %v6489_v22, 0.0 }
 0xca3   : > { %v6495_v35 = vadd.f32 %v6494_v29, %v16010_v1  ;;  %v6841_v23 = vmax.f32 %v6491_v5, 0.0 }
 0xca4   : > { %v6844_v34 = vmax.f32 %v6493_v62, 0.0 }
 0xca5   : > { %v6845_v43 = vmax.f32 %v6495_v35, 0.0 }
 0xca6   : > { %v6968_v46 = vpack.c.bf16 %v6844_v34, %v6840_v30 }
 0xca7   : > { %v6969_v0 = vpack.c.bf16 %v6845_v43, %v6841_v23  ;;  %v6498_v55 = vpop.f32.mrb[244].mxu0 }
 0xca8   : > { %v6499_v21 = vadd.f32 %v6498_v55, %v16006_v52  ;;  %v6500_v7 = vpop.f32.mrb[245].mxu0 }
 0xca9   : > { %6710 = vmatmul.mubr.bf16.gmra.mrb[60].mxu0 %v15584_v38  ;;  %v6501_v56 = vadd.f32 %v6500_v7, %v16010_v1  ;;  %v6502_v47 = vpop.f32.mrb[246].mxu0  ;;  %7460 = vmatprep.mubr.bf16.mxu1 %v6969_v0  ;;  %v10461_v7 = vld [vmem:[%s12002_s8 + $0x110] ss:$8 sps:$4 sm:$0xff]  }
 0xcaa   : > { %6719 = vmatprep.mubr.bf16.mxu0 %v15606_v16  ;;  %v6503_v29 = vadd.f32 %v6502_v47, %v16006_v52  ;;  %v6504_v22 = vpop.f32.mrb[247].mxu0  ;;  %7461 = vmatmul.mubr.bf16.vlgmr.msra.gmra.mrb[208].mxu1 %v6968_v46  ;;  %v6848_v23 = vmax.f32 %v6499_v21, 0.0  ;;  %v10460_v16 = vld [vmem:[%s12002_s8 + $0x104] ss:$8 sps:$4 sm:$0xff]   ;;  %v10458_v46 = vld [vmem:[%s12002_s8 + $0x100] ss:$8 sps:$4 sm:$0xff]  }
 0xcab   : > { %v6505_v43 = vadd.f32 %v6504_v22, %v16010_v1  ;;  %v6849_v35 = vmax.f32 %v6501_v56, 0.0  ;;  %7621 = vmatprep.subr.bf16.mxu1 %v10460_v16  ;;  %v10463_v56 = vld [vmem:[%s12002_s8 + $0x114] ss:$8 sps:$4 sm:$0xff]  }
 0xcac   : > { %v6852_v34 = vmax.f32 %v6503_v29, 0.0  ;;  %7622 = vmatpush1.bf16.msra.mxu1 %v10458_v46  ;;  %v10466_v29 = vld [vmem:[%s12002_s8 + $0x124] ss:$8 sps:$4 sm:$0xff]  }
 0xcad   : > { %v6853_v30 = vmax.f32 %v6505_v43, 0.0  ;;  %7623 = vmatprep.subr.bf16.mxu1 %v10463_v56 }
 0xcae   : > { %v6972_v38 = vpack.c.bf16 %v6852_v34, %v6848_v23 }
 0xcaf   : > { %v6973_v5 = vpack.c.bf16 %v6853_v30, %v6849_v35  ;;  %v10464_v35 = vld [vmem:[%s12002_s8 + $0x120] ss:$8 sps:$4 sm:$0xff]  }
 0xcb0   : > { %7624 = vmatpush1.bf16.msra.mxu1 %v10461_v7 }
 0xcb1   : > { %6720 = vmatmul.mubr.bf16.gmra.mrb[64].mxu0 %v15611_v49  ;;  %7470 = vmatprep.mubr.bf16.mxu1 %v6973_v5 }
 0xcb2   : > { %6729 = vmatprep.mubr.bf16.mxu0 %v15648_v10  ;;  %v6508_v0 = vpop.f32.mrb[248].mxu0  ;;  %7471 = vmatmul.mubr.bf16.gmra.mrb[212].mxu1 %v6972_v38 }
 0xcb3   : > { %v6509_v57 = vadd.f32 %v6508_v0, %v16006_v52  ;;  %v6510_v21 = vpop.f32.mrb[249].mxu0  ;;  %7625 = vmatprep.subr.bf16.mxu1 %v10466_v29  ;;  %v10472_v29 = vld [vmem:[%s12002_s8 + $0x144] ss:$8 sps:$4 sm:$0xff]  }
 0xcb4   : > { %v6511_v62 = vadd.f32 %v6510_v21, %v16010_v1  ;;  %v6512_v55 = vpop.f32.mrb[250].mxu0  ;;  %7626 = vmatpush1.bf16.msra.mxu1 %v10464_v35 }
 0xcb5   : > { %v6513_v49 = vadd.f32 %v6512_v55, %v16006_v52  ;;  %v6514_v47 = vpop.f32.mrb[251].mxu0  ;;  %v6856_v22 = vmax.f32 %v6509_v57, 0.0  ;;  %v10467_v55 = vld [vmem:[%s12002_s8 + $0x130] ss:$8 sps:$4 sm:$0xff]  }
 0xcb6   : > { %v6515_v10 = vadd.f32 %v6514_v47, %v16010_v1  ;;  %v6857_v23 = vmax.f32 %v6511_v62, 0.0 }
 0xcb7   : > { %v6860_v43 = vmax.f32 %v6513_v49, 0.0 }
 0xcb8   : > { %v6861_v34 = vmax.f32 %v6515_v10, 0.0  ;;  %v10470_v10 = vld [vmem:[%s12002_s8 + $0x140] ss:$8 sps:$4 sm:$0xff]  }
 0xcb9   : > { %6730 = vmatmul.mubr.bf16.gmra.mrb[68].mxu0 %v15653_v61  ;;  %v6976_v30 = vpack.c.bf16 %v6860_v43, %v6856_v22  ;;  %v10469_v61 = vld [vmem:[%s12002_s8 + $0x134] ss:$8 sps:$4 sm:$0xff]  }
 0xcba   : > { %6739 = vmatprep.mubr.bf16.mxu0 %v15673_v9  ;;  %v6977_v38 = vpack.c.bf16 %v6861_v34, %v6857_v23  ;;  %7627 = vmatprep.subr.bf16.mxu1 %v10469_v61  ;;  %v10475_v34 = vld [vmem:[%s12002_s8 + $0x154] ss:$8 sps:$4 sm:$0xff]  }
 0xcbb   : > { %v6518_v5 = vpop.f32.mrb[252].mxu0  ;;  %7628 = vmatpush1.bf16.msra.mxu1 %v10467_v55 }
 0xcbc   : > { %v6519_v16 = vadd.f32 %v6518_v5, %v16006_v52  ;;  %v6520_v0 = vpop.f32.mrb[253].mxu0  ;;  %7480 = vmatprep.mubr.bf16.mxu1 %v6977_v38  ;;  %7629 = vmatprep.subr.bf16.mxu1 %v10472_v29  ;;  %v10473_v38 = vld [vmem:[%s12002_s8 + $0x150] ss:$8 sps:$4 sm:$0xff]  }
 0xcbd   : > { %v6521_v46 = vadd.f32 %v6520_v0, %v16010_v1  ;;  %v6522_v57 = vpop.f32.mrb[254].mxu0  ;;  %7481 = vmatmul.mubr.bf16.gmra.mrb[216].mxu1 %v6976_v30  ;;  %v10479_v29 = vld [vmem:[%s12002_s8 + $0x170] ss:$8 sps:$4 sm:$0xff]  }
 0xcbe   : > { %v6523_v21 = vadd.f32 %v6522_v57, %v16006_v52  ;;  %v6524_v62 = vpop.f32.mrb[255].mxu0  ;;  %v6864_v7 = vmax.f32 %v6519_v16, 0.0 }
 0xcbf   : > { %v6525_v9 = vadd.f32 %v6524_v62, %v16010_v1  ;;  %v6865_v49 = vmax.f32 %v6521_v46, 0.0  ;;  %7630 = vmatpush1.bf16.msra.mxu1 %v10470_v10  ;;  %v10478_v62 = vld [vmem:[%s12002_s8 + $0x164] ss:$8 sps:$4 sm:$0xff]  }
 0xcc0   : > { %v6868_v56 = vmax.f32 %v6523_v21, 0.0  ;;  %7631 = vmatprep.subr.bf16.mxu1 %v10475_v34 }
 0xcc1   : > { %6740 = vmatmul.mubr.bf16.gmra.mrb[72].mxu0 %v15697_v59  ;;  %v6869_v47 = vmax.f32 %v6525_v9, 0.0  ;;  %v10476_v9 = vld [vmem:[%s12002_s8 + $0x160] ss:$8 sps:$4 sm:$0xff]  }
 0xcc2   : > { %6749 = vmatprep.mubr.bf16.mxu0 %v15711_v14  ;;  %v6980_v22 = vpack.c.bf16 %v6868_v56, %v6864_v7 }
 0xcc3   : > { %v6981_v43 = vpack.c.bf16 %v6869_v47, %v6865_v49  ;;  %v6528_v23 = vpop.f32.mrb[0].mxu0  ;;  %7632 = vmatpush1.bf16.msra.mxu1 %v10473_v38  ;;  %v10481_v49 = vld [vmem:[%s12002_s8 + $0x174] ss:$8 sps:$4 sm:$0xff]  }
 0xcc4   : > { %v6529_v35 = vadd.f32 %v6528_v23, %v16006_v52  ;;  %v6530_v30 = vpop.f32.mrb[1].mxu0  ;;  %7633 = vmatprep.subr.bf16.mxu1 %v10478_v62 }
 0xcc5   : > { %v6531_v59 = vadd.f32 %v6530_v30, %v16010_v1  ;;  %v6532_v5 = vpop.f32.mrb[2].mxu0  ;;  %7490 = vmatprep.mubr.bf16.mxu1 %v6981_v43 }
 0xcc6   : > { %v6533_v14 = vadd.f32 %v6532_v5, %v16006_v52  ;;  %v6534_v16 = vpop.f32.mrb[3].mxu0  ;;  %7491 = vmatmul.mubr.bf16.gmra.mrb[220].mxu1 %v6980_v22  ;;  %v6872_v46 = vmax.f32 %v6529_v35, 0.0 }
 0xcc7   : > { %v6535_v0 = vadd.f32 %v6534_v16, %v16010_v1  ;;  %v6873_v61 = vmax.f32 %v6531_v59, 0.0  ;;  %7634 = vmatpush1.bf16.msra.mxu1 %v10476_v9  ;;  %v10484_v59 = vld [vmem:[%s12002_s8 + $0x184] ss:$8 sps:$4 sm:$0xff]  }
 0xcc8   : > { %v6876_v57 = vmax.f32 %v6533_v14, 0.0  ;;  %7635 = vmatprep.subr.bf16.mxu1 %v10481_v49  ;;  %v10482_v14 = vld [vmem:[%s12002_s8 + $0x180] ss:$8 sps:$4 sm:$0xff]  }
 0xcc9   : > { %6750 = vmatmul.mubr.bf16.gmra.mrb[76].mxu0 %v15730_v8  ;;  %v6877_v21 = vmax.f32 %v6535_v0, 0.0 }
 0xcca   : > { %6759 = vmatprep.mubr.bf16.mxu0 %v15783_v48  ;;  %v6984_v55 = vpack.c.bf16 %v6876_v57, %v6872_v46  ;;  %v10487_v46 = vld [vmem:[%s12002_s8 + $0x194] ss:$8 sps:$4 sm:$0xff]  }
 0xccb   : > { %v6985_v7 = vpack.c.bf16 %v6877_v21, %v6873_v61  ;;  %v6538_v56 = vpop.f32.mrb[4].mxu0  ;;  %7636 = vmatpush1.bf16.msra.mxu1 %v10479_v29  ;;  %v10485_v21 = vld [vmem:[%s12002_s8 + $0x190] ss:$8 sps:$4 sm:$0xff]  }
 0xccc   : > { %v6539_v47 = vadd.f32 %v6538_v56, %v16006_v52  ;;  %v6540_v10 = vpop.f32.mrb[5].mxu0  ;;  %7637 = vmatprep.subr.bf16.mxu1 %v10484_v59 }
 0xccd   : > { %v6541_v8 = vadd.f32 %v6540_v10, %v16010_v1  ;;  %v6542_v22 = vpop.f32.mrb[6].mxu0  ;;  %7500 = vmatprep.mubr.bf16.mxu1 %v6985_v7  ;;  %v10490_v10 = vld [vmem:[%s12002_s8 + $0x1a4] ss:$8 sps:$4 sm:$0xff]  }
 0xcce   : > { %v6543_v48 = vadd.f32 %v6542_v22, %v16006_v52  ;;  %v6544_v43 = vpop.f32.mrb[7].mxu0  ;;  %7501 = vmatmul.mubr.bf16.gmra.mrb[224].mxu1 %v6984_v55  ;;  %v6880_v34 = vmax.f32 %v6539_v47, 0.0 }
 0xccf   : > { %v6545_v23 = vadd.f32 %v6544_v43, %v16010_v1  ;;  %v6881_v30 = vmax.f32 %v6541_v8, 0.0  ;;  %7638 = vmatpush1.bf16.msra.mxu1 %v10482_v14  ;;  %v10488_v8 = vld [vmem:[%s12002_s8 + $0x1a0] ss:$8 sps:$4 sm:$0xff]   ;;  %v10493_v43 = vld [vmem:[%s12002_s8 + $0x1b4] ss:$8 sps:$4 sm:$0xff]  }
 0xcd0   : > { %v6884_v35 = vmax.f32 %v6543_v48, 0.0  ;;  %7639 = vmatprep.subr.bf16.mxu1 %v10487_v46  ;;  %v10496_v46 = vld [vmem:[%s12002_s8 + $0x1c4] ss:$8 sps:$4 sm:$0xff]  }
 0xcd1   : > { %6760 = vmatmul.mubr.bf16.gmra.mrb[80].mxu0 %v15778_v60  ;;  %v6885_v38 = vmax.f32 %v6545_v23, 0.0 }
 0xcd2   : > { %6769 = vmatprep.mubr.bf16.mxu0 %v15813_v18  ;;  %v6988_v5 = vpack.c.bf16 %v6884_v35, %v6880_v34  ;;  %v10491_v35 = vld [vmem:[%s12002_s8 + $0x1b0] ss:$8 sps:$4 sm:$0xff]  }
 0xcd3   : > { %v6989_v16 = vpack.c.bf16 %v6885_v38, %v6881_v30  ;;  %v6548_v0 = vpop.f32.mrb[8].mxu0  ;;  %7640 = vmatpush1.bf16.msra.mxu1 %v10485_v21 }
 0xcd4   : > { %v6549_v57 = vadd.f32 %v6548_v0, %v16006_v52  ;;  %v6550_v61 = vpop.f32.mrb[9].mxu0  ;;  %7641 = vmatprep.subr.bf16.mxu1 %v10490_v10 }
 0xcd5   : > { %v6551_v60 = vadd.f32 %v6550_v61, %v16010_v1  ;;  %v6552_v62 = vpop.f32.mrb[10].mxu0  ;;  %7510 = vmatprep.mubr.bf16.mxu1 %v6989_v16  ;;  %v10494_v61 = vld [vmem:[%s12002_s8 + $0x1c0] ss:$8 sps:$4 sm:$0xff]  }
 0xcd6   : > { %v6553_v18 = vadd.f32 %v6552_v62, %v16006_v52  ;;  %v6554_v55 = vpop.f32.mrb[11].mxu0  ;;  %7511 = vmatmul.mubr.bf16.gmra.mrb[228].mxu1 %v6988_v5  ;;  %v6888_v7 = vmax.f32 %v6549_v57, 0.0  ;;  %v10497_v62 = vld [vmem:[%s12002_s8 + $0x1d0] ss:$8 sps:$4 sm:$0xff]  }
 0xcd7   : > { %v6555_v9 = vadd.f32 %v6554_v55, %v16010_v1  ;;  %v6889_v49 = vmax.f32 %v6551_v60, 0.0  ;;  %7642 = vmatpush1.bf16.msra.mxu1 %v10488_v8  ;;  %v10499_v60 = vld [vmem:[%s12002_s8 + $0x1d4] ss:$8 sps:$4 sm:$0xff]   ;;  %v10503_v55 = vld [vmem:[%s12002_s8 + $0x1f0] ss:$8 sps:$4 sm:$0xff]  }
 0xcd8   : > { %v6892_v56 = vmax.f32 %v6553_v18, 0.0  ;;  %7643 = vmatprep.subr.bf16.mxu1 %v10493_v43  ;;  %v10505_v18 = vld [vmem:[%s12002_s8 + $0x1f4] ss:$8 sps:$4 sm:$0xff]  }
 0xcd9   : > { %6770 = vmatmul.mubr.bf16.gmra.mrb[84].mxu0 %v15808_v37  ;;  %v6893_v47 = vmax.f32 %v6555_v9, 0.0 }
 0xcda   : > { %6779 = vmatprep.mubr.bf16.mxu0 %v15842_v51  ;;  %v6992_v29 = vpack.c.bf16 %v6892_v56, %v6888_v7 }
 0xcdb   : > { %v6993_v22 = vpack.c.bf16 %v6893_v47, %v6889_v49  ;;  %v6558_v48 = vpop.f32.mrb[12].mxu0  ;;  %7644 = vmatpush1.bf16.msra.mxu1 %v10491_v35 }
 0xcdc   : > { %v6559_v23 = vadd.f32 %v6558_v48, %v16006_v52  ;;  %v6560_v34 = vpop.f32.mrb[13].mxu0  ;;  %7645 = vmatprep.subr.bf16.mxu1 %v10496_v46 }
 0xcdd   : > { %v6561_v37 = vadd.f32 %v6560_v34, %v16010_v1  ;;  %v6562_v30 = vpop.f32.mrb[14].mxu0  ;;  %7520 = vmatprep.mubr.bf16.mxu1 %v6993_v22 }
 0xcde   : > { %v6563_v51 = vadd.f32 %v6562_v30, %v16006_v52  ;;  %v6564_v38 = vpop.f32.mrb[15].mxu0  ;;  %7521 = vmatmul.mubr.bf16.gmra.mrb[232].mxu1 %v6992_v29  ;;  %v6896_v5 = vmax.f32 %v6559_v23, 0.0 }
 0xcdf   : > { %v6565_v59 = vadd.f32 %v6564_v38, %v16010_v1  ;;  %v6897_v16 = vmax.f32 %v6561_v37, 0.0  ;;  %7646 = vmatpush1.bf16.msra.mxu1 %v10494_v61 }
 0xce0   : > { %v6900_v14 = vmax.f32 %v6563_v51, 0.0  ;;  %7647 = vmatprep.subr.bf16.mxu1 %v10499_v60 }
 0xce1   : > { %6780 = vmatmul.mubr.bf16.gmra.mrb[88].mxu0 %v15838_v3  ;;  %v6901_v0 = vmax.f32 %v6565_v59, 0.0  ;;  %v10502_v3 = vld [vmem:[%s12002_s8 + $0x1e4] ss:$8 sps:$4 sm:$0xff]  }
 0xce2   : > { %6789 = vmatprep.mubr.bf16.mxu0 %v15872_v13  ;;  %v6996_v57 = vpack.c.bf16 %v6900_v14, %v6896_v5  ;;  %v10500_v13 = vld [vmem:[%s12002_s8 + $0x1e0] ss:$8 sps:$4 sm:$0xff]  }
 0xce3   : > { %v6997_v21 = vpack.c.bf16 %v6901_v0, %v6897_v16  ;;  %7648 = vmatpush1.bf16.msra.mxu1 %v10497_v62 }
 0xce4   : > { %7649 = vmatprep.subr.bf16.mxu1 %v10502_v3 }
 0xce5   : > { %7530 = vmatprep.mubr.bf16.mxu1 %v6997_v21 }
 0xce6   : > { %7531 = vmatmul.mubr.bf16.gmra.mrb[236].mxu1 %v6996_v57 }
 0xce7   : > { %7650 = vmatpush1.bf16.msra.mxu1 %v10500_v13 }
 0xce8   : > { %7651 = vmatprep.subr.bf16.mxu1 %v10505_v18 }
 0xce9   : > { %6790 = vmatmul.mubr.bf16.gmra.mrb[92].mxu0 %v15868_v11 }
 0xcea   : > { %6799 = vmatprep.mubr.bf16.mxu0 %v15903_v25 }
 0xceb   : > { %7652 = vmatpush1.bf16.msra.mxu1 %v10503_v55 }
 0xcf1   : > { %6800 = vmatmul.mubr.bf16.gmra.mrb[96].mxu0 %v15898_v44 }
 0xcf2   : > { %6809 = vmatprep.mubr.bf16.mxu0 %v15933_v28 }
 0xcf9   : > { %6810 = vmatmul.mubr.bf16.gmra.mrb[100].mxu0 %v15928_v50 }
 0xcfa   : > { %6819 = vmatprep.mubr.bf16.mxu0 %v15963_v36 }
 0xd01   : > { %6820 = vmatmul.mubr.bf16.gmra.mrb[104].mxu0 %v15958_v6 }
 0xd02   : > { %6829 = vmatprep.mubr.bf16.mxu0 %v15992_v45 }
 0xd09   : > { %6830 = vmatmul.mubr.bf16.gmra.mrb[108].mxu0 %v15988_v63 }
 0xd1c   : > { %v6568_v11 = vpop.f32.mrb[16].mxu0 }
 0xd1d   : > { %v6569_v25 = vadd.f32 %v6568_v11, %v16006_v52  ;;  %v6570_v9 = vpop.f32.mrb[17].mxu0 }
 0xd1e   : > { %v6571_v7 = vadd.f32 %v6570_v9, %v16010_v1  ;;  %v6572_v44 = vpop.f32.mrb[18].mxu0 }
 0xd1f   : > { %v6573_v56 = vadd.f32 %v6572_v44, %v16006_v52  ;;  %v6574_v28 = vpop.f32.mrb[19].mxu0  ;;  %v6904_v49 = vmax.f32 %v6569_v25, 0.0 }
 0xd20   : > { %v6575_v50 = vadd.f32 %v6574_v28, %v16010_v1  ;;  %v6905_v47 = vmax.f32 %v6571_v7, 0.0 }
 0xd21   : > { %v6908_v36 = vmax.f32 %v6573_v56, 0.0 }
 0xd22   : > { %v6909_v6 = vmax.f32 %v6575_v50, 0.0 }
 0xd23   : > { %v7000_v10 = vpack.c.bf16 %v6908_v36, %v6904_v49 }
 0xd24   : > { %v7001_v45 = vpack.c.bf16 %v6909_v6, %v6905_v47  ;;  %v6578_v29 = vpop.f32.mrb[20].mxu0 }
 0xd25   : > { %v6579_v63 = vadd.f32 %v6578_v29, %v16006_v52  ;;  %v6580_v8 = vpop.f32.mrb[21].mxu0 }
 0xd26   : > { %v6581_v22 = vadd.f32 %v6580_v8, %v16010_v1  ;;  %v6582_v48 = vpop.f32.mrb[22].mxu0  ;;  %7540 = vmatprep.mubr.bf16.mxu1 %v7001_v45 }
 0xd27   : > { %v6583_v43 = vadd.f32 %v6582_v48, %v16006_v52  ;;  %v6584_v23 = vpop.f32.mrb[23].mxu0  ;;  %7541 = vmatmul.mubr.bf16.gmra.mrb[240].mxu1 %v7000_v10  ;;  %v6912_v35 = vmax.f32 %v6579_v63, 0.0 }
 0xd28   : > { %v6585_v34 = vadd.f32 %v6584_v23, %v16010_v1  ;;  %v6913_v30 = vmax.f32 %v6581_v22, 0.0 }
 0xd29   : > { %v6916_v37 = vmax.f32 %v6583_v43, 0.0 }
 0xd2a   : > { %v6917_v51 = vmax.f32 %v6585_v34, 0.0 }
 0xd2b   : > { %v7004_v38 = vpack.c.bf16 %v6916_v37, %v6912_v35 }
 0xd2c   : > { %v7005_v59 = vpack.c.bf16 %v6917_v51, %v6913_v30  ;;  %v6588_v5 = vpop.f32.mrb[24].mxu0 }
 0xd2d   : > { %v6589_v14 = vadd.f32 %v6588_v5, %v16006_v52  ;;  %v6590_v16 = vpop.f32.mrb[25].mxu0 }
 0xd2e   : > { %v6591_v0 = vadd.f32 %v6590_v16, %v16010_v1  ;;  %v6592_v46 = vpop.f32.mrb[26].mxu0  ;;  %7550 = vmatprep.mubr.bf16.mxu1 %v7005_v59 }
 0xd2f   : > { %v6593_v57 = vadd.f32 %v6592_v46, %v16006_v52  ;;  %v6594_v61 = vpop.f32.mrb[27].mxu0  ;;  %7551 = vmatmul.mubr.bf16.gmra.mrb[244].mxu1 %v7004_v38  ;;  %v6920_v60 = vmax.f32 %v6589_v14, 0.0 }
 0xd30   : > { %v6595_v21 = vadd.f32 %v6594_v61, %v16010_v1  ;;  %v6921_v3 = vmax.f32 %v6591_v0, 0.0 }
 0xd31   : > { %v6924_v62 = vmax.f32 %v6593_v57, 0.0 }
 0xd32   : > { %v6925_v13 = vmax.f32 %v6595_v21, 0.0 }
 0xd33   : > { %v7008_v18 = vpack.c.bf16 %v6924_v62, %v6920_v60 }
 0xd34   : > { %v7009_v55 = vpack.c.bf16 %v6925_v13, %v6921_v3 }
 0xd36   : > { %7560 = vmatprep.mubr.bf16.mxu1 %v7009_v55 }
 0xd37   : > { %7561 = vmatmul.mubr.bf16.gmra.mrb[248].mxu1 %v7008_v18 }
 0xd39   : > { %v6598_v11 = vpop.f32.mrb[28].mxu0 }
 0xd3a   : > { %v6599_v25 = vadd.f32 %v6598_v11, %v16006_v52  ;;  %v6600_v9 = vpop.f32.mrb[29].mxu0 }
 0xd3b   : > { %v6601_v7 = vadd.f32 %v6600_v9, %v16010_v1  ;;  %v6602_v44 = vpop.f32.mrb[30].mxu0 }
 0xd3c   : > { %v6603_v56 = vadd.f32 %v6602_v44, %v16006_v52  ;;  %v6604_v28 = vpop.f32.mrb[31].mxu0  ;;  %v6928_v49 = vmax.f32 %v6599_v25, 0.0 }
 0xd3d   : > { %v6605_v50 = vadd.f32 %v6604_v28, %v16010_v1  ;;  %v6929_v47 = vmax.f32 %v6601_v7, 0.0 }
 0xd3e   : > { %v6932_v36 = vmax.f32 %v6603_v56, 0.0 }
 0xd3f   : > { %v6933_v6 = vmax.f32 %v6605_v50, 0.0 }
 0xd40   : > { %v7012_v10 = vpack.c.bf16 %v6932_v36, %v6928_v49 }
 0xd41   : > { %v7013_v45 = vpack.c.bf16 %v6933_v6, %v6929_v47 }
 0xd43   : > { %7570 = vmatprep.mubr.bf16.mxu1 %v7013_v45 }
 0xd44   : > { %v6608_v29 = vpop.f32.mrb[32].mxu0  ;;  %7571 = vmatmul.mubr.bf16.gmra.mrb[252].mxu1 %v7012_v10 }
 0xd45   : > { %v6609_v63 = vadd.f32 %v6608_v29, %v16006_v52  ;;  %v6610_v8 = vpop.f32.mrb[33].mxu0 }
 0xd46   : > { %v6611_v22 = vadd.f32 %v6610_v8, %v16010_v1  ;;  %v6612_v48 = vpop.f32.mrb[34].mxu0 }
 0xd47   : > { %v6613_v43 = vadd.f32 %v6612_v48, %v16006_v52  ;;  %v6614_v23 = vpop.f32.mrb[35].mxu0  ;;  %v6936_v35 = vmax.f32 %v6609_v63, 0.0 }
 0xd48   : > { %v6615_v34 = vadd.f32 %v6614_v23, %v16010_v1  ;;  %v6937_v30 = vmax.f32 %v6611_v22, 0.0 }
 0xd49   : > { %v6940_v37 = vmax.f32 %v6613_v43, 0.0 }
 0xd4a   : > { %v6941_v51 = vmax.f32 %v6615_v34, 0.0 }
 0xd4b   : > { %v7016_v38 = vpack.c.bf16 %v6940_v37, %v6936_v35 }
 0xd4c   : > { %v7017_v59 = vpack.c.bf16 %v6941_v51, %v6937_v30  ;;  %v6618_v5 = vpop.f32.mrb[36].mxu0  ;;  %v18301_v30 = vld [vmem:[#allocation67_spill] sm:$0xff] }
 0xd4d   : > { %v6619_v14 = vadd.f32 %v6618_v5, %v16006_v52  ;;  %v6620_v16 = vpop.f32.mrb[37].mxu0  ;;  %v18302_v51 = vsub.s32 2, %v18301_v30 }
 0xd4e   : > { %v6621_v0 = vadd.f32 %v6620_v16, %v16010_v1  ;;  %v6622_v46 = vpop.f32.mrb[38].mxu0  ;;  %7580 = vmatprep.mubr.bf16.mxu1 %v7017_v59 }
 0xd4f   : > { %v6623_v57 = vadd.f32 %v6622_v46, %v16006_v52  ;;  %v6624_v61 = vpop.f32.mrb[39].mxu0  ;;  %7581 = vmatmul.mubr.bf16.gmra.mrb[0].mxu1 %v7016_v38  ;;  %v6944_v60 = vmax.f32 %v6619_v14, 0.0  ;;  %v16138_v38 = vrot.slane %v16002_v20, %v18302_v51  ;;  %v18303_v14 = vsub.s32 3, %v18301_v30 }
 0xd50   : > { %v6625_v21 = vadd.f32 %v6624_v61, %v16010_v1  ;;  %v6945_v3 = vmax.f32 %v6621_v0, 0.0 }
 0xd51   : > { %v6948_v62 = vmax.f32 %v6623_v57, 0.0  ;;  %v16143_v16 = vrot.slane %v16002_v20, %v18303_v14 }
 0xd52   : > { %v6949_v13 = vmax.f32 %v6625_v21, 0.0 }
 0xd53   : > { %v7020_v18 = vpack.c.bf16 %v6948_v62, %v6944_v60 }
 0xd54   : > { %v7021_v55 = vpack.c.bf16 %v6949_v13, %v6945_v3  ;;  %v6628_v11 = vpop.f32.mrb[40].mxu0 }
 0xd55   : > { %v6629_v25 = vadd.f32 %v6628_v11, %v16006_v52  ;;  %v6630_v9 = vpop.f32.mrb[41].mxu0 }
 0xd56   : > { %v6631_v7 = vadd.f32 %v6630_v9, %v16010_v1  ;;  %v6632_v44 = vpop.f32.mrb[42].mxu0  ;;  %7590 = vmatprep.mubr.bf16.mxu1 %v7021_v55 }
 0xd57   : > { %v6633_v56 = vadd.f32 %v6632_v44, %v16006_v52  ;;  %v6634_v28 = vpop.f32.mrb[43].mxu0  ;;  %7591 = vmatmul.mubr.bf16.gmra.mrb[4].mxu1 %v7020_v18  ;;  %v6952_v49 = vmax.f32 %v6629_v25, 0.0 }
 0xd58   : > { %v6635_v50 = vadd.f32 %v6634_v28, %v16010_v1  ;;  %v6953_v47 = vmax.f32 %v6631_v7, 0.0 }
 0xd59   : > { %v6956_v36 = vmax.f32 %v6633_v56, 0.0 }
 0xd5a   : > { %v6957_v6 = vmax.f32 %v6635_v50, 0.0 }
 0xd5b   : > { %v7024_v10 = vpack.c.bf16 %v6956_v36, %v6952_v49 }
 0xd5c   : > { %v7025_v45 = vpack.c.bf16 %v6957_v6, %v6953_v47  ;;  %v6638_v29 = vpop.f32.mrb[44].mxu0 }
 0xd5d   : > { %v6639_v63 = vadd.f32 %v6638_v29, %v16006_v52  ;;  %v6640_v8 = vpop.f32.mrb[45].mxu0 }
 0xd5e   : > { %v6641_v22 = vadd.f32 %v6640_v8, %v16010_v1  ;;  %v6642_v48 = vpop.f32.mrb[46].mxu0  ;;  %7600 = vmatprep.mubr.bf16.mxu1 %v7025_v45 }
 0xd5f   : > { %v6643_v43 = vadd.f32 %v6642_v48, %v16006_v52  ;;  %v6644_v23 = vpop.f32.mrb[47].mxu0  ;;  %7601 = vmatmul.mubr.bf16.gmra.mrb[8].mxu1 %v7024_v10  ;;  %v6960_v35 = vmax.f32 %v6639_v63, 0.0 }
 0xd60   : > { %v6645_v34 = vadd.f32 %v6644_v23, %v16010_v1  ;;  %v6961_v59 = vmax.f32 %v6641_v22, 0.0 }
 0xd61   : > { %v6964_v37 = vmax.f32 %v6643_v43, 0.0 }
 0xd62   : > { %v6965_v5 = vmax.f32 %v6645_v34, 0.0 }
 0xd63   : > { %v7028_v0 = vpack.c.bf16 %v6964_v37, %v6960_v35 }
 0xd64   : > { %v7029_v52 = vpack.c.bf16 %v6965_v5, %v6961_v59  ;;  %v6681_v46 = vpop.f32.mrb[48].mxu0 }
 0xd65   : > { %v6682_v57 = vadd.f32 %v6681_v46, %v16138_v38  ;;  %v6683_v1 = vpop.f32.mrb[49].mxu0 }
 0xd66   : > { %v6684_v61 = vadd.f32 %v6683_v1, %v16143_v16  ;;  %v6685_v21 = vpop.f32.mrb[50].mxu0  ;;  %7610 = vmatprep.mubr.bf16.mxu1 %v7029_v52 }
 0xd67   : > { %v6686_v60 = vadd.f32 %v6685_v21, %v16138_v38  ;;  %v6687_v62 = vpop.f32.mrb[51].mxu0  ;;  %7611 = vmatmul.mubr.bf16.gmra.mrb[12].mxu1 %v7028_v0  ;;  %v6842_v13 = vmax.f32 %v6682_v57, 0.0 }
 0xd68   : > { %v6688_v3 = vadd.f32 %v6687_v62, %v16143_v16  ;;  %v6843_v20 = vmax.f32 %v6684_v61, 0.0 }
 0xd69   : > { %v6846_v18 = vmax.f32 %v6686_v60, 0.0 }
 0xd6a   : > { %v6847_v55 = vmax.f32 %v6688_v3, 0.0 }
 0xd6b   : > { %v6970_v11 = vpack.c.bf16 %v6846_v18, %v6842_v13 }
 0xd6c   : > { %v6971_v25 = vpack.c.bf16 %v6847_v55, %v6843_v20  ;;  %v6691_v9 = vpop.f32.mrb[52].mxu0 }
 0xd6d   : > { %v6692_v7 = vadd.f32 %v6691_v9, %v16138_v38  ;;  %v6693_v44 = vpop.f32.mrb[53].mxu0 }
 0xd6e   : > { %v6694_v56 = vadd.f32 %v6693_v44, %v16143_v16  ;;  %v6695_v28 = vpop.f32.mrb[54].mxu0  ;;  %7653 = vmatprep.mubr.bf16.mxu1 %v6971_v25 }
 0xd6f   : > { %v6696_v50 = vadd.f32 %v6695_v28, %v16138_v38  ;;  %v6697_v49 = vpop.f32.mrb[55].mxu0  ;;  %7654 = vmatmul.mubr.bf16.vlgmr.msra.gmra.mrb[208].mxu1 %v6970_v11  ;;  %v6850_v47 = vmax.f32 %v6692_v7, 0.0 }
 0xd70   : > { %v6698_v36 = vadd.f32 %v6697_v49, %v16143_v16  ;;  %v6851_v10 = vmax.f32 %v6694_v56, 0.0 }
 0xd71   : > { %v6854_v6 = vmax.f32 %v6696_v50, 0.0 }
 0xd72   : > { %v6855_v45 = vmax.f32 %v6698_v36, 0.0 }
 0xd73   : > { %v6974_v29 = vpack.c.bf16 %v6854_v6, %v6850_v47 }
 0xd74   : > { %v6975_v63 = vpack.c.bf16 %v6855_v45, %v6851_v10  ;;  %v6701_v8 = vpop.f32.mrb[56].mxu0 }
 0xd75   : > { %v6702_v22 = vadd.f32 %v6701_v8, %v16138_v38  ;;  %v6703_v48 = vpop.f32.mrb[57].mxu0 }
 0xd76   : > { %v6704_v43 = vadd.f32 %v6703_v48, %v16143_v16  ;;  %v6705_v23 = vpop.f32.mrb[58].mxu0  ;;  %7663 = vmatprep.mubr.bf16.mxu1 %v6975_v63 }
 0xd77   : > { %v6706_v34 = vadd.f32 %v6705_v23, %v16138_v38  ;;  %v6707_v35 = vpop.f32.mrb[59].mxu0  ;;  %7664 = vmatmul.mubr.bf16.gmra.mrb[212].mxu1 %v6974_v29  ;;  %v6858_v30 = vmax.f32 %v6702_v22, 0.0 }
 0xd78   : > { %v6708_v37 = vadd.f32 %v6707_v35, %v16143_v16  ;;  %v6859_v59 = vmax.f32 %v6704_v43, 0.0 }
 0xd79   : > { %v6862_v51 = vmax.f32 %v6706_v34, 0.0 }
 0xd7a   : > { %v6863_v5 = vmax.f32 %v6708_v37, 0.0 }
 0xd7b   : > { %v6978_v14 = vpack.c.bf16 %v6862_v51, %v6858_v30 }
 0xd7c   : > { %v6979_v0 = vpack.c.bf16 %v6863_v5, %v6859_v59  ;;  %v6711_v52 = vpop.f32.mrb[60].mxu0 }
 0xd7d   : > { %v6712_v46 = vadd.f32 %v6711_v52, %v16138_v38  ;;  %v6713_v57 = vpop.f32.mrb[61].mxu0 }
 0xd7e   : > { %v6714_v1 = vadd.f32 %v6713_v57, %v16143_v16  ;;  %v6715_v61 = vpop.f32.mrb[62].mxu0  ;;  %7673 = vmatprep.mubr.bf16.mxu1 %v6979_v0 }
 0xd7f   : > { %v6716_v21 = vadd.f32 %v6715_v61, %v16138_v38  ;;  %v6717_v60 = vpop.f32.mrb[63].mxu0  ;;  %7674 = vmatmul.mubr.bf16.gmra.mrb[216].mxu1 %v6978_v14  ;;  %v6866_v3 = vmax.f32 %v6712_v46, 0.0 }
 0xd80   : > { %v6718_v62 = vadd.f32 %v6717_v60, %v16143_v16  ;;  %v6867_v18 = vmax.f32 %v6714_v1, 0.0 }
 0xd81   : > { %v6870_v13 = vmax.f32 %v6716_v21, 0.0 }
 0xd82   : > { %v6871_v20 = vmax.f32 %v6718_v62, 0.0 }
 0xd83   : > { %v6982_v55 = vpack.c.bf16 %v6870_v13, %v6866_v3 }
 0xd84   : > { %v6983_v11 = vpack.c.bf16 %v6871_v20, %v6867_v18  ;;  %v6721_v25 = vpop.f32.mrb[64].mxu0 }
 0xd85   : > { %v6722_v9 = vadd.f32 %v6721_v25, %v16138_v38  ;;  %v6723_v7 = vpop.f32.mrb[65].mxu0 }
 0xd86   : > { %v6724_v44 = vadd.f32 %v6723_v7, %v16143_v16  ;;  %v6725_v56 = vpop.f32.mrb[66].mxu0  ;;  %7683 = vmatprep.mubr.bf16.mxu1 %v6983_v11 }
 0xd87   : > { %v6726_v28 = vadd.f32 %v6725_v56, %v16138_v38  ;;  %v6727_v50 = vpop.f32.mrb[67].mxu0  ;;  %7684 = vmatmul.mubr.bf16.gmra.mrb[220].mxu1 %v6982_v55  ;;  %v6874_v36 = vmax.f32 %v6722_v9, 0.0 }
 0xd88   : > { %v6728_v49 = vadd.f32 %v6727_v50, %v16143_v16  ;;  %v6875_v6 = vmax.f32 %v6724_v44, 0.0 }
 0xd89   : > { %v6878_v47 = vmax.f32 %v6726_v28, 0.0 }
 0xd8a   : > { %v6879_v10 = vmax.f32 %v6728_v49, 0.0 }
 0xd8b   : > { %v6986_v45 = vpack.c.bf16 %v6878_v47, %v6874_v36 }
 0xd8c   : > { %v6987_v29 = vpack.c.bf16 %v6879_v10, %v6875_v6  ;;  %v6731_v63 = vpop.f32.mrb[68].mxu0 }
 0xd8d   : > { %v6732_v8 = vadd.f32 %v6731_v63, %v16138_v38  ;;  %v6733_v22 = vpop.f32.mrb[69].mxu0 }
 0xd8e   : > { %v6734_v48 = vadd.f32 %v6733_v22, %v16143_v16  ;;  %v6735_v43 = vpop.f32.mrb[70].mxu0  ;;  %7693 = vmatprep.mubr.bf16.mxu1 %v6987_v29 }
 0xd8f   : > { %v6736_v23 = vadd.f32 %v6735_v43, %v16138_v38  ;;  %v6737_v34 = vpop.f32.mrb[71].mxu0  ;;  %7694 = vmatmul.mubr.bf16.gmra.mrb[224].mxu1 %v6986_v45  ;;  %v6882_v37 = vmax.f32 %v6732_v8, 0.0 }
 0xd90   : > { %v6738_v35 = vadd.f32 %v6737_v34, %v16143_v16  ;;  %v6883_v51 = vmax.f32 %v6734_v48, 0.0 }
 0xd91   : > { %v6886_v30 = vmax.f32 %v6736_v23, 0.0 }
 0xd92   : > { %v6887_v59 = vmax.f32 %v6738_v35, 0.0 }
 0xd93   : > { %v6990_v5 = vpack.c.bf16 %v6886_v30, %v6882_v37 }
 0xd94   : > { %v6991_v14 = vpack.c.bf16 %v6887_v59, %v6883_v51  ;;  %v6741_v0 = vpop.f32.mrb[72].mxu0 }
 0xd95   : > { %v6742_v52 = vadd.f32 %v6741_v0, %v16138_v38  ;;  %v6743_v46 = vpop.f32.mrb[73].mxu0 }
 0xd96   : > { %v6744_v57 = vadd.f32 %v6743_v46, %v16143_v16  ;;  %v6745_v1 = vpop.f32.mrb[74].mxu0  ;;  %7703 = vmatprep.mubr.bf16.mxu1 %v6991_v14 }
 0xd97   : > { %v6746_v61 = vadd.f32 %v6745_v1, %v16138_v38  ;;  %v6747_v21 = vpop.f32.mrb[75].mxu0  ;;  %7704 = vmatmul.mubr.bf16.gmra.mrb[228].mxu1 %v6990_v5  ;;  %v6890_v62 = vmax.f32 %v6742_v52, 0.0 }
 0xd98   : > { %v6748_v60 = vadd.f32 %v6747_v21, %v16143_v16  ;;  %v6891_v13 = vmax.f32 %v6744_v57, 0.0 }
 0xd99   : > { %v6894_v3 = vmax.f32 %v6746_v61, 0.0 }
 0xd9a   : > { %v6895_v18 = vmax.f32 %v6748_v60, 0.0 }
 0xd9b   : > { %v6994_v20 = vpack.c.bf16 %v6894_v3, %v6890_v62 }
 0xd9c   : > { %v6995_v55 = vpack.c.bf16 %v6895_v18, %v6891_v13  ;;  %v6751_v11 = vpop.f32.mrb[76].mxu0 }
 0xd9d   : > { %v6752_v25 = vadd.f32 %v6751_v11, %v16138_v38  ;;  %v6753_v9 = vpop.f32.mrb[77].mxu0 }
 0xd9e   : > { %v6754_v7 = vadd.f32 %v6753_v9, %v16143_v16  ;;  %v6755_v44 = vpop.f32.mrb[78].mxu0  ;;  %7713 = vmatprep.mubr.bf16.mxu1 %v6995_v55 }
 0xd9f   : > { %v6756_v56 = vadd.f32 %v6755_v44, %v16138_v38  ;;  %v6757_v28 = vpop.f32.mrb[79].mxu0  ;;  %7714 = vmatmul.mubr.bf16.gmra.mrb[232].mxu1 %v6994_v20  ;;  %v6898_v49 = vmax.f32 %v6752_v25, 0.0 }
 0xda0   : > { %v6758_v50 = vadd.f32 %v6757_v28, %v16143_v16  ;;  %v6899_v47 = vmax.f32 %v6754_v7, 0.0 }
 0xda1   : > { %v6902_v36 = vmax.f32 %v6756_v56, 0.0 }
 0xda2   : > { %v6903_v6 = vmax.f32 %v6758_v50, 0.0 }
 0xda3   : > { %v6998_v10 = vpack.c.bf16 %v6902_v36, %v6898_v49 }
 0xda4   : > { %v6999_v45 = vpack.c.bf16 %v6903_v6, %v6899_v47  ;;  %v6761_v29 = vpop.f32.mrb[80].mxu0 }
 0xda5   : > { %v6762_v63 = vadd.f32 %v6761_v29, %v16138_v38  ;;  %v6763_v8 = vpop.f32.mrb[81].mxu0 }
 0xda6   : > { %v6764_v22 = vadd.f32 %v6763_v8, %v16143_v16  ;;  %v6765_v48 = vpop.f32.mrb[82].mxu0  ;;  %7723 = vmatprep.mubr.bf16.mxu1 %v6999_v45 }
 0xda7   : > { %v6766_v43 = vadd.f32 %v6765_v48, %v16138_v38  ;;  %v6767_v23 = vpop.f32.mrb[83].mxu0  ;;  %7724 = vmatmul.mubr.bf16.gmra.mrb[236].mxu1 %v6998_v10  ;;  %v6906_v35 = vmax.f32 %v6762_v63, 0.0 }
 0xda8   : > { %v6768_v34 = vadd.f32 %v6767_v23, %v16143_v16  ;;  %v6907_v30 = vmax.f32 %v6764_v22, 0.0 }
 0xda9   : > { %v6910_v37 = vmax.f32 %v6766_v43, 0.0 }
 0xdaa   : > { %v6911_v51 = vmax.f32 %v6768_v34, 0.0 }
 0xdab   : > { %v7002_v59 = vpack.c.bf16 %v6910_v37, %v6906_v35 }
 0xdac   : > { %v7003_v5 = vpack.c.bf16 %v6911_v51, %v6907_v30  ;;  %v6771_v14 = vpop.f32.mrb[84].mxu0 }
 0xdad   : > { %v6772_v0 = vadd.f32 %v6771_v14, %v16138_v38  ;;  %v6773_v52 = vpop.f32.mrb[85].mxu0 }
 0xdae   : > { %v6774_v46 = vadd.f32 %v6773_v52, %v16143_v16  ;;  %v6775_v57 = vpop.f32.mrb[86].mxu0  ;;  %7733 = vmatprep.mubr.bf16.mxu1 %v7003_v5 }
 0xdaf   : > { %v6776_v1 = vadd.f32 %v6775_v57, %v16138_v38  ;;  %v6777_v61 = vpop.f32.mrb[87].mxu0  ;;  %7734 = vmatmul.mubr.bf16.gmra.mrb[240].mxu1 %v7002_v59  ;;  %v6914_v60 = vmax.f32 %v6772_v0, 0.0 }
 0xdb0   : > { %v6778_v21 = vadd.f32 %v6777_v61, %v16143_v16  ;;  %v6915_v3 = vmax.f32 %v6774_v46, 0.0 }
 0xdb1   : > { %v6918_v62 = vmax.f32 %v6776_v1, 0.0 }
 0xdb2   : > { %v6919_v13 = vmax.f32 %v6778_v21, 0.0 }
 0xdb3   : > { %v7006_v18 = vpack.c.bf16 %v6918_v62, %v6914_v60 }
 0xdb4   : > { %v7007_v20 = vpack.c.bf16 %v6919_v13, %v6915_v3  ;;  %v6781_v55 = vpop.f32.mrb[88].mxu0 }
 0xdb5   : > { %v6782_v11 = vadd.f32 %v6781_v55, %v16138_v38  ;;  %v6783_v25 = vpop.f32.mrb[89].mxu0 }
 0xdb6   : > { %v6784_v9 = vadd.f32 %v6783_v25, %v16143_v16  ;;  %v6785_v7 = vpop.f32.mrb[90].mxu0  ;;  %7743 = vmatprep.mubr.bf16.mxu1 %v7007_v20 }
 0xdb7   : > { %v6786_v44 = vadd.f32 %v6785_v7, %v16138_v38  ;;  %v6787_v56 = vpop.f32.mrb[91].mxu0  ;;  %7744 = vmatmul.mubr.bf16.gmra.mrb[244].mxu1 %v7006_v18  ;;  %v6922_v50 = vmax.f32 %v6782_v11, 0.0 }
 0xdb8   : > { %v6788_v28 = vadd.f32 %v6787_v56, %v16143_v16  ;;  %v6923_v36 = vmax.f32 %v6784_v9, 0.0 }
 0xdb9   : > { %v6926_v49 = vmax.f32 %v6786_v44, 0.0 }
 0xdba   : > { %v6927_v47 = vmax.f32 %v6788_v28, 0.0 }
 0xdbb   : > { %v7010_v6 = vpack.c.bf16 %v6926_v49, %v6922_v50 }
 0xdbc   : > { %v7011_v10 = vpack.c.bf16 %v6927_v47, %v6923_v36  ;;  %v6791_v45 = vpop.f32.mrb[92].mxu0 }
 0xdbd   : > { %v6792_v29 = vadd.f32 %v6791_v45, %v16138_v38  ;;  %v6793_v63 = vpop.f32.mrb[93].mxu0 }
 0xdbe   : > { %v6794_v8 = vadd.f32 %v6793_v63, %v16143_v16  ;;  %v6795_v22 = vpop.f32.mrb[94].mxu0  ;;  %7753 = vmatprep.mubr.bf16.mxu1 %v7011_v10 }
 0xdbf   : > { %v6796_v48 = vadd.f32 %v6795_v22, %v16138_v38  ;;  %v6797_v43 = vpop.f32.mrb[95].mxu0  ;;  %7754 = vmatmul.mubr.bf16.gmra.mrb[248].mxu1 %v7010_v6  ;;  %v6930_v34 = vmax.f32 %v6792_v29, 0.0 }
 0xdc0   : > { %v6798_v23 = vadd.f32 %v6797_v43, %v16143_v16  ;;  %v6931_v37 = vmax.f32 %v6794_v8, 0.0 }
 0xdc1   : > { %v6934_v35 = vmax.f32 %v6796_v48, 0.0 }
 0xdc2   : > { %v6935_v30 = vmax.f32 %v6798_v23, 0.0 }
 0xdc3   : > { %v7014_v51 = vpack.c.bf16 %v6934_v35, %v6930_v34 }
 0xdc4   : > { %v7015_v59 = vpack.c.bf16 %v6935_v30, %v6931_v37  ;;  %v6801_v5 = vpop.f32.mrb[96].mxu0 }
 0xdc5   : > { %v6802_v14 = vadd.f32 %v6801_v5, %v16138_v38  ;;  %v6803_v0 = vpop.f32.mrb[97].mxu0 }
 0xdc6   : > { %v6804_v52 = vadd.f32 %v6803_v0, %v16143_v16  ;;  %v6805_v46 = vpop.f32.mrb[98].mxu0  ;;  %7763 = vmatprep.mubr.bf16.mxu1 %v7015_v59 }
 0xdc7   : > { %v6806_v57 = vadd.f32 %v6805_v46, %v16138_v38  ;;  %v6807_v1 = vpop.f32.mrb[99].mxu0  ;;  %7764 = vmatmul.mubr.bf16.gmra.mrb[252].mxu1 %v7014_v51  ;;  %v6938_v21 = vmax.f32 %v6802_v14, 0.0 }
 0xdc8   : > { %v6808_v61 = vadd.f32 %v6807_v1, %v16143_v16  ;;  %v6939_v62 = vmax.f32 %v6804_v52, 0.0 }
 0xdc9   : > { %v6942_v60 = vmax.f32 %v6806_v57, 0.0 }
 0xdca   : > { %v6943_v3 = vmax.f32 %v6808_v61, 0.0 }
 0xdcb   : > { %v7018_v13 = vpack.c.bf16 %v6942_v60, %v6938_v21 }
 0xdcc   : > { %v7019_v18 = vpack.c.bf16 %v6943_v3, %v6939_v62  ;;  %v6811_v20 = vpop.f32.mrb[100].mxu0 }
 0xdcd   : > { %v6812_v55 = vadd.f32 %v6811_v20, %v16138_v38  ;;  %v6813_v11 = vpop.f32.mrb[101].mxu0 }
 0xdce   : > { %v6814_v25 = vadd.f32 %v6813_v11, %v16143_v16  ;;  %v6815_v9 = vpop.f32.mrb[102].mxu0  ;;  %7773 = vmatprep.mubr.bf16.mxu1 %v7019_v18  ;;  %v7096_v18 = vld [vmem:[%s934_s9] sm:$0x3] }
 0xdcf   : > { %v6816_v7 = vadd.f32 %v6815_v9, %v16138_v38  ;;  %v6817_v44 = vpop.f32.mrb[103].mxu0  ;;  %7774 = vmatmul.mubr.bf16.gmra.mrb[0].mxu1 %v7018_v13  ;;  %v6946_v28 = vmax.f32 %v6812_v55, 0.0  ;;  %v16215_v20 = vrot.slane %v7096_v18, %v18299_v24 }
 0xdd0   : > { %v6818_v56 = vadd.f32 %v6817_v44, %v16143_v16  ;;  %v6947_v49 = vmax.f32 %v6814_v25, 0.0 }
 0xdd1   : > { %v6950_v50 = vmax.f32 %v6816_v7, 0.0  ;;  %v18305_v7 = vld [vmem:[#allocation123_spill] sm:$0xff] }
 0xdd2   : > { %v6951_v36 = vmax.f32 %v6818_v56, 0.0 }
 0xdd3   : > { %v7022_v47 = vpack.c.bf16 %v6950_v50, %v6946_v28  ;;  %v18306_v50 = vld [vmem:[#allocation72_spill] sm:$0xff] }
 0xdd4   : > { %v7023_v6 = vpack.c.bf16 %v6951_v36, %v6947_v49  ;;  %v6821_v10 = vpop.f32.mrb[104].mxu0 }
 0xdd5   : > { %v6822_v45 = vadd.f32 %v6821_v10, %v16138_v38  ;;  %v6823_v29 = vpop.f32.mrb[105].mxu0  ;;  %v18308_v10 = vld [vmem:[#allocation75_spill] sm:$0xff] }
 0xdd6   : > { %v6824_v63 = vadd.f32 %v6823_v29, %v16143_v16  ;;  %v6825_v8 = vpop.f32.mrb[106].mxu0  ;;  %7783 = vmatprep.mubr.bf16.mxu1 %v7023_v6 }
 0xdd7   : > { %v6826_v22 = vadd.f32 %v6825_v8, %v16138_v38  ;;  %v6827_v48 = vpop.f32.mrb[107].mxu0  ;;  %7784 = vmatmul.mubr.bf16.gmra.mrb[4].mxu1 %v7022_v47  ;;  %v6954_v23 = vmax.f32 %v6822_v45, 0.0  ;;  %v18307_v47 = vld [vmem:[#allocation90_spill] sm:$0xff] }
 0xdd8   : > { %v6828_v43 = vadd.f32 %v6827_v48, %v16143_v16  ;;  %v6955_v35 = vmax.f32 %v6824_v63, 0.0 }
 0xdd9   : > { %v6958_v34 = vmax.f32 %v6826_v22, 0.0 }
 0xdda   : > { %v6959_v37 = vmax.f32 %v6828_v43, 0.0 }
 0xddb   : > { %v7026_v30 = vpack.c.bf16 %v6958_v34, %v6954_v23  ;;  %v18309_v34 = vld [vmem:[#allocation70_spill] sm:$0xff] }
 0xddc   : > { %v7027_v51 = vpack.c.bf16 %v6959_v37, %v6955_v35  ;;  %v6831_v59 = vpop.f32.mrb[108].mxu0 }
 0xddd   : > { %v6832_v5 = vadd.f32 %v6831_v59, %v16138_v38  ;;  %v6833_v14 = vpop.f32.mrb[109].mxu0 }
 0xdde   : > { %v6834_v0 = vadd.f32 %v6833_v14, %v16143_v16  ;;  %v6835_v52 = vpop.f32.mrb[110].mxu0  ;;  %7793 = vmatprep.mubr.bf16.mxu1 %v7027_v51  ;;  %v18310_v51 = vld [vmem:[#allocation81_spill] sm:$0xff] }
 0xddf   : > { %v6836_v46 = vadd.f32 %v6835_v52, %v16138_v38  ;;  %v6837_v57 = vpop.f32.mrb[111].mxu0  ;;  %7794 = vmatmul.mubr.bf16.gmra.mrb[8].mxu1 %v7026_v30  ;;  %v6962_v61 = vmax.f32 %v6832_v5, 0.0  ;;  %v16218_v38 = vrot.slane %v7096_v18, %v18300_v27  ;;  %v18311_v14 = vld [vmem:[#allocation93_spill] sm:$0xff]  ;;  %v18312_v52 = vld [vmem:[#allocation124_spill] sm:$0xff] }
 0xde0   : > { %v6838_v1 = vadd.f32 %v6837_v57, %v16143_v16  ;;  %v6963_v60 = vmax.f32 %v6834_v0, 0.0 }
 0xde1   : > { %v6966_v21 = vmax.f32 %v6836_v46, 0.0 }
 0xde2   : > { %v6967_v62 = vmax.f32 %v6838_v1, 0.0 }
 0xde3   : > { %v7030_v3 = vpack.c.bf16 %v6966_v21, %v6962_v61 }
 0xde4   : > { %v7031_v13 = vpack.c.bf16 %v6967_v62, %v6963_v60 }
 0xde6   : > { %7803 = vmatprep.mubr.bf16.mxu1 %v7031_v13  ;;  %v18313_v13 = vld [vmem:[#allocation80_spill] sm:$0xff] }
 0xde7   : > { %7804 = vmatmul.mubr.bf16.gmra.mrb[12].mxu1 %v7030_v3 }
 0xe42   : > { %v7655_v16 = vpop.f32.mrb[208].mxu1 }
 0xe43   : > { %v9758_v55 = vadd.f32 %v7655_v16, %v16215_v20  ;;  %v7657_v11 = vpop.f32.mrb[209].mxu1 }
 0xe44   : > { %v9759_v25 = vadd.f32 %v7657_v11, %v16218_v38  ;;  %v7659_v9 = vpop.f32.mrb[210].mxu1  ;;  %v18314_v11 = vld [vmem:[#allocation77_spill] sm:$0xff] }
 0xe45   : > { %v16223_v44 = vadd.f32 %v9758_v55, %v18305_v7  ;;  %v9760_v56 = vadd.f32 %v7659_v9, %v16215_v20  ;;  %v7661_v28 = vpop.f32.mrb[211].mxu1  ;;  %v18315_v7 = vld [vmem:[#allocation79_spill] sm:$0xff] }
 0xe46   : > { %v16227_v49 = vadd.f32 %v9759_v25, %v18306_v50  ;;  %v9761_v36 = vadd.f32 %v7661_v28, %v16218_v38  ;;  %v18316_v28 = vld [vmem:[#allocation76_spill] sm:$0xff] }
 0xe47   : > { %v16231_v6 = vadd.f32 %v9760_v56, %v18307_v47 }
 0xe48   : > { %v16234_v45 = vadd.f32 %v9761_v36, %v18308_v10  ;;  %v7880_v29 = vadd.f32 %v16227_v49, %v16223_v44 }
 0xe4a   : > { %v7665_v63 = vpop.f32.mrb[212].mxu1  ;;  %7881 = vadd.xlane.f32.xlu0 %v7880_v29  ;;  %v7883_v8 = vadd.f32 %v16234_v45, %v16231_v6 }
 0xe4b   : > { %v9762_v22 = vadd.f32 %v7665_v63, %v16215_v20  ;;  %v7667_v48 = vpop.f32.mrb[213].mxu1 }
 0xe4c   : > { %v9763_v43 = vadd.f32 %v7667_v48, %v16218_v38  ;;  %v7669_v23 = vpop.f32.mrb[214].mxu1  ;;  %7884 = vadd.xlane.f32.xlu1 %v7883_v8 }
 0xe4d   : > { %v16243_v35 = vadd.f32 %v9762_v22, %v18309_v34  ;;  %v9764_v37 = vadd.f32 %v7669_v23, %v16215_v20  ;;  %v7671_v30 = vpop.f32.mrb[215].mxu1 }
 0xe4e   : > { %v16247_v59 = vadd.f32 %v9763_v43, %v18310_v51  ;;  %v9765_v5 = vadd.f32 %v7671_v30, %v16218_v38 }
 0xe4f   : > { %v16251_v0 = vadd.f32 %v9764_v37, %v18311_v14 }
 0xe50   : > { %v16254_v46 = vadd.f32 %v9765_v5, %v18312_v52  ;;  %v7886_v57 = vadd.f32 %v16247_v59, %v16243_v35 }
 0xe52   : > { %v7675_v1 = vpop.f32.mrb[216].mxu1  ;;  %7887 = vadd.xlane.f32.xlu0 %v7886_v57  ;;  %v7889_v61 = vadd.f32 %v16254_v46, %v16251_v0 }
 0xe53   : > { %v9766_v21 = vadd.f32 %v7675_v1, %v16215_v20  ;;  %v7677_v60 = vpop.f32.mrb[217].mxu1 }
 0xe54   : > { %v9767_v62 = vadd.f32 %v7677_v60, %v16218_v38  ;;  %v7679_v3 = vpop.f32.mrb[218].mxu1  ;;  %7890 = vadd.xlane.f32.xlu1 %v7889_v61 }
 0xe55   : > { %v16263_v18 = vadd.f32 %v9766_v21, %v18313_v13  ;;  %v9768_v16 = vadd.f32 %v7679_v3, %v16215_v20  ;;  %v7681_v55 = vpop.f32.mrb[219].mxu1  ;;  %v18317_v3 = vld [vmem:[#allocation82_spill] sm:$0xff] }
 0xe56   : > { %v16267_v25 = vadd.f32 %v9767_v62, %v18314_v11  ;;  %v9769_v9 = vadd.f32 %v7681_v55, %v16218_v38 }
 0xe57   : > { %v16271_v56 = vadd.f32 %v9768_v16, %v18315_v7 }
 0xe58   : > { %v16274_v50 = vadd.f32 %v9769_v9, %v18316_v28  ;;  %v7892_v36 = vadd.f32 %v16267_v25, %v16263_v18 }
 0xe5a   : > { %v7685_v47 = vpop.f32.mrb[220].mxu1  ;;  %7893 = vadd.xlane.f32.xlu0 %v7892_v36  ;;  %v7895_v10 = vadd.f32 %v16274_v50, %v16271_v56 }
 0xe5b   : > { %v9770_v29 = vadd.f32 %v7685_v47, %v16215_v20  ;;  %v7687_v63 = vpop.f32.mrb[221].mxu1 }
 0xe5c   : > { %v9771_v8 = vadd.f32 %v7687_v63, %v16218_v38  ;;  %v7689_v22 = vpop.f32.mrb[222].mxu1  ;;  %7896 = vadd.xlane.f32.xlu1 %v7895_v10 }
 0xe5d   : > { %v16283_v48 = vadd.f32 %v9770_v29, %v15571_v19  ;;  %v9772_v43 = vadd.f32 %v7689_v22, %v16215_v20  ;;  %v7691_v23 = vpop.f32.mrb[223].mxu1 }
 0xe5e   : > { %v16287_v34 = vadd.f32 %v9771_v8, %v15557_v26  ;;  %v9773_v37 = vadd.f32 %v7691_v23, %v16218_v38 }
 0xe5f   : > { %v16291_v30 = vadd.f32 %v9772_v43, %v15574_v58 }
 0xe60   : > { %v16294_v51 = vadd.f32 %v9773_v37, %v15560_v54  ;;  %v7898_v5 = vadd.f32 %v16287_v34, %v16283_v48 }
 0xe62   : > { %v7695_v14 = vpop.f32.mrb[224].mxu1  ;;  %7899 = vadd.xlane.f32.xlu0 %v7898_v5  ;;  %v7901_v19 = vadd.f32 %v16294_v51, %v16291_v30 }
 0xe63   : > { %v9774_v52 = vadd.f32 %v7695_v14, %v16215_v20  ;;  %v7697_v26 = vpop.f32.mrb[225].mxu1 }
 0xe64   : > { %v9775_v57 = vadd.f32 %v7697_v26, %v16218_v38  ;;  %v7699_v1 = vpop.f32.mrb[226].mxu1  ;;  %7902 = vadd.xlane.f32.xlu1 %v7901_v19  ;;  %v18319_v19 = vld [vmem:[#allocation103_spill] sm:$0xff] }
 0xe65   : > { %v16303_v58 = vadd.f32 %v9774_v52, %v15602_v41  ;;  %v9776_v54 = vadd.f32 %v7699_v1, %v16215_v20  ;;  %v7701_v61 = vpop.f32.mrb[227].mxu1 }
 0xe66   : > { %v16307_v21 = vadd.f32 %v9775_v57, %v15596_v31  ;;  %v9777_v60 = vadd.f32 %v7701_v61, %v16218_v38  ;;  %v18320_v57 = vld [vmem:[#allocation85_spill] sm:$0xff] }
 0xe67   : > { %v16311_v62 = vadd.f32 %v9776_v54, %v15593_v2  ;;  %v18321_v54 = vld [vmem:[#allocation86_spill] sm:$0xff] }
 0xe68   : > { %v16314_v13 = vadd.f32 %v9777_v60, %v18317_v3  ;;  %v7904_v16 = vadd.f32 %v16307_v21, %v16303_v58 }
 0xe6a   : > { %v7705_v55 = vpop.f32.mrb[228].mxu1  ;;  %7905 = vadd.xlane.f32.xlu0 %v7904_v16  ;;  %v7907_v41 = vadd.f32 %v16314_v13, %v16311_v62 }
 0xe6b   : > { %v9778_v11 = vadd.f32 %v7705_v55, %v16215_v20  ;;  %v7707_v31 = vpop.f32.mrb[229].mxu1 }
 0xe6c   : > { %v9779_v9 = vadd.f32 %v7707_v31, %v16218_v38  ;;  %v7709_v7 = vpop.f32.mrb[230].mxu1  ;;  %7908 = vadd.xlane.f32.xlu1 %v7907_v41 }
 0xe6d   : > { %v16323_v2 = vadd.f32 %v9778_v11, %v15641_v40  ;;  %v9780_v28 = vadd.f32 %v7709_v7, %v16215_v20  ;;  %v7711_v36 = vpop.f32.mrb[231].mxu1 }
 0xe6e   : > { %v16327_v47 = vadd.f32 %v9779_v9, %v15634_v53  ;;  %v9781_v10 = vadd.f32 %v7711_v36, %v16218_v38  ;;  %v18322_v9 = vld [vmem:[#allocation92_spill] sm:$0xff] }
 0xe6f   : > { %v16331_v29 = vadd.f32 %v9780_v28, %v15631_v33  ;;  %v18318_v33 = vld [vmem:[#allocation89_spill] sm:$0xff] }
 0xe70   : > { %v16334_v63 = vadd.f32 %v9781_v10, %v15637_v32  ;;  %v7910_v8 = vadd.f32 %v16327_v47, %v16323_v2  ;;  %v18323_v10 = vld [vmem:[#allocation88_spill] sm:$0xff] }
 0xe72   : > { %v7715_v22 = vpop.f32.mrb[232].mxu1  ;;  %7911 = vadd.xlane.f32.xlu0 %v7910_v8  ;;  %v7913_v40 = vadd.f32 %v16334_v63, %v16331_v29 }
 0xe73   : > { %v9782_v43 = vadd.f32 %v7715_v22, %v16215_v20  ;;  %v7717_v53 = vpop.f32.mrb[233].mxu1 }
 0xe74   : > { %v9783_v23 = vadd.f32 %v7717_v53, %v16218_v38  ;;  %v7719_v37 = vpop.f32.mrb[234].mxu1  ;;  %7914 = vadd.xlane.f32.xlu1 %v7913_v40  ;;  %v18324_v40 = vld [vmem:[#allocation106_spill] sm:$0xff]  ;;  %v18325_v53 = vld [vmem:[#allocation112_spill] sm:$0xff] }
 0xe75   : > { %v16343_v5 = vadd.f32 %v9782_v43, %v18318_v33  ;;  %v9784_v32 = vadd.f32 %v7719_v37, %v16215_v20  ;;  %v7721_v14 = vpop.f32.mrb[235].mxu1 }
 0xe76   : > { %v16347_v52 = vadd.f32 %v9783_v23, %v18319_v19  ;;  %v9785_v26 = vadd.f32 %v7721_v14, %v16218_v38 }
 0xe77   : > { %v16351_v1 = vadd.f32 %v9784_v32, %v18320_v57 }
 0xe78   : > { %v16354_v61 = vadd.f32 %v9785_v26, %v18321_v54  ;;  %v7916_v60 = vadd.f32 %v16347_v52, %v16343_v5 }
 0xe7a   : > { %v7725_v3 = vpop.f32.mrb[236].mxu1  ;;  %7917 = vadd.xlane.f32.xlu0 %v7916_v60  ;;  %v7919_v16 = vadd.f32 %v16354_v61, %v16351_v1 }
 0xe7b   : > { %v9786_v55 = vadd.f32 %v7725_v3, %v16215_v20  ;;  %v7727_v41 = vpop.f32.mrb[237].mxu1 }
 0xe7c   : > { %v9787_v11 = vadd.f32 %v7727_v41, %v16218_v38  ;;  %v7729_v31 = vpop.f32.mrb[238].mxu1  ;;  %7920 = vadd.xlane.f32.xlu1 %v7919_v16 }
 0xe7d   : > { %v16363_v7 = vadd.f32 %v9786_v55, %v18322_v9  ;;  %v9788_v28 = vadd.f32 %v7729_v31, %v16215_v20  ;;  %v7731_v36 = vpop.f32.mrb[239].mxu1 }
 0xe7e   : > { %v16367_v8 = vadd.f32 %v9787_v11, %v18323_v10  ;;  %v9789_v22 = vadd.f32 %v7731_v36, %v16218_v38 }
 0xe7f   : > { %v16371_v43 = vadd.f32 %v9788_v28, %v18324_v40 }
 0xe80   : > { %v16374_v23 = vadd.f32 %v9789_v22, %v18325_v53  ;;  %v7922_v37 = vadd.f32 %v16367_v8, %v16363_v7  ;;  %v18327_v53 = vld [vmem:[#allocation95_spill] sm:$0xff] }
 0xe82   : > { %v7735_v33 = vpop.f32.mrb[240].mxu1  ;;  %7923 = vadd.xlane.f32.xlu0 %v7922_v37  ;;  %v7925_v32 = vadd.f32 %v16374_v23, %v16371_v43 }
 0xe83   : > { %v9790_v14 = vadd.f32 %v7735_v33, %v16215_v20  ;;  %v7737_v19 = vpop.f32.mrb[241].mxu1 }
 0xe84   : > { %v9791_v26 = vadd.f32 %v7737_v19, %v16218_v38  ;;  %v7739_v57 = vpop.f32.mrb[242].mxu1  ;;  %7926 = vadd.xlane.f32.xlu1 %v7925_v32  ;;  %v18328_v32 = vld [vmem:[#allocation109_spill] sm:$0xff]  ;;  %v18329_v19 = vld [vmem:[#allocation115_spill] sm:$0xff] }
 0xe85   : > { %v16383_v54 = vadd.f32 %v9790_v14, %v15765_v42  ;;  %v9792_v60 = vadd.f32 %v7739_v57, %v16215_v20  ;;  %v7741_v3 = vpop.f32.mrb[243].mxu1 }
 0xe86   : > { %v16387_v16 = vadd.f32 %v9791_v26, %v15771_v39  ;;  %v9793_v55 = vadd.f32 %v7741_v3, %v16218_v38 }
 0xe87   : > { %v16391_v41 = vadd.f32 %v9792_v60, %v15768_v17  ;;  %v18326_v17 = vld [vmem:[#allocation91_spill] sm:$0xff] }
 0xe88   : > { %v16394_v11 = vadd.f32 %v9793_v55, %v15774_v15  ;;  %v7928_v31 = vadd.f32 %v16387_v16, %v16383_v54 }
 0xe8a   : > { %v7745_v9 = vpop.f32.mrb[244].mxu1  ;;  %7929 = vadd.xlane.f32.xlu0 %v7928_v31  ;;  %v7931_v42 = vadd.f32 %v16394_v11, %v16391_v41 }
 0xe8b   : > { %v9794_v28 = vadd.f32 %v7745_v9, %v16215_v20  ;;  %v7747_v39 = vpop.f32.mrb[245].mxu1 }
 0xe8c   : > { %v9795_v36 = vadd.f32 %v7747_v39, %v16218_v38  ;;  %v7749_v10 = vpop.f32.mrb[246].mxu1  ;;  %7932 = vadd.xlane.f32.xlu1 %v7931_v42 }
 0xe8d   : > { %v16403_v22 = vadd.f32 %v9794_v28, %v18326_v17  ;;  %v9796_v15 = vadd.f32 %v7749_v10, %v16215_v20  ;;  %v7751_v40 = vpop.f32.mrb[247].mxu1  ;;  %v18330_v28 = vld [vmem:[#allocation98_spill] sm:$0xff]  ;;  %v18331_v17 = vld [vmem:[#allocation107_spill] sm:$0xff] }
 0xe8e   : > { %v16407_v37 = vadd.f32 %v9795_v36, %v18327_v53  ;;  %v9797_v33 = vadd.f32 %v7751_v40, %v16218_v38  ;;  %v18332_v53 = vld [vmem:[#allocation94_spill] sm:$0xff] }
 0xe8f   : > { %v16411_v14 = vadd.f32 %v9796_v15, %v18328_v32  ;;  %v18333_v32 = vld [vmem:[#allocation102_spill] sm:$0xff] }
 0xe90   : > { %v16414_v26 = vadd.f32 %v9797_v33, %v18329_v19  ;;  %v7934_v57 = vadd.f32 %v16407_v37, %v16403_v22 }
 0xe92   : > { %v7755_v60 = vpop.f32.mrb[248].mxu1  ;;  %7935 = vadd.xlane.f32.xlu0 %v7934_v57  ;;  %v7937_v3 = vadd.f32 %v16414_v26, %v16411_v14 }
 0xe93   : > { %v9798_v55 = vadd.f32 %v7755_v60, %v16215_v20  ;;  %v7757_v31 = vpop.f32.mrb[249].mxu1 }
 0xe94   : > { %v9799_v9 = vadd.f32 %v7757_v31, %v16218_v38  ;;  %v7759_v42 = vpop.f32.mrb[250].mxu1  ;;  %7938 = vadd.xlane.f32.xlu1 %v7937_v3 }
 0xe95   : > { %v16423_v39 = vadd.f32 %v9798_v55, %v18330_v28  ;;  %v9800_v36 = vadd.f32 %v7759_v42, %v16215_v20  ;;  %v7761_v10 = vpop.f32.mrb[251].mxu1  ;;  %v18334_v28 = vld [vmem:[#allocation105_spill] sm:$0xff] }
 0xe96   : > { %v16427_v15 = vadd.f32 %v9799_v9, %v18331_v17  ;;  %v9801_v40 = vadd.f32 %v7761_v10, %v16218_v38 }
 0xe97   : > { %v16431_v33 = vadd.f32 %v9800_v36, %v18332_v53 }
 0xe98   : > { %v16434_v19 = vadd.f32 %v9801_v40, %v18333_v32  ;;  %v7940_v57 = vadd.f32 %v16427_v15, %v16423_v39  ;;  %v18335_v40 = vld [vmem:[#allocation101_spill] sm:$0xff] }
 0xe9a   : > { %v7765_v60 = vpop.f32.mrb[252].mxu1  ;;  %7941 = vadd.xlane.f32.xlu0 %v7940_v57  ;;  %v7943_v3 = vadd.f32 %v16434_v19, %v16431_v33  ;;  %v18336_v57 = vld [vmem:[#allocation97_spill] sm:$0xff] }
 0xe9b   : > { %v9802_v55 = vadd.f32 %v7765_v60, %v16215_v20  ;;  %v7767_v31 = vpop.f32.mrb[253].mxu1  ;;  %v18338_v60 = vld [vmem:[#allocation108_spill] sm:$0xff] }
 0xe9c   : > { %v9803_v9 = vadd.f32 %v7767_v31, %v16218_v38  ;;  %v7769_v42 = vpop.f32.mrb[254].mxu1  ;;  %7944 = vadd.xlane.f32.xlu1 %v7943_v3 }
 0xe9d   : > { %v16443_v36 = vadd.f32 %v9802_v55, %v18334_v28  ;;  %v9804_v10 = vadd.f32 %v7769_v42, %v16215_v20  ;;  %v7771_v17 = vpop.f32.mrb[255].mxu1 }
 0xe9e   : > { %v16447_v53 = vadd.f32 %v9803_v9, %v18335_v40  ;;  %v9805_v32 = vadd.f32 %v7771_v17, %v16218_v38 }
 0xe9f   : > { %v16451_v27 = vadd.f32 %v9804_v10, %v18336_v57 }
 0xea0   : > { %v16454_v24 = vadd.f32 %v9805_v32, %v18338_v60  ;;  %v7946_v3 = vadd.f32 %v16447_v53, %v16443_v36 }
 0xea1   : > { %18337 = vst [vmem:[#allocation74_spill] sm:$0xff] %v16451_v27 }
 0xea2   : > { %18339 = vst [vmem:[#allocation73_spill] sm:$0xff] %v16454_v24  ;;  %v7775_v31 = vpop.f32.mrb[0].mxu1  ;;  %7947 = vadd.xlane.f32.xlu0 %v7946_v3  ;;  %v7949_v55 = vadd.f32 %v16454_v24, %v16451_v27  ;;  %v18342_v3 = vld [vmem:[#allocation111_spill] sm:$0xff] }
 0xea3   : > { %v9806_v42 = vadd.f32 %v7775_v31, %v16215_v20  ;;  %v7777_v9 = vpop.f32.mrb[1].mxu1  ;;  %v18344_v31 = vld [vmem:[#allocation104_spill] sm:$0xff] }
 0xea4   : > { %v9807_v28 = vadd.f32 %v7777_v9, %v16218_v38  ;;  %v7779_v17 = vpop.f32.mrb[2].mxu1  ;;  %7950 = vadd.xlane.f32.xlu1 %v7949_v55 }
 0xea5   : > { %v16463_v10 = vadd.f32 %v9806_v42, %v15885_v12  ;;  %v9808_v40 = vadd.f32 %v7779_v17, %v16215_v20  ;;  %v7781_v32 = vpop.f32.mrb[3].mxu1 }
 0xea6   : > { %v16467_v57 = vadd.f32 %v9807_v28, %v15891_v4  ;;  %v9809_v60 = vadd.f32 %v7781_v32, %v16218_v38 }
 0xea7   : > { %18340 = vst [vmem:[#allocation83_spill] sm:$0xff] %v16463_v10  ;;  %v16471_v24 = vadd.f32 %v9808_v40, %v18342_v3  ;;  %v18346_v40 = vld [vmem:[#allocation120_spill] sm:$0xff] }
 0xea8   : > { %18341 = vst [vmem:[#allocation84_spill] sm:$0xff] %v16467_v57  ;;  %v16474_v27 = vadd.f32 %v9809_v60, %v18344_v31  ;;  %v7952_v55 = vadd.f32 %v16467_v57, %v16463_v10  ;;  %v18348_v31 = vld [vmem:[#allocation114_spill] sm:$0xff] }
 0xea9   : > { %18343 = vst [vmem:[#allocation87_spill] sm:$0xff] %v16471_v24  ;;  %v18350_v10 = vld [vmem:[#allocation110_spill] sm:$0xff] }
 0xeaa   : > { %18345 = vst [vmem:[#allocation71_spill] sm:$0xff] %v16474_v27  ;;  %v7785_v9 = vpop.f32.mrb[4].mxu1  ;;  %7953 = vadd.xlane.f32.xlu0 %v7952_v55  ;;  %v7955_v12 = vadd.f32 %v16474_v27, %v16471_v24 }
 0xeab   : > { %v9810_v42 = vadd.f32 %v7785_v9, %v16215_v20  ;;  %v7787_v4 = vpop.f32.mrb[5].mxu1  ;;  %v18352_v9 = vld [vmem:[#allocation113_spill] sm:$0xff] }
 0xeac   : > { %v9811_v28 = vadd.f32 %v7787_v4, %v16218_v38  ;;  %v7789_v17 = vpop.f32.mrb[6].mxu1  ;;  %7956 = vadd.xlane.f32.xlu1 %v7955_v12 }
 0xead   : > { %v16483_v32 = vadd.f32 %v9810_v42, %v18346_v40  ;;  %v9812_v60 = vadd.f32 %v7789_v17, %v16215_v20  ;;  %v7791_v3 = vpop.f32.mrb[7].mxu1 }
 0xeae   : > { %v16487_v57 = vadd.f32 %v9811_v28, %v18348_v31  ;;  %v9813_v55 = vadd.f32 %v7791_v3, %v16218_v38 }
 0xeaf   : > { %18347 = vst [vmem:[#allocation96_spill] sm:$0xff] %v16483_v32  ;;  %v16491_v27 = vadd.f32 %v9812_v60, %v18350_v10  ;;  %v18354_v10 = vld [vmem:[#allocation121_spill] sm:$0xff] }
 0xeb0   : > { %18349 = vst [vmem:[#allocation100_spill] sm:$0xff] %v16487_v57  ;;  %v16494_v24 = vadd.f32 %v9813_v55, %v18352_v9  ;;  %v7958_v12 = vadd.f32 %v16487_v57, %v16483_v32  ;;  %v18356_v9 = vld [vmem:[#allocation117_spill] sm:$0xff]  ;;  %v18358_v32 = vld [vmem:[#allocation122_spill] sm:$0xff] }
 0xeb1   : > { %18351 = vst [vmem:[#allocation67_spill] sm:$0xff] %v16491_v27 }
 0xeb2   : > { %18353 = vst [vmem:[#allocation123_spill] sm:$0xff] %v16494_v24  ;;  %v7795_v4 = vpop.f32.mrb[8].mxu1  ;;  %7959 = vadd.xlane.f32.xlu0 %v7958_v12  ;;  %v7961_v42 = vadd.f32 %v16494_v24, %v16491_v27 }
 0xeb3   : > { %v9814_v17 = vadd.f32 %v7795_v4, %v16215_v20  ;;  %v7797_v28 = vpop.f32.mrb[9].mxu1  ;;  %v18360_v4 = vld [vmem:[#allocation116_spill] sm:$0xff] }
 0xeb4   : > { %v9815_v40 = vadd.f32 %v7797_v28, %v16218_v38  ;;  %v7799_v3 = vpop.f32.mrb[10].mxu1  ;;  %7962 = vadd.xlane.f32.xlu1 %v7961_v42 }
 0xeb5   : > { %v16503_v60 = vadd.f32 %v9814_v17, %v18354_v10  ;;  %v9816_v31 = vadd.f32 %v7799_v3, %v16215_v20  ;;  %v7801_v55 = vpop.f32.mrb[11].mxu1 }
 0xeb6   : > { %v16507_v57 = vadd.f32 %v9815_v40, %v18356_v9  ;;  %v9817_v12 = vadd.f32 %v7801_v55, %v16218_v38 }
 0xeb7   : > { %18355 = vst [vmem:[#allocation72_spill] sm:$0xff] %v16503_v60  ;;  %v16511_v24 = vadd.f32 %v9816_v31, %v18358_v32  ;;  %v18362_v32 = vld [vmem:[#allocation119_spill] sm:$0xff] }
 0xeb8   : > { %18357 = vst [vmem:[#allocation90_spill] sm:$0xff] %v16507_v57  ;;  %v16514_v27 = vadd.f32 %v9817_v12, %v18360_v4  ;;  %v7964_v42 = vadd.f32 %v16507_v57, %v16503_v60  ;;  %v18363_v4 = vld [vmem:[#allocation78_spill] sm:$0xff] }
 0xeb9   : > { %18359 = vst [vmem:[#allocation75_spill] sm:$0xff] %v16511_v24  ;;  %v18364_v60 = vld [vmem:[#allocation118_spill] sm:$0xff] }
 0xeba   : > { %18361 = vst [vmem:[#allocation70_spill] sm:$0xff] %v16514_v27  ;;  %v7805_v28 = vpop.f32.mrb[12].mxu1  ;;  %7965 = vadd.xlane.f32.xlu0 %v7964_v42  ;;  %v7967_v17 = vadd.f32 %v16514_v27, %v16511_v24 }
 0xebb   : > { %v9818_v3 = vadd.f32 %v7805_v28, %v16215_v20  ;;  %v7807_v40 = vpop.f32.mrb[13].mxu1  ;;  %v18365_v28 = vld [vmem:[#allocation99_spill] sm:$0xff] }
 0xebc   : > { %v9819_v10 = vadd.f32 %v7807_v40, %v16218_v38  ;;  %v7809_v55 = vpop.f32.mrb[14].mxu1  ;;  %7968 = vadd.xlane.f32.xlu1 %v7967_v17 }
 0xebd   : > { %v16523_v31 = vadd.f32 %v9818_v3, %v18362_v32  ;;  %v9820_v9 = vadd.f32 %v7809_v55, %v16215_v20  ;;  %v7811_v12 = vpop.f32.mrb[15].mxu1 }
 0xebe   : > { %v16527_v57 = vadd.f32 %v9819_v10, %v18363_v4  ;;  %v9821_v42 = vadd.f32 %v7811_v12, %v16218_v38 }
 0xebf   : > { %v16531_v27 = vadd.f32 %v9820_v9, %v18364_v60 }
 0xec0   : > { %v16534_v24 = vadd.f32 %v9821_v42, %v18365_v28  ;;  %v7970_v17 = vadd.f32 %v16527_v57, %v16523_v31 }
 0xec2   : > { %7971 = vadd.xlane.f32.xlu0 %v7970_v17  ;;  %v7973_v3 = vadd.f32 %v16534_v24, %v16531_v27 }
 0xec4   : > { %7974 = vadd.xlane.f32.xlu1 %v7973_v3 }
 0xed7   : > { %v7882_v20 = vpop.xlane.xlu0 %7881 }
 0xed8   : > { %v7976_v40 = vmul.f32 0.00390625, %v7882_v20 }
 0xed9   : > { %v7885_v10 = vpop.xlane.xlu1 %7884 }
 0xeda   : > { %v16541_v55 = vsub.f32 %v16223_v44, %v7976_v40  ;;  %v16544_v38 = vsub.f32 %v16227_v49, %v7976_v40  ;;  %v7977_v60 = vmul.f32 0.00390625, %v7885_v10 }
 0xedc   : > { %v8072_v32 = vmul.f32 %v16541_v55, %v16541_v55  ;;  %v8073_v9 = vmul.f32 %v16544_v38, %v16544_v38  ;;  %v16551_v12 = vsub.f32 %v16231_v6, %v7977_v60  ;;  %v16554_v4 = vsub.f32 %v16234_v45, %v7977_v60 }
 0xede   : > { %v8074_v44 = vmul.f32 %v16551_v12, %v16551_v12  ;;  %v8075_v49 = vmul.f32 %v16554_v4, %v16554_v4  ;;  %v8136_v42 = vadd.f32 %v8073_v9, %v8072_v32 }
 0xedf   : > { %v7888_v28 = vpop.xlane.xlu0 %7887 }
 0xee0   : > { %v7978_v17 = vmul.f32 0.00390625, %v7888_v28  ;;  %8137 = vadd.xlane.f32.xlu0 %v8136_v42  ;;  %v8139_v3 = vadd.f32 %v8075_v49, %v8074_v44 }
 0xee1   : > { %v7891_v20 = vpop.xlane.xlu1 %7890 }
 0xee2   : > { %v16561_v40 = vsub.f32 %v16243_v35, %v7978_v17  ;;  %v16564_v6 = vsub.f32 %v16247_v59, %v7978_v17  ;;  %v7979_v45 = vmul.f32 0.00390625, %v7891_v20  ;;  %8140 = vadd.xlane.f32.xlu1 %v8139_v3 }
 0xee4   : > { %v8076_v10 = vmul.f32 %v16561_v40, %v16561_v40  ;;  %v8077_v60 = vmul.f32 %v16564_v6, %v16564_v6  ;;  %v16571_v32 = vsub.f32 %v16251_v0, %v7979_v45  ;;  %v16574_v9 = vsub.f32 %v16254_v46, %v7979_v45 }
 0xee6   : > { %v8078_v35 = vmul.f32 %v16571_v32, %v16571_v32  ;;  %v8079_v59 = vmul.f32 %v16574_v9, %v16574_v9  ;;  %v8142_v44 = vadd.f32 %v8077_v60, %v8076_v10 }
 0xee7   : > { %v7894_v49 = vpop.xlane.xlu0 %7893 }
 0xee8   : > { %v7980_v42 = vmul.f32 0.00390625, %v7894_v49  ;;  %8143 = vadd.xlane.f32.xlu0 %v8142_v44  ;;  %v8145_v28 = vadd.f32 %v8079_v59, %v8078_v35 }
 0xee9   : > { %v7897_v17 = vpop.xlane.xlu1 %7896 }
 0xeea   : > { %v16581_v3 = vsub.f32 %v16263_v18, %v7980_v42  ;;  %v16584_v0 = vsub.f32 %v16267_v25, %v7980_v42  ;;  %v7981_v46 = vmul.f32 0.00390625, %v7897_v17  ;;  %8146 = vadd.xlane.f32.xlu1 %v8145_v28 }
 0xeec   : > { %v8080_v20 = vmul.f32 %v16581_v3, %v16581_v3  ;;  %v8081_v45 = vmul.f32 %v16584_v0, %v16584_v0  ;;  %v16591_v10 = vsub.f32 %v16271_v56, %v7981_v46  ;;  %v16594_v60 = vsub.f32 %v16274_v50, %v7981_v46 }
 0xeee   : > { %v8082_v18 = vmul.f32 %v16591_v10, %v16591_v10  ;;  %v8083_v25 = vmul.f32 %v16594_v60, %v16594_v60  ;;  %v8148_v35 = vadd.f32 %v8081_v45, %v8080_v20 }
 0xeef   : > { %v7900_v59 = vpop.xlane.xlu0 %7899 }
 0xef0   : > { %v7982_v44 = vmul.f32 0.00390625, %v7900_v59  ;;  %8149 = vadd.xlane.f32.xlu0 %v8148_v35  ;;  %v8151_v49 = vadd.f32 %v8083_v25, %v8082_v18 }
 0xef1   : > { %v7903_v42 = vpop.xlane.xlu1 %7902 }
 0xef2   : > { %v16601_v28 = vsub.f32 %v16283_v48, %v7982_v44  ;;  %v16604_v56 = vsub.f32 %v16287_v34, %v7982_v44  ;;  %v7983_v50 = vmul.f32 0.00390625, %v7903_v42  ;;  %8152 = vadd.xlane.f32.xlu1 %v8151_v49 }
 0xef4   : > { %v8084_v17 = vmul.f32 %v16601_v28, %v16601_v28  ;;  %v8085_v46 = vmul.f32 %v16604_v56, %v16604_v56  ;;  %v16611_v20 = vsub.f32 %v16291_v30, %v7983_v50  ;;  %v16614_v45 = vsub.f32 %v16294_v51, %v7983_v50 }
 0xef6   : > { %v8086_v48 = vmul.f32 %v16611_v20, %v16611_v20  ;;  %v8087_v34 = vmul.f32 %v16614_v45, %v16614_v45  ;;  %v8154_v18 = vadd.f32 %v8085_v46, %v8084_v17 }
 0xef7   : > { %v7906_v25 = vpop.xlane.xlu0 %7905 }
 0xef8   : > { %v7984_v35 = vmul.f32 0.00390625, %v7906_v25  ;;  %8155 = vadd.xlane.f32.xlu0 %v8154_v18  ;;  %v8157_v59 = vadd.f32 %v8087_v34, %v8086_v48 }
 0xef9   : > { %v7909_v44 = vpop.xlane.xlu1 %7908 }
 0xefa   : > { %v16621_v49 = vsub.f32 %v16303_v58, %v7984_v35  ;;  %v16624_v30 = vsub.f32 %v16307_v21, %v7984_v35  ;;  %v7985_v51 = vmul.f32 0.00390625, %v7909_v44  ;;  %8158 = vadd.xlane.f32.xlu1 %v8157_v59 }
 0xefc   : > { %v8088_v42 = vmul.f32 %v16621_v49, %v16621_v49  ;;  %v8089_v50 = vmul.f32 %v16624_v30, %v16624_v30  ;;  %v16631_v17 = vsub.f32 %v16311_v62, %v7985_v51  ;;  %v16634_v46 = vsub.f32 %v16314_v13, %v7985_v51 }
 0xefe   : > { %v8090_v58 = vmul.f32 %v16631_v17, %v16631_v17  ;;  %v8091_v21 = vmul.f32 %v16634_v46, %v16634_v46  ;;  %v8160_v48 = vadd.f32 %v8089_v50, %v8088_v42 }
 0xeff   : > { %v7912_v34 = vpop.xlane.xlu0 %7911 }
 0xf00   : > { %v7986_v18 = vmul.f32 0.00390625, %v7912_v34  ;;  %8161 = vadd.xlane.f32.xlu0 %v8160_v48  ;;  %v8163_v25 = vadd.f32 %v8091_v21, %v8090_v58 }
 0xf01   : > { %v7915_v35 = vpop.xlane.xlu1 %7914 }
 0xf02   : > { %v16641_v59 = vsub.f32 %v16323_v2, %v7986_v18  ;;  %v16644_v62 = vsub.f32 %v16327_v47, %v7986_v18  ;;  %v7987_v13 = vmul.f32 0.00390625, %v7915_v35  ;;  %8164 = vadd.xlane.f32.xlu1 %v8163_v25 }
 0xf04   : > { %v8092_v44 = vmul.f32 %v16641_v59, %v16641_v59  ;;  %v8093_v51 = vmul.f32 %v16644_v62, %v16644_v62  ;;  %v16651_v42 = vsub.f32 %v16331_v29, %v7987_v13  ;;  %v16654_v50 = vsub.f32 %v16334_v63, %v7987_v13 }
 0xf06   : > { %v8094_v2 = vmul.f32 %v16651_v42, %v16651_v42  ;;  %v8095_v47 = vmul.f32 %v16654_v50, %v16654_v50  ;;  %v8166_v58 = vadd.f32 %v8093_v51, %v8092_v44 }
 0xf07   : > { %v7918_v21 = vpop.xlane.xlu0 %7917 }
 0xf08   : > { %v7988_v48 = vmul.f32 0.00390625, %v7918_v21  ;;  %8167 = vadd.xlane.f32.xlu0 %v8166_v58  ;;  %v8169_v34 = vadd.f32 %v8095_v47, %v8094_v2 }
 0xf09   : > { %v7921_v18 = vpop.xlane.xlu1 %7920 }
 0xf0a   : > { %v16661_v25 = vsub.f32 %v16343_v5, %v7988_v48  ;;  %v16664_v29 = vsub.f32 %v16347_v52, %v7988_v48  ;;  %v7989_v63 = vmul.f32 0.00390625, %v7921_v18  ;;  %8170 = vadd.xlane.f32.xlu1 %v8169_v34 }
 0xf0c   : > { %v8096_v35 = vmul.f32 %v16661_v25, %v16661_v25  ;;  %v8097_v13 = vmul.f32 %v16664_v29, %v16664_v29  ;;  %v16671_v44 = vsub.f32 %v16351_v1, %v7989_v63  ;;  %v16674_v51 = vsub.f32 %v16354_v61, %v7989_v63 }
 0xf0e   : > { %v8098_v5 = vmul.f32 %v16671_v44, %v16671_v44  ;;  %v8099_v52 = vmul.f32 %v16674_v51, %v16674_v51  ;;  %v8172_v2 = vadd.f32 %v8097_v13, %v8096_v35 }
 0xf0f   : > { %v7924_v47 = vpop.xlane.xlu0 %7923 }
 0xf10   : > { %v7990_v58 = vmul.f32 0.00390625, %v7924_v47  ;;  %8173 = vadd.xlane.f32.xlu0 %v8172_v2  ;;  %v8175_v21 = vadd.f32 %v8099_v52, %v8098_v5 }
 0xf11   : > { %v7927_v48 = vpop.xlane.xlu1 %7926 }
 0xf12   : > { %v16681_v34 = vsub.f32 %v16363_v7, %v7990_v58  ;;  %v16684_v1 = vsub.f32 %v16367_v8, %v7990_v58  ;;  %v7991_v61 = vmul.f32 0.00390625, %v7927_v48  ;;  %8176 = vadd.xlane.f32.xlu1 %v8175_v21 }
 0xf14   : > { %v8100_v18 = vmul.f32 %v16681_v34, %v16681_v34  ;;  %v8101_v63 = vmul.f32 %v16684_v1, %v16684_v1  ;;  %v16691_v35 = vsub.f32 %v16371_v43, %v7991_v61  ;;  %v16694_v13 = vsub.f32 %v16374_v23, %v7991_v61 }
 0xf16   : > { %v8102_v7 = vmul.f32 %v16691_v35, %v16691_v35  ;;  %v8103_v8 = vmul.f32 %v16694_v13, %v16694_v13  ;;  %v8178_v5 = vadd.f32 %v8101_v63, %v8100_v18 }
 0xf17   : > { %v7930_v52 = vpop.xlane.xlu0 %7929 }
 0xf18   : > { %v7992_v2 = vmul.f32 0.00390625, %v7930_v52  ;;  %8179 = vadd.xlane.f32.xlu0 %v8178_v5  ;;  %v8181_v47 = vadd.f32 %v8103_v8, %v8102_v7 }
 0xf19   : > { %v7933_v58 = vpop.xlane.xlu1 %7932 }
 0xf1a   : > { %v16701_v21 = vsub.f32 %v16383_v54, %v7992_v2  ;;  %v16704_v43 = vsub.f32 %v16387_v16, %v7992_v2  ;;  %v7993_v23 = vmul.f32 0.00390625, %v7933_v58  ;;  %8182 = vadd.xlane.f32.xlu1 %v8181_v47 }
 0xf1c   : > { %v8104_v48 = vmul.f32 %v16701_v21, %v16701_v21  ;;  %v8105_v61 = vmul.f32 %v16704_v43, %v16704_v43  ;;  %v16711_v18 = vsub.f32 %v16391_v41, %v7993_v23  ;;  %v16714_v63 = vsub.f32 %v16394_v11, %v7993_v23 }
 0xf1e   : > { %v8106_v54 = vmul.f32 %v16711_v18, %v16711_v18  ;;  %v8107_v16 = vmul.f32 %v16714_v63, %v16714_v63  ;;  %v8184_v7 = vadd.f32 %v8105_v61, %v8104_v48 }
 0xf1f   : > { %v7936_v8 = vpop.xlane.xlu0 %7935 }
 0xf20   : > { %v7994_v5 = vmul.f32 0.00390625, %v7936_v8  ;;  %8185 = vadd.xlane.f32.xlu0 %v8184_v7  ;;  %v8187_v52 = vadd.f32 %v8107_v16, %v8106_v54 }
 0xf21   : > { %v7939_v2 = vpop.xlane.xlu1 %7938 }
 0xf22   : > { %v16721_v47 = vsub.f32 %v16403_v22, %v7994_v5  ;;  %v16724_v41 = vsub.f32 %v16407_v37, %v7994_v5  ;;  %v7995_v11 = vmul.f32 0.00390625, %v7939_v2  ;;  %8188 = vadd.xlane.f32.xlu1 %v8187_v52 }
 0xf24   : > { %v8108_v58 = vmul.f32 %v16721_v47, %v16721_v47  ;;  %v8109_v23 = vmul.f32 %v16724_v41, %v16724_v41  ;;  %v16731_v48 = vsub.f32 %v16411_v14, %v7995_v11  ;;  %v16734_v61 = vsub.f32 %v16414_v26, %v7995_v11 }
 0xf26   : > { %v8110_v22 = vmul.f32 %v16731_v48, %v16731_v48  ;;  %v8111_v37 = vmul.f32 %v16734_v61, %v16734_v61  ;;  %v8190_v54 = vadd.f32 %v8109_v23, %v8108_v58 }
 0xf27   : > { %v7942_v16 = vpop.xlane.xlu0 %7941 }
 0xf28   : > { %v7996_v7 = vmul.f32 0.00390625, %v7942_v16  ;;  %8191 = vadd.xlane.f32.xlu0 %v8190_v54  ;;  %v8193_v8 = vadd.f32 %v8111_v37, %v8110_v22 }
 0xf29   : > { %v7945_v5 = vpop.xlane.xlu1 %7944 }
 0xf2a   : > { %v16741_v52 = vsub.f32 %v16423_v39, %v7996_v7  ;;  %v16744_v14 = vsub.f32 %v16427_v15, %v7996_v7  ;;  %v7997_v26 = vmul.f32 0.00390625, %v7945_v5  ;;  %8194 = vadd.xlane.f32.xlu1 %v8193_v8 }
 0xf2c   : > { %v8112_v2 = vmul.f32 %v16741_v52, %v16741_v52  ;;  %v8113_v11 = vmul.f32 %v16744_v14, %v16744_v14  ;;  %v16751_v58 = vsub.f32 %v16431_v33, %v7997_v26  ;;  %v16754_v23 = vsub.f32 %v16434_v19, %v7997_v26 }
 0xf2e   : > { %18366 = vst [vmem:[#allocation81_spill] sm:$0xff] %v16754_v23  ;;  %v8114_v39 = vmul.f32 %v16751_v58, %v16751_v58  ;;  %v8115_v15 = vmul.f32 %v16754_v23, %v16754_v23  ;;  %v8196_v22 = vadd.f32 %v8113_v11, %v8112_v2  ;;  %v18369_v2 = vld [vmem:[#allocation74_spill] sm:$0xff] }
 0xf2f   : > { %v7948_v37 = vpop.xlane.xlu0 %7947 }
 0xf30   : > { %v7998_v54 = vmul.f32 0.00390625, %v7948_v37  ;;  %8197 = vadd.xlane.f32.xlu0 %v8196_v22  ;;  %v8199_v16 = vadd.f32 %v8115_v15, %v8114_v39  ;;  %v18371_v22 = vld [vmem:[#allocation73_spill] sm:$0xff] }
 0xf31   : > { %v7951_v7 = vpop.xlane.xlu1 %7950 }
 0xf32   : > { %v16761_v8 = vsub.f32 %v16443_v36, %v7998_v54  ;;  %v16764_v33 = vsub.f32 %v16447_v53, %v7998_v54  ;;  %v7999_v19 = vmul.f32 0.00390625, %v7951_v7  ;;  %8200 = vadd.xlane.f32.xlu1 %v8199_v16 }
 0xf34   : > { %18367 = vst [vmem:[#allocation93_spill] sm:$0xff] %v16761_v8  ;;  %18368 = vst [vmem:[#allocation124_spill] sm:$0xff] %v16764_v33  ;;  %v8116_v5 = vmul.f32 %v16761_v8, %v16761_v8  ;;  %v8117_v26 = vmul.f32 %v16764_v33, %v16764_v33  ;;  %v16771_v11 = vsub.f32 %v18369_v2, %v7999_v19  ;;  %v18373_v8 = vld [vmem:[#allocation83_spill] sm:$0xff]  ;;  %v18375_v2 = vld [vmem:[#allocation84_spill] sm:$0xff] }
 0xf35   : > { %v16774_v39 = vsub.f32 %v18371_v22, %v7999_v19 }
 0xf36   : > { %18370 = vst [vmem:[#allocation80_spill] sm:$0xff] %v16771_v11  ;;  %v8118_v36 = vmul.f32 %v16771_v11, %v16771_v11  ;;  %v8202_v15 = vadd.f32 %v8117_v26, %v8116_v5  ;;  %v18377_v5 = vld [vmem:[#allocation87_spill] sm:$0xff] }
 0xf37   : > { %18372 = vst [vmem:[#allocation77_spill] sm:$0xff] %v16774_v39  ;;  %v8119_v53 = vmul.f32 %v16774_v39, %v16774_v39  ;;  %v7954_v37 = vpop.xlane.xlu0 %7953 }
 0xf38   : > { %v8000_v54 = vmul.f32 0.00390625, %v7954_v37  ;;  %8203 = vadd.xlane.f32.xlu0 %v8202_v15  ;;  %v18379_v15 = vld [vmem:[#allocation71_spill] sm:$0xff] }
 0xf39   : > { %v8205_v16 = vadd.f32 %v8119_v53, %v8118_v36  ;;  %v7957_v7 = vpop.xlane.xlu1 %7956 }
 0xf3a   : > { %v16781_v33 = vsub.f32 %v18373_v8, %v8000_v54  ;;  %v16784_v23 = vsub.f32 %v18375_v2, %v8000_v54  ;;  %v8001_v19 = vmul.f32 0.00390625, %v7957_v7 }
 0xf3b   : > { %8206 = vadd.xlane.f32.xlu1 %v8205_v16 }
 0xf3c   : > { %18374 = vst [vmem:[#allocation79_spill] sm:$0xff] %v16781_v33  ;;  %18376 = vst [vmem:[#allocation76_spill] sm:$0xff] %v16784_v23  ;;  %v8120_v22 = vmul.f32 %v16781_v33, %v16781_v33  ;;  %v8121_v39 = vmul.f32 %v16784_v23, %v16784_v23  ;;  %v16791_v26 = vsub.f32 %v18377_v5, %v8001_v19  ;;  %v18381_v33 = vld [vmem:[#allocation96_spill] sm:$0xff] }
 0xf3d   : > { %v16794_v36 = vsub.f32 %v18379_v15, %v8001_v19  ;;  %v18383_v5 = vld [vmem:[#allocation100_spill] sm:$0xff] }
 0xf3e   : > { %18378 = vst [vmem:[#allocation82_spill] sm:$0xff] %v16791_v26  ;;  %v8122_v8 = vmul.f32 %v16791_v26, %v16791_v26  ;;  %v8208_v37 = vadd.f32 %v8121_v39, %v8120_v22  ;;  %v18385_v39 = vld [vmem:[#allocation67_spill] sm:$0xff] }
 0xf3f   : > { %18380 = vst [vmem:[#allocation89_spill] sm:$0xff] %v16794_v36  ;;  %v8123_v53 = vmul.f32 %v16794_v36, %v16794_v36  ;;  %v7960_v54 = vpop.xlane.xlu0 %7959 }
 0xf40   : > { %v8002_v16 = vmul.f32 0.00390625, %v7960_v54  ;;  %8209 = vadd.xlane.f32.xlu0 %v8208_v37  ;;  %v18386_v37 = vld [vmem:[#allocation123_spill] sm:$0xff] }
 0xf41   : > { %v8211_v7 = vadd.f32 %v8123_v53, %v8122_v8  ;;  %v7963_v2 = vpop.xlane.xlu1 %7962 }
 0xf42   : > { %v16801_v23 = vsub.f32 %v18381_v33, %v8002_v16  ;;  %v16804_v11 = vsub.f32 %v18383_v5, %v8002_v16  ;;  %v8003_v19 = vmul.f32 0.00390625, %v7963_v2 }
 0xf43   : > { %8212 = vadd.xlane.f32.xlu1 %v8211_v7 }
 0xf44   : > { %18382 = vst [vmem:[#allocation103_spill] sm:$0xff] %v16801_v23  ;;  %18384 = vst [vmem:[#allocation85_spill] sm:$0xff] %v16804_v11  ;;  %v8124_v15 = vmul.f32 %v16801_v23, %v16801_v23  ;;  %v8125_v36 = vmul.f32 %v16804_v11, %v16804_v11  ;;  %v16811_v22 = vsub.f32 %v18385_v39, %v8003_v19  ;;  %v18388_v23 = vld [vmem:[#allocation72_spill] sm:$0xff]  ;;  %v18389_v39 = vld [vmem:[#allocation90_spill] sm:$0xff] }
 0xf45   : > { %v16814_v8 = vsub.f32 %v18386_v37, %v8003_v19 }
 0xf46   : > { %v8126_v33 = vmul.f32 %v16811_v22, %v16811_v22  ;;  %v8214_v54 = vadd.f32 %v8125_v36, %v8124_v15  ;;  %v18391_v36 = vld [vmem:[#allocation75_spill] sm:$0xff] }
 0xf47   : > { %18387 = vst [vmem:[#allocation86_spill] sm:$0xff] %v16814_v8  ;;  %v8127_v53 = vmul.f32 %v16814_v8, %v16814_v8  ;;  %v7966_v16 = vpop.xlane.xlu0 %7965 }
 0xf48   : > { %v8004_v7 = vmul.f32 0.00390625, %v7966_v16  ;;  %8215 = vadd.xlane.f32.xlu0 %v8214_v54  ;;  %v18393_v54 = vld [vmem:[#allocation70_spill] sm:$0xff] }
 0xf49   : > { %v8217_v2 = vadd.f32 %v8127_v53, %v8126_v33  ;;  %v7969_v5 = vpop.xlane.xlu1 %7968 }
 0xf4a   : > { %v16821_v11 = vsub.f32 %v18388_v23, %v8004_v7  ;;  %v16824_v26 = vsub.f32 %v18389_v39, %v8004_v7  ;;  %v8005_v19 = vmul.f32 0.00390625, %v7969_v5 }
 0xf4b   : > { %8218 = vadd.xlane.f32.xlu1 %v8217_v2 }
 0xf4c   : > { %18390 = vst [vmem:[#allocation92_spill] sm:$0xff] %v16824_v26  ;;  %v8128_v37 = vmul.f32 %v16821_v11, %v16821_v11  ;;  %v8129_v8 = vmul.f32 %v16824_v26, %v16824_v26  ;;  %v16831_v15 = vsub.f32 %v18391_v36, %v8005_v19  ;;  %v16834_v33 = vsub.f32 %v18393_v54, %v8005_v19 }
 0xf4e   : > { %18392 = vst [vmem:[#allocation88_spill] sm:$0xff] %v16831_v15  ;;  %18394 = vst [vmem:[#allocation106_spill] sm:$0xff] %v16834_v33  ;;  %v8130_v23 = vmul.f32 %v16831_v15, %v16831_v15  ;;  %v8131_v53 = vmul.f32 %v16834_v33, %v16834_v33  ;;  %v8220_v16 = vadd.f32 %v8129_v8, %v8128_v37 }
 0xf4f   : > { %v7972_v7 = vpop.xlane.xlu0 %7971 }
 0xf50   : > { %v8006_v2 = vmul.f32 0.00390625, %v7972_v7  ;;  %8221 = vadd.xlane.f32.xlu0 %v8220_v16  ;;  %v8223_v5 = vadd.f32 %v8131_v53, %v8130_v23 }
 0xf51   : > { %v7975_v39 = vpop.xlane.xlu1 %7974 }
 0xf52   : > { %v16841_v26 = vsub.f32 %v16523_v31, %v8006_v2  ;;  %v16844_v36 = vsub.f32 %v16527_v57, %v8006_v2  ;;  %v8007_v19 = vmul.f32 0.00390625, %v7975_v39  ;;  %8224 = vadd.xlane.f32.xlu1 %v8223_v5 }
 0xf54   : > { %18395 = vst [vmem:[#allocation112_spill] sm:$0xff] %v16841_v26  ;;  %18396 = vst [vmem:[#allocation91_spill] sm:$0xff] %v16844_v36  ;;  %v8132_v54 = vmul.f32 %v16841_v26, %v16841_v26  ;;  %v8133_v33 = vmul.f32 %v16844_v36, %v16844_v36  ;;  %v16851_v8 = vsub.f32 %v16531_v27, %v8007_v19 }
 0xf55   : > { %v16854_v37 = vsub.f32 %v16534_v24, %v8007_v19 }
 0xf56   : > { %18397 = vst [vmem:[#allocation95_spill] sm:$0xff] %v16851_v8  ;;  %v8134_v31 = vmul.f32 %v16851_v8, %v16851_v8  ;;  %v8226_v23 = vadd.f32 %v8133_v33, %v8132_v54  ;;  %v7878_v33 = vld [vmem:[%s938_s11] sm:$0x3] }
 0xf57   : > { %18398 = vst [vmem:[#allocation109_spill] sm:$0xff] %v16854_v37  ;;  %v8135_v57 = vmul.f32 %v16854_v37, %v16854_v37 }
 0xf58   : > { %8227 = vadd.xlane.f32.xlu0 %v8226_v23 }
 0xf59   : > { %v8229_v53 = vadd.f32 %v8135_v57, %v8134_v31  ;;  %v7879_v57 = vld [vmem:[%s942_s26] sm:$0x3] }
 0xf5b   : > { %8230 = vadd.xlane.f32.xlu1 %v8229_v53  ;;  %v18401_v53 = vld [vmem:[#allocation68_spill] sm:$0xff] }
 0xf6d   : > { %v8138_v16 = vpop.xlane.xlu0 %8137 }
 0xf6e   : > { %v8232_v7 = vmul.f32 0.00390625, %v8138_v16  ;;  %v16871_v16 = vrot.slane %v7878_v33, %v18401_v53 }
 0xf6f   : > { %v8141_v2 = vpop.xlane.xlu1 %8140 }
 0xf70   : > { %v8264_v27 = vadd.f32 1e-05, %v8232_v7  ;;  %v8233_v5 = vmul.f32 0.00390625, %v8141_v2  ;;  %v18402_v7 = vld [vmem:[#allocation69_spill] sm:$0xff] }
 0xf71   : > { %v16874_v2 = vrot.slane %v7878_v33, %v18402_v7 }
 0xf72   : > { %10826 = vrsqrt.f32 %v8264_v27  ;;  %v8265_v24 = vadd.f32 1e-05, %v8233_v5  ;;  %v16877_v5 = vrot.slane %v7879_v57, %v18401_v53 }
 0xf74   : > { %10828 = vrsqrt.f32 %v8265_v24 }
 0xf75   : > { %v8144_v39 = vpop.xlane.xlu0 %8143 }
 0xf76   : > { %v8234_v19 = vmul.f32 0.00390625, %v8144_v39 }
 0xf77   : > { %v8147_v8 = vpop.xlane.xlu1 %8146 }
 0xf78   : > { %v8266_v54 = vadd.f32 1e-05, %v8234_v19  ;;  %v8235_v31 = vmul.f32 0.00390625, %v8147_v8  ;;  %v16880_v8 = vrot.slane %v7879_v57, %v18402_v7 }
 0xf7a   : > { %10830 = vrsqrt.f32 %v8266_v54  ;;  %v8267_v23 = vadd.f32 1e-05, %v8235_v31 }
 0xf7c   : > { %v10827_v27 = vpop.eup %10826  ;;  %10832 = vrsqrt.f32 %v8267_v23 }
 0xf7d   : > { %v8328_v24 = vmul.f32 %v10827_v27, %v16541_v55  ;;  %v8329_v39 = vmul.f32 %v10827_v27, %v16544_v38  ;;  %v8150_v19 = vpop.xlane.xlu0 %8149 }
 0xf7e   : > { %v10829_v54 = vpop.eup %10828  ;;  %v8236_v31 = vmul.f32 0.00390625, %v8150_v19 }
 0xf7f   : > { %v8403_v37 = vmul.f32 %v16871_v16, %v8328_v24  ;;  %v8404_v33 = vmul.f32 %v16874_v2, %v8329_v39  ;;  %v8330_v36 = vmul.f32 %v10829_v54, %v16551_v12  ;;  %v8331_v23 = vmul.f32 %v10829_v54, %v16554_v4  ;;  %v8153_v53 = vpop.xlane.xlu1 %8152 }
 0xf80   : > { %v8268_v26 = vadd.f32 1e-05, %v8236_v31  ;;  %v8237_v15 = vmul.f32 0.00390625, %v8153_v53 }
 0xf81   : > { %v16889_v57 = vadd.f32 %v16877_v5, %v8403_v37  ;;  %v16892_v55 = vadd.f32 %v16880_v8, %v8404_v33  ;;  %v8405_v38 = vmul.f32 %v16871_v16, %v8330_v36  ;;  %v8406_v7 = vmul.f32 %v16874_v2, %v8331_v23 }
 0xf82   : > { %10834 = vrsqrt.f32 %v8268_v26  ;;  %v8269_v27 = vadd.f32 1e-05, %v8237_v15 }
 0xf83   : > { %8542 = vst [vmem:[#allocation2] sm:$0xff] %v16889_v57  ;;  %8543 = vst [vmem:[#allocation2 + $0x8] sm:$0xff] %v16892_v55  ;;  %v16899_v12 = vadd.f32 %v16877_v5, %v8405_v38  ;;  %v16902_v4 = vadd.f32 %v16880_v8, %v8406_v7 }
 0xf84   : > { %v10831_v37 = vpop.eup %10830  ;;  %10836 = vrsqrt.f32 %v8269_v27  ;;  %8610 = vst [vmem:[%s12005_s4] sm:$0xff] (!%p9295_p4), %v16889_v57  ;;  %8611 = vst [vmem:[%s12005_s4 + $0x8] sm:$0xff] (!%p9295_p4), %v16892_v55 }
 0xf85   : > { %8544 = vst [vmem:[#allocation2 + $0x10] sm:$0xff] %v16899_v12  ;;  %8545 = vst [vmem:[#allocation2 + $0x18] sm:$0xff] %v16902_v4  ;;  %v8332_v36 = vmul.f32 %v10831_v37, %v16561_v40  ;;  %v8333_v26 = vmul.f32 %v10831_v37, %v16564_v6  ;;  %v8156_v15 = vpop.xlane.xlu0 %8155 }
 0xf86   : > { %v10833_v24 = vpop.eup %10832  ;;  %v8238_v39 = vmul.f32 0.00390625, %v8156_v15  ;;  %8612 = vst [vmem:[%s12005_s4 + $0x10] sm:$0xff] (!%p9295_p4), %v16899_v12  ;;  %8613 = vst [vmem:[%s12005_s4 + $0x18] sm:$0xff] (!%p9295_p4), %v16902_v4 }
 0xf87   : > { %v8407_v19 = vmul.f32 %v16871_v16, %v8332_v36  ;;  %v8408_v54 = vmul.f32 %v16874_v2, %v8333_v26  ;;  %v8334_v31 = vmul.f32 %v10833_v24, %v16571_v32  ;;  %v8335_v33 = vmul.f32 %v10833_v24, %v16574_v9  ;;  %v8159_v23 = vpop.xlane.xlu1 %8158 }
 0xf88   : > { %v8270_v53 = vadd.f32 1e-05, %v8238_v39  ;;  %v8239_v38 = vmul.f32 0.00390625, %v8159_v23 }
 0xf89   : > { %v16913_v7 = vadd.f32 %v16877_v5, %v8407_v19  ;;  %v16916_v40 = vadd.f32 %v16880_v8, %v8408_v54  ;;  %v8409_v6 = vmul.f32 %v16871_v16, %v8334_v31  ;;  %v8410_v27 = vmul.f32 %v16874_v2, %v8335_v33 }
 0xf8a   : > { %10838 = vrsqrt.f32 %v8270_v53  ;;  %v8271_v37 = vadd.f32 1e-05, %v8239_v38 }
 0xf8b   : > { %8546 = vst [vmem:[#allocation2 + $0x20] sm:$0xff] %v16913_v7  ;;  %8547 = vst [vmem:[#allocation2 + $0x28] sm:$0xff] %v16916_v40  ;;  %v16923_v32 = vadd.f32 %v16877_v5, %v8409_v6  ;;  %v16926_v9 = vadd.f32 %v16880_v8, %v8410_v27 }
 0xf8c   : > { %v10835_v36 = vpop.eup %10834  ;;  %10840 = vrsqrt.f32 %v8271_v37  ;;  %8614 = vst [vmem:[%s12005_s4 + $0x20] sm:$0xff] (!%p9295_p4), %v16913_v7  ;;  %8615 = vst [vmem:[%s12005_s4 + $0x28] sm:$0xff] (!%p9295_p4), %v16916_v40 }
 0xf8d   : > { %8548 = vst [vmem:[#allocation2 + $0x30] sm:$0xff] %v16923_v32  ;;  %8549 = vst [vmem:[#allocation2 + $0x38] sm:$0xff] %v16926_v9  ;;  %v8336_v26 = vmul.f32 %v10835_v36, %v16581_v3  ;;  %v8337_v15 = vmul.f32 %v10835_v36, %v16584_v0  ;;  %v8162_v24 = vpop.xlane.xlu0 %8161 }
 0xf8e   : > { %v10837_v39 = vpop.eup %10836  ;;  %v8240_v19 = vmul.f32 0.00390625, %v8162_v24  ;;  %8616 = vst [vmem:[%s12005_s4 + $0x30] sm:$0xff] (!%p9295_p4), %v16923_v32  ;;  %8617 = vst [vmem:[%s12005_s4 + $0x38] sm:$0xff] (!%p9295_p4), %v16926_v9 }
 0xf8f   : > { %v8411_v54 = vmul.f32 %v16871_v16, %v8336_v26  ;;  %v8412_v31 = vmul.f32 %v16874_v2, %v8337_v15  ;;  %v8338_v33 = vmul.f32 %v10837_v39, %v16591_v10  ;;  %v8339_v23 = vmul.f32 %v10837_v39, %v16594_v60  ;;  %v8165_v53 = vpop.xlane.xlu1 %8164 }
 0xf90   : > { %v8272_v38 = vadd.f32 1e-05, %v8240_v19  ;;  %v8241_v6 = vmul.f32 0.00390625, %v8165_v53 }
 0xf91   : > { %v16937_v27 = vadd.f32 %v16877_v5, %v8411_v54  ;;  %v16940_v3 = vadd.f32 %v16880_v8, %v8412_v31  ;;  %v8413_v0 = vmul.f32 %v16871_v16, %v8338_v33  ;;  %v8414_v37 = vmul.f32 %v16874_v2, %v8339_v23 }
 0xf92   : > { %10842 = vrsqrt.f32 %v8272_v38  ;;  %v8273_v36 = vadd.f32 1e-05, %v8241_v6 }
 0xf93   : > { %8550 = vst [vmem:[#allocation2 + $0x40] sm:$0xff] %v16937_v27  ;;  %8551 = vst [vmem:[#allocation2 + $0x48] sm:$0xff] %v16940_v3  ;;  %v16947_v10 = vadd.f32 %v16877_v5, %v8413_v0  ;;  %v16950_v60 = vadd.f32 %v16880_v8, %v8414_v37 }
 0xf94   : > { %v10839_v26 = vpop.eup %10838  ;;  %10844 = vrsqrt.f32 %v8273_v36  ;;  %8618 = vst [vmem:[%s12005_s4 + $0x40] sm:$0xff] (!%p9295_p4), %v16937_v27  ;;  %8619 = vst [vmem:[%s12005_s4 + $0x48] sm:$0xff] (!%p9295_p4), %v16940_v3 }
 0xf95   : > { %8552 = vst [vmem:[#allocation2 + $0x50] sm:$0xff] %v16947_v10  ;;  %8553 = vst [vmem:[#allocation2 + $0x58] sm:$0xff] %v16950_v60  ;;  %v8340_v15 = vmul.f32 %v10839_v26, %v16601_v28  ;;  %v8341_v24 = vmul.f32 %v10839_v26, %v16604_v56  ;;  %v8168_v39 = vpop.xlane.xlu0 %8167 }
 0xf96   : > { %v10841_v19 = vpop.eup %10840  ;;  %v8242_v54 = vmul.f32 0.00390625, %v8168_v39  ;;  %8620 = vst [vmem:[%s12005_s4 + $0x50] sm:$0xff] (!%p9295_p4), %v16947_v10  ;;  %8621 = vst [vmem:[%s12005_s4 + $0x58] sm:$0xff] (!%p9295_p4), %v16950_v60 }
 0xf97   : > { %v8415_v31 = vmul.f32 %v16871_v16, %v8340_v15  ;;  %v8416_v33 = vmul.f32 %v16874_v2, %v8341_v24  ;;  %v8342_v23 = vmul.f32 %v10841_v19, %v16611_v20  ;;  %v8343_v53 = vmul.f32 %v10841_v19, %v16614_v45  ;;  %v8171_v38 = vpop.xlane.xlu1 %8170 }
 0xf98   : > { %v8274_v6 = vadd.f32 1e-05, %v8242_v54  ;;  %v8243_v0 = vmul.f32 0.00390625, %v8171_v38 }
 0xf99   : > { %v16961_v37 = vadd.f32 %v16877_v5, %v8415_v31  ;;  %v16964_v28 = vadd.f32 %v16880_v8, %v8416_v33  ;;  %v8417_v56 = vmul.f32 %v16871_v16, %v8342_v23  ;;  %v8418_v36 = vmul.f32 %v16874_v2, %v8343_v53 }
 0xf9a   : > { %10846 = vrsqrt.f32 %v8274_v6  ;;  %v8275_v26 = vadd.f32 1e-05, %v8243_v0 }
 0xf9b   : > { %8554 = vst [vmem:[#allocation2 + $0x60] sm:$0xff] %v16961_v37  ;;  %8555 = vst [vmem:[#allocation2 + $0x68] sm:$0xff] %v16964_v28  ;;  %v16971_v20 = vadd.f32 %v16877_v5, %v8417_v56  ;;  %v16974_v45 = vadd.f32 %v16880_v8, %v8418_v36 }
 0xf9c   : > { %v10843_v15 = vpop.eup %10842  ;;  %10848 = vrsqrt.f32 %v8275_v26  ;;  %8622 = vst [vmem:[%s12005_s4 + $0x60] sm:$0xff] (!%p9295_p4), %v16961_v37  ;;  %8623 = vst [vmem:[%s12005_s4 + $0x68] sm:$0xff] (!%p9295_p4), %v16964_v28 }
 0xf9d   : > { %8556 = vst [vmem:[#allocation2 + $0x70] sm:$0xff] %v16971_v20  ;;  %8557 = vst [vmem:[#allocation2 + $0x78] sm:$0xff] %v16974_v45  ;;  %v8344_v24 = vmul.f32 %v10843_v15, %v16621_v49  ;;  %v8345_v39 = vmul.f32 %v10843_v15, %v16624_v30  ;;  %v8174_v19 = vpop.xlane.xlu0 %8173 }
 0xf9e   : > { %v10845_v54 = vpop.eup %10844  ;;  %v8244_v31 = vmul.f32 0.00390625, %v8174_v19  ;;  %8624 = vst [vmem:[%s12005_s4 + $0x70] sm:$0xff] (!%p9295_p4), %v16971_v20  ;;  %8625 = vst [vmem:[%s12005_s4 + $0x78] sm:$0xff] (!%p9295_p4), %v16974_v45 }
 0xf9f   : > { %v8419_v33 = vmul.f32 %v16871_v16, %v8344_v24  ;;  %v8420_v23 = vmul.f32 %v16874_v2, %v8345_v39  ;;  %v8346_v53 = vmul.f32 %v10845_v54, %v16631_v17  ;;  %v8347_v38 = vmul.f32 %v10845_v54, %v16634_v46  ;;  %v8177_v6 = vpop.xlane.xlu1 %8176 }
 0xfa0   : > { %v8276_v0 = vadd.f32 1e-05, %v8244_v31  ;;  %v8245_v56 = vmul.f32 0.00390625, %v8177_v6 }
 0xfa1   : > { %v16985_v36 = vadd.f32 %v16877_v5, %v8419_v33  ;;  %v16988_v49 = vadd.f32 %v16880_v8, %v8420_v23  ;;  %v8421_v30 = vmul.f32 %v16871_v16, %v8346_v53  ;;  %v8422_v26 = vmul.f32 %v16874_v2, %v8347_v38 }
 0xfa2   : > { %10850 = vrsqrt.f32 %v8276_v0  ;;  %v8277_v15 = vadd.f32 1e-05, %v8245_v56 }
 0xfa3   : > { %8558 = vst [vmem:[#allocation2 + $0x80] sm:$0xff] %v16985_v36  ;;  %8559 = vst [vmem:[#allocation2 + $0x88] sm:$0xff] %v16988_v49  ;;  %v16995_v17 = vadd.f32 %v16877_v5, %v8421_v30  ;;  %v16998_v46 = vadd.f32 %v16880_v8, %v8422_v26 }
 0xfa4   : > { %v10847_v24 = vpop.eup %10846  ;;  %10852 = vrsqrt.f32 %v8277_v15  ;;  %8626 = vst [vmem:[%s12005_s4 + $0x80] sm:$0xff] (!%p9295_p4), %v16985_v36  ;;  %8627 = vst [vmem:[%s12005_s4 + $0x88] sm:$0xff] (!%p9295_p4), %v16988_v49 }
 0xfa5   : > { %8560 = vst [vmem:[#allocation2 + $0x90] sm:$0xff] %v16995_v17  ;;  %8561 = vst [vmem:[#allocation2 + $0x98] sm:$0xff] %v16998_v46  ;;  %v8348_v39 = vmul.f32 %v10847_v24, %v16641_v59  ;;  %v8349_v19 = vmul.f32 %v10847_v24, %v16644_v62  ;;  %v8180_v54 = vpop.xlane.xlu0 %8179 }
 0xfa6   : > { %v10849_v31 = vpop.eup %10848  ;;  %v8246_v33 = vmul.f32 0.00390625, %v8180_v54  ;;  %8628 = vst [vmem:[%s12005_s4 + $0x90] sm:$0xff] (!%p9295_p4), %v16995_v17  ;;  %8629 = vst [vmem:[%s12005_s4 + $0x98] sm:$0xff] (!%p9295_p4), %v16998_v46 }
 0xfa7   : > { %v8423_v23 = vmul.f32 %v16871_v16, %v8348_v39  ;;  %v8424_v53 = vmul.f32 %v16874_v2, %v8349_v19  ;;  %v8350_v38 = vmul.f32 %v10849_v31, %v16651_v42  ;;  %v8351_v6 = vmul.f32 %v10849_v31, %v16654_v50  ;;  %v8183_v0 = vpop.xlane.xlu1 %8182 }
 0xfa8   : > { %v8278_v56 = vadd.f32 1e-05, %v8246_v33  ;;  %v8247_v30 = vmul.f32 0.00390625, %v8183_v0 }
 0xfa9   : > { %v17009_v26 = vadd.f32 %v16877_v5, %v8423_v23  ;;  %v17012_v59 = vadd.f32 %v16880_v8, %v8424_v53  ;;  %v8425_v62 = vmul.f32 %v16871_v16, %v8350_v38  ;;  %v8426_v15 = vmul.f32 %v16874_v2, %v8351_v6 }
 0xfaa   : > { %10854 = vrsqrt.f32 %v8278_v56  ;;  %v8279_v24 = vadd.f32 1e-05, %v8247_v30 }
 0xfab   : > { %8562 = vst [vmem:[#allocation2 + $0xa0] sm:$0xff] %v17009_v26  ;;  %8563 = vst [vmem:[#allocation2 + $0xa8] sm:$0xff] %v17012_v59  ;;  %v17019_v42 = vadd.f32 %v16877_v5, %v8425_v62  ;;  %v17022_v50 = vadd.f32 %v16880_v8, %v8426_v15 }
 0xfac   : > { %v10851_v39 = vpop.eup %10850  ;;  %10856 = vrsqrt.f32 %v8279_v24  ;;  %8630 = vst [vmem:[%s12005_s4 + $0xa0] sm:$0xff] (!%p9295_p4), %v17009_v26  ;;  %8631 = vst [vmem:[%s12005_s4 + $0xa8] sm:$0xff] (!%p9295_p4), %v17012_v59 }
 0xfad   : > { %8564 = vst [vmem:[#allocation2 + $0xb0] sm:$0xff] %v17019_v42  ;;  %8565 = vst [vmem:[#allocation2 + $0xb8] sm:$0xff] %v17022_v50  ;;  %v8352_v19 = vmul.f32 %v10851_v39, %v16661_v25  ;;  %v8353_v54 = vmul.f32 %v10851_v39, %v16664_v29  ;;  %v8186_v31 = vpop.xlane.xlu0 %8185 }
 0xfae   : > { %v10853_v33 = vpop.eup %10852  ;;  %v8248_v23 = vmul.f32 0.00390625, %v8186_v31  ;;  %8632 = vst [vmem:[%s12005_s4 + $0xb0] sm:$0xff] (!%p9295_p4), %v17019_v42  ;;  %8633 = vst [vmem:[%s12005_s4 + $0xb8] sm:$0xff] (!%p9295_p4), %v17022_v50 }
 0xfaf   : > { %v8427_v53 = vmul.f32 %v16871_v16, %v8352_v19  ;;  %v8428_v38 = vmul.f32 %v16874_v2, %v8353_v54  ;;  %v8354_v6 = vmul.f32 %v10853_v33, %v16671_v44  ;;  %v8355_v0 = vmul.f32 %v10853_v33, %v16674_v51  ;;  %v8189_v56 = vpop.xlane.xlu1 %8188 }
 0xfb0   : > { %v8280_v30 = vadd.f32 1e-05, %v8248_v23  ;;  %v8249_v62 = vmul.f32 0.00390625, %v8189_v56 }
 0xfb1   : > { %v17033_v15 = vadd.f32 %v16877_v5, %v8427_v53  ;;  %v17036_v25 = vadd.f32 %v16880_v8, %v8428_v38  ;;  %v8429_v29 = vmul.f32 %v16871_v16, %v8354_v6  ;;  %v8430_v24 = vmul.f32 %v16874_v2, %v8355_v0 }
 0xfb2   : > { %10858 = vrsqrt.f32 %v8280_v30  ;;  %v8281_v39 = vadd.f32 1e-05, %v8249_v62 }
 0xfb3   : > { %8566 = vst [vmem:[#allocation2 + $0xc0] sm:$0xff] %v17033_v15  ;;  %8567 = vst [vmem:[#allocation2 + $0xc8] sm:$0xff] %v17036_v25  ;;  %v17043_v44 = vadd.f32 %v16877_v5, %v8429_v29  ;;  %v17046_v51 = vadd.f32 %v16880_v8, %v8430_v24 }
 0xfb4   : > { %v10855_v19 = vpop.eup %10854  ;;  %10860 = vrsqrt.f32 %v8281_v39  ;;  %8634 = vst [vmem:[%s12005_s4 + $0xc0] sm:$0xff] (!%p9295_p4), %v17033_v15  ;;  %8635 = vst [vmem:[%s12005_s4 + $0xc8] sm:$0xff] (!%p9295_p4), %v17036_v25 }
 0xfb5   : > { %8568 = vst [vmem:[#allocation2 + $0xd0] sm:$0xff] %v17043_v44  ;;  %8569 = vst [vmem:[#allocation2 + $0xd8] sm:$0xff] %v17046_v51  ;;  %v8356_v54 = vmul.f32 %v10855_v19, %v16681_v34  ;;  %v8357_v31 = vmul.f32 %v10855_v19, %v16684_v1  ;;  %v8192_v33 = vpop.xlane.xlu0 %8191 }
 0xfb6   : > { %v10857_v23 = vpop.eup %10856  ;;  %v8250_v53 = vmul.f32 0.00390625, %v8192_v33  ;;  %8636 = vst [vmem:[%s12005_s4 + $0xd0] sm:$0xff] (!%p9295_p4), %v17043_v44  ;;  %8637 = vst [vmem:[%s12005_s4 + $0xd8] sm:$0xff] (!%p9295_p4), %v17046_v51 }
 0xfb7   : > { %v8431_v38 = vmul.f32 %v16871_v16, %v8356_v54  ;;  %v8432_v6 = vmul.f32 %v16874_v2, %v8357_v31  ;;  %v8358_v0 = vmul.f32 %v10857_v23, %v16691_v35  ;;  %v8359_v56 = vmul.f32 %v10857_v23, %v16694_v13  ;;  %v8195_v30 = vpop.xlane.xlu1 %8194 }
 0xfb8   : > { %v8282_v62 = vadd.f32 1e-05, %v8250_v53  ;;  %v8251_v29 = vmul.f32 0.00390625, %v8195_v30 }
 0xfb9   : > { %v17057_v24 = vadd.f32 %v16877_v5, %v8431_v38  ;;  %v17060_v34 = vadd.f32 %v16880_v8, %v8432_v6  ;;  %v8433_v1 = vmul.f32 %v16871_v16, %v8358_v0  ;;  %v8434_v39 = vmul.f32 %v16874_v2, %v8359_v56 }
 0xfba   : > { %10862 = vrsqrt.f32 %v8282_v62  ;;  %v8283_v19 = vadd.f32 1e-05, %v8251_v29 }
 0xfbb   : > { %8570 = vst [vmem:[#allocation2 + $0xe0] sm:$0xff] %v17057_v24  ;;  %8571 = vst [vmem:[#allocation2 + $0xe8] sm:$0xff] %v17060_v34  ;;  %v17067_v35 = vadd.f32 %v16877_v5, %v8433_v1  ;;  %v17070_v13 = vadd.f32 %v16880_v8, %v8434_v39 }
 0xfbc   : > { %v10859_v54 = vpop.eup %10858  ;;  %10864 = vrsqrt.f32 %v8283_v19  ;;  %8638 = vst [vmem:[%s12005_s4 + $0xe0] sm:$0xff] (!%p9295_p4), %v17057_v24  ;;  %8639 = vst [vmem:[%s12005_s4 + $0xe8] sm:$0xff] (!%p9295_p4), %v17060_v34 }
 0xfbd   : > { %8572 = vst [vmem:[#allocation2 + $0xf0] sm:$0xff] %v17067_v35  ;;  %8573 = vst [vmem:[#allocation2 + $0xf8] sm:$0xff] %v17070_v13  ;;  %v8360_v31 = vmul.f32 %v10859_v54, %v16701_v21  ;;  %v8361_v33 = vmul.f32 %v10859_v54, %v16704_v43  ;;  %v8198_v23 = vpop.xlane.xlu0 %8197 }
 0xfbe   : > { %v10861_v53 = vpop.eup %10860  ;;  %v8252_v38 = vmul.f32 0.00390625, %v8198_v23  ;;  %8640 = vst [vmem:[%s12005_s4 + $0xf0] sm:$0xff] (!%p9295_p4), %v17067_v35  ;;  %8641 = vst [vmem:[%s12005_s4 + $0xf8] sm:$0xff] (!%p9295_p4), %v17070_v13 }
 0xfbf   : > { %v8435_v6 = vmul.f32 %v16871_v16, %v8360_v31  ;;  %v8436_v0 = vmul.f32 %v16874_v2, %v8361_v33  ;;  %v8362_v56 = vmul.f32 %v10861_v53, %v16711_v18  ;;  %v8363_v30 = vmul.f32 %v10861_v53, %v16714_v63  ;;  %v8201_v62 = vpop.xlane.xlu1 %8200 }
 0xfc0   : > { %v8284_v29 = vadd.f32 1e-05, %v8252_v38  ;;  %v8253_v1 = vmul.f32 0.00390625, %v8201_v62 }
 0xfc1   : > { %v17081_v39 = vadd.f32 %v16877_v5, %v8435_v6  ;;  %v17084_v21 = vadd.f32 %v16880_v8, %v8436_v0  ;;  %v8437_v43 = vmul.f32 %v16871_v16, %v8362_v56  ;;  %v8438_v19 = vmul.f32 %v16874_v2, %v8363_v30 }
 0xfc2   : > { %10866 = vrsqrt.f32 %v8284_v29  ;;  %v8285_v54 = vadd.f32 1e-05, %v8253_v1 }
 0xfc3   : > { %8574 = vst [vmem:[#allocation2 + $0x100] sm:$0xff] %v17081_v39  ;;  %8575 = vst [vmem:[#allocation2 + $0x108] sm:$0xff] %v17084_v21  ;;  %v17091_v18 = vadd.f32 %v16877_v5, %v8437_v43  ;;  %v17094_v63 = vadd.f32 %v16880_v8, %v8438_v19 }
 0xfc4   : > { %v10863_v31 = vpop.eup %10862  ;;  %10868 = vrsqrt.f32 %v8285_v54  ;;  %8642 = vst [vmem:[%s12005_s4 + $0x100] sm:$0xff] (!%p9295_p4), %v17081_v39  ;;  %8643 = vst [vmem:[%s12005_s4 + $0x108] sm:$0xff] (!%p9295_p4), %v17084_v21 }
 0xfc5   : > { %8576 = vst [vmem:[#allocation2 + $0x110] sm:$0xff] %v17091_v18  ;;  %8577 = vst [vmem:[#allocation2 + $0x118] sm:$0xff] %v17094_v63  ;;  %v8364_v33 = vmul.f32 %v10863_v31, %v16721_v47  ;;  %v8365_v23 = vmul.f32 %v10863_v31, %v16724_v41  ;;  %v8204_v53 = vpop.xlane.xlu0 %8203 }
 0xfc6   : > { %v10865_v38 = vpop.eup %10864  ;;  %v8254_v6 = vmul.f32 0.00390625, %v8204_v53  ;;  %8644 = vst [vmem:[%s12005_s4 + $0x110] sm:$0xff] (!%p9295_p4), %v17091_v18  ;;  %8645 = vst [vmem:[%s12005_s4 + $0x118] sm:$0xff] (!%p9295_p4), %v17094_v63 }
 0xfc7   : > { %v8439_v0 = vmul.f32 %v16871_v16, %v8364_v33  ;;  %v8440_v56 = vmul.f32 %v16874_v2, %v8365_v23  ;;  %v8366_v30 = vmul.f32 %v10865_v38, %v16731_v48  ;;  %v8367_v62 = vmul.f32 %v10865_v38, %v16734_v61 }
 0xfc8   : > { %v8207_v29 = vpop.xlane.xlu1 %8206  ;;  %v8286_v1 = vadd.f32 1e-05, %v8254_v6 }
 0xfc9   : > { %v8255_v43 = vmul.f32 0.00390625, %v8207_v29  ;;  %v17105_v19 = vadd.f32 %v16877_v5, %v8439_v0  ;;  %v17108_v47 = vadd.f32 %v16880_v8, %v8440_v56  ;;  %v8441_v41 = vmul.f32 %v16871_v16, %v8366_v30  ;;  %v18403_v29 = vld [vmem:[#allocation81_spill] sm:$0xff] }
 0xfca   : > { %v8442_v54 = vmul.f32 %v16874_v2, %v8367_v62  ;;  %10870 = vrsqrt.f32 %v8286_v1 }
 0xfcb   : > { %v8287_v31 = vadd.f32 1e-05, %v8255_v43  ;;  %8578 = vst [vmem:[#allocation2 + $0x120] sm:$0xff] %v17105_v19  ;;  %8579 = vst [vmem:[#allocation2 + $0x128] sm:$0xff] %v17108_v47  ;;  %v17115_v48 = vadd.f32 %v16877_v5, %v8441_v41 }
 0xfcc   : > { %v17118_v61 = vadd.f32 %v16880_v8, %v8442_v54  ;;  %v10867_v33 = vpop.eup %10866  ;;  %8646 = vst [vmem:[%s12005_s4 + $0x120] sm:$0xff] (!%p9295_p4), %v17105_v19  ;;  %8647 = vst [vmem:[%s12005_s4 + $0x128] sm:$0xff] (!%p9295_p4), %v17108_v47 }
 0xfcd   : > { %10872 = vrsqrt.f32 %v8287_v31  ;;  %8580 = vst [vmem:[#allocation2 + $0x130] sm:$0xff] %v17115_v48  ;;  %v8368_v23 = vmul.f32 %v10867_v33, %v16741_v52  ;;  %v8369_v53 = vmul.f32 %v10867_v33, %v16744_v14  ;;  %v8210_v38 = vpop.xlane.xlu0 %8209  ;;  %8648 = vst [vmem:[%s12005_s4 + $0x130] sm:$0xff] (!%p9295_p4), %v17115_v48 }
 0xfce   : > { %8581 = vst [vmem:[#allocation2 + $0x138] sm:$0xff] %v17118_v61  ;;  %v10869_v6 = vpop.eup %10868  ;;  %v8256_v0 = vmul.f32 0.00390625, %v8210_v38  ;;  %8649 = vst [vmem:[%s12005_s4 + $0x138] sm:$0xff] (!%p9295_p4), %v17118_v61 }
 0xfcf   : > { %v8443_v56 = vmul.f32 %v16871_v16, %v8368_v23  ;;  %v8444_v30 = vmul.f32 %v16874_v2, %v8369_v53  ;;  %v8370_v62 = vmul.f32 %v10869_v6, %v16751_v58  ;;  %v8371_v1 = vmul.f32 %v10869_v6, %v18403_v29  ;;  %v18408_v6 = vld [vmem:[#allocation93_spill] sm:$0xff] }
 0xfd0   : > { %v8213_v43 = vpop.xlane.xlu1 %8212  ;;  %v8288_v41 = vadd.f32 1e-05, %v8256_v0 }
 0xfd1   : > { %v8257_v54 = vmul.f32 0.00390625, %v8213_v43  ;;  %v17129_v31 = vadd.f32 %v16877_v5, %v8443_v56  ;;  %v17132_v52 = vadd.f32 %v16880_v8, %v8444_v30  ;;  %v8445_v14 = vmul.f32 %v16871_v16, %v8370_v62  ;;  %v18409_v56 = vld [vmem:[#allocation124_spill] sm:$0xff] }
 0xfd2   : > { %v8446_v33 = vmul.f32 %v16874_v2, %v8371_v1  ;;  %10874 = vrsqrt.f32 %v8288_v41 }
 0xfd3   : > { %18404 = vst [vmem:[#allocation115_spill] sm:$0xff] %v17129_v31  ;;  %18405 = vst [vmem:[#allocation98_spill] sm:$0xff] %v17132_v52  ;;  %v8289_v23 = vadd.f32 1e-05, %v8257_v54  ;;  %v17139_v58 = vadd.f32 %v16877_v5, %v8445_v14  ;;  %v18410_v54 = vld [vmem:[#allocation80_spill] sm:$0xff] }
 0xfd4   : > { %8582 = vst [vmem:[#allocation2 + $0x140] sm:$0xff] %v17129_v31  ;;  %8583 = vst [vmem:[#allocation2 + $0x148] sm:$0xff] %v17132_v52  ;;  %v17142_v53 = vadd.f32 %v16880_v8, %v8446_v33  ;;  %v10871_v38 = vpop.eup %10870  ;;  %v18411_v33 = vld [vmem:[#allocation77_spill] sm:$0xff] }
 0xfd5   : > { %18406 = vst [vmem:[#allocation107_spill] sm:$0xff] %v17139_v58  ;;  %10876 = vrsqrt.f32 %v8289_v23  ;;  %8584 = vst [vmem:[#allocation2 + $0x150] sm:$0xff] %v17139_v58  ;;  %v8372_v0 = vmul.f32 %v10871_v38, %v18408_v6  ;;  %v8373_v30 = vmul.f32 %v10871_v38, %v18409_v56  ;;  %v8216_v62 = vpop.xlane.xlu0 %8215 }
 0xfd6   : > { %18407 = vst [vmem:[#allocation94_spill] sm:$0xff] %v17142_v53  ;;  %8585 = vst [vmem:[#allocation2 + $0x158] sm:$0xff] %v17142_v53  ;;  %v8258_v1 = vmul.f32 0.00390625, %v8216_v62 }
 0xfd7   : > { %v10873_v29 = vpop.eup %10872  ;;  %v8447_v43 = vmul.f32 %v16871_v16, %v8372_v0  ;;  %v8448_v41 = vmul.f32 %v16874_v2, %v8373_v30 }
 0xfd8   : > { %v8374_v14 = vmul.f32 %v10873_v29, %v18410_v54  ;;  %v8375_v52 = vmul.f32 %v10873_v29, %v18411_v33  ;;  %v8219_v23 = vpop.xlane.xlu1 %8218  ;;  %v8290_v31 = vadd.f32 1e-05, %v8258_v1  ;;  %v18416_v1 = vld [vmem:[#allocation79_spill] sm:$0xff] }
 0xfd9   : > { %v8259_v58 = vmul.f32 0.00390625, %v8219_v23  ;;  %v17153_v53 = vadd.f32 %v16877_v5, %v8447_v43  ;;  %v17156_v6 = vadd.f32 %v16880_v8, %v8448_v41  ;;  %v18418_v23 = vld [vmem:[#allocation82_spill] sm:$0xff] }
 0xfda   : > { %v8449_v38 = vmul.f32 %v16871_v16, %v8374_v14  ;;  %v8450_v56 = vmul.f32 %v16874_v2, %v8375_v52  ;;  %10878 = vrsqrt.f32 %v8290_v31  ;;  %v18417_v31 = vld [vmem:[#allocation76_spill] sm:$0xff] }
 0xfdb   : > { %18412 = vst [vmem:[#allocation102_spill] sm:$0xff] %v17153_v53  ;;  %18413 = vst [vmem:[#allocation105_spill] sm:$0xff] %v17156_v6  ;;  %v8291_v0 = vadd.f32 1e-05, %v8259_v58 }
 0xfdc   : > { %8586 = vst [vmem:[#allocation2 + $0x160] sm:$0xff] %v17153_v53  ;;  %8587 = vst [vmem:[#allocation2 + $0x168] sm:$0xff] %v17156_v6  ;;  %v17163_v30 = vadd.f32 %v16877_v5, %v8449_v38  ;;  %v17166_v62 = vadd.f32 %v16880_v8, %v8450_v56  ;;  %v10875_v29 = vpop.eup %10874  ;;  %v18419_v56 = vld [vmem:[#allocation89_spill] sm:$0xff] }
 0xfdd   : > { %10880 = vrsqrt.f32 %v8291_v0  ;;  %v8376_v52 = vmul.f32 %v10875_v29, %v18416_v1  ;;  %v8377_v58 = vmul.f32 %v10875_v29, %v18417_v31  ;;  %v8222_v43 = vpop.xlane.xlu0 %8221 }
 0xfde   : > { %18414 = vst [vmem:[#allocation101_spill] sm:$0xff] %v17163_v30  ;;  %18415 = vst [vmem:[#allocation97_spill] sm:$0xff] %v17166_v62  ;;  %v8260_v54 = vmul.f32 0.00390625, %v8222_v43 }
 0xfdf   : > { %8588 = vst [vmem:[#allocation2 + $0x170] sm:$0xff] %v17163_v30  ;;  %8589 = vst [vmem:[#allocation2 + $0x178] sm:$0xff] %v17166_v62  ;;  %v10877_v41 = vpop.eup %10876  ;;  %v8451_v14 = vmul.f32 %v16871_v16, %v8376_v52  ;;  %v8452_v33 = vmul.f32 %v16874_v2, %v8377_v58  ;;  %v8225_v0 = vpop.xlane.xlu1 %8224 }
 0xfe0   : > { %v8378_v38 = vmul.f32 %v10877_v41, %v18418_v23  ;;  %v8379_v6 = vmul.f32 %v10877_v41, %v18419_v56  ;;  %v8292_v53 = vadd.f32 1e-05, %v8260_v54  ;;  %v8261_v30 = vmul.f32 0.00390625, %v8225_v0  ;;  %v18423_v54 = vld [vmem:[#allocation103_spill] sm:$0xff] }
 0xfe1   : > { %v17177_v62 = vadd.f32 %v16877_v5, %v8451_v14  ;;  %v17180_v1 = vadd.f32 %v16880_v8, %v8452_v33 }
 0xfe2   : > { %v8453_v29 = vmul.f32 %v16871_v16, %v8378_v38  ;;  %v8454_v31 = vmul.f32 %v16874_v2, %v8379_v6  ;;  %10882 = vrsqrt.f32 %v8292_v53  ;;  %v8293_v52 = vadd.f32 1e-05, %v8261_v30  ;;  %v18424_v53 = vld [vmem:[#allocation85_spill] sm:$0xff]  ;;  %v18442_v57 = vld [vmem:[#allocation102_spill] sm:$0xff] (!%p9295_p4) }
 0xfe3   : > { %18420 = vst [vmem:[#allocation108_spill] sm:$0xff] %v17180_v1  ;;  %8590 = vst [vmem:[#allocation2 + $0x180] sm:$0xff] %v17177_v62  ;;  %v18443_v55 = vld [vmem:[#allocation105_spill] sm:$0xff] (!%p9295_p4) }
 0xfe4   : > { %8591 = vst [vmem:[#allocation2 + $0x188] sm:$0xff] %v17180_v1  ;;  %v17187_v58 = vadd.f32 %v16877_v5, %v8453_v29  ;;  %v17190_v43 = vadd.f32 %v16880_v8, %v8454_v31  ;;  %v10879_v41 = vpop.eup %10878  ;;  %10884 = vrsqrt.f32 %v8293_v52  ;;  %v18425_v29 = vld [vmem:[#allocation86_spill] sm:$0xff]  ;;  %8654 = vst [vmem:[%s12005_s4 + $0x160] sm:$0xff] (!%p9295_p4), %v18442_v57 }
 0xfe5   : > { %v8380_v6 = vmul.f32 %v10879_v41, %v18423_v54  ;;  %v8381_v30 = vmul.f32 %v10879_v41, %v18424_v53  ;;  %v8228_v14 = vpop.xlane.xlu0 %8227  ;;  %8655 = vst [vmem:[%s12005_s4 + $0x168] sm:$0xff] (!%p9295_p4), %v18443_v55  ;;  %v18444_v12 = vld [vmem:[#allocation101_spill] sm:$0xff] (!%p9295_p4)  ;;  %8658 = vst [vmem:[%s12005_s4 + $0x180] sm:$0xff] (!%p9295_p4), %v17177_v62 }
 0xfe6   : > { %18421 = vst [vmem:[#allocation111_spill] sm:$0xff] %v17187_v58  ;;  %18422 = vst [vmem:[#allocation104_spill] sm:$0xff] %v17190_v43  ;;  %v8262_v23 = vmul.f32 0.00390625, %v8228_v14  ;;  %v18445_v4 = vld [vmem:[#allocation97_spill] sm:$0xff] (!%p9295_p4) }
 0xfe7   : > { %8592 = vst [vmem:[#allocation2 + $0x190] sm:$0xff] %v17187_v58  ;;  %8593 = vst [vmem:[#allocation2 + $0x198] sm:$0xff] %v17190_v43  ;;  %v10881_v33 = vpop.eup %10880  ;;  %v8455_v38 = vmul.f32 %v16871_v16, %v8380_v6  ;;  %v8456_v56 = vmul.f32 %v16874_v2, %v8381_v30 }
 0xfe8   : > { %v8382_v0 = vmul.f32 %v10881_v33, %v16811_v22  ;;  %v8383_v31 = vmul.f32 %v10881_v33, %v18425_v29  ;;  %v8231_v52 = vpop.xlane.xlu1 %8230  ;;  %v8294_v1 = vadd.f32 1e-05, %v8262_v23  ;;  %8656 = vst [vmem:[%s12005_s4 + $0x170] sm:$0xff] (!%p9295_p4), %v18444_v12  ;;  %8657 = vst [vmem:[%s12005_s4 + $0x178] sm:$0xff] (!%p9295_p4), %v18445_v4 }
 0xfe9   : > { %v8263_v58 = vmul.f32 0.00390625, %v8231_v52  ;;  %v17201_v43 = vadd.f32 %v16877_v5, %v8455_v38  ;;  %v17204_v54 = vadd.f32 %v16880_v8, %v8456_v56 }
 0xfea   : > { %v8457_v41 = vmul.f32 %v16871_v16, %v8382_v0  ;;  %v8458_v53 = vmul.f32 %v16874_v2, %v8383_v31  ;;  %10886 = vrsqrt.f32 %v8294_v1  ;;  %v18426_v1 = vld [vmem:[#allocation92_spill] sm:$0xff]  ;;  %v18428_v31 = vld [vmem:[#allocation106_spill] sm:$0xff] }
 0xfeb   : > { %v8295_v6 = vadd.f32 1e-05, %v8263_v58  ;;  %8594 = vst [vmem:[#allocation2 + $0x1a0] sm:$0xff] %v17201_v43  ;;  %8595 = vst [vmem:[#allocation2 + $0x1a8] sm:$0xff] %v17204_v54  ;;  %v18427_v0 = vld [vmem:[#allocation88_spill] sm:$0xff] }
 0xfec   : > { %v17211_v22 = vadd.f32 %v16877_v5, %v8457_v41  ;;  %v17214_v30 = vadd.f32 %v16880_v8, %v8458_v53  ;;  %v10883_v14 = vpop.eup %10882  ;;  %v18446_v7 = vld [vmem:[#allocation108_spill] sm:$0xff] (!%p9295_p4)  ;;  %8662 = vst [vmem:[%s12005_s4 + $0x1a0] sm:$0xff] (!%p9295_p4), %v17201_v43  ;;  %8663 = vst [vmem:[%s12005_s4 + $0x1a8] sm:$0xff] (!%p9295_p4), %v17204_v54 }
 0xfed   : > { %10888 = vrsqrt.f32 %v8295_v6  ;;  %v8384_v33 = vmul.f32 %v10883_v14, %v16821_v11  ;;  %v8385_v58 = vmul.f32 %v10883_v14, %v18426_v1  ;;  %8659 = vst [vmem:[%s12005_s4 + $0x188] sm:$0xff] (!%p9295_p4), %v18446_v7  ;;  %v18447_v40 = vld [vmem:[#allocation111_spill] sm:$0xff] (!%p9295_p4)  ;;  %v18448_v32 = vld [vmem:[#allocation104_spill] sm:$0xff] (!%p9295_p4) }
 0xfee   : > { %8596 = vst [vmem:[#allocation2 + $0x1b0] sm:$0xff] %v17211_v22  ;;  %8597 = vst [vmem:[#allocation2 + $0x1b8] sm:$0xff] %v17214_v30  ;;  %v10885_v23 = vpop.eup %10884 }
 0xfef   : > { %v8459_v38 = vmul.f32 %v16871_v16, %v8384_v33  ;;  %v8460_v56 = vmul.f32 %v16874_v2, %v8385_v58  ;;  %v8386_v29 = vmul.f32 %v10885_v23, %v18427_v0  ;;  %v8387_v52 = vmul.f32 %v10885_v23, %v18428_v31  ;;  %v18433_v58 = vld [vmem:[#allocation112_spill] sm:$0xff]  ;;  %8660 = vst [vmem:[%s12005_s4 + $0x190] sm:$0xff] (!%p9295_p4), %v18447_v40 }
 0xff0   : > { %8661 = vst [vmem:[%s12005_s4 + $0x198] sm:$0xff] (!%p9295_p4), %v18448_v32  ;;  %8664 = vst [vmem:[%s12005_s4 + $0x1b0] sm:$0xff] (!%p9295_p4), %v17211_v22 }
 0xff1   : > { %v17225_v41 = vadd.f32 %v16877_v5, %v8459_v38  ;;  %v17228_v53 = vadd.f32 %v16880_v8, %v8460_v56  ;;  %v8461_v6 = vmul.f32 %v16871_v16, %v8386_v29  ;;  %v8462_v11 = vmul.f32 %v16874_v2, %v8387_v52  ;;  %v18434_v38 = vld [vmem:[#allocation91_spill] sm:$0xff]  ;;  %8665 = vst [vmem:[%s12005_s4 + $0x1b8] sm:$0xff] (!%p9295_p4), %v17214_v30 }
 0xff2   : > { %v18435_v52 = vld [vmem:[#allocation95_spill] sm:$0xff] }
 0xff3   : > { %18429 = vst [vmem:[#allocation120_spill] sm:$0xff] %v17225_v41  ;;  %18430 = vst [vmem:[#allocation114_spill] sm:$0xff] %v17228_v53  ;;  %v17235_v14 = vadd.f32 %v16877_v5, %v8461_v6  ;;  %v17238_v33 = vadd.f32 %v16880_v8, %v8462_v11 }
 0xff4   : > { %8598 = vst [vmem:[#allocation2 + $0x1c0] sm:$0xff] %v17225_v41  ;;  %8599 = vst [vmem:[#allocation2 + $0x1c8] sm:$0xff] %v17228_v53  ;;  %v10887_v1 = vpop.eup %10886  ;;  %v18436_v53 = vld [vmem:[#allocation109_spill] sm:$0xff] }
 0xff5   : > { %18431 = vst [vmem:[#allocation110_spill] sm:$0xff] %v17235_v14  ;;  %18432 = vst [vmem:[#allocation113_spill] sm:$0xff] %v17238_v33  ;;  %v8388_v23 = vmul.f32 %v10887_v1, %v18433_v58  ;;  %v8389_v56 = vmul.f32 %v10887_v1, %v18434_v38 }
 0xff6   : > { %8600 = vst [vmem:[#allocation2 + $0x1d0] sm:$0xff] %v17235_v14  ;;  %8601 = vst [vmem:[#allocation2 + $0x1d8] sm:$0xff] %v17238_v33 }
 0xff7   : > { %v10889_v0 = vpop.eup %10888  ;;  %v8463_v29 = vmul.f32 %v16871_v16, %v8388_v23  ;;  %v8464_v31 = vmul.f32 %v16874_v2, %v8389_v56 }
 0xff8   : > { %v8390_v6 = vmul.f32 %v10889_v0, %v18435_v52  ;;  %v8391_v41 = vmul.f32 %v10889_v0, %v18436_v53  ;;  %8609 = sbr.rel (%p9295_p4) target bundleno = 4099 (0x1003), region = 132 }
 0xff9   : > { %v17249_v11 = vadd.f32 %v16877_v5, %v8463_v29  ;;  %v17252_v14 = vadd.f32 %v16880_v8, %v8464_v31 }
 0xffa   : > { %v8465_v33 = vmul.f32 %v16871_v16, %v8390_v6  ;;  %v8466_v58 = vmul.f32 %v16874_v2, %v8391_v41  ;;  %v18438_v16 = vld [vmem:[#allocation115_spill] sm:$0xff] (!%p9295_p4)  ;;  %v18439_v2 = vld [vmem:[#allocation98_spill] sm:$0xff] (!%p9295_p4)  ;;  %v18449_v9 = vld [vmem:[#allocation120_spill] sm:$0xff] (!%p9295_p4) }
 0xffb   : > { %8602 = vst [vmem:[#allocation2 + $0x1e0] sm:$0xff] %v17249_v11  ;;  %8603 = vst [vmem:[#allocation2 + $0x1e8] sm:$0xff] %v17252_v14  ;;  %v18450_v27 = vld [vmem:[#allocation114_spill] sm:$0xff] (!%p9295_p4) }
 0xffc   : > { %v17259_v1 = vadd.f32 %v16877_v5, %v8465_v33  ;;  %v17262_v23 = vadd.f32 %v16880_v8, %v8466_v58  ;;  %8650 = vst [vmem:[%s12005_s4 + $0x140] sm:$0xff] (!%p9295_p4), %v18438_v16  ;;  %8651 = vst [vmem:[%s12005_s4 + $0x148] sm:$0xff] (!%p9295_p4), %v18439_v2  ;;  %v18440_v5 = vld [vmem:[#allocation107_spill] sm:$0xff] (!%p9295_p4)  ;;  %v18441_v8 = vld [vmem:[#allocation94_spill] sm:$0xff] (!%p9295_p4) }
 0xffd   : > { %8652 = vst [vmem:[%s12005_s4 + $0x150] sm:$0xff] (!%p9295_p4), %v18440_v5  ;;  %8653 = vst [vmem:[%s12005_s4 + $0x158] sm:$0xff] (!%p9295_p4), %v18441_v8  ;;  %v18451_v3 = vld [vmem:[#allocation110_spill] sm:$0xff] (!%p9295_p4)  ;;  %v18452_v10 = vld [vmem:[#allocation113_spill] sm:$0xff] (!%p9295_p4) }
 0xffe   : > { %8604 = vst [vmem:[#allocation2 + $0x1f0] sm:$0xff] %v17259_v1  ;;  %8605 = vst [vmem:[#allocation2 + $0x1f8] sm:$0xff] %v17262_v23 }
 0xfff   : > { %8666 = vst [vmem:[%s12005_s4 + $0x1c0] sm:$0xff] %v18449_v9  ;;  %8667 = vst [vmem:[%s12005_s4 + $0x1c8] sm:$0xff] %v18450_v27 }
0x1000   : > { %8668 = vst [vmem:[%s12005_s4 + $0x1d0] sm:$0xff] %v18451_v3  ;;  %8669 = vst [vmem:[%s12005_s4 + $0x1d8] sm:$0xff] %v18452_v10 }
0x1001   : > { %8670 = vst [vmem:[%s12005_s4 + $0x1e0] sm:$0xff] %v17249_v11  ;;  %8671 = vst [vmem:[%s12005_s4 + $0x1e8] sm:$0xff] %v17252_v14 }
0x1002   : > { %8672 = vst [vmem:[%s12005_s4 + $0x1f0] sm:$0xff] %v17259_v1  ;;  %8673 = vst [vmem:[%s12005_s4 + $0x1f8] sm:$0xff] %v17262_v23 }
0x1003 PF: > { %s18453_s26 = sld [smem:[#allocation29_spill]]  ;;  %s18454_s11 = sld [smem:[#allocation37_spill]] }
0x1004   : > { %s18455_s10 = sld [smem:[#allocation142_spill]]  ;;  %s8689_s8 = sshll.u32 %s12005_s4, 4  ;;  %s17402_s8 = int_to_ptr.vmem [resolvable:$true] %s8689_s8 }
0x1005   : > { %s18456_s18 = sand.u32 1, %s11336_s28   ;;  %s11218_s12 = scalar_lea.vmem %s17402_s8, 8192 }
0x1006   : > { %s17406_s7 = scalar_lea.sflag [#allocation5], %s18456_s18  ;;  %p11219_p7 = scmp.ne.s32.totalorder %s17402_s8, %s11218_s12 }
0x1007   : > { %s11379_s19 = smov [#allocation16]  }
0x1008   : > { %s11222_s1 = sshll.u32 %s11379_s19, 4  ;;  %s11223_s1 = int_to_ptr.vmem [resolvable:$false] %s11222_s1 }
0x1009   : > { %s9309_s14 = sshll.u32 %s18453_s26, 13  ;;  %p18457_p2 = scmp.ne.s32.totalorder %s18454_s11, 0 }
0x100a   : > { %s17399_s27 = scalar_lea.hbm %s18455_s10, %s9309_s14  ;;  %s11224_s2 = scalar_lea.vmem %s11223_s1, 16384 }
0x100b   : > { %p11220_p3 = pnand %p11219_p7, %p18457_p2  ;;  %p11225_p5 = scmp.lt.s32.totalorder %s17402_s8, %s11223_s1 }
0x100c   : > { %p11226_p8 = scmp.lt.s32.totalorder %s11224_s2, %s11218_s12 }
0x100d   : > { %p11221_p12 = pneg %p11220_p3 }
0x100e   : > { %p11227_p10 = por %p11226_p8, %p11225_p5 }
0x1010   : > { %p11228_p13 = pnand %p11227_p10, %p11221_p12 }
0x1012   : > { %11231 = shalt.err (!%p11228_p13)
}
0x1013   : > { %s11232_s4 = scalar_lea.hbm %s17399_s27, 8192  ;;  %s11236_s15 = scalar_lea.hbm %s18455_s10, 16384 }
0x1014   : > { %p11233_p6 = scmp.ne.s32.totalorder %s17399_s27, %s11232_s4  ;;  %p11237_p0 = scmp.lt.u32.totalorder %s17399_s27, %s18455_s10 }
0x1015   : > { %p11238_p1 = scmp.lt.u32.totalorder %s11236_s15, %s11232_s4  ;;  %p11240_p7 = scmp.lt.u32.totalorder %s11232_s4, %s17399_s27 }
0x1016   : > { %p11234_p9 = pnand %p11233_p6, %p18457_p2 }
0x1017   : > { %p11239_p4 = por %p11238_p1, %p11237_p0 }
0x1018   : > { %p11235_p11 = pneg %p11234_p9 }
0x1019   : > { %p11241_p3 = por %p11240_p7, %p11239_p4 }
0x101b   : > { %p11242_p12 = pnand %p11241_p3, %p11235_p11 }
0x101d   : > { %11245 = shalt.err (!%p11242_p12)
}
0x101e   : > { %s11380_s3 = smov 256   ;;  %s11381_s25 = smov 16  }
0x101f   : > { %9914 = dma.vmem_to_hbm [thread:$0]  (%p18457_p2), %s17402_s8, 8192, %s17399_s27, %s17406_s7, %s11380_s3, %s11380_s3, %s11381_s25  }
0x1020 PF: > { %s18458_s21 = sld [smem:[#allocation32_spill]]  ;;  %s18459_s9 = sld [smem:[#allocation26_spill]] }
0x1021   : > { %s18460_s5 = sld [smem:[#allocation38_spill]] }
0x1026   : > { %p9956_p5 = scmp.ge.s32.totalorder %s18458_s21, 2  ;;  %s8704_s22 = sand.u32 1, %s18459_s9  }
0x1027   : > { %p18461_p8 = scmp.ne.s32.totalorder %s18460_s5, 0  ;;  %s8705_s16 = scalar_lea.sflag [#allocation5], %s8704_s22 }
0x1029   : > { %p9946_p10 = pnand %p9956_p5, %p18461_p8 }
0x102b   : > { %11315 = dma.done.wait (!%p9946_p10), %s8705_s16, 8192  }
0x102c   : > { %11317 = vsyncadd (!%p9946_p10), %s8705_s16, 4294959104  ;;  %s35_s1 = sadd.s32 1, %s18458_s21   ;;  %s18462_s24 = sld [smem:[#allocation24_spill]] }
0x102d   : > { %p32_p13 = scmp.ge.s32.totalorder %s35_s1, 6   ;;  %s18463_s25 = sld [smem:[#allocation25_spill]] }
0x102e   : > { %s18464_s26 = sld [smem:[#allocation36_spill]]  ;;  %s18465_s29 = sld [smem:[#allocation27_spill]] }
0x102f   : > { %s18466_s20 = sld [smem:[#allocation35_spill]]  ;;  %s18467_s0 = sld [smem:[#allocation30_spill]] }
0x1030   : > { %s18468_s30 = sld [smem:[#allocation31_spill]]  ;;  %s18469_s18 = sld [smem:[#allocation33_spill]] }
0x1031   : > { %s18470_s19 = sld [smem:[#allocation34_spill]]  ;;  %s18471_s27 = smov %s11336_s28 }
0x1032   :  { %34 = sbr.rel (!%p32_p13) target bundleno = 30 (0x1e), region = 232 }
0x1034   : > { %s18472_s28 = smov %s18465_s29 }
0x1035   : > { %s18473_s29 = smov %s18466_s20 }
0x1039   :  { %8710 = vsyncpa [#allocation4], 1 }
0x103a   :  { %8712 = vsyncpa [#allocation4 + $0x1], 1 }
0x103b   :  { %8713 = vsyncpa [#allocation7], 1 }
0x103c   :  { %8714 = vsyncpa [#allocation11], 1 }
0x103d   :  { %8715 = vsyncpa [#allocation5], 1 }
0x103e   :  { %8717 = vsyncpa [#allocation5 + $0x1], 1 }

</bundles_post_ra>
